<compile_context>
chip_gen: v5e
topology: v5e:2x2
jax: 0.10.0
libtpu: 0.0.40
codegen_flags: <defaults>
</compile_context>

<pallas_src>
import jax
import jax.numpy as jnp
from jax.experimental import pallas as pl
from jax.experimental.pallas import tpu as pltpu


def _make_msfb_kernel(C, H, W):
    HW = H * W

    def kernel(x_ref,
               w1_ref, w3_ref, w5_ref, w7_ref, w11a_ref, w11b_ref,
               wm_ref, wm1_ref, wm2_ref, wl_ref,
               fw1_ref, fb1_ref, fw2_ref, fb2_ref,
               o_ref):
        # Resident input for this batch element, channels-major (C, HW).
        x = x_ref[...].astype(jnp.float32)

        # Row / column index of every flattened spatial position, shape (1, HW).
        lane = jax.lax.broadcasted_iota(jnp.int32, (1, HW), 1)
        if W & (W - 1) == 0:                                  # power-of-two fast path
            row = jnp.right_shift(lane, W.bit_length() - 1)
            col = jnp.bitwise_and(lane, W - 1)
        else:                                                 # generic fallback
            row = lane // W
            col = lane - (lane // W) * W

        def shifted(src, sh, sw):
            """src spatially shifted by (sh, sw) with zero padding; src: (Cin, HW)."""
            if sh == 0 and sw == 0:
                return src
            s = sh * W + sw
            # rolled[:, p] == src[:, (p + s) mod HW]
            rolled = pltpu.roll(src, (-s) % HW, axis=1)
            mask = ((row >= -sh) & (row < H - sh) &
                    (col >= -sw) & (col < W - sw))
            return jnp.where(mask, rolled, 0.0)

        def im2col(src, K):
            """(Cin, HW) -> (K*K*Cin, HW) patch matrix (tap-major row blocks)."""
            if K == 1:
                return src
            p = K // 2
            pieces = [shifted(src, dh - p, dw - p)
                      for dh in range(K) for dw in range(K)]
            return jnp.concatenate(pieces, axis=0)            # sublane-aligned concat

        def conv_in_lrelu(src, K, w_ref):
            """KxK conv (single MXU matmul) + InstanceNorm2d + LeakyReLU(0.2)."""
            patches = im2col(src, K)                          # (K*K*Cin, HW)
            # (Operands kept f32 for exact parity with the PyTorch reference;
            #  on v6e/v7x they could be cast to bf16 once MXU-bound.)
            acc = jnp.dot(w_ref[...], patches,
                          preferred_element_type=jnp.float32)  # (Cout, HW)
            mean = jnp.mean(acc, axis=1, keepdims=True)
            cen = acc - mean
            var = jnp.mean(cen * cen, axis=1, keepdims=True)   # biased variance
            y = cen * jax.lax.rsqrt(var + 1e-5)
            return jnp.where(y >= 0.0, y, 0.2 * y)             # LeakyReLU(0.2)

        # Multi-scale branch tree (torch.cat over channels == axis-0 concat).
        x_1 = conv_in_lrelu(x, 1, w1_ref)
        x_3 = conv_in_lrelu(x, 3, w3_ref)
        x_5 = conv_in_lrelu(x, 5, w5_ref)
        x_7 = conv_in_lrelu(x, 7, w7_ref)

        x_13 = conv_in_lrelu(jnp.concatenate([x_1, x_3], axis=0), 3, wm_ref)
        x_5b = conv_in_lrelu(x_5, 1, w11a_ref)
        x_135 = conv_in_lrelu(jnp.concatenate([x_13, x_5b], axis=0), 3, wm1_ref)
        x_7b = conv_in_lrelu(x_7, 1, w11b_ref)
        x_1357 = conv_in_lrelu(jnp.concatenate([x_135, x_7b], axis=0), 3, wm2_ref)

        y_mid = conv_in_lrelu(
            jnp.concatenate([x_1, x_13, x_135, x_1357], axis=0), 1, wl_ref)

        # Squeeze-excite tail: pools the block *input* x (exactly as the
        # PyTorch forward does), two tiny FCs, sigmoid, residual combine.
        pooled = jnp.mean(x, axis=1, keepdims=True)                     # (C, 1)
        h = jnp.dot(fw1_ref[...], pooled,
                    preferred_element_type=jnp.float32) + fb1_ref[...]  # (Cr, 1)
        h = jnp.maximum(h, 0.0)                                         # ReLU
        g = jnp.dot(fw2_ref[...], h,
                    preferred_element_type=jnp.float32) + fb2_ref[...]  # (C, 1)
        g = jax.nn.sigmoid(g)

        o_ref[...] = (x + y_mid * g).astype(o_ref.dtype)

    return kernel


def _w2d(w):
    """torch conv weight (Cout, Cin, K, K) -> (Cout, K*K*Cin), tap-major columns
    (matches the in-kernel im2col row order)."""
    co, ci, kh, kw = w.shape
    return jnp.transpose(w, (0, 2, 3, 1)).reshape(co, kh * kw * ci)


def msfb_forward(x_nchw, params):
    N, C, H, W = x_nchw.shape
    HW = H * W
    Cr = params["fc_w1"].shape[0]

    xr = x_nchw.reshape(N, C, HW)                    # NCHW flattened; no transpose needed
    conv_names = ("conv_1", "conv_3", "conv_5", "conv_7",
                  "conv_1_1", "conv_1_2",
                  "conv_mid", "conv_mid_1", "conv_mid_2", "conv_last")
    ws = [_w2d(params[k]) for k in conv_names]
    fw1 = params["fc_w1"]                            # (Cr, C)
    fb1 = params["fc_b1"].reshape(Cr, 1)
    fw2 = params["fc_w2"]                            # (C, Cr)
    fb2 = params["fc_b2"].reshape(C, 1)

    kernel = _make_msfb_kernel(C, H, W)

    def full_spec(a):
        return pl.BlockSpec(a.shape, lambda n: (0,) * a.ndim)

    in_specs = ([pl.BlockSpec((None, C, HW), lambda n: (n, 0, 0))]
                + [full_spec(w) for w in ws]
                + [full_spec(fw1), full_spec(fb1), full_spec(fw2), full_spec(fb2)])

    out = pl.pallas_call(
        kernel,
        out_shape=jax.ShapeDtypeStruct((N, C, HW), x_nchw.dtype),
        grid=(N,),
        in_specs=in_specs,
        out_specs=pl.BlockSpec((None, C, HW), lambda n: (n, 0, 0)),
        compiler_params=pltpu.CompilerParams(
            dimension_semantics=("parallel",),        # batch axis -> both TCs on v7x
            vmem_limit_bytes=32 * 1024 * 1024),       # raise v5e's 16 MiB default
    )(xr, *ws, fw1, fb1, fw2, fb2)
    return out.reshape(N, C, H, W)


def init_msfb_params(key, channel, reduction):
    """Deterministic synthetic parameters mirroring MSFB.__init__ (torch layouts)."""
    c = channel
    cr = max(channel // reduction, 1)
    keys = jax.random.split(key, 14)

    def conv_w(k, ksize, cin, cout, scale=0.1):
        # torch Conv2d weight layout: (Cout, Cin, K, K)
        return scale * jax.random.normal(k, (cout, cin, ksize, ksize), jnp.float32)

    return {
        "conv_1": conv_w(keys[0], 1, c, c),
        "conv_3": conv_w(keys[1], 3, c, c),
        "conv_5": conv_w(keys[2], 5, c, c),
        "conv_7": conv_w(keys[3], 7, c, c),
        "conv_1_1": conv_w(keys[4], 1, c, c),
        "conv_1_2": conv_w(keys[5], 1, c, c),
        "conv_mid": conv_w(keys[6], 3, 2 * c, c),
        "conv_mid_1": conv_w(keys[7], 3, 2 * c, c),
        "conv_mid_2": conv_w(keys[8], 3, 2 * c, c),
        "conv_last": conv_w(keys[9], 1, 4 * c, c),
        # NOTE: conv biases omitted on purpose -- a per-channel bias is exactly
        # cancelled by the following InstanceNorm2d(affine=False), so it is
        # dead work (numerically identical to the PyTorch module).
        "fc_w1": 0.1 * jax.random.normal(keys[10], (cr, c), jnp.float32),
        "fc_b1": 0.1 * jax.random.normal(keys[11], (cr,), jnp.float32),
        "fc_w2": 0.1 * jax.random.normal(keys[12], (c, cr), jnp.float32),
        "fc_b2": 0.1 * jax.random.normal(keys[13], (c,), jnp.float32),
    }


if __name__ == "__main__":
    key = jax.random.PRNGKey(0)
    channel, reduction = 16, 4          # channel // reduction = 4
    N, H, W = 2, 16, 16
    k_x, k_p = jax.random.split(key)
    x = jax.random.normal(k_x, (N, channel, H, W), jnp.float32)   # NCHW like PyTorch
    params = init_msfb_params(k_p, channel, reduction)

    fwd = jax.jit(msfb_forward)
    out = fwd(x, params)
    jax.block_until_ready(out)
    assert out.shape == x.shape and out.dtype == x.dtype
    assert bool(jnp.all(jnp.isfinite(out)))
    print("KERNEL_OK")
</pallas_src>

<mosaic_0001>
module attributes {stable_mosaic.version = 11 : i64} {
  func.func @kernel(%arg0: i32, %arg1: memref<1x16x256xf32, #tpu.memory_space<vmem>>, %arg2: memref<16x16xf32, #tpu.memory_space<vmem>>, %arg3: memref<16x144xf32, #tpu.memory_space<vmem>>, %arg4: memref<16x400xf32, #tpu.memory_space<vmem>>, %arg5: memref<16x784xf32, #tpu.memory_space<vmem>>, %arg6: memref<16x16xf32, #tpu.memory_space<vmem>>, %arg7: memref<16x16xf32, #tpu.memory_space<vmem>>, %arg8: memref<16x288xf32, #tpu.memory_space<vmem>>, %arg9: memref<16x288xf32, #tpu.memory_space<vmem>>, %arg10: memref<16x288xf32, #tpu.memory_space<vmem>>, %arg11: memref<16x64xf32, #tpu.memory_space<vmem>>, %arg12: memref<4x16xf32, #tpu.memory_space<vmem>>, %arg13: memref<4x1xf32, #tpu.memory_space<vmem>>, %arg14: memref<16x4xf32, #tpu.memory_space<vmem>>, %arg15: memref<16x1xf32, #tpu.memory_space<vmem>>, %arg16: memref<1x16x256xf32, #tpu.memory_space<vmem>>) attributes {dimension_semantics = [#tpu.dimension_semantics<parallel>], iteration_bounds = array<i64: 2>, scalar_prefetch = 0 : i64, scratch_operands = 0 : i64, tpu.core_type = #tpu.core_type<tc>, window_params = [{transform_indices = @transform_0, window_bounds = array<i64: 1, 16, 256>}, {pipeline_mode = #tpu.pipeline_mode<synchronous>, transform_indices = @transform_1, window_bounds = array<i64: 16, 16>}, {pipeline_mode = #tpu.pipeline_mode<synchronous>, transform_indices = @transform_2, window_bounds = array<i64: 16, 144>}, {pipeline_mode = #tpu.pipeline_mode<synchronous>, transform_indices = @transform_3, window_bounds = array<i64: 16, 400>}, {pipeline_mode = #tpu.pipeline_mode<synchronous>, transform_indices = @transform_4, window_bounds = array<i64: 16, 784>}, {pipeline_mode = #tpu.pipeline_mode<synchronous>, transform_indices = @transform_5, window_bounds = array<i64: 16, 16>}, {pipeline_mode = #tpu.pipeline_mode<synchronous>, transform_indices = @transform_6, window_bounds = array<i64: 16, 16>}, {pipeline_mode = #tpu.pipeline_mode<synchronous>, transform_indices = @transform_7, window_bounds = array<i64: 16, 288>}, {pipeline_mode = #tpu.pipeline_mode<synchronous>, transform_indices = @transform_8, window_bounds = array<i64: 16, 288>}, {pipeline_mode = #tpu.pipeline_mode<synchronous>, transform_indices = @transform_9, window_bounds = array<i64: 16, 288>}, {pipeline_mode = #tpu.pipeline_mode<synchronous>, transform_indices = @transform_10, window_bounds = array<i64: 16, 64>}, {pipeline_mode = #tpu.pipeline_mode<synchronous>, transform_indices = @transform_11, window_bounds = array<i64: 4, 16>}, {pipeline_mode = #tpu.pipeline_mode<synchronous>, transform_indices = @transform_12, window_bounds = array<i64: 4, 1>}, {pipeline_mode = #tpu.pipeline_mode<synchronous>, transform_indices = @transform_13, window_bounds = array<i64: 16, 4>}, {pipeline_mode = #tpu.pipeline_mode<synchronous>, transform_indices = @transform_14, window_bounds = array<i64: 16, 1>}, {transform_indices = @transform_15, window_bounds = array<i64: 1, 16, 256>}]} {
    %c0 = arith.constant 0 : index
    %c0_0 = arith.constant 0 : index
    %c0_1 = arith.constant 0 : index
    %0 = vector.load %arg1[%c0, %c0_0, %c0_1] : memref<1x16x256xf32, #tpu.memory_space<vmem>>, vector<1x16x256xf32>
    %1 = vector.shape_cast %0 : vector<1x16x256xf32> to vector<16x256xf32>
    %2 = tpu.iota {dimensions = array<i32: 1>} : vector<1x256xi32>
    %c4_i32 = arith.constant 4 : i32
    %3 = vector.broadcast %c4_i32 : i32 to vector<1x256xi32>
    %4 = arith.shrsi %2, %3 : vector<1x256xi32>
    %c15_i32 = arith.constant 15 : i32
    %5 = vector.broadcast %c15_i32 : i32 to vector<1x256xi32>
    %6 = arith.andi %2, %5 : vector<1x256xi32>
    %c0_2 = arith.constant 0 : index
    %c0_3 = arith.constant 0 : index
    %7 = vector.load %arg2[%c0_2, %c0_3] : memref<16x16xf32, #tpu.memory_space<vmem>>, vector<16x16xf32>
    %cst = arith.constant dense<0.000000e+00> : vector<16x256xf32>
    %8 = tpu.matmul %7, %1, %cst {dimension_numbers = #tpu.dot_dimension_numbers<[1], [0], [0], [1], [0, 0, 1, 1], [], []>} : vector<16x16xf32>, vector<16x256xf32>, vector<16x256xf32> -> vector<16x256xf32>
    %cst_4 = arith.constant dense<0.000000e+00> : vector<16xf32>
    %9 = vector.multi_reduction <add>, %8, %cst_4 [1] : vector<16x256xf32> to vector<16xf32>
    %10 = vector.shape_cast %9 : vector<16xf32> to vector<16x1xf32>
    %cst_5 = arith.constant 2.560000e+02 : f32
    %11 = vector.broadcast %cst_5 : f32 to vector<16x1xf32>
    %12 = arith.divf %10, %11 : vector<16x1xf32>
    %13 = vector.broadcast %12 : vector<16x1xf32> to vector<16x256xf32>
    %14 = arith.subf %8, %13 : vector<16x256xf32>
    %15 = arith.mulf %14, %14 : vector<16x256xf32>
    %cst_6 = arith.constant dense<0.000000e+00> : vector<16xf32>
    %16 = vector.multi_reduction <add>, %15, %cst_6 [1] : vector<16x256xf32> to vector<16xf32>
    %17 = vector.shape_cast %16 : vector<16xf32> to vector<16x1xf32>
    %cst_7 = arith.constant 2.560000e+02 : f32
    %18 = vector.broadcast %cst_7 : f32 to vector<16x1xf32>
    %19 = arith.divf %17, %18 : vector<16x1xf32>
    %cst_8 = arith.constant 9.99999974E-6 : f32
    %20 = vector.broadcast %cst_8 : f32 to vector<16x1xf32>
    %21 = arith.addf %19, %20 : vector<16x1xf32>
    %22 = math.rsqrt %21 : vector<16x1xf32>
    %23 = vector.broadcast %22 : vector<16x1xf32> to vector<16x256xf32>
    %24 = arith.mulf %14, %23 : vector<16x256xf32>
    %cst_9 = arith.constant 0.000000e+00 : f32
    %25 = vector.broadcast %cst_9 : f32 to vector<16x256xf32>
    %26 = arith.cmpf oge, %24, %25 : vector<16x256xf32>
    %cst_10 = arith.constant 2.000000e-01 : f32
    %27 = vector.broadcast %cst_10 : f32 to vector<16x256xf32>
    %28 = arith.mulf %27, %24 : vector<16x256xf32>
    %29 = arith.select %26, %24, %28 : vector<16x256xi1>, vector<16x256xf32>
    %c17_i32 = arith.constant 17 : i32
    %30 = tpu.dynamic_rotate %1 by %c17_i32 dim 1 : vector<16x256xf32>, i32 -> vector<16x256xf32>
    %c1_i32 = arith.constant 1 : i32
    %31 = vector.broadcast %c1_i32 : i32 to vector<1x256xi32>
    %32 = arith.cmpi sge, %4, %31 : vector<1x256xi32>
    %c17_i32_11 = arith.constant 17 : i32
    %33 = vector.broadcast %c17_i32_11 : i32 to vector<1x256xi32>
    %34 = arith.cmpi slt, %4, %33 : vector<1x256xi32>
    %35 = arith.andi %32, %34 : vector<1x256xi1>
    %c1_i32_12 = arith.constant 1 : i32
    %36 = vector.broadcast %c1_i32_12 : i32 to vector<1x256xi32>
    %37 = arith.cmpi sge, %6, %36 : vector<1x256xi32>
    %38 = arith.andi %35, %37 : vector<1x256xi1>
    %c17_i32_13 = arith.constant 17 : i32
    %39 = vector.broadcast %c17_i32_13 : i32 to vector<1x256xi32>
    %40 = arith.cmpi slt, %6, %39 : vector<1x256xi32>
    %41 = arith.andi %38, %40 : vector<1x256xi1>
    %cst_14 = arith.constant 0.000000e+00 : f32
    %42 = vector.shape_cast %41 : vector<1x256xi1> to vector<1x256xi1>
    %43 = vector.broadcast %42 : vector<1x256xi1> to vector<16x256xi1>
    %44 = vector.broadcast %cst_14 : f32 to vector<16x256xf32>
    %45 = arith.select %43, %30, %44 : vector<16x256xi1>, vector<16x256xf32>
    %c16_i32 = arith.constant 16 : i32
    %46 = tpu.dynamic_rotate %1 by %c16_i32 dim 1 : vector<16x256xf32>, i32 -> vector<16x256xf32>
    %c1_i32_15 = arith.constant 1 : i32
    %47 = vector.broadcast %c1_i32_15 : i32 to vector<1x256xi32>
    %48 = arith.cmpi sge, %4, %47 : vector<1x256xi32>
    %c17_i32_16 = arith.constant 17 : i32
    %49 = vector.broadcast %c17_i32_16 : i32 to vector<1x256xi32>
    %50 = arith.cmpi slt, %4, %49 : vector<1x256xi32>
    %51 = arith.andi %48, %50 : vector<1x256xi1>
    %c0_i32 = arith.constant 0 : i32
    %52 = vector.broadcast %c0_i32 : i32 to vector<1x256xi32>
    %53 = arith.cmpi sge, %6, %52 : vector<1x256xi32>
    %54 = arith.andi %51, %53 : vector<1x256xi1>
    %c16_i32_17 = arith.constant 16 : i32
    %55 = vector.broadcast %c16_i32_17 : i32 to vector<1x256xi32>
    %56 = arith.cmpi slt, %6, %55 : vector<1x256xi32>
    %57 = arith.andi %54, %56 : vector<1x256xi1>
    %cst_18 = arith.constant 0.000000e+00 : f32
    %58 = vector.shape_cast %57 : vector<1x256xi1> to vector<1x256xi1>
    %59 = vector.broadcast %58 : vector<1x256xi1> to vector<16x256xi1>
    %60 = vector.broadcast %cst_18 : f32 to vector<16x256xf32>
    %61 = arith.select %59, %46, %60 : vector<16x256xi1>, vector<16x256xf32>
    %c15_i32_19 = arith.constant 15 : i32
    %62 = tpu.dynamic_rotate %1 by %c15_i32_19 dim 1 : vector<16x256xf32>, i32 -> vector<16x256xf32>
    %c1_i32_20 = arith.constant 1 : i32
    %63 = vector.broadcast %c1_i32_20 : i32 to vector<1x256xi32>
    %64 = arith.cmpi sge, %4, %63 : vector<1x256xi32>
    %c17_i32_21 = arith.constant 17 : i32
    %65 = vector.broadcast %c17_i32_21 : i32 to vector<1x256xi32>
    %66 = arith.cmpi slt, %4, %65 : vector<1x256xi32>
    %67 = arith.andi %64, %66 : vector<1x256xi1>
    %c-1_i32 = arith.constant -1 : i32
    %68 = vector.broadcast %c-1_i32 : i32 to vector<1x256xi32>
    %69 = arith.cmpi sge, %6, %68 : vector<1x256xi32>
    %70 = arith.andi %67, %69 : vector<1x256xi1>
    %c15_i32_22 = arith.constant 15 : i32
    %71 = vector.broadcast %c15_i32_22 : i32 to vector<1x256xi32>
    %72 = arith.cmpi slt, %6, %71 : vector<1x256xi32>
    %73 = arith.andi %70, %72 : vector<1x256xi1>
    %cst_23 = arith.constant 0.000000e+00 : f32
    %74 = vector.shape_cast %73 : vector<1x256xi1> to vector<1x256xi1>
    %75 = vector.broadcast %74 : vector<1x256xi1> to vector<16x256xi1>
    %76 = vector.broadcast %cst_23 : f32 to vector<16x256xf32>
    %77 = arith.select %75, %62, %76 : vector<16x256xi1>, vector<16x256xf32>
    %c1_i32_24 = arith.constant 1 : i32
    %78 = tpu.dynamic_rotate %1 by %c1_i32_24 dim 1 : vector<16x256xf32>, i32 -> vector<16x256xf32>
    %c0_i32_25 = arith.constant 0 : i32
    %79 = vector.broadcast %c0_i32_25 : i32 to vector<1x256xi32>
    %80 = arith.cmpi sge, %4, %79 : vector<1x256xi32>
    %c16_i32_26 = arith.constant 16 : i32
    %81 = vector.broadcast %c16_i32_26 : i32 to vector<1x256xi32>
    %82 = arith.cmpi slt, %4, %81 : vector<1x256xi32>
    %83 = arith.andi %80, %82 : vector<1x256xi1>
    %c1_i32_27 = arith.constant 1 : i32
    %84 = vector.broadcast %c1_i32_27 : i32 to vector<1x256xi32>
    %85 = arith.cmpi sge, %6, %84 : vector<1x256xi32>
    %86 = arith.andi %83, %85 : vector<1x256xi1>
    %c17_i32_28 = arith.constant 17 : i32
    %87 = vector.broadcast %c17_i32_28 : i32 to vector<1x256xi32>
    %88 = arith.cmpi slt, %6, %87 : vector<1x256xi32>
    %89 = arith.andi %86, %88 : vector<1x256xi1>
    %cst_29 = arith.constant 0.000000e+00 : f32
    %90 = vector.shape_cast %89 : vector<1x256xi1> to vector<1x256xi1>
    %91 = vector.broadcast %90 : vector<1x256xi1> to vector<16x256xi1>
    %92 = vector.broadcast %cst_29 : f32 to vector<16x256xf32>
    %93 = arith.select %91, %78, %92 : vector<16x256xi1>, vector<16x256xf32>
    %c255_i32 = arith.constant 255 : i32
    %94 = tpu.dynamic_rotate %1 by %c255_i32 dim 1 : vector<16x256xf32>, i32 -> vector<16x256xf32>
    %c0_i32_30 = arith.constant 0 : i32
    %95 = vector.broadcast %c0_i32_30 : i32 to vector<1x256xi32>
    %96 = arith.cmpi sge, %4, %95 : vector<1x256xi32>
    %c16_i32_31 = arith.constant 16 : i32
    %97 = vector.broadcast %c16_i32_31 : i32 to vector<1x256xi32>
    %98 = arith.cmpi slt, %4, %97 : vector<1x256xi32>
    %99 = arith.andi %96, %98 : vector<1x256xi1>
    %c-1_i32_32 = arith.constant -1 : i32
    %100 = vector.broadcast %c-1_i32_32 : i32 to vector<1x256xi32>
    %101 = arith.cmpi sge, %6, %100 : vector<1x256xi32>
    %102 = arith.andi %99, %101 : vector<1x256xi1>
    %c15_i32_33 = arith.constant 15 : i32
    %103 = vector.broadcast %c15_i32_33 : i32 to vector<1x256xi32>
    %104 = arith.cmpi slt, %6, %103 : vector<1x256xi32>
    %105 = arith.andi %102, %104 : vector<1x256xi1>
    %cst_34 = arith.constant 0.000000e+00 : f32
    %106 = vector.shape_cast %105 : vector<1x256xi1> to vector<1x256xi1>
    %107 = vector.broadcast %106 : vector<1x256xi1> to vector<16x256xi1>
    %108 = vector.broadcast %cst_34 : f32 to vector<16x256xf32>
    %109 = arith.select %107, %94, %108 : vector<16x256xi1>, vector<16x256xf32>
    %c241_i32 = arith.constant 241 : i32
    %110 = tpu.dynamic_rotate %1 by %c241_i32 dim 1 : vector<16x256xf32>, i32 -> vector<16x256xf32>
    %c-1_i32_35 = arith.constant -1 : i32
    %111 = vector.broadcast %c-1_i32_35 : i32 to vector<1x256xi32>
    %112 = arith.cmpi sge, %4, %111 : vector<1x256xi32>
    %c15_i32_36 = arith.constant 15 : i32
    %113 = vector.broadcast %c15_i32_36 : i32 to vector<1x256xi32>
    %114 = arith.cmpi slt, %4, %113 : vector<1x256xi32>
    %115 = arith.andi %112, %114 : vector<1x256xi1>
    %c1_i32_37 = arith.constant 1 : i32
    %116 = vector.broadcast %c1_i32_37 : i32 to vector<1x256xi32>
    %117 = arith.cmpi sge, %6, %116 : vector<1x256xi32>
    %118 = arith.andi %115, %117 : vector<1x256xi1>
    %c17_i32_38 = arith.constant 17 : i32
    %119 = vector.broadcast %c17_i32_38 : i32 to vector<1x256xi32>
    %120 = arith.cmpi slt, %6, %119 : vector<1x256xi32>
    %121 = arith.andi %118, %120 : vector<1x256xi1>
    %cst_39 = arith.constant 0.000000e+00 : f32
    %122 = vector.shape_cast %121 : vector<1x256xi1> to vector<1x256xi1>
    %123 = vector.broadcast %122 : vector<1x256xi1> to vector<16x256xi1>
    %124 = vector.broadcast %cst_39 : f32 to vector<16x256xf32>
    %125 = arith.select %123, %110, %124 : vector<16x256xi1>, vector<16x256xf32>
    %c240_i32 = arith.constant 240 : i32
    %126 = tpu.dynamic_rotate %1 by %c240_i32 dim 1 : vector<16x256xf32>, i32 -> vector<16x256xf32>
    %c-1_i32_40 = arith.constant -1 : i32
    %127 = vector.broadcast %c-1_i32_40 : i32 to vector<1x256xi32>
    %128 = arith.cmpi sge, %4, %127 : vector<1x256xi32>
    %c15_i32_41 = arith.constant 15 : i32
    %129 = vector.broadcast %c15_i32_41 : i32 to vector<1x256xi32>
    %130 = arith.cmpi slt, %4, %129 : vector<1x256xi32>
    %131 = arith.andi %128, %130 : vector<1x256xi1>
    %c0_i32_42 = arith.constant 0 : i32
    %132 = vector.broadcast %c0_i32_42 : i32 to vector<1x256xi32>
    %133 = arith.cmpi sge, %6, %132 : vector<1x256xi32>
    %134 = arith.andi %131, %133 : vector<1x256xi1>
    %c16_i32_43 = arith.constant 16 : i32
    %135 = vector.broadcast %c16_i32_43 : i32 to vector<1x256xi32>
    %136 = arith.cmpi slt, %6, %135 : vector<1x256xi32>
    %137 = arith.andi %134, %136 : vector<1x256xi1>
    %cst_44 = arith.constant 0.000000e+00 : f32
    %138 = vector.shape_cast %137 : vector<1x256xi1> to vector<1x256xi1>
    %139 = vector.broadcast %138 : vector<1x256xi1> to vector<16x256xi1>
    %140 = vector.broadcast %cst_44 : f32 to vector<16x256xf32>
    %141 = arith.select %139, %126, %140 : vector<16x256xi1>, vector<16x256xf32>
    %c239_i32 = arith.constant 239 : i32
    %142 = tpu.dynamic_rotate %1 by %c239_i32 dim 1 : vector<16x256xf32>, i32 -> vector<16x256xf32>
    %c-1_i32_45 = arith.constant -1 : i32
    %143 = vector.broadcast %c-1_i32_45 : i32 to vector<1x256xi32>
    %144 = arith.cmpi sge, %4, %143 : vector<1x256xi32>
    %c15_i32_46 = arith.constant 15 : i32
    %145 = vector.broadcast %c15_i32_46 : i32 to vector<1x256xi32>
    %146 = arith.cmpi slt, %4, %145 : vector<1x256xi32>
    %147 = arith.andi %144, %146 : vector<1x256xi1>
    %c-1_i32_47 = arith.constant -1 : i32
    %148 = vector.broadcast %c-1_i32_47 : i32 to vector<1x256xi32>
    %149 = arith.cmpi sge, %6, %148 : vector<1x256xi32>
    %150 = arith.andi %147, %149 : vector<1x256xi1>
    %c15_i32_48 = arith.constant 15 : i32
    %151 = vector.broadcast %c15_i32_48 : i32 to vector<1x256xi32>
    %152 = arith.cmpi slt, %6, %151 : vector<1x256xi32>
    %153 = arith.andi %150, %152 : vector<1x256xi1>
    %cst_49 = arith.constant 0.000000e+00 : f32
    %154 = vector.shape_cast %153 : vector<1x256xi1> to vector<1x256xi1>
    %155 = vector.broadcast %154 : vector<1x256xi1> to vector<16x256xi1>
    %156 = vector.broadcast %cst_49 : f32 to vector<16x256xf32>
    %157 = arith.select %155, %142, %156 : vector<16x256xi1>, vector<16x256xf32>
    %158 = tpu.concatenate %45, %61, %77, %93, %1, %109, %125, %141, %157 in 0 : vector<16x256xf32>, vector<16x256xf32>, vector<16x256xf32>, vector<16x256xf32>, vector<16x256xf32>, vector<16x256xf32>, vector<16x256xf32>, vector<16x256xf32>, vector<16x256xf32> -> vector<144x256xf32>
    %c0_50 = arith.constant 0 : index
    %c0_51 = arith.constant 0 : index
    %159 = vector.load %arg3[%c0_50, %c0_51] : memref<16x144xf32, #tpu.memory_space<vmem>>, vector<16x144xf32>
    %cst_52 = arith.constant dense<0.000000e+00> : vector<16x256xf32>
    %160 = tpu.matmul %159, %158, %cst_52 {dimension_numbers = #tpu.dot_dimension_numbers<[1], [0], [0], [1], [0, 0, 1, 1], [], []>} : vector<16x144xf32>, vector<144x256xf32>, vector<16x256xf32> -> vector<16x256xf32>
    %cst_53 = arith.constant dense<0.000000e+00> : vector<16xf32>
    %161 = vector.multi_reduction <add>, %160, %cst_53 [1] : vector<16x256xf32> to vector<16xf32>
    %162 = vector.shape_cast %161 : vector<16xf32> to vector<16x1xf32>
    %cst_54 = arith.constant 2.560000e+02 : f32
    %163 = vector.broadcast %cst_54 : f32 to vector<16x1xf32>
    %164 = arith.divf %162, %163 : vector<16x1xf32>
    %165 = vector.broadcast %164 : vector<16x1xf32> to vector<16x256xf32>
    %166 = arith.subf %160, %165 : vector<16x256xf32>
    %167 = arith.mulf %166, %166 : vector<16x256xf32>
    %cst_55 = arith.constant dense<0.000000e+00> : vector<16xf32>
    %168 = vector.multi_reduction <add>, %167, %cst_55 [1] : vector<16x256xf32> to vector<16xf32>
    %169 = vector.shape_cast %168 : vector<16xf32> to vector<16x1xf32>
    %cst_56 = arith.constant 2.560000e+02 : f32
    %170 = vector.broadcast %cst_56 : f32 to vector<16x1xf32>
    %171 = arith.divf %169, %170 : vector<16x1xf32>
    %cst_57 = arith.constant 9.99999974E-6 : f32
    %172 = vector.broadcast %cst_57 : f32 to vector<16x1xf32>
    %173 = arith.addf %171, %172 : vector<16x1xf32>
    %174 = math.rsqrt %173 : vector<16x1xf32>
    %175 = vector.broadcast %174 : vector<16x1xf32> to vector<16x256xf32>
    %176 = arith.mulf %166, %175 : vector<16x256xf32>
    %cst_58 = arith.constant 0.000000e+00 : f32
    %177 = vector.broadcast %cst_58 : f32 to vector<16x256xf32>
    %178 = arith.cmpf oge, %176, %177 : vector<16x256xf32>
    %cst_59 = arith.constant 2.000000e-01 : f32
    %179 = vector.broadcast %cst_59 : f32 to vector<16x256xf32>
    %180 = arith.mulf %179, %176 : vector<16x256xf32>
    %181 = arith.select %178, %176, %180 : vector<16x256xi1>, vector<16x256xf32>
    %c34_i32 = arith.constant 34 : i32
    %182 = tpu.dynamic_rotate %1 by %c34_i32 dim 1 : vector<16x256xf32>, i32 -> vector<16x256xf32>
    %c2_i32 = arith.constant 2 : i32
    %183 = vector.broadcast %c2_i32 : i32 to vector<1x256xi32>
    %184 = arith.cmpi sge, %4, %183 : vector<1x256xi32>
    %c18_i32 = arith.constant 18 : i32
    %185 = vector.broadcast %c18_i32 : i32 to vector<1x256xi32>
    %186 = arith.cmpi slt, %4, %185 : vector<1x256xi32>
    %187 = arith.andi %184, %186 : vector<1x256xi1>
    %c2_i32_60 = arith.constant 2 : i32
    %188 = vector.broadcast %c2_i32_60 : i32 to vector<1x256xi32>
    %189 = arith.cmpi sge, %6, %188 : vector<1x256xi32>
    %190 = arith.andi %187, %189 : vector<1x256xi1>
    %c18_i32_61 = arith.constant 18 : i32
    %191 = vector.broadcast %c18_i32_61 : i32 to vector<1x256xi32>
    %192 = arith.cmpi slt, %6, %191 : vector<1x256xi32>
    %193 = arith.andi %190, %192 : vector<1x256xi1>
    %cst_62 = arith.constant 0.000000e+00 : f32
    %194 = vector.shape_cast %193 : vector<1x256xi1> to vector<1x256xi1>
    %195 = vector.broadcast %194 : vector<1x256xi1> to vector<16x256xi1>
    %196 = vector.broadcast %cst_62 : f32 to vector<16x256xf32>
    %197 = arith.select %195, %182, %196 : vector<16x256xi1>, vector<16x256xf32>
    %c33_i32 = arith.constant 33 : i32
    %198 = tpu.dynamic_rotate %1 by %c33_i32 dim 1 : vector<16x256xf32>, i32 -> vector<16x256xf32>
    %c2_i32_63 = arith.constant 2 : i32
    %199 = vector.broadcast %c2_i32_63 : i32 to vector<1x256xi32>
    %200 = arith.cmpi sge, %4, %199 : vector<1x256xi32>
    %c18_i32_64 = arith.constant 18 : i32
    %201 = vector.broadcast %c18_i32_64 : i32 to vector<1x256xi32>
    %202 = arith.cmpi slt, %4, %201 : vector<1x256xi32>
    %203 = arith.andi %200, %202 : vector<1x256xi1>
    %c1_i32_65 = arith.constant 1 : i32
    %204 = vector.broadcast %c1_i32_65 : i32 to vector<1x256xi32>
    %205 = arith.cmpi sge, %6, %204 : vector<1x256xi32>
    %206 = arith.andi %203, %205 : vector<1x256xi1>
    %c17_i32_66 = arith.constant 17 : i32
    %207 = vector.broadcast %c17_i32_66 : i32 to vector<1x256xi32>
    %208 = arith.cmpi slt, %6, %207 : vector<1x256xi32>
    %209 = arith.andi %206, %208 : vector<1x256xi1>
    %cst_67 = arith.constant 0.000000e+00 : f32
    %210 = vector.shape_cast %209 : vector<1x256xi1> to vector<1x256xi1>
    %211 = vector.broadcast %210 : vector<1x256xi1> to vector<16x256xi1>
    %212 = vector.broadcast %cst_67 : f32 to vector<16x256xf32>
    %213 = arith.select %211, %198, %212 : vector<16x256xi1>, vector<16x256xf32>
    %c32_i32 = arith.constant 32 : i32
    %214 = tpu.dynamic_rotate %1 by %c32_i32 dim 1 : vector<16x256xf32>, i32 -> vector<16x256xf32>
    %c2_i32_68 = arith.constant 2 : i32
    %215 = vector.broadcast %c2_i32_68 : i32 to vector<1x256xi32>
    %216 = arith.cmpi sge, %4, %215 : vector<1x256xi32>
    %c18_i32_69 = arith.constant 18 : i32
    %217 = vector.broadcast %c18_i32_69 : i32 to vector<1x256xi32>
    %218 = arith.cmpi slt, %4, %217 : vector<1x256xi32>
    %219 = arith.andi %216, %218 : vector<1x256xi1>
    %c0_i32_70 = arith.constant 0 : i32
    %220 = vector.broadcast %c0_i32_70 : i32 to vector<1x256xi32>
    %221 = arith.cmpi sge, %6, %220 : vector<1x256xi32>
    %222 = arith.andi %219, %221 : vector<1x256xi1>
    %c16_i32_71 = arith.constant 16 : i32
    %223 = vector.broadcast %c16_i32_71 : i32 to vector<1x256xi32>
    %224 = arith.cmpi slt, %6, %223 : vector<1x256xi32>
    %225 = arith.andi %222, %224 : vector<1x256xi1>
    %cst_72 = arith.constant 0.000000e+00 : f32
    %226 = vector.shape_cast %225 : vector<1x256xi1> to vector<1x256xi1>
    %227 = vector.broadcast %226 : vector<1x256xi1> to vector<16x256xi1>
    %228 = vector.broadcast %cst_72 : f32 to vector<16x256xf32>
    %229 = arith.select %227, %214, %228 : vector<16x256xi1>, vector<16x256xf32>
    %c31_i32 = arith.constant 31 : i32
    %230 = tpu.dynamic_rotate %1 by %c31_i32 dim 1 : vector<16x256xf32>, i32 -> vector<16x256xf32>
    %c2_i32_73 = arith.constant 2 : i32
    %231 = vector.broadcast %c2_i32_73 : i32 to vector<1x256xi32>
    %232 = arith.cmpi sge, %4, %231 : vector<1x256xi32>
    %c18_i32_74 = arith.constant 18 : i32
    %233 = vector.broadcast %c18_i32_74 : i32 to vector<1x256xi32>
    %234 = arith.cmpi slt, %4, %233 : vector<1x256xi32>
    %235 = arith.andi %232, %234 : vector<1x256xi1>
    %c-1_i32_75 = arith.constant -1 : i32
    %236 = vector.broadcast %c-1_i32_75 : i32 to vector<1x256xi32>
    %237 = arith.cmpi sge, %6, %236 : vector<1x256xi32>
    %238 = arith.andi %235, %237 : vector<1x256xi1>
    %c15_i32_76 = arith.constant 15 : i32
    %239 = vector.broadcast %c15_i32_76 : i32 to vector<1x256xi32>
    %240 = arith.cmpi slt, %6, %239 : vector<1x256xi32>
    %241 = arith.andi %238, %240 : vector<1x256xi1>
    %cst_77 = arith.constant 0.000000e+00 : f32
    %242 = vector.shape_cast %241 : vector<1x256xi1> to vector<1x256xi1>
    %243 = vector.broadcast %242 : vector<1x256xi1> to vector<16x256xi1>
    %244 = vector.broadcast %cst_77 : f32 to vector<16x256xf32>
    %245 = arith.select %243, %230, %244 : vector<16x256xi1>, vector<16x256xf32>
    %c30_i32 = arith.constant 30 : i32
    %246 = tpu.dynamic_rotate %1 by %c30_i32 dim 1 : vector<16x256xf32>, i32 -> vector<16x256xf32>
    %c2_i32_78 = arith.constant 2 : i32
    %247 = vector.broadcast %c2_i32_78 : i32 to vector<1x256xi32>
    %248 = arith.cmpi sge, %4, %247 : vector<1x256xi32>
    %c18_i32_79 = arith.constant 18 : i32
    %249 = vector.broadcast %c18_i32_79 : i32 to vector<1x256xi32>
    %250 = arith.cmpi slt, %4, %249 : vector<1x256xi32>
    %251 = arith.andi %248, %250 : vector<1x256xi1>
    %c-2_i32 = arith.constant -2 : i32
    %252 = vector.broadcast %c-2_i32 : i32 to vector<1x256xi32>
    %253 = arith.cmpi sge, %6, %252 : vector<1x256xi32>
    %254 = arith.andi %251, %253 : vector<1x256xi1>
    %c14_i32 = arith.constant 14 : i32
    %255 = vector.broadcast %c14_i32 : i32 to vector<1x256xi32>
    %256 = arith.cmpi slt, %6, %255 : vector<1x256xi32>
    %257 = arith.andi %254, %256 : vector<1x256xi1>
    %cst_80 = arith.constant 0.000000e+00 : f32
    %258 = vector.shape_cast %257 : vector<1x256xi1> to vector<1x256xi1>
    %259 = vector.broadcast %258 : vector<1x256xi1> to vector<16x256xi1>
    %260 = vector.broadcast %cst_80 : f32 to vector<16x256xf32>
    %261 = arith.select %259, %246, %260 : vector<16x256xi1>, vector<16x256xf32>
    %c18_i32_81 = arith.constant 18 : i32
    %262 = tpu.dynamic_rotate %1 by %c18_i32_81 dim 1 : vector<16x256xf32>, i32 -> vector<16x256xf32>
    %c1_i32_82 = arith.constant 1 : i32
    %263 = vector.broadcast %c1_i32_82 : i32 to vector<1x256xi32>
    %264 = arith.cmpi sge, %4, %263 : vector<1x256xi32>
    %c17_i32_83 = arith.constant 17 : i32
    %265 = vector.broadcast %c17_i32_83 : i32 to vector<1x256xi32>
    %266 = arith.cmpi slt, %4, %265 : vector<1x256xi32>
    %267 = arith.andi %264, %266 : vector<1x256xi1>
    %c2_i32_84 = arith.constant 2 : i32
    %268 = vector.broadcast %c2_i32_84 : i32 to vector<1x256xi32>
    %269 = arith.cmpi sge, %6, %268 : vector<1x256xi32>
    %270 = arith.andi %267, %269 : vector<1x256xi1>
    %c18_i32_85 = arith.constant 18 : i32
    %271 = vector.broadcast %c18_i32_85 : i32 to vector<1x256xi32>
    %272 = arith.cmpi slt, %6, %271 : vector<1x256xi32>
    %273 = arith.andi %270, %272 : vector<1x256xi1>
    %cst_86 = arith.constant 0.000000e+00 : f32
    %274 = vector.shape_cast %273 : vector<1x256xi1> to vector<1x256xi1>
    %275 = vector.broadcast %274 : vector<1x256xi1> to vector<16x256xi1>
    %276 = vector.broadcast %cst_86 : f32 to vector<16x256xf32>
    %277 = arith.select %275, %262, %276 : vector<16x256xi1>, vector<16x256xf32>
    %c17_i32_87 = arith.constant 17 : i32
    %278 = tpu.dynamic_rotate %1 by %c17_i32_87 dim 1 : vector<16x256xf32>, i32 -> vector<16x256xf32>
    %c1_i32_88 = arith.constant 1 : i32
    %279 = vector.broadcast %c1_i32_88 : i32 to vector<1x256xi32>
    %280 = arith.cmpi sge, %4, %279 : vector<1x256xi32>
    %c17_i32_89 = arith.constant 17 : i32
    %281 = vector.broadcast %c17_i32_89 : i32 to vector<1x256xi32>
    %282 = arith.cmpi slt, %4, %281 : vector<1x256xi32>
    %283 = arith.andi %280, %282 : vector<1x256xi1>
    %c1_i32_90 = arith.constant 1 : i32
    %284 = vector.broadcast %c1_i32_90 : i32 to vector<1x256xi32>
    %285 = arith.cmpi sge, %6, %284 : vector<1x256xi32>
    %286 = arith.andi %283, %285 : vector<1x256xi1>
    %c17_i32_91 = arith.constant 17 : i32
    %287 = vector.broadcast %c17_i32_91 : i32 to vector<1x256xi32>
    %288 = arith.cmpi slt, %6, %287 : vector<1x256xi32>
    %289 = arith.andi %286, %288 : vector<1x256xi1>
    %cst_92 = arith.constant 0.000000e+00 : f32
    %290 = vector.shape_cast %289 : vector<1x256xi1> to vector<1x256xi1>
    %291 = vector.broadcast %290 : vector<1x256xi1> to vector<16x256xi1>
    %292 = vector.broadcast %cst_92 : f32 to vector<16x256xf32>
    %293 = arith.select %291, %278, %292 : vector<16x256xi1>, vector<16x256xf32>
    %c16_i32_93 = arith.constant 16 : i32
    %294 = tpu.dynamic_rotate %1 by %c16_i32_93 dim 1 : vector<16x256xf32>, i32 -> vector<16x256xf32>
    %c1_i32_94 = arith.constant 1 : i32
    %295 = vector.broadcast %c1_i32_94 : i32 to vector<1x256xi32>
    %296 = arith.cmpi sge, %4, %295 : vector<1x256xi32>
    %c17_i32_95 = arith.constant 17 : i32
    %297 = vector.broadcast %c17_i32_95 : i32 to vector<1x256xi32>
    %298 = arith.cmpi slt, %4, %297 : vector<1x256xi32>
    %299 = arith.andi %296, %298 : vector<1x256xi1>
    %c0_i32_96 = arith.constant 0 : i32
    %300 = vector.broadcast %c0_i32_96 : i32 to vector<1x256xi32>
    %301 = arith.cmpi sge, %6, %300 : vector<1x256xi32>
    %302 = arith.andi %299, %301 : vector<1x256xi1>
    %c16_i32_97 = arith.constant 16 : i32
    %303 = vector.broadcast %c16_i32_97 : i32 to vector<1x256xi32>
    %304 = arith.cmpi slt, %6, %303 : vector<1x256xi32>
    %305 = arith.andi %302, %304 : vector<1x256xi1>
    %cst_98 = arith.constant 0.000000e+00 : f32
    %306 = vector.shape_cast %305 : vector<1x256xi1> to vector<1x256xi1>
    %307 = vector.broadcast %306 : vector<1x256xi1> to vector<16x256xi1>
    %308 = vector.broadcast %cst_98 : f32 to vector<16x256xf32>
    %309 = arith.select %307, %294, %308 : vector<16x256xi1>, vector<16x256xf32>
    %c15_i32_99 = arith.constant 15 : i32
    %310 = tpu.dynamic_rotate %1 by %c15_i32_99 dim 1 : vector<16x256xf32>, i32 -> vector<16x256xf32>
    %c1_i32_100 = arith.constant 1 : i32
    %311 = vector.broadcast %c1_i32_100 : i32 to vector<1x256xi32>
    %312 = arith.cmpi sge, %4, %311 : vector<1x256xi32>
    %c17_i32_101 = arith.constant 17 : i32
    %313 = vector.broadcast %c17_i32_101 : i32 to vector<1x256xi32>
    %314 = arith.cmpi slt, %4, %313 : vector<1x256xi32>
    %315 = arith.andi %312, %314 : vector<1x256xi1>
    %c-1_i32_102 = arith.constant -1 : i32
    %316 = vector.broadcast %c-1_i32_102 : i32 to vector<1x256xi32>
    %317 = arith.cmpi sge, %6, %316 : vector<1x256xi32>
    %318 = arith.andi %315, %317 : vector<1x256xi1>
    %c15_i32_103 = arith.constant 15 : i32
    %319 = vector.broadcast %c15_i32_103 : i32 to vector<1x256xi32>
    %320 = arith.cmpi slt, %6, %319 : vector<1x256xi32>
    %321 = arith.andi %318, %320 : vector<1x256xi1>
    %cst_104 = arith.constant 0.000000e+00 : f32
    %322 = vector.shape_cast %321 : vector<1x256xi1> to vector<1x256xi1>
    %323 = vector.broadcast %322 : vector<1x256xi1> to vector<16x256xi1>
    %324 = vector.broadcast %cst_104 : f32 to vector<16x256xf32>
    %325 = arith.select %323, %310, %324 : vector<16x256xi1>, vector<16x256xf32>
    %c14_i32_105 = arith.constant 14 : i32
    %326 = tpu.dynamic_rotate %1 by %c14_i32_105 dim 1 : vector<16x256xf32>, i32 -> vector<16x256xf32>
    %c1_i32_106 = arith.constant 1 : i32
    %327 = vector.broadcast %c1_i32_106 : i32 to vector<1x256xi32>
    %328 = arith.cmpi sge, %4, %327 : vector<1x256xi32>
    %c17_i32_107 = arith.constant 17 : i32
    %329 = vector.broadcast %c17_i32_107 : i32 to vector<1x256xi32>
    %330 = arith.cmpi slt, %4, %329 : vector<1x256xi32>
    %331 = arith.andi %328, %330 : vector<1x256xi1>
    %c-2_i32_108 = arith.constant -2 : i32
    %332 = vector.broadcast %c-2_i32_108 : i32 to vector<1x256xi32>
    %333 = arith.cmpi sge, %6, %332 : vector<1x256xi32>
    %334 = arith.andi %331, %333 : vector<1x256xi1>
    %c14_i32_109 = arith.constant 14 : i32
    %335 = vector.broadcast %c14_i32_109 : i32 to vector<1x256xi32>
    %336 = arith.cmpi slt, %6, %335 : vector<1x256xi32>
    %337 = arith.andi %334, %336 : vector<1x256xi1>
    %cst_110 = arith.constant 0.000000e+00 : f32
    %338 = vector.shape_cast %337 : vector<1x256xi1> to vector<1x256xi1>
    %339 = vector.broadcast %338 : vector<1x256xi1> to vector<16x256xi1>
    %340 = vector.broadcast %cst_110 : f32 to vector<16x256xf32>
    %341 = arith.select %339, %326, %340 : vector<16x256xi1>, vector<16x256xf32>
    %c2_i32_111 = arith.constant 2 : i32
    %342 = tpu.dynamic_rotate %1 by %c2_i32_111 dim 1 : vector<16x256xf32>, i32 -> vector<16x256xf32>
    %c0_i32_112 = arith.constant 0 : i32
    %343 = vector.broadcast %c0_i32_112 : i32 to vector<1x256xi32>
    %344 = arith.cmpi sge, %4, %343 : vector<1x256xi32>
    %c16_i32_113 = arith.constant 16 : i32
    %345 = vector.broadcast %c16_i32_113 : i32 to vector<1x256xi32>
    %346 = arith.cmpi slt, %4, %345 : vector<1x256xi32>
    %347 = arith.andi %344, %346 : vector<1x256xi1>
    %c2_i32_114 = arith.constant 2 : i32
    %348 = vector.broadcast %c2_i32_114 : i32 to vector<1x256xi32>
    %349 = arith.cmpi sge, %6, %348 : vector<1x256xi32>
    %350 = arith.andi %347, %349 : vector<1x256xi1>
    %c18_i32_115 = arith.constant 18 : i32
    %351 = vector.broadcast %c18_i32_115 : i32 to vector<1x256xi32>
    %352 = arith.cmpi slt, %6, %351 : vector<1x256xi32>
    %353 = arith.andi %350, %352 : vector<1x256xi1>
    %cst_116 = arith.constant 0.000000e+00 : f32
    %354 = vector.shape_cast %353 : vector<1x256xi1> to vector<1x256xi1>
    %355 = vector.broadcast %354 : vector<1x256xi1> to vector<16x256xi1>
    %356 = vector.broadcast %cst_116 : f32 to vector<16x256xf32>
    %357 = arith.select %355, %342, %356 : vector<16x256xi1>, vector<16x256xf32>
    %c1_i32_117 = arith.constant 1 : i32
    %358 = tpu.dynamic_rotate %1 by %c1_i32_117 dim 1 : vector<16x256xf32>, i32 -> vector<16x256xf32>
    %c0_i32_118 = arith.constant 0 : i32
    %359 = vector.broadcast %c0_i32_118 : i32 to vector<1x256xi32>
    %360 = arith.cmpi sge, %4, %359 : vector<1x256xi32>
    %c16_i32_119 = arith.constant 16 : i32
    %361 = vector.broadcast %c16_i32_119 : i32 to vector<1x256xi32>
    %362 = arith.cmpi slt, %4, %361 : vector<1x256xi32>
    %363 = arith.andi %360, %362 : vector<1x256xi1>
    %c1_i32_120 = arith.constant 1 : i32
    %364 = vector.broadcast %c1_i32_120 : i32 to vector<1x256xi32>
    %365 = arith.cmpi sge, %6, %364 : vector<1x256xi32>
    %366 = arith.andi %363, %365 : vector<1x256xi1>
    %c17_i32_121 = arith.constant 17 : i32
    %367 = vector.broadcast %c17_i32_121 : i32 to vector<1x256xi32>
    %368 = arith.cmpi slt, %6, %367 : vector<1x256xi32>
    %369 = arith.andi %366, %368 : vector<1x256xi1>
    %cst_122 = arith.constant 0.000000e+00 : f32
    %370 = vector.shape_cast %369 : vector<1x256xi1> to vector<1x256xi1>
    %371 = vector.broadcast %370 : vector<1x256xi1> to vector<16x256xi1>
    %372 = vector.broadcast %cst_122 : f32 to vector<16x256xf32>
    %373 = arith.select %371, %358, %372 : vector<16x256xi1>, vector<16x256xf32>
    %c255_i32_123 = arith.constant 255 : i32
    %374 = tpu.dynamic_rotate %1 by %c255_i32_123 dim 1 : vector<16x256xf32>, i32 -> vector<16x256xf32>
    %c0_i32_124 = arith.constant 0 : i32
    %375 = vector.broadcast %c0_i32_124 : i32 to vector<1x256xi32>
    %376 = arith.cmpi sge, %4, %375 : vector<1x256xi32>
    %c16_i32_125 = arith.constant 16 : i32
    %377 = vector.broadcast %c16_i32_125 : i32 to vector<1x256xi32>
    %378 = arith.cmpi slt, %4, %377 : vector<1x256xi32>
    %379 = arith.andi %376, %378 : vector<1x256xi1>
    %c-1_i32_126 = arith.constant -1 : i32
    %380 = vector.broadcast %c-1_i32_126 : i32 to vector<1x256xi32>
    %381 = arith.cmpi sge, %6, %380 : vector<1x256xi32>
    %382 = arith.andi %379, %381 : vector<1x256xi1>
    %c15_i32_127 = arith.constant 15 : i32
    %383 = vector.broadcast %c15_i32_127 : i32 to vector<1x256xi32>
    %384 = arith.cmpi slt, %6, %383 : vector<1x256xi32>
    %385 = arith.andi %382, %384 : vector<1x256xi1>
    %cst_128 = arith.constant 0.000000e+00 : f32
    %386 = vector.shape_cast %385 : vector<1x256xi1> to vector<1x256xi1>
    %387 = vector.broadcast %386 : vector<1x256xi1> to vector<16x256xi1>
    %388 = vector.broadcast %cst_128 : f32 to vector<16x256xf32>
    %389 = arith.select %387, %374, %388 : vector<16x256xi1>, vector<16x256xf32>
    %c254_i32 = arith.constant 254 : i32
    %390 = tpu.dynamic_rotate %1 by %c254_i32 dim 1 : vector<16x256xf32>, i32 -> vector<16x256xf32>
    %c0_i32_129 = arith.constant 0 : i32
    %391 = vector.broadcast %c0_i32_129 : i32 to vector<1x256xi32>
    %392 = arith.cmpi sge, %4, %391 : vector<1x256xi32>
    %c16_i32_130 = arith.constant 16 : i32
    %393 = vector.broadcast %c16_i32_130 : i32 to vector<1x256xi32>
    %394 = arith.cmpi slt, %4, %393 : vector<1x256xi32>
    %395 = arith.andi %392, %394 : vector<1x256xi1>
    %c-2_i32_131 = arith.constant -2 : i32
    %396 = vector.broadcast %c-2_i32_131 : i32 to vector<1x256xi32>
    %397 = arith.cmpi sge, %6, %396 : vector<1x256xi32>
    %398 = arith.andi %395, %397 : vector<1x256xi1>
    %c14_i32_132 = arith.constant 14 : i32
    %399 = vector.broadcast %c14_i32_132 : i32 to vector<1x256xi32>
    %400 = arith.cmpi slt, %6, %399 : vector<1x256xi32>
    %401 = arith.andi %398, %400 : vector<1x256xi1>
    %cst_133 = arith.constant 0.000000e+00 : f32
    %402 = vector.shape_cast %401 : vector<1x256xi1> to vector<1x256xi1>
    %403 = vector.broadcast %402 : vector<1x256xi1> to vector<16x256xi1>
    %404 = vector.broadcast %cst_133 : f32 to vector<16x256xf32>
    %405 = arith.select %403, %390, %404 : vector<16x256xi1>, vector<16x256xf32>
    %c242_i32 = arith.constant 242 : i32
    %406 = tpu.dynamic_rotate %1 by %c242_i32 dim 1 : vector<16x256xf32>, i32 -> vector<16x256xf32>
    %c-1_i32_134 = arith.constant -1 : i32
    %407 = vector.broadcast %c-1_i32_134 : i32 to vector<1x256xi32>
    %408 = arith.cmpi sge, %4, %407 : vector<1x256xi32>
    %c15_i32_135 = arith.constant 15 : i32
    %409 = vector.broadcast %c15_i32_135 : i32 to vector<1x256xi32>
    %410 = arith.cmpi slt, %4, %409 : vector<1x256xi32>
    %411 = arith.andi %408, %410 : vector<1x256xi1>
    %c2_i32_136 = arith.constant 2 : i32
    %412 = vector.broadcast %c2_i32_136 : i32 to vector<1x256xi32>
    %413 = arith.cmpi sge, %6, %412 : vector<1x256xi32>
    %414 = arith.andi %411, %413 : vector<1x256xi1>
    %c18_i32_137 = arith.constant 18 : i32
    %415 = vector.broadcast %c18_i32_137 : i32 to vector<1x256xi32>
    %416 = arith.cmpi slt, %6, %415 : vector<1x256xi32>
    %417 = arith.andi %414, %416 : vector<1x256xi1>
    %cst_138 = arith.constant 0.000000e+00 : f32
    %418 = vector.shape_cast %417 : vector<1x256xi1> to vector<1x256xi1>
    %419 = vector.broadcast %418 : vector<1x256xi1> to vector<16x256xi1>
    %420 = vector.broadcast %cst_138 : f32 to vector<16x256xf32>
    %421 = arith.select %419, %406, %420 : vector<16x256xi1>, vector<16x256xf32>
    %c241_i32_139 = arith.constant 241 : i32
    %422 = tpu.dynamic_rotate %1 by %c241_i32_139 dim 1 : vector<16x256xf32>, i32 -> vector<16x256xf32>
    %c-1_i32_140 = arith.constant -1 : i32
    %423 = vector.broadcast %c-1_i32_140 : i32 to vector<1x256xi32>
    %424 = arith.cmpi sge, %4, %423 : vector<1x256xi32>
    %c15_i32_141 = arith.constant 15 : i32
    %425 = vector.broadcast %c15_i32_141 : i32 to vector<1x256xi32>
    %426 = arith.cmpi slt, %4, %425 : vector<1x256xi32>
    %427 = arith.andi %424, %426 : vector<1x256xi1>
    %c1_i32_142 = arith.constant 1 : i32
    %428 = vector.broadcast %c1_i32_142 : i32 to vector<1x256xi32>
    %429 = arith.cmpi sge, %6, %428 : vector<1x256xi32>
    %430 = arith.andi %427, %429 : vector<1x256xi1>
    %c17_i32_143 = arith.constant 17 : i32
    %431 = vector.broadcast %c17_i32_143 : i32 to vector<1x256xi32>
    %432 = arith.cmpi slt, %6, %431 : vector<1x256xi32>
    %433 = arith.andi %430, %432 : vector<1x256xi1>
    %cst_144 = arith.constant 0.000000e+00 : f32
    %434 = vector.shape_cast %433 : vector<1x256xi1> to vector<1x256xi1>
    %435 = vector.broadcast %434 : vector<1x256xi1> to vector<16x256xi1>
    %436 = vector.broadcast %cst_144 : f32 to vector<16x256xf32>
    %437 = arith.select %435, %422, %436 : vector<16x256xi1>, vector<16x256xf32>
    %c240_i32_145 = arith.constant 240 : i32
    %438 = tpu.dynamic_rotate %1 by %c240_i32_145 dim 1 : vector<16x256xf32>, i32 -> vector<16x256xf32>
    %c-1_i32_146 = arith.constant -1 : i32
    %439 = vector.broadcast %c-1_i32_146 : i32 to vector<1x256xi32>
    %440 = arith.cmpi sge, %4, %439 : vector<1x256xi32>
    %c15_i32_147 = arith.constant 15 : i32
    %441 = vector.broadcast %c15_i32_147 : i32 to vector<1x256xi32>
    %442 = arith.cmpi slt, %4, %441 : vector<1x256xi32>
    %443 = arith.andi %440, %442 : vector<1x256xi1>
    %c0_i32_148 = arith.constant 0 : i32
    %444 = vector.broadcast %c0_i32_148 : i32 to vector<1x256xi32>
    %445 = arith.cmpi sge, %6, %444 : vector<1x256xi32>
    %446 = arith.andi %443, %445 : vector<1x256xi1>
    %c16_i32_149 = arith.constant 16 : i32
    %447 = vector.broadcast %c16_i32_149 : i32 to vector<1x256xi32>
    %448 = arith.cmpi slt, %6, %447 : vector<1x256xi32>
    %449 = arith.andi %446, %448 : vector<1x256xi1>
    %cst_150 = arith.constant 0.000000e+00 : f32
    %450 = vector.shape_cast %449 : vector<1x256xi1> to vector<1x256xi1>
    %451 = vector.broadcast %450 : vector<1x256xi1> to vector<16x256xi1>
    %452 = vector.broadcast %cst_150 : f32 to vector<16x256xf32>
    %453 = arith.select %451, %438, %452 : vector<16x256xi1>, vector<16x256xf32>
    %c239_i32_151 = arith.constant 239 : i32
    %454 = tpu.dynamic_rotate %1 by %c239_i32_151 dim 1 : vector<16x256xf32>, i32 -> vector<16x256xf32>
    %c-1_i32_152 = arith.constant -1 : i32
    %455 = vector.broadcast %c-1_i32_152 : i32 to vector<1x256xi32>
    %456 = arith.cmpi sge, %4, %455 : vector<1x256xi32>
    %c15_i32_153 = arith.constant 15 : i32
    %457 = vector.broadcast %c15_i32_153 : i32 to vector<1x256xi32>
    %458 = arith.cmpi slt, %4, %457 : vector<1x256xi32>
    %459 = arith.andi %456, %458 : vector<1x256xi1>
    %c-1_i32_154 = arith.constant -1 : i32
    %460 = vector.broadcast %c-1_i32_154 : i32 to vector<1x256xi32>
    %461 = arith.cmpi sge, %6, %460 : vector<1x256xi32>
    %462 = arith.andi %459, %461 : vector<1x256xi1>
    %c15_i32_155 = arith.constant 15 : i32
    %463 = vector.broadcast %c15_i32_155 : i32 to vector<1x256xi32>
    %464 = arith.cmpi slt, %6, %463 : vector<1x256xi32>
    %465 = arith.andi %462, %464 : vector<1x256xi1>
    %cst_156 = arith.constant 0.000000e+00 : f32
    %466 = vector.shape_cast %465 : vector<1x256xi1> to vector<1x256xi1>
    %467 = vector.broadcast %466 : vector<1x256xi1> to vector<16x256xi1>
    %468 = vector.broadcast %cst_156 : f32 to vector<16x256xf32>
    %469 = arith.select %467, %454, %468 : vector<16x256xi1>, vector<16x256xf32>
    %c238_i32 = arith.constant 238 : i32
    %470 = tpu.dynamic_rotate %1 by %c238_i32 dim 1 : vector<16x256xf32>, i32 -> vector<16x256xf32>
    %c-1_i32_157 = arith.constant -1 : i32
    %471 = vector.broadcast %c-1_i32_157 : i32 to vector<1x256xi32>
    %472 = arith.cmpi sge, %4, %471 : vector<1x256xi32>
    %c15_i32_158 = arith.constant 15 : i32
    %473 = vector.broadcast %c15_i32_158 : i32 to vector<1x256xi32>
    %474 = arith.cmpi slt, %4, %473 : vector<1x256xi32>
    %475 = arith.andi %472, %474 : vector<1x256xi1>
    %c-2_i32_159 = arith.constant -2 : i32
    %476 = vector.broadcast %c-2_i32_159 : i32 to vector<1x256xi32>
    %477 = arith.cmpi sge, %6, %476 : vector<1x256xi32>
    %478 = arith.andi %475, %477 : vector<1x256xi1>
    %c14_i32_160 = arith.constant 14 : i32
    %479 = vector.broadcast %c14_i32_160 : i32 to vector<1x256xi32>
    %480 = arith.cmpi slt, %6, %479 : vector<1x256xi32>
    %481 = arith.andi %478, %480 : vector<1x256xi1>
    %cst_161 = arith.constant 0.000000e+00 : f32
    %482 = vector.shape_cast %481 : vector<1x256xi1> to vector<1x256xi1>
    %483 = vector.broadcast %482 : vector<1x256xi1> to vector<16x256xi1>
    %484 = vector.broadcast %cst_161 : f32 to vector<16x256xf32>
    %485 = arith.select %483, %470, %484 : vector<16x256xi1>, vector<16x256xf32>
    %c226_i32 = arith.constant 226 : i32
    %486 = tpu.dynamic_rotate %1 by %c226_i32 dim 1 : vector<16x256xf32>, i32 -> vector<16x256xf32>
    %c-2_i32_162 = arith.constant -2 : i32
    %487 = vector.broadcast %c-2_i32_162 : i32 to vector<1x256xi32>
    %488 = arith.cmpi sge, %4, %487 : vector<1x256xi32>
    %c14_i32_163 = arith.constant 14 : i32
    %489 = vector.broadcast %c14_i32_163 : i32 to vector<1x256xi32>
    %490 = arith.cmpi slt, %4, %489 : vector<1x256xi32>
    %491 = arith.andi %488, %490 : vector<1x256xi1>
    %c2_i32_164 = arith.constant 2 : i32
    %492 = vector.broadcast %c2_i32_164 : i32 to vector<1x256xi32>
    %493 = arith.cmpi sge, %6, %492 : vector<1x256xi32>
    %494 = arith.andi %491, %493 : vector<1x256xi1>
    %c18_i32_165 = arith.constant 18 : i32
    %495 = vector.broadcast %c18_i32_165 : i32 to vector<1x256xi32>
    %496 = arith.cmpi slt, %6, %495 : vector<1x256xi32>
    %497 = arith.andi %494, %496 : vector<1x256xi1>
    %cst_166 = arith.constant 0.000000e+00 : f32
    %498 = vector.shape_cast %497 : vector<1x256xi1> to vector<1x256xi1>
    %499 = vector.broadcast %498 : vector<1x256xi1> to vector<16x256xi1>
    %500 = vector.broadcast %cst_166 : f32 to vector<16x256xf32>
    %501 = arith.select %499, %486, %500 : vector<16x256xi1>, vector<16x256xf32>
    %c225_i32 = arith.constant 225 : i32
    %502 = tpu.dynamic_rotate %1 by %c225_i32 dim 1 : vector<16x256xf32>, i32 -> vector<16x256xf32>
    %c-2_i32_167 = arith.constant -2 : i32
    %503 = vector.broadcast %c-2_i32_167 : i32 to vector<1x256xi32>
    %504 = arith.cmpi sge, %4, %503 : vector<1x256xi32>
    %c14_i32_168 = arith.constant 14 : i32
    %505 = vector.broadcast %c14_i32_168 : i32 to vector<1x256xi32>
    %506 = arith.cmpi slt, %4, %505 : vector<1x256xi32>
    %507 = arith.andi %504, %506 : vector<1x256xi1>
    %c1_i32_169 = arith.constant 1 : i32
    %508 = vector.broadcast %c1_i32_169 : i32 to vector<1x256xi32>
    %509 = arith.cmpi sge, %6, %508 : vector<1x256xi32>
    %510 = arith.andi %507, %509 : vector<1x256xi1>
    %c17_i32_170 = arith.constant 17 : i32
    %511 = vector.broadcast %c17_i32_170 : i32 to vector<1x256xi32>
    %512 = arith.cmpi slt, %6, %511 : vector<1x256xi32>
    %513 = arith.andi %510, %512 : vector<1x256xi1>
    %cst_171 = arith.constant 0.000000e+00 : f32
    %514 = vector.shape_cast %513 : vector<1x256xi1> to vector<1x256xi1>
    %515 = vector.broadcast %514 : vector<1x256xi1> to vector<16x256xi1>
    %516 = vector.broadcast %cst_171 : f32 to vector<16x256xf32>
    %517 = arith.select %515, %502, %516 : vector<16x256xi1>, vector<16x256xf32>
    %c224_i32 = arith.constant 224 : i32
    %518 = tpu.dynamic_rotate %1 by %c224_i32 dim 1 : vector<16x256xf32>, i32 -> vector<16x256xf32>
    %c-2_i32_172 = arith.constant -2 : i32
    %519 = vector.broadcast %c-2_i32_172 : i32 to vector<1x256xi32>
    %520 = arith.cmpi sge, %4, %519 : vector<1x256xi32>
    %c14_i32_173 = arith.constant 14 : i32
    %521 = vector.broadcast %c14_i32_173 : i32 to vector<1x256xi32>
    %522 = arith.cmpi slt, %4, %521 : vector<1x256xi32>
    %523 = arith.andi %520, %522 : vector<1x256xi1>
    %c0_i32_174 = arith.constant 0 : i32
    %524 = vector.broadcast %c0_i32_174 : i32 to vector<1x256xi32>
    %525 = arith.cmpi sge, %6, %524 : vector<1x256xi32>
    %526 = arith.andi %523, %525 : vector<1x256xi1>
    %c16_i32_175 = arith.constant 16 : i32
    %527 = vector.broadcast %c16_i32_175 : i32 to vector<1x256xi32>
    %528 = arith.cmpi slt, %6, %527 : vector<1x256xi32>
    %529 = arith.andi %526, %528 : vector<1x256xi1>
    %cst_176 = arith.constant 0.000000e+00 : f32
    %530 = vector.shape_cast %529 : vector<1x256xi1> to vector<1x256xi1>
    %531 = vector.broadcast %530 : vector<1x256xi1> to vector<16x256xi1>
    %532 = vector.broadcast %cst_176 : f32 to vector<16x256xf32>
    %533 = arith.select %531, %518, %532 : vector<16x256xi1>, vector<16x256xf32>
    %c223_i32 = arith.constant 223 : i32
    %534 = tpu.dynamic_rotate %1 by %c223_i32 dim 1 : vector<16x256xf32>, i32 -> vector<16x256xf32>
    %c-2_i32_177 = arith.constant -2 : i32
    %535 = vector.broadcast %c-2_i32_177 : i32 to vector<1x256xi32>
    %536 = arith.cmpi sge, %4, %535 : vector<1x256xi32>
    %c14_i32_178 = arith.constant 14 : i32
    %537 = vector.broadcast %c14_i32_178 : i32 to vector<1x256xi32>
    %538 = arith.cmpi slt, %4, %537 : vector<1x256xi32>
    %539 = arith.andi %536, %538 : vector<1x256xi1>
    %c-1_i32_179 = arith.constant -1 : i32
    %540 = vector.broadcast %c-1_i32_179 : i32 to vector<1x256xi32>
    %541 = arith.cmpi sge, %6, %540 : vector<1x256xi32>
    %542 = arith.andi %539, %541 : vector<1x256xi1>
    %c15_i32_180 = arith.constant 15 : i32
    %543 = vector.broadcast %c15_i32_180 : i32 to vector<1x256xi32>
    %544 = arith.cmpi slt, %6, %543 : vector<1x256xi32>
    %545 = arith.andi %542, %544 : vector<1x256xi1>
    %cst_181 = arith.constant 0.000000e+00 : f32
    %546 = vector.shape_cast %545 : vector<1x256xi1> to vector<1x256xi1>
    %547 = vector.broadcast %546 : vector<1x256xi1> to vector<16x256xi1>
    %548 = vector.broadcast %cst_181 : f32 to vector<16x256xf32>
    %549 = arith.select %547, %534, %548 : vector<16x256xi1>, vector<16x256xf32>
    %c222_i32 = arith.constant 222 : i32
    %550 = tpu.dynamic_rotate %1 by %c222_i32 dim 1 : vector<16x256xf32>, i32 -> vector<16x256xf32>
    %c-2_i32_182 = arith.constant -2 : i32
    %551 = vector.broadcast %c-2_i32_182 : i32 to vector<1x256xi32>
    %552 = arith.cmpi sge, %4, %551 : vector<1x256xi32>
    %c14_i32_183 = arith.constant 14 : i32
    %553 = vector.broadcast %c14_i32_183 : i32 to vector<1x256xi32>
    %554 = arith.cmpi slt, %4, %553 : vector<1x256xi32>
    %555 = arith.andi %552, %554 : vector<1x256xi1>
    %c-2_i32_184 = arith.constant -2 : i32
    %556 = vector.broadcast %c-2_i32_184 : i32 to vector<1x256xi32>
    %557 = arith.cmpi sge, %6, %556 : vector<1x256xi32>
    %558 = arith.andi %555, %557 : vector<1x256xi1>
    %c14_i32_185 = arith.constant 14 : i32
    %559 = vector.broadcast %c14_i32_185 : i32 to vector<1x256xi32>
    %560 = arith.cmpi slt, %6, %559 : vector<1x256xi32>
    %561 = arith.andi %558, %560 : vector<1x256xi1>
    %cst_186 = arith.constant 0.000000e+00 : f32
    %562 = vector.shape_cast %561 : vector<1x256xi1> to vector<1x256xi1>
    %563 = vector.broadcast %562 : vector<1x256xi1> to vector<16x256xi1>
    %564 = vector.broadcast %cst_186 : f32 to vector<16x256xf32>
    %565 = arith.select %563, %550, %564 : vector<16x256xi1>, vector<16x256xf32>
    %566 = tpu.concatenate %197, %213, %229, %245, %261, %277, %293, %309, %325, %341, %357, %373, %1, %389, %405, %421 in 0 : vector<16x256xf32>, vector<16x256xf32>, vector<16x256xf32>, vector<16x256xf32>, vector<16x256xf32>, vector<16x256xf32>, vector<16x256xf32>, vector<16x256xf32>, vector<16x256xf32>, vector<16x256xf32>, vector<16x256xf32>, vector<16x256xf32>, vector<16x256xf32>, vector<16x256xf32>, vector<16x256xf32>, vector<16x256xf32> -> vector<256x256xf32>
    %567 = tpu.concatenate %437, %453, %469, %485, %501, %517, %533, %549, %565 in 0 : vector<16x256xf32>, vector<16x256xf32>, vector<16x256xf32>, vector<16x256xf32>, vector<16x256xf32>, vector<16x256xf32>, vector<16x256xf32>, vector<16x256xf32>, vector<16x256xf32> -> vector<144x256xf32>
    %568 = tpu.concatenate %566, %567 in 0 : vector<256x256xf32>, vector<144x256xf32> -> vector<400x256xf32>
    %c0_187 = arith.constant 0 : index
    %c0_188 = arith.constant 0 : index
    %569 = vector.load %arg4[%c0_187, %c0_188] : memref<16x400xf32, #tpu.memory_space<vmem>>, vector<16x400xf32>
    %cst_189 = arith.constant dense<0.000000e+00> : vector<16x256xf32>
    %570 = tpu.matmul %569, %568, %cst_189 {dimension_numbers = #tpu.dot_dimension_numbers<[1], [0], [0], [1], [0, 0, 1, 1], [], []>} : vector<16x400xf32>, vector<400x256xf32>, vector<16x256xf32> -> vector<16x256xf32>
    %cst_190 = arith.constant dense<0.000000e+00> : vector<16xf32>
    %571 = vector.multi_reduction <add>, %570, %cst_190 [1] : vector<16x256xf32> to vector<16xf32>
    %572 = vector.shape_cast %571 : vector<16xf32> to vector<16x1xf32>
    %cst_191 = arith.constant 2.560000e+02 : f32
    %573 = vector.broadcast %cst_191 : f32 to vector<16x1xf32>
    %574 = arith.divf %572, %573 : vector<16x1xf32>
    %575 = vector.broadcast %574 : vector<16x1xf32> to vector<16x256xf32>
    %576 = arith.subf %570, %575 : vector<16x256xf32>
    %577 = arith.mulf %576, %576 : vector<16x256xf32>
    %cst_192 = arith.constant dense<0.000000e+00> : vector<16xf32>
    %578 = vector.multi_reduction <add>, %577, %cst_192 [1] : vector<16x256xf32> to vector<16xf32>
    %579 = vector.shape_cast %578 : vector<16xf32> to vector<16x1xf32>
    %cst_193 = arith.constant 2.560000e+02 : f32
    %580 = vector.broadcast %cst_193 : f32 to vector<16x1xf32>
    %581 = arith.divf %579, %580 : vector<16x1xf32>
    %cst_194 = arith.constant 9.99999974E-6 : f32
    %582 = vector.broadcast %cst_194 : f32 to vector<16x1xf32>
    %583 = arith.addf %581, %582 : vector<16x1xf32>
    %584 = math.rsqrt %583 : vector<16x1xf32>
    %585 = vector.broadcast %584 : vector<16x1xf32> to vector<16x256xf32>
    %586 = arith.mulf %576, %585 : vector<16x256xf32>
    %cst_195 = arith.constant 0.000000e+00 : f32
    %587 = vector.broadcast %cst_195 : f32 to vector<16x256xf32>
    %588 = arith.cmpf oge, %586, %587 : vector<16x256xf32>
    %cst_196 = arith.constant 2.000000e-01 : f32
    %589 = vector.broadcast %cst_196 : f32 to vector<16x256xf32>
    %590 = arith.mulf %589, %586 : vector<16x256xf32>
    %591 = arith.select %588, %586, %590 : vector<16x256xi1>, vector<16x256xf32>
    %c51_i32 = arith.constant 51 : i32
    %592 = tpu.dynamic_rotate %1 by %c51_i32 dim 1 : vector<16x256xf32>, i32 -> vector<16x256xf32>
    %c3_i32 = arith.constant 3 : i32
    %593 = vector.broadcast %c3_i32 : i32 to vector<1x256xi32>
    %594 = arith.cmpi sge, %4, %593 : vector<1x256xi32>
    %c19_i32 = arith.constant 19 : i32
    %595 = vector.broadcast %c19_i32 : i32 to vector<1x256xi32>
    %596 = arith.cmpi slt, %4, %595 : vector<1x256xi32>
    %597 = arith.andi %594, %596 : vector<1x256xi1>
    %c3_i32_197 = arith.constant 3 : i32
    %598 = vector.broadcast %c3_i32_197 : i32 to vector<1x256xi32>
    %599 = arith.cmpi sge, %6, %598 : vector<1x256xi32>
    %600 = arith.andi %597, %599 : vector<1x256xi1>
    %c19_i32_198 = arith.constant 19 : i32
    %601 = vector.broadcast %c19_i32_198 : i32 to vector<1x256xi32>
    %602 = arith.cmpi slt, %6, %601 : vector<1x256xi32>
    %603 = arith.andi %600, %602 : vector<1x256xi1>
    %cst_199 = arith.constant 0.000000e+00 : f32
    %604 = vector.shape_cast %603 : vector<1x256xi1> to vector<1x256xi1>
    %605 = vector.broadcast %604 : vector<1x256xi1> to vector<16x256xi1>
    %606 = vector.broadcast %cst_199 : f32 to vector<16x256xf32>
    %607 = arith.select %605, %592, %606 : vector<16x256xi1>, vector<16x256xf32>
    %c50_i32 = arith.constant 50 : i32
    %608 = tpu.dynamic_rotate %1 by %c50_i32 dim 1 : vector<16x256xf32>, i32 -> vector<16x256xf32>
    %c3_i32_200 = arith.constant 3 : i32
    %609 = vector.broadcast %c3_i32_200 : i32 to vector<1x256xi32>
    %610 = arith.cmpi sge, %4, %609 : vector<1x256xi32>
    %c19_i32_201 = arith.constant 19 : i32
    %611 = vector.broadcast %c19_i32_201 : i32 to vector<1x256xi32>
    %612 = arith.cmpi slt, %4, %611 : vector<1x256xi32>
    %613 = arith.andi %610, %612 : vector<1x256xi1>
    %c2_i32_202 = arith.constant 2 : i32
    %614 = vector.broadcast %c2_i32_202 : i32 to vector<1x256xi32>
    %615 = arith.cmpi sge, %6, %614 : vector<1x256xi32>
    %616 = arith.andi %613, %615 : vector<1x256xi1>
    %c18_i32_203 = arith.constant 18 : i32
    %617 = vector.broadcast %c18_i32_203 : i32 to vector<1x256xi32>
    %618 = arith.cmpi slt, %6, %617 : vector<1x256xi32>
    %619 = arith.andi %616, %618 : vector<1x256xi1>
    %cst_204 = arith.constant 0.000000e+00 : f32
    %620 = vector.shape_cast %619 : vector<1x256xi1> to vector<1x256xi1>
    %621 = vector.broadcast %620 : vector<1x256xi1> to vector<16x256xi1>
    %622 = vector.broadcast %cst_204 : f32 to vector<16x256xf32>
    %623 = arith.select %621, %608, %622 : vector<16x256xi1>, vector<16x256xf32>
    %c49_i32 = arith.constant 49 : i32
    %624 = tpu.dynamic_rotate %1 by %c49_i32 dim 1 : vector<16x256xf32>, i32 -> vector<16x256xf32>
    %c3_i32_205 = arith.constant 3 : i32
    %625 = vector.broadcast %c3_i32_205 : i32 to vector<1x256xi32>
    %626 = arith.cmpi sge, %4, %625 : vector<1x256xi32>
    %c19_i32_206 = arith.constant 19 : i32
    %627 = vector.broadcast %c19_i32_206 : i32 to vector<1x256xi32>
    %628 = arith.cmpi slt, %4, %627 : vector<1x256xi32>
    %629 = arith.andi %626, %628 : vector<1x256xi1>
    %c1_i32_207 = arith.constant 1 : i32
    %630 = vector.broadcast %c1_i32_207 : i32 to vector<1x256xi32>
    %631 = arith.cmpi sge, %6, %630 : vector<1x256xi32>
    %632 = arith.andi %629, %631 : vector<1x256xi1>
    %c17_i32_208 = arith.constant 17 : i32
    %633 = vector.broadcast %c17_i32_208 : i32 to vector<1x256xi32>
    %634 = arith.cmpi slt, %6, %633 : vector<1x256xi32>
    %635 = arith.andi %632, %634 : vector<1x256xi1>
    %cst_209 = arith.constant 0.000000e+00 : f32
    %636 = vector.shape_cast %635 : vector<1x256xi1> to vector<1x256xi1>
    %637 = vector.broadcast %636 : vector<1x256xi1> to vector<16x256xi1>
    %638 = vector.broadcast %cst_209 : f32 to vector<16x256xf32>
    %639 = arith.select %637, %624, %638 : vector<16x256xi1>, vector<16x256xf32>
    %c48_i32 = arith.constant 48 : i32
    %640 = tpu.dynamic_rotate %1 by %c48_i32 dim 1 : vector<16x256xf32>, i32 -> vector<16x256xf32>
    %c3_i32_210 = arith.constant 3 : i32
    %641 = vector.broadcast %c3_i32_210 : i32 to vector<1x256xi32>
    %642 = arith.cmpi sge, %4, %641 : vector<1x256xi32>
    %c19_i32_211 = arith.constant 19 : i32
    %643 = vector.broadcast %c19_i32_211 : i32 to vector<1x256xi32>
    %644 = arith.cmpi slt, %4, %643 : vector<1x256xi32>
    %645 = arith.andi %642, %644 : vector<1x256xi1>
    %c0_i32_212 = arith.constant 0 : i32
    %646 = vector.broadcast %c0_i32_212 : i32 to vector<1x256xi32>
    %647 = arith.cmpi sge, %6, %646 : vector<1x256xi32>
    %648 = arith.andi %645, %647 : vector<1x256xi1>
    %c16_i32_213 = arith.constant 16 : i32
    %649 = vector.broadcast %c16_i32_213 : i32 to vector<1x256xi32>
    %650 = arith.cmpi slt, %6, %649 : vector<1x256xi32>
    %651 = arith.andi %648, %650 : vector<1x256xi1>
    %cst_214 = arith.constant 0.000000e+00 : f32
    %652 = vector.shape_cast %651 : vector<1x256xi1> to vector<1x256xi1>
    %653 = vector.broadcast %652 : vector<1x256xi1> to vector<16x256xi1>
    %654 = vector.broadcast %cst_214 : f32 to vector<16x256xf32>
    %655 = arith.select %653, %640, %654 : vector<16x256xi1>, vector<16x256xf32>
    %c47_i32 = arith.constant 47 : i32
    %656 = tpu.dynamic_rotate %1 by %c47_i32 dim 1 : vector<16x256xf32>, i32 -> vector<16x256xf32>
    %c3_i32_215 = arith.constant 3 : i32
    %657 = vector.broadcast %c3_i32_215 : i32 to vector<1x256xi32>
    %658 = arith.cmpi sge, %4, %657 : vector<1x256xi32>
    %c19_i32_216 = arith.constant 19 : i32
    %659 = vector.broadcast %c19_i32_216 : i32 to vector<1x256xi32>
    %660 = arith.cmpi slt, %4, %659 : vector<1x256xi32>
    %661 = arith.andi %658, %660 : vector<1x256xi1>
    %c-1_i32_217 = arith.constant -1 : i32
    %662 = vector.broadcast %c-1_i32_217 : i32 to vector<1x256xi32>
    %663 = arith.cmpi sge, %6, %662 : vector<1x256xi32>
    %664 = arith.andi %661, %663 : vector<1x256xi1>
    %c15_i32_218 = arith.constant 15 : i32
    %665 = vector.broadcast %c15_i32_218 : i32 to vector<1x256xi32>
    %666 = arith.cmpi slt, %6, %665 : vector<1x256xi32>
    %667 = arith.andi %664, %666 : vector<1x256xi1>
    %cst_219 = arith.constant 0.000000e+00 : f32
    %668 = vector.shape_cast %667 : vector<1x256xi1> to vector<1x256xi1>
    %669 = vector.broadcast %668 : vector<1x256xi1> to vector<16x256xi1>
    %670 = vector.broadcast %cst_219 : f32 to vector<16x256xf32>
    %671 = arith.select %669, %656, %670 : vector<16x256xi1>, vector<16x256xf32>
    %c46_i32 = arith.constant 46 : i32
    %672 = tpu.dynamic_rotate %1 by %c46_i32 dim 1 : vector<16x256xf32>, i32 -> vector<16x256xf32>
    %c3_i32_220 = arith.constant 3 : i32
    %673 = vector.broadcast %c3_i32_220 : i32 to vector<1x256xi32>
    %674 = arith.cmpi sge, %4, %673 : vector<1x256xi32>
    %c19_i32_221 = arith.constant 19 : i32
    %675 = vector.broadcast %c19_i32_221 : i32 to vector<1x256xi32>
    %676 = arith.cmpi slt, %4, %675 : vector<1x256xi32>
    %677 = arith.andi %674, %676 : vector<1x256xi1>
    %c-2_i32_222 = arith.constant -2 : i32
    %678 = vector.broadcast %c-2_i32_222 : i32 to vector<1x256xi32>
    %679 = arith.cmpi sge, %6, %678 : vector<1x256xi32>
    %680 = arith.andi %677, %679 : vector<1x256xi1>
    %c14_i32_223 = arith.constant 14 : i32
    %681 = vector.broadcast %c14_i32_223 : i32 to vector<1x256xi32>
    %682 = arith.cmpi slt, %6, %681 : vector<1x256xi32>
    %683 = arith.andi %680, %682 : vector<1x256xi1>
    %cst_224 = arith.constant 0.000000e+00 : f32
    %684 = vector.shape_cast %683 : vector<1x256xi1> to vector<1x256xi1>
    %685 = vector.broadcast %684 : vector<1x256xi1> to vector<16x256xi1>
    %686 = vector.broadcast %cst_224 : f32 to vector<16x256xf32>
    %687 = arith.select %685, %672, %686 : vector<16x256xi1>, vector<16x256xf32>
    %c45_i32 = arith.constant 45 : i32
    %688 = tpu.dynamic_rotate %1 by %c45_i32 dim 1 : vector<16x256xf32>, i32 -> vector<16x256xf32>
    %c3_i32_225 = arith.constant 3 : i32
    %689 = vector.broadcast %c3_i32_225 : i32 to vector<1x256xi32>
    %690 = arith.cmpi sge, %4, %689 : vector<1x256xi32>
    %c19_i32_226 = arith.constant 19 : i32
    %691 = vector.broadcast %c19_i32_226 : i32 to vector<1x256xi32>
    %692 = arith.cmpi slt, %4, %691 : vector<1x256xi32>
    %693 = arith.andi %690, %692 : vector<1x256xi1>
    %c-3_i32 = arith.constant -3 : i32
    %694 = vector.broadcast %c-3_i32 : i32 to vector<1x256xi32>
    %695 = arith.cmpi sge, %6, %694 : vector<1x256xi32>
    %696 = arith.andi %693, %695 : vector<1x256xi1>
    %c13_i32 = arith.constant 13 : i32
    %697 = vector.broadcast %c13_i32 : i32 to vector<1x256xi32>
    %698 = arith.cmpi slt, %6, %697 : vector<1x256xi32>
    %699 = arith.andi %696, %698 : vector<1x256xi1>
    %cst_227 = arith.constant 0.000000e+00 : f32
    %700 = vector.shape_cast %699 : vector<1x256xi1> to vector<1x256xi1>
    %701 = vector.broadcast %700 : vector<1x256xi1> to vector<16x256xi1>
    %702 = vector.broadcast %cst_227 : f32 to vector<16x256xf32>
    %703 = arith.select %701, %688, %702 : vector<16x256xi1>, vector<16x256xf32>
    %c35_i32 = arith.constant 35 : i32
    %704 = tpu.dynamic_rotate %1 by %c35_i32 dim 1 : vector<16x256xf32>, i32 -> vector<16x256xf32>
    %c2_i32_228 = arith.constant 2 : i32
    %705 = vector.broadcast %c2_i32_228 : i32 to vector<1x256xi32>
    %706 = arith.cmpi sge, %4, %705 : vector<1x256xi32>
    %c18_i32_229 = arith.constant 18 : i32
    %707 = vector.broadcast %c18_i32_229 : i32 to vector<1x256xi32>
    %708 = arith.cmpi slt, %4, %707 : vector<1x256xi32>
    %709 = arith.andi %706, %708 : vector<1x256xi1>
    %c3_i32_230 = arith.constant 3 : i32
    %710 = vector.broadcast %c3_i32_230 : i32 to vector<1x256xi32>
    %711 = arith.cmpi sge, %6, %710 : vector<1x256xi32>
    %712 = arith.andi %709, %711 : vector<1x256xi1>
    %c19_i32_231 = arith.constant 19 : i32
    %713 = vector.broadcast %c19_i32_231 : i32 to vector<1x256xi32>
    %714 = arith.cmpi slt, %6, %713 : vector<1x256xi32>
    %715 = arith.andi %712, %714 : vector<1x256xi1>
    %cst_232 = arith.constant 0.000000e+00 : f32
    %716 = vector.shape_cast %715 : vector<1x256xi1> to vector<1x256xi1>
    %717 = vector.broadcast %716 : vector<1x256xi1> to vector<16x256xi1>
    %718 = vector.broadcast %cst_232 : f32 to vector<16x256xf32>
    %719 = arith.select %717, %704, %718 : vector<16x256xi1>, vector<16x256xf32>
    %c34_i32_233 = arith.constant 34 : i32
    %720 = tpu.dynamic_rotate %1 by %c34_i32_233 dim 1 : vector<16x256xf32>, i32 -> vector<16x256xf32>
    %c2_i32_234 = arith.constant 2 : i32
    %721 = vector.broadcast %c2_i32_234 : i32 to vector<1x256xi32>
    %722 = arith.cmpi sge, %4, %721 : vector<1x256xi32>
    %c18_i32_235 = arith.constant 18 : i32
    %723 = vector.broadcast %c18_i32_235 : i32 to vector<1x256xi32>
    %724 = arith.cmpi slt, %4, %723 : vector<1x256xi32>
    %725 = arith.andi %722, %724 : vector<1x256xi1>
    %c2_i32_236 = arith.constant 2 : i32
    %726 = vector.broadcast %c2_i32_236 : i32 to vector<1x256xi32>
    %727 = arith.cmpi sge, %6, %726 : vector<1x256xi32>
    %728 = arith.andi %725, %727 : vector<1x256xi1>
    %c18_i32_237 = arith.constant 18 : i32
    %729 = vector.broadcast %c18_i32_237 : i32 to vector<1x256xi32>
    %730 = arith.cmpi slt, %6, %729 : vector<1x256xi32>
    %731 = arith.andi %728, %730 : vector<1x256xi1>
    %cst_238 = arith.constant 0.000000e+00 : f32
    %732 = vector.shape_cast %731 : vector<1x256xi1> to vector<1x256xi1>
    %733 = vector.broadcast %732 : vector<1x256xi1> to vector<16x256xi1>
    %734 = vector.broadcast %cst_238 : f32 to vector<16x256xf32>
    %735 = arith.select %733, %720, %734 : vector<16x256xi1>, vector<16x256xf32>
    %c33_i32_239 = arith.constant 33 : i32
    %736 = tpu.dynamic_rotate %1 by %c33_i32_239 dim 1 : vector<16x256xf32>, i32 -> vector<16x256xf32>
    %c2_i32_240 = arith.constant 2 : i32
    %737 = vector.broadcast %c2_i32_240 : i32 to vector<1x256xi32>
    %738 = arith.cmpi sge, %4, %737 : vector<1x256xi32>
    %c18_i32_241 = arith.constant 18 : i32
    %739 = vector.broadcast %c18_i32_241 : i32 to vector<1x256xi32>
    %740 = arith.cmpi slt, %4, %739 : vector<1x256xi32>
    %741 = arith.andi %738, %740 : vector<1x256xi1>
    %c1_i32_242 = arith.constant 1 : i32
    %742 = vector.broadcast %c1_i32_242 : i32 to vector<1x256xi32>
    %743 = arith.cmpi sge, %6, %742 : vector<1x256xi32>
    %744 = arith.andi %741, %743 : vector<1x256xi1>
    %c17_i32_243 = arith.constant 17 : i32
    %745 = vector.broadcast %c17_i32_243 : i32 to vector<1x256xi32>
    %746 = arith.cmpi slt, %6, %745 : vector<1x256xi32>
    %747 = arith.andi %744, %746 : vector<1x256xi1>
    %cst_244 = arith.constant 0.000000e+00 : f32
    %748 = vector.shape_cast %747 : vector<1x256xi1> to vector<1x256xi1>
    %749 = vector.broadcast %748 : vector<1x256xi1> to vector<16x256xi1>
    %750 = vector.broadcast %cst_244 : f32 to vector<16x256xf32>
    %751 = arith.select %749, %736, %750 : vector<16x256xi1>, vector<16x256xf32>
    %c32_i32_245 = arith.constant 32 : i32
    %752 = tpu.dynamic_rotate %1 by %c32_i32_245 dim 1 : vector<16x256xf32>, i32 -> vector<16x256xf32>
    %c2_i32_246 = arith.constant 2 : i32
    %753 = vector.broadcast %c2_i32_246 : i32 to vector<1x256xi32>
    %754 = arith.cmpi sge, %4, %753 : vector<1x256xi32>
    %c18_i32_247 = arith.constant 18 : i32
    %755 = vector.broadcast %c18_i32_247 : i32 to vector<1x256xi32>
    %756 = arith.cmpi slt, %4, %755 : vector<1x256xi32>
    %757 = arith.andi %754, %756 : vector<1x256xi1>
    %c0_i32_248 = arith.constant 0 : i32
    %758 = vector.broadcast %c0_i32_248 : i32 to vector<1x256xi32>
    %759 = arith.cmpi sge, %6, %758 : vector<1x256xi32>
    %760 = arith.andi %757, %759 : vector<1x256xi1>
    %c16_i32_249 = arith.constant 16 : i32
    %761 = vector.broadcast %c16_i32_249 : i32 to vector<1x256xi32>
    %762 = arith.cmpi slt, %6, %761 : vector<1x256xi32>
    %763 = arith.andi %760, %762 : vector<1x256xi1>
    %cst_250 = arith.constant 0.000000e+00 : f32
    %764 = vector.shape_cast %763 : vector<1x256xi1> to vector<1x256xi1>
    %765 = vector.broadcast %764 : vector<1x256xi1> to vector<16x256xi1>
    %766 = vector.broadcast %cst_250 : f32 to vector<16x256xf32>
    %767 = arith.select %765, %752, %766 : vector<16x256xi1>, vector<16x256xf32>
    %c31_i32_251 = arith.constant 31 : i32
    %768 = tpu.dynamic_rotate %1 by %c31_i32_251 dim 1 : vector<16x256xf32>, i32 -> vector<16x256xf32>
    %c2_i32_252 = arith.constant 2 : i32
    %769 = vector.broadcast %c2_i32_252 : i32 to vector<1x256xi32>
    %770 = arith.cmpi sge, %4, %769 : vector<1x256xi32>
    %c18_i32_253 = arith.constant 18 : i32
    %771 = vector.broadcast %c18_i32_253 : i32 to vector<1x256xi32>
    %772 = arith.cmpi slt, %4, %771 : vector<1x256xi32>
    %773 = arith.andi %770, %772 : vector<1x256xi1>
    %c-1_i32_254 = arith.constant -1 : i32
    %774 = vector.broadcast %c-1_i32_254 : i32 to vector<1x256xi32>
    %775 = arith.cmpi sge, %6, %774 : vector<1x256xi32>
    %776 = arith.andi %773, %775 : vector<1x256xi1>
    %c15_i32_255 = arith.constant 15 : i32
    %777 = vector.broadcast %c15_i32_255 : i32 to vector<1x256xi32>
    %778 = arith.cmpi slt, %6, %777 : vector<1x256xi32>
    %779 = arith.andi %776, %778 : vector<1x256xi1>
    %cst_256 = arith.constant 0.000000e+00 : f32
    %780 = vector.shape_cast %779 : vector<1x256xi1> to vector<1x256xi1>
    %781 = vector.broadcast %780 : vector<1x256xi1> to vector<16x256xi1>
    %782 = vector.broadcast %cst_256 : f32 to vector<16x256xf32>
    %783 = arith.select %781, %768, %782 : vector<16x256xi1>, vector<16x256xf32>
    %c30_i32_257 = arith.constant 30 : i32
    %784 = tpu.dynamic_rotate %1 by %c30_i32_257 dim 1 : vector<16x256xf32>, i32 -> vector<16x256xf32>
    %c2_i32_258 = arith.constant 2 : i32
    %785 = vector.broadcast %c2_i32_258 : i32 to vector<1x256xi32>
    %786 = arith.cmpi sge, %4, %785 : vector<1x256xi32>
    %c18_i32_259 = arith.constant 18 : i32
    %787 = vector.broadcast %c18_i32_259 : i32 to vector<1x256xi32>
    %788 = arith.cmpi slt, %4, %787 : vector<1x256xi32>
    %789 = arith.andi %786, %788 : vector<1x256xi1>
    %c-2_i32_260 = arith.constant -2 : i32
    %790 = vector.broadcast %c-2_i32_260 : i32 to vector<1x256xi32>
    %791 = arith.cmpi sge, %6, %790 : vector<1x256xi32>
    %792 = arith.andi %789, %791 : vector<1x256xi1>
    %c14_i32_261 = arith.constant 14 : i32
    %793 = vector.broadcast %c14_i32_261 : i32 to vector<1x256xi32>
    %794 = arith.cmpi slt, %6, %793 : vector<1x256xi32>
    %795 = arith.andi %792, %794 : vector<1x256xi1>
    %cst_262 = arith.constant 0.000000e+00 : f32
    %796 = vector.shape_cast %795 : vector<1x256xi1> to vector<1x256xi1>
    %797 = vector.broadcast %796 : vector<1x256xi1> to vector<16x256xi1>
    %798 = vector.broadcast %cst_262 : f32 to vector<16x256xf32>
    %799 = arith.select %797, %784, %798 : vector<16x256xi1>, vector<16x256xf32>
    %c29_i32 = arith.constant 29 : i32
    %800 = tpu.dynamic_rotate %1 by %c29_i32 dim 1 : vector<16x256xf32>, i32 -> vector<16x256xf32>
    %c2_i32_263 = arith.constant 2 : i32
    %801 = vector.broadcast %c2_i32_263 : i32 to vector<1x256xi32>
    %802 = arith.cmpi sge, %4, %801 : vector<1x256xi32>
    %c18_i32_264 = arith.constant 18 : i32
    %803 = vector.broadcast %c18_i32_264 : i32 to vector<1x256xi32>
    %804 = arith.cmpi slt, %4, %803 : vector<1x256xi32>
    %805 = arith.andi %802, %804 : vector<1x256xi1>
    %c-3_i32_265 = arith.constant -3 : i32
    %806 = vector.broadcast %c-3_i32_265 : i32 to vector<1x256xi32>
    %807 = arith.cmpi sge, %6, %806 : vector<1x256xi32>
    %808 = arith.andi %805, %807 : vector<1x256xi1>
    %c13_i32_266 = arith.constant 13 : i32
    %809 = vector.broadcast %c13_i32_266 : i32 to vector<1x256xi32>
    %810 = arith.cmpi slt, %6, %809 : vector<1x256xi32>
    %811 = arith.andi %808, %810 : vector<1x256xi1>
    %cst_267 = arith.constant 0.000000e+00 : f32
    %812 = vector.shape_cast %811 : vector<1x256xi1> to vector<1x256xi1>
    %813 = vector.broadcast %812 : vector<1x256xi1> to vector<16x256xi1>
    %814 = vector.broadcast %cst_267 : f32 to vector<16x256xf32>
    %815 = arith.select %813, %800, %814 : vector<16x256xi1>, vector<16x256xf32>
    %c19_i32_268 = arith.constant 19 : i32
    %816 = tpu.dynamic_rotate %1 by %c19_i32_268 dim 1 : vector<16x256xf32>, i32 -> vector<16x256xf32>
    %c1_i32_269 = arith.constant 1 : i32
    %817 = vector.broadcast %c1_i32_269 : i32 to vector<1x256xi32>
    %818 = arith.cmpi sge, %4, %817 : vector<1x256xi32>
    %c17_i32_270 = arith.constant 17 : i32
    %819 = vector.broadcast %c17_i32_270 : i32 to vector<1x256xi32>
    %820 = arith.cmpi slt, %4, %819 : vector<1x256xi32>
    %821 = arith.andi %818, %820 : vector<1x256xi1>
    %c3_i32_271 = arith.constant 3 : i32
    %822 = vector.broadcast %c3_i32_271 : i32 to vector<1x256xi32>
    %823 = arith.cmpi sge, %6, %822 : vector<1x256xi32>
    %824 = arith.andi %821, %823 : vector<1x256xi1>
    %c19_i32_272 = arith.constant 19 : i32
    %825 = vector.broadcast %c19_i32_272 : i32 to vector<1x256xi32>
    %826 = arith.cmpi slt, %6, %825 : vector<1x256xi32>
    %827 = arith.andi %824, %826 : vector<1x256xi1>
    %cst_273 = arith.constant 0.000000e+00 : f32
    %828 = vector.shape_cast %827 : vector<1x256xi1> to vector<1x256xi1>
    %829 = vector.broadcast %828 : vector<1x256xi1> to vector<16x256xi1>
    %830 = vector.broadcast %cst_273 : f32 to vector<16x256xf32>
    %831 = arith.select %829, %816, %830 : vector<16x256xi1>, vector<16x256xf32>
    %c18_i32_274 = arith.constant 18 : i32
    %832 = tpu.dynamic_rotate %1 by %c18_i32_274 dim 1 : vector<16x256xf32>, i32 -> vector<16x256xf32>
    %c1_i32_275 = arith.constant 1 : i32
    %833 = vector.broadcast %c1_i32_275 : i32 to vector<1x256xi32>
    %834 = arith.cmpi sge, %4, %833 : vector<1x256xi32>
    %c17_i32_276 = arith.constant 17 : i32
    %835 = vector.broadcast %c17_i32_276 : i32 to vector<1x256xi32>
    %836 = arith.cmpi slt, %4, %835 : vector<1x256xi32>
    %837 = arith.andi %834, %836 : vector<1x256xi1>
    %c2_i32_277 = arith.constant 2 : i32
    %838 = vector.broadcast %c2_i32_277 : i32 to vector<1x256xi32>
    %839 = arith.cmpi sge, %6, %838 : vector<1x256xi32>
    %840 = arith.andi %837, %839 : vector<1x256xi1>
    %c18_i32_278 = arith.constant 18 : i32
    %841 = vector.broadcast %c18_i32_278 : i32 to vector<1x256xi32>
    %842 = arith.cmpi slt, %6, %841 : vector<1x256xi32>
    %843 = arith.andi %840, %842 : vector<1x256xi1>
    %cst_279 = arith.constant 0.000000e+00 : f32
    %844 = vector.shape_cast %843 : vector<1x256xi1> to vector<1x256xi1>
    %845 = vector.broadcast %844 : vector<1x256xi1> to vector<16x256xi1>
    %846 = vector.broadcast %cst_279 : f32 to vector<16x256xf32>
    %847 = arith.select %845, %832, %846 : vector<16x256xi1>, vector<16x256xf32>
    %c17_i32_280 = arith.constant 17 : i32
    %848 = tpu.dynamic_rotate %1 by %c17_i32_280 dim 1 : vector<16x256xf32>, i32 -> vector<16x256xf32>
    %c1_i32_281 = arith.constant 1 : i32
    %849 = vector.broadcast %c1_i32_281 : i32 to vector<1x256xi32>
    %850 = arith.cmpi sge, %4, %849 : vector<1x256xi32>
    %c17_i32_282 = arith.constant 17 : i32
    %851 = vector.broadcast %c17_i32_282 : i32 to vector<1x256xi32>
    %852 = arith.cmpi slt, %4, %851 : vector<1x256xi32>
    %853 = arith.andi %850, %852 : vector<1x256xi1>
    %c1_i32_283 = arith.constant 1 : i32
    %854 = vector.broadcast %c1_i32_283 : i32 to vector<1x256xi32>
    %855 = arith.cmpi sge, %6, %854 : vector<1x256xi32>
    %856 = arith.andi %853, %855 : vector<1x256xi1>
    %c17_i32_284 = arith.constant 17 : i32
    %857 = vector.broadcast %c17_i32_284 : i32 to vector<1x256xi32>
    %858 = arith.cmpi slt, %6, %857 : vector<1x256xi32>
    %859 = arith.andi %856, %858 : vector<1x256xi1>
    %cst_285 = arith.constant 0.000000e+00 : f32
    %860 = vector.shape_cast %859 : vector<1x256xi1> to vector<1x256xi1>
    %861 = vector.broadcast %860 : vector<1x256xi1> to vector<16x256xi1>
    %862 = vector.broadcast %cst_285 : f32 to vector<16x256xf32>
    %863 = arith.select %861, %848, %862 : vector<16x256xi1>, vector<16x256xf32>
    %c16_i32_286 = arith.constant 16 : i32
    %864 = tpu.dynamic_rotate %1 by %c16_i32_286 dim 1 : vector<16x256xf32>, i32 -> vector<16x256xf32>
    %c1_i32_287 = arith.constant 1 : i32
    %865 = vector.broadcast %c1_i32_287 : i32 to vector<1x256xi32>
    %866 = arith.cmpi sge, %4, %865 : vector<1x256xi32>
    %c17_i32_288 = arith.constant 17 : i32
    %867 = vector.broadcast %c17_i32_288 : i32 to vector<1x256xi32>
    %868 = arith.cmpi slt, %4, %867 : vector<1x256xi32>
    %869 = arith.andi %866, %868 : vector<1x256xi1>
    %c0_i32_289 = arith.constant 0 : i32
    %870 = vector.broadcast %c0_i32_289 : i32 to vector<1x256xi32>
    %871 = arith.cmpi sge, %6, %870 : vector<1x256xi32>
    %872 = arith.andi %869, %871 : vector<1x256xi1>
    %c16_i32_290 = arith.constant 16 : i32
    %873 = vector.broadcast %c16_i32_290 : i32 to vector<1x256xi32>
    %874 = arith.cmpi slt, %6, %873 : vector<1x256xi32>
    %875 = arith.andi %872, %874 : vector<1x256xi1>
    %cst_291 = arith.constant 0.000000e+00 : f32
    %876 = vector.shape_cast %875 : vector<1x256xi1> to vector<1x256xi1>
    %877 = vector.broadcast %876 : vector<1x256xi1> to vector<16x256xi1>
    %878 = vector.broadcast %cst_291 : f32 to vector<16x256xf32>
    %879 = arith.select %877, %864, %878 : vector<16x256xi1>, vector<16x256xf32>
    %c15_i32_292 = arith.constant 15 : i32
    %880 = tpu.dynamic_rotate %1 by %c15_i32_292 dim 1 : vector<16x256xf32>, i32 -> vector<16x256xf32>
    %c1_i32_293 = arith.constant 1 : i32
    %881 = vector.broadcast %c1_i32_293 : i32 to vector<1x256xi32>
    %882 = arith.cmpi sge, %4, %881 : vector<1x256xi32>
    %c17_i32_294 = arith.constant 17 : i32
    %883 = vector.broadcast %c17_i32_294 : i32 to vector<1x256xi32>
    %884 = arith.cmpi slt, %4, %883 : vector<1x256xi32>
    %885 = arith.andi %882, %884 : vector<1x256xi1>
    %c-1_i32_295 = arith.constant -1 : i32
    %886 = vector.broadcast %c-1_i32_295 : i32 to vector<1x256xi32>
    %887 = arith.cmpi sge, %6, %886 : vector<1x256xi32>
    %888 = arith.andi %885, %887 : vector<1x256xi1>
    %c15_i32_296 = arith.constant 15 : i32
    %889 = vector.broadcast %c15_i32_296 : i32 to vector<1x256xi32>
    %890 = arith.cmpi slt, %6, %889 : vector<1x256xi32>
    %891 = arith.andi %888, %890 : vector<1x256xi1>
    %cst_297 = arith.constant 0.000000e+00 : f32
    %892 = vector.shape_cast %891 : vector<1x256xi1> to vector<1x256xi1>
    %893 = vector.broadcast %892 : vector<1x256xi1> to vector<16x256xi1>
    %894 = vector.broadcast %cst_297 : f32 to vector<16x256xf32>
    %895 = arith.select %893, %880, %894 : vector<16x256xi1>, vector<16x256xf32>
    %c14_i32_298 = arith.constant 14 : i32
    %896 = tpu.dynamic_rotate %1 by %c14_i32_298 dim 1 : vector<16x256xf32>, i32 -> vector<16x256xf32>
    %c1_i32_299 = arith.constant 1 : i32
    %897 = vector.broadcast %c1_i32_299 : i32 to vector<1x256xi32>
    %898 = arith.cmpi sge, %4, %897 : vector<1x256xi32>
    %c17_i32_300 = arith.constant 17 : i32
    %899 = vector.broadcast %c17_i32_300 : i32 to vector<1x256xi32>
    %900 = arith.cmpi slt, %4, %899 : vector<1x256xi32>
    %901 = arith.andi %898, %900 : vector<1x256xi1>
    %c-2_i32_301 = arith.constant -2 : i32
    %902 = vector.broadcast %c-2_i32_301 : i32 to vector<1x256xi32>
    %903 = arith.cmpi sge, %6, %902 : vector<1x256xi32>
    %904 = arith.andi %901, %903 : vector<1x256xi1>
    %c14_i32_302 = arith.constant 14 : i32
    %905 = vector.broadcast %c14_i32_302 : i32 to vector<1x256xi32>
    %906 = arith.cmpi slt, %6, %905 : vector<1x256xi32>
    %907 = arith.andi %904, %906 : vector<1x256xi1>
    %cst_303 = arith.constant 0.000000e+00 : f32
    %908 = vector.shape_cast %907 : vector<1x256xi1> to vector<1x256xi1>
    %909 = vector.broadcast %908 : vector<1x256xi1> to vector<16x256xi1>
    %910 = vector.broadcast %cst_303 : f32 to vector<16x256xf32>
    %911 = arith.select %909, %896, %910 : vector<16x256xi1>, vector<16x256xf32>
    %c13_i32_304 = arith.constant 13 : i32
    %912 = tpu.dynamic_rotate %1 by %c13_i32_304 dim 1 : vector<16x256xf32>, i32 -> vector<16x256xf32>
    %c1_i32_305 = arith.constant 1 : i32
    %913 = vector.broadcast %c1_i32_305 : i32 to vector<1x256xi32>
    %914 = arith.cmpi sge, %4, %913 : vector<1x256xi32>
    %c17_i32_306 = arith.constant 17 : i32
    %915 = vector.broadcast %c17_i32_306 : i32 to vector<1x256xi32>
    %916 = arith.cmpi slt, %4, %915 : vector<1x256xi32>
    %917 = arith.andi %914, %916 : vector<1x256xi1>
    %c-3_i32_307 = arith.constant -3 : i32
    %918 = vector.broadcast %c-3_i32_307 : i32 to vector<1x256xi32>
    %919 = arith.cmpi sge, %6, %918 : vector<1x256xi32>
    %920 = arith.andi %917, %919 : vector<1x256xi1>
    %c13_i32_308 = arith.constant 13 : i32
    %921 = vector.broadcast %c13_i32_308 : i32 to vector<1x256xi32>
    %922 = arith.cmpi slt, %6, %921 : vector<1x256xi32>
    %923 = arith.andi %920, %922 : vector<1x256xi1>
    %cst_309 = arith.constant 0.000000e+00 : f32
    %924 = vector.shape_cast %923 : vector<1x256xi1> to vector<1x256xi1>
    %925 = vector.broadcast %924 : vector<1x256xi1> to vector<16x256xi1>
    %926 = vector.broadcast %cst_309 : f32 to vector<16x256xf32>
    %927 = arith.select %925, %912, %926 : vector<16x256xi1>, vector<16x256xf32>
    %c3_i32_310 = arith.constant 3 : i32
    %928 = tpu.dynamic_rotate %1 by %c3_i32_310 dim 1 : vector<16x256xf32>, i32 -> vector<16x256xf32>
    %c0_i32_311 = arith.constant 0 : i32
    %929 = vector.broadcast %c0_i32_311 : i32 to vector<1x256xi32>
    %930 = arith.cmpi sge, %4, %929 : vector<1x256xi32>
    %c16_i32_312 = arith.constant 16 : i32
    %931 = vector.broadcast %c16_i32_312 : i32 to vector<1x256xi32>
    %932 = arith.cmpi slt, %4, %931 : vector<1x256xi32>
    %933 = arith.andi %930, %932 : vector<1x256xi1>
    %c3_i32_313 = arith.constant 3 : i32
    %934 = vector.broadcast %c3_i32_313 : i32 to vector<1x256xi32>
    %935 = arith.cmpi sge, %6, %934 : vector<1x256xi32>
    %936 = arith.andi %933, %935 : vector<1x256xi1>
    %c19_i32_314 = arith.constant 19 : i32
    %937 = vector.broadcast %c19_i32_314 : i32 to vector<1x256xi32>
    %938 = arith.cmpi slt, %6, %937 : vector<1x256xi32>
    %939 = arith.andi %936, %938 : vector<1x256xi1>
    %cst_315 = arith.constant 0.000000e+00 : f32
    %940 = vector.shape_cast %939 : vector<1x256xi1> to vector<1x256xi1>
    %941 = vector.broadcast %940 : vector<1x256xi1> to vector<16x256xi1>
    %942 = vector.broadcast %cst_315 : f32 to vector<16x256xf32>
    %943 = arith.select %941, %928, %942 : vector<16x256xi1>, vector<16x256xf32>
    %c2_i32_316 = arith.constant 2 : i32
    %944 = tpu.dynamic_rotate %1 by %c2_i32_316 dim 1 : vector<16x256xf32>, i32 -> vector<16x256xf32>
    %c0_i32_317 = arith.constant 0 : i32
    %945 = vector.broadcast %c0_i32_317 : i32 to vector<1x256xi32>
    %946 = arith.cmpi sge, %4, %945 : vector<1x256xi32>
    %c16_i32_318 = arith.constant 16 : i32
    %947 = vector.broadcast %c16_i32_318 : i32 to vector<1x256xi32>
    %948 = arith.cmpi slt, %4, %947 : vector<1x256xi32>
    %949 = arith.andi %946, %948 : vector<1x256xi1>
    %c2_i32_319 = arith.constant 2 : i32
    %950 = vector.broadcast %c2_i32_319 : i32 to vector<1x256xi32>
    %951 = arith.cmpi sge, %6, %950 : vector<1x256xi32>
    %952 = arith.andi %949, %951 : vector<1x256xi1>
    %c18_i32_320 = arith.constant 18 : i32
    %953 = vector.broadcast %c18_i32_320 : i32 to vector<1x256xi32>
    %954 = arith.cmpi slt, %6, %953 : vector<1x256xi32>
    %955 = arith.andi %952, %954 : vector<1x256xi1>
    %cst_321 = arith.constant 0.000000e+00 : f32
    %956 = vector.shape_cast %955 : vector<1x256xi1> to vector<1x256xi1>
    %957 = vector.broadcast %956 : vector<1x256xi1> to vector<16x256xi1>
    %958 = vector.broadcast %cst_321 : f32 to vector<16x256xf32>
    %959 = arith.select %957, %944, %958 : vector<16x256xi1>, vector<16x256xf32>
    %c1_i32_322 = arith.constant 1 : i32
    %960 = tpu.dynamic_rotate %1 by %c1_i32_322 dim 1 : vector<16x256xf32>, i32 -> vector<16x256xf32>
    %c0_i32_323 = arith.constant 0 : i32
    %961 = vector.broadcast %c0_i32_323 : i32 to vector<1x256xi32>
    %962 = arith.cmpi sge, %4, %961 : vector<1x256xi32>
    %c16_i32_324 = arith.constant 16 : i32
    %963 = vector.broadcast %c16_i32_324 : i32 to vector<1x256xi32>
    %964 = arith.cmpi slt, %4, %963 : vector<1x256xi32>
    %965 = arith.andi %962, %964 : vector<1x256xi1>
    %c1_i32_325 = arith.constant 1 : i32
    %966 = vector.broadcast %c1_i32_325 : i32 to vector<1x256xi32>
    %967 = arith.cmpi sge, %6, %966 : vector<1x256xi32>
    %968 = arith.andi %965, %967 : vector<1x256xi1>
    %c17_i32_326 = arith.constant 17 : i32
    %969 = vector.broadcast %c17_i32_326 : i32 to vector<1x256xi32>
    %970 = arith.cmpi slt, %6, %969 : vector<1x256xi32>
    %971 = arith.andi %968, %970 : vector<1x256xi1>
    %cst_327 = arith.constant 0.000000e+00 : f32
    %972 = vector.shape_cast %971 : vector<1x256xi1> to vector<1x256xi1>
    %973 = vector.broadcast %972 : vector<1x256xi1> to vector<16x256xi1>
    %974 = vector.broadcast %cst_327 : f32 to vector<16x256xf32>
    %975 = arith.select %973, %960, %974 : vector<16x256xi1>, vector<16x256xf32>
    %c255_i32_328 = arith.constant 255 : i32
    %976 = tpu.dynamic_rotate %1 by %c255_i32_328 dim 1 : vector<16x256xf32>, i32 -> vector<16x256xf32>
    %c0_i32_329 = arith.constant 0 : i32
    %977 = vector.broadcast %c0_i32_329 : i32 to vector<1x256xi32>
    %978 = arith.cmpi sge, %4, %977 : vector<1x256xi32>
    %c16_i32_330 = arith.constant 16 : i32
    %979 = vector.broadcast %c16_i32_330 : i32 to vector<1x256xi32>
    %980 = arith.cmpi slt, %4, %979 : vector<1x256xi32>
    %981 = arith.andi %978, %980 : vector<1x256xi1>
    %c-1_i32_331 = arith.constant -1 : i32
    %982 = vector.broadcast %c-1_i32_331 : i32 to vector<1x256xi32>
    %983 = arith.cmpi sge, %6, %982 : vector<1x256xi32>
    %984 = arith.andi %981, %983 : vector<1x256xi1>
    %c15_i32_332 = arith.constant 15 : i32
    %985 = vector.broadcast %c15_i32_332 : i32 to vector<1x256xi32>
    %986 = arith.cmpi slt, %6, %985 : vector<1x256xi32>
    %987 = arith.andi %984, %986 : vector<1x256xi1>
    %cst_333 = arith.constant 0.000000e+00 : f32
    %988 = vector.shape_cast %987 : vector<1x256xi1> to vector<1x256xi1>
    %989 = vector.broadcast %988 : vector<1x256xi1> to vector<16x256xi1>
    %990 = vector.broadcast %cst_333 : f32 to vector<16x256xf32>
    %991 = arith.select %989, %976, %990 : vector<16x256xi1>, vector<16x256xf32>
    %c254_i32_334 = arith.constant 254 : i32
    %992 = tpu.dynamic_rotate %1 by %c254_i32_334 dim 1 : vector<16x256xf32>, i32 -> vector<16x256xf32>
    %c0_i32_335 = arith.constant 0 : i32
    %993 = vector.broadcast %c0_i32_335 : i32 to vector<1x256xi32>
    %994 = arith.cmpi sge, %4, %993 : vector<1x256xi32>
    %c16_i32_336 = arith.constant 16 : i32
    %995 = vector.broadcast %c16_i32_336 : i32 to vector<1x256xi32>
    %996 = arith.cmpi slt, %4, %995 : vector<1x256xi32>
    %997 = arith.andi %994, %996 : vector<1x256xi1>
    %c-2_i32_337 = arith.constant -2 : i32
    %998 = vector.broadcast %c-2_i32_337 : i32 to vector<1x256xi32>
    %999 = arith.cmpi sge, %6, %998 : vector<1x256xi32>
    %1000 = arith.andi %997, %999 : vector<1x256xi1>
    %c14_i32_338 = arith.constant 14 : i32
    %1001 = vector.broadcast %c14_i32_338 : i32 to vector<1x256xi32>
    %1002 = arith.cmpi slt, %6, %1001 : vector<1x256xi32>
    %1003 = arith.andi %1000, %1002 : vector<1x256xi1>
    %cst_339 = arith.constant 0.000000e+00 : f32
    %1004 = vector.shape_cast %1003 : vector<1x256xi1> to vector<1x256xi1>
    %1005 = vector.broadcast %1004 : vector<1x256xi1> to vector<16x256xi1>
    %1006 = vector.broadcast %cst_339 : f32 to vector<16x256xf32>
    %1007 = arith.select %1005, %992, %1006 : vector<16x256xi1>, vector<16x256xf32>
    %c253_i32 = arith.constant 253 : i32
    %1008 = tpu.dynamic_rotate %1 by %c253_i32 dim 1 : vector<16x256xf32>, i32 -> vector<16x256xf32>
    %c0_i32_340 = arith.constant 0 : i32
    %1009 = vector.broadcast %c0_i32_340 : i32 to vector<1x256xi32>
    %1010 = arith.cmpi sge, %4, %1009 : vector<1x256xi32>
    %c16_i32_341 = arith.constant 16 : i32
    %1011 = vector.broadcast %c16_i32_341 : i32 to vector<1x256xi32>
    %1012 = arith.cmpi slt, %4, %1011 : vector<1x256xi32>
    %1013 = arith.andi %1010, %1012 : vector<1x256xi1>
    %c-3_i32_342 = arith.constant -3 : i32
    %1014 = vector.broadcast %c-3_i32_342 : i32 to vector<1x256xi32>
    %1015 = arith.cmpi sge, %6, %1014 : vector<1x256xi32>
    %1016 = arith.andi %1013, %1015 : vector<1x256xi1>
    %c13_i32_343 = arith.constant 13 : i32
    %1017 = vector.broadcast %c13_i32_343 : i32 to vector<1x256xi32>
    %1018 = arith.cmpi slt, %6, %1017 : vector<1x256xi32>
    %1019 = arith.andi %1016, %1018 : vector<1x256xi1>
    %cst_344 = arith.constant 0.000000e+00 : f32
    %1020 = vector.shape_cast %1019 : vector<1x256xi1> to vector<1x256xi1>
    %1021 = vector.broadcast %1020 : vector<1x256xi1> to vector<16x256xi1>
    %1022 = vector.broadcast %cst_344 : f32 to vector<16x256xf32>
    %1023 = arith.select %1021, %1008, %1022 : vector<16x256xi1>, vector<16x256xf32>
    %c243_i32 = arith.constant 243 : i32
    %1024 = tpu.dynamic_rotate %1 by %c243_i32 dim 1 : vector<16x256xf32>, i32 -> vector<16x256xf32>
    %c-1_i32_345 = arith.constant -1 : i32
    %1025 = vector.broadcast %c-1_i32_345 : i32 to vector<1x256xi32>
    %1026 = arith.cmpi sge, %4, %1025 : vector<1x256xi32>
    %c15_i32_346 = arith.constant 15 : i32
    %1027 = vector.broadcast %c15_i32_346 : i32 to vector<1x256xi32>
    %1028 = arith.cmpi slt, %4, %1027 : vector<1x256xi32>
    %1029 = arith.andi %1026, %1028 : vector<1x256xi1>
    %c3_i32_347 = arith.constant 3 : i32
    %1030 = vector.broadcast %c3_i32_347 : i32 to vector<1x256xi32>
    %1031 = arith.cmpi sge, %6, %1030 : vector<1x256xi32>
    %1032 = arith.andi %1029, %1031 : vector<1x256xi1>
    %c19_i32_348 = arith.constant 19 : i32
    %1033 = vector.broadcast %c19_i32_348 : i32 to vector<1x256xi32>
    %1034 = arith.cmpi slt, %6, %1033 : vector<1x256xi32>
    %1035 = arith.andi %1032, %1034 : vector<1x256xi1>
    %cst_349 = arith.constant 0.000000e+00 : f32
    %1036 = vector.shape_cast %1035 : vector<1x256xi1> to vector<1x256xi1>
    %1037 = vector.broadcast %1036 : vector<1x256xi1> to vector<16x256xi1>
    %1038 = vector.broadcast %cst_349 : f32 to vector<16x256xf32>
    %1039 = arith.select %1037, %1024, %1038 : vector<16x256xi1>, vector<16x256xf32>
    %c242_i32_350 = arith.constant 242 : i32
    %1040 = tpu.dynamic_rotate %1 by %c242_i32_350 dim 1 : vector<16x256xf32>, i32 -> vector<16x256xf32>
    %c-1_i32_351 = arith.constant -1 : i32
    %1041 = vector.broadcast %c-1_i32_351 : i32 to vector<1x256xi32>
    %1042 = arith.cmpi sge, %4, %1041 : vector<1x256xi32>
    %c15_i32_352 = arith.constant 15 : i32
    %1043 = vector.broadcast %c15_i32_352 : i32 to vector<1x256xi32>
    %1044 = arith.cmpi slt, %4, %1043 : vector<1x256xi32>
    %1045 = arith.andi %1042, %1044 : vector<1x256xi1>
    %c2_i32_353 = arith.constant 2 : i32
    %1046 = vector.broadcast %c2_i32_353 : i32 to vector<1x256xi32>
    %1047 = arith.cmpi sge, %6, %1046 : vector<1x256xi32>
    %1048 = arith.andi %1045, %1047 : vector<1x256xi1>
    %c18_i32_354 = arith.constant 18 : i32
    %1049 = vector.broadcast %c18_i32_354 : i32 to vector<1x256xi32>
    %1050 = arith.cmpi slt, %6, %1049 : vector<1x256xi32>
    %1051 = arith.andi %1048, %1050 : vector<1x256xi1>
    %cst_355 = arith.constant 0.000000e+00 : f32
    %1052 = vector.shape_cast %1051 : vector<1x256xi1> to vector<1x256xi1>
    %1053 = vector.broadcast %1052 : vector<1x256xi1> to vector<16x256xi1>
    %1054 = vector.broadcast %cst_355 : f32 to vector<16x256xf32>
    %1055 = arith.select %1053, %1040, %1054 : vector<16x256xi1>, vector<16x256xf32>
    %c241_i32_356 = arith.constant 241 : i32
    %1056 = tpu.dynamic_rotate %1 by %c241_i32_356 dim 1 : vector<16x256xf32>, i32 -> vector<16x256xf32>
    %c-1_i32_357 = arith.constant -1 : i32
    %1057 = vector.broadcast %c-1_i32_357 : i32 to vector<1x256xi32>
    %1058 = arith.cmpi sge, %4, %1057 : vector<1x256xi32>
    %c15_i32_358 = arith.constant 15 : i32
    %1059 = vector.broadcast %c15_i32_358 : i32 to vector<1x256xi32>
    %1060 = arith.cmpi slt, %4, %1059 : vector<1x256xi32>
    %1061 = arith.andi %1058, %1060 : vector<1x256xi1>
    %c1_i32_359 = arith.constant 1 : i32
    %1062 = vector.broadcast %c1_i32_359 : i32 to vector<1x256xi32>
    %1063 = arith.cmpi sge, %6, %1062 : vector<1x256xi32>
    %1064 = arith.andi %1061, %1063 : vector<1x256xi1>
    %c17_i32_360 = arith.constant 17 : i32
    %1065 = vector.broadcast %c17_i32_360 : i32 to vector<1x256xi32>
    %1066 = arith.cmpi slt, %6, %1065 : vector<1x256xi32>
    %1067 = arith.andi %1064, %1066 : vector<1x256xi1>
    %cst_361 = arith.constant 0.000000e+00 : f32
    %1068 = vector.shape_cast %1067 : vector<1x256xi1> to vector<1x256xi1>
    %1069 = vector.broadcast %1068 : vector<1x256xi1> to vector<16x256xi1>
    %1070 = vector.broadcast %cst_361 : f32 to vector<16x256xf32>
    %1071 = arith.select %1069, %1056, %1070 : vector<16x256xi1>, vector<16x256xf32>
    %c240_i32_362 = arith.constant 240 : i32
    %1072 = tpu.dynamic_rotate %1 by %c240_i32_362 dim 1 : vector<16x256xf32>, i32 -> vector<16x256xf32>
    %c-1_i32_363 = arith.constant -1 : i32
    %1073 = vector.broadcast %c-1_i32_363 : i32 to vector<1x256xi32>
    %1074 = arith.cmpi sge, %4, %1073 : vector<1x256xi32>
    %c15_i32_364 = arith.constant 15 : i32
    %1075 = vector.broadcast %c15_i32_364 : i32 to vector<1x256xi32>
    %1076 = arith.cmpi slt, %4, %1075 : vector<1x256xi32>
    %1077 = arith.andi %1074, %1076 : vector<1x256xi1>
    %c0_i32_365 = arith.constant 0 : i32
    %1078 = vector.broadcast %c0_i32_365 : i32 to vector<1x256xi32>
    %1079 = arith.cmpi sge, %6, %1078 : vector<1x256xi32>
    %1080 = arith.andi %1077, %1079 : vector<1x256xi1>
    %c16_i32_366 = arith.constant 16 : i32
    %1081 = vector.broadcast %c16_i32_366 : i32 to vector<1x256xi32>
    %1082 = arith.cmpi slt, %6, %1081 : vector<1x256xi32>
    %1083 = arith.andi %1080, %1082 : vector<1x256xi1>
    %cst_367 = arith.constant 0.000000e+00 : f32
    %1084 = vector.shape_cast %1083 : vector<1x256xi1> to vector<1x256xi1>
    %1085 = vector.broadcast %1084 : vector<1x256xi1> to vector<16x256xi1>
    %1086 = vector.broadcast %cst_367 : f32 to vector<16x256xf32>
    %1087 = arith.select %1085, %1072, %1086 : vector<16x256xi1>, vector<16x256xf32>
    %c239_i32_368 = arith.constant 239 : i32
    %1088 = tpu.dynamic_rotate %1 by %c239_i32_368 dim 1 : vector<16x256xf32>, i32 -> vector<16x256xf32>
    %c-1_i32_369 = arith.constant -1 : i32
    %1089 = vector.broadcast %c-1_i32_369 : i32 to vector<1x256xi32>
    %1090 = arith.cmpi sge, %4, %1089 : vector<1x256xi32>
    %c15_i32_370 = arith.constant 15 : i32
    %1091 = vector.broadcast %c15_i32_370 : i32 to vector<1x256xi32>
    %1092 = arith.cmpi slt, %4, %1091 : vector<1x256xi32>
    %1093 = arith.andi %1090, %1092 : vector<1x256xi1>
    %c-1_i32_371 = arith.constant -1 : i32
    %1094 = vector.broadcast %c-1_i32_371 : i32 to vector<1x256xi32>
    %1095 = arith.cmpi sge, %6, %1094 : vector<1x256xi32>
    %1096 = arith.andi %1093, %1095 : vector<1x256xi1>
    %c15_i32_372 = arith.constant 15 : i32
    %1097 = vector.broadcast %c15_i32_372 : i32 to vector<1x256xi32>
    %1098 = arith.cmpi slt, %6, %1097 : vector<1x256xi32>
    %1099 = arith.andi %1096, %1098 : vector<1x256xi1>
    %cst_373 = arith.constant 0.000000e+00 : f32
    %1100 = vector.shape_cast %1099 : vector<1x256xi1> to vector<1x256xi1>
    %1101 = vector.broadcast %1100 : vector<1x256xi1> to vector<16x256xi1>
    %1102 = vector.broadcast %cst_373 : f32 to vector<16x256xf32>
    %1103 = arith.select %1101, %1088, %1102 : vector<16x256xi1>, vector<16x256xf32>
    %c238_i32_374 = arith.constant 238 : i32
    %1104 = tpu.dynamic_rotate %1 by %c238_i32_374 dim 1 : vector<16x256xf32>, i32 -> vector<16x256xf32>
    %c-1_i32_375 = arith.constant -1 : i32
    %1105 = vector.broadcast %c-1_i32_375 : i32 to vector<1x256xi32>
    %1106 = arith.cmpi sge, %4, %1105 : vector<1x256xi32>
    %c15_i32_376 = arith.constant 15 : i32
    %1107 = vector.broadcast %c15_i32_376 : i32 to vector<1x256xi32>
    %1108 = arith.cmpi slt, %4, %1107 : vector<1x256xi32>
    %1109 = arith.andi %1106, %1108 : vector<1x256xi1>
    %c-2_i32_377 = arith.constant -2 : i32
    %1110 = vector.broadcast %c-2_i32_377 : i32 to vector<1x256xi32>
    %1111 = arith.cmpi sge, %6, %1110 : vector<1x256xi32>
    %1112 = arith.andi %1109, %1111 : vector<1x256xi1>
    %c14_i32_378 = arith.constant 14 : i32
    %1113 = vector.broadcast %c14_i32_378 : i32 to vector<1x256xi32>
    %1114 = arith.cmpi slt, %6, %1113 : vector<1x256xi32>
    %1115 = arith.andi %1112, %1114 : vector<1x256xi1>
    %cst_379 = arith.constant 0.000000e+00 : f32
    %1116 = vector.shape_cast %1115 : vector<1x256xi1> to vector<1x256xi1>
    %1117 = vector.broadcast %1116 : vector<1x256xi1> to vector<16x256xi1>
    %1118 = vector.broadcast %cst_379 : f32 to vector<16x256xf32>
    %1119 = arith.select %1117, %1104, %1118 : vector<16x256xi1>, vector<16x256xf32>
    %c237_i32 = arith.constant 237 : i32
    %1120 = tpu.dynamic_rotate %1 by %c237_i32 dim 1 : vector<16x256xf32>, i32 -> vector<16x256xf32>
    %c-1_i32_380 = arith.constant -1 : i32
    %1121 = vector.broadcast %c-1_i32_380 : i32 to vector<1x256xi32>
    %1122 = arith.cmpi sge, %4, %1121 : vector<1x256xi32>
    %c15_i32_381 = arith.constant 15 : i32
    %1123 = vector.broadcast %c15_i32_381 : i32 to vector<1x256xi32>
    %1124 = arith.cmpi slt, %4, %1123 : vector<1x256xi32>
    %1125 = arith.andi %1122, %1124 : vector<1x256xi1>
    %c-3_i32_382 = arith.constant -3 : i32
    %1126 = vector.broadcast %c-3_i32_382 : i32 to vector<1x256xi32>
    %1127 = arith.cmpi sge, %6, %1126 : vector<1x256xi32>
    %1128 = arith.andi %1125, %1127 : vector<1x256xi1>
    %c13_i32_383 = arith.constant 13 : i32
    %1129 = vector.broadcast %c13_i32_383 : i32 to vector<1x256xi32>
    %1130 = arith.cmpi slt, %6, %1129 : vector<1x256xi32>
    %1131 = arith.andi %1128, %1130 : vector<1x256xi1>
    %cst_384 = arith.constant 0.000000e+00 : f32
    %1132 = vector.shape_cast %1131 : vector<1x256xi1> to vector<1x256xi1>
    %1133 = vector.broadcast %1132 : vector<1x256xi1> to vector<16x256xi1>
    %1134 = vector.broadcast %cst_384 : f32 to vector<16x256xf32>
    %1135 = arith.select %1133, %1120, %1134 : vector<16x256xi1>, vector<16x256xf32>
    %c227_i32 = arith.constant 227 : i32
    %1136 = tpu.dynamic_rotate %1 by %c227_i32 dim 1 : vector<16x256xf32>, i32 -> vector<16x256xf32>
    %c-2_i32_385 = arith.constant -2 : i32
    %1137 = vector.broadcast %c-2_i32_385 : i32 to vector<1x256xi32>
    %1138 = arith.cmpi sge, %4, %1137 : vector<1x256xi32>
    %c14_i32_386 = arith.constant 14 : i32
    %1139 = vector.broadcast %c14_i32_386 : i32 to vector<1x256xi32>
    %1140 = arith.cmpi slt, %4, %1139 : vector<1x256xi32>
    %1141 = arith.andi %1138, %1140 : vector<1x256xi1>
    %c3_i32_387 = arith.constant 3 : i32
    %1142 = vector.broadcast %c3_i32_387 : i32 to vector<1x256xi32>
    %1143 = arith.cmpi sge, %6, %1142 : vector<1x256xi32>
    %1144 = arith.andi %1141, %1143 : vector<1x256xi1>
    %c19_i32_388 = arith.constant 19 : i32
    %1145 = vector.broadcast %c19_i32_388 : i32 to vector<1x256xi32>
    %1146 = arith.cmpi slt, %6, %1145 : vector<1x256xi32>
    %1147 = arith.andi %1144, %1146 : vector<1x256xi1>
    %cst_389 = arith.constant 0.000000e+00 : f32
    %1148 = vector.shape_cast %1147 : vector<1x256xi1> to vector<1x256xi1>
    %1149 = vector.broadcast %1148 : vector<1x256xi1> to vector<16x256xi1>
    %1150 = vector.broadcast %cst_389 : f32 to vector<16x256xf32>
    %1151 = arith.select %1149, %1136, %1150 : vector<16x256xi1>, vector<16x256xf32>
    %c226_i32_390 = arith.constant 226 : i32
    %1152 = tpu.dynamic_rotate %1 by %c226_i32_390 dim 1 : vector<16x256xf32>, i32 -> vector<16x256xf32>
    %c-2_i32_391 = arith.constant -2 : i32
    %1153 = vector.broadcast %c-2_i32_391 : i32 to vector<1x256xi32>
    %1154 = arith.cmpi sge, %4, %1153 : vector<1x256xi32>
    %c14_i32_392 = arith.constant 14 : i32
    %1155 = vector.broadcast %c14_i32_392 : i32 to vector<1x256xi32>
    %1156 = arith.cmpi slt, %4, %1155 : vector<1x256xi32>
    %1157 = arith.andi %1154, %1156 : vector<1x256xi1>
    %c2_i32_393 = arith.constant 2 : i32
    %1158 = vector.broadcast %c2_i32_393 : i32 to vector<1x256xi32>
    %1159 = arith.cmpi sge, %6, %1158 : vector<1x256xi32>
    %1160 = arith.andi %1157, %1159 : vector<1x256xi1>
    %c18_i32_394 = arith.constant 18 : i32
    %1161 = vector.broadcast %c18_i32_394 : i32 to vector<1x256xi32>
    %1162 = arith.cmpi slt, %6, %1161 : vector<1x256xi32>
    %1163 = arith.andi %1160, %1162 : vector<1x256xi1>
    %cst_395 = arith.constant 0.000000e+00 : f32
    %1164 = vector.shape_cast %1163 : vector<1x256xi1> to vector<1x256xi1>
    %1165 = vector.broadcast %1164 : vector<1x256xi1> to vector<16x256xi1>
    %1166 = vector.broadcast %cst_395 : f32 to vector<16x256xf32>
    %1167 = arith.select %1165, %1152, %1166 : vector<16x256xi1>, vector<16x256xf32>
    %c225_i32_396 = arith.constant 225 : i32
    %1168 = tpu.dynamic_rotate %1 by %c225_i32_396 dim 1 : vector<16x256xf32>, i32 -> vector<16x256xf32>
    %c-2_i32_397 = arith.constant -2 : i32
    %1169 = vector.broadcast %c-2_i32_397 : i32 to vector<1x256xi32>
    %1170 = arith.cmpi sge, %4, %1169 : vector<1x256xi32>
    %c14_i32_398 = arith.constant 14 : i32
    %1171 = vector.broadcast %c14_i32_398 : i32 to vector<1x256xi32>
    %1172 = arith.cmpi slt, %4, %1171 : vector<1x256xi32>
    %1173 = arith.andi %1170, %1172 : vector<1x256xi1>
    %c1_i32_399 = arith.constant 1 : i32
    %1174 = vector.broadcast %c1_i32_399 : i32 to vector<1x256xi32>
    %1175 = arith.cmpi sge, %6, %1174 : vector<1x256xi32>
    %1176 = arith.andi %1173, %1175 : vector<1x256xi1>
    %c17_i32_400 = arith.constant 17 : i32
    %1177 = vector.broadcast %c17_i32_400 : i32 to vector<1x256xi32>
    %1178 = arith.cmpi slt, %6, %1177 : vector<1x256xi32>
    %1179 = arith.andi %1176, %1178 : vector<1x256xi1>
    %cst_401 = arith.constant 0.000000e+00 : f32
    %1180 = vector.shape_cast %1179 : vector<1x256xi1> to vector<1x256xi1>
    %1181 = vector.broadcast %1180 : vector<1x256xi1> to vector<16x256xi1>
    %1182 = vector.broadcast %cst_401 : f32 to vector<16x256xf32>
    %1183 = arith.select %1181, %1168, %1182 : vector<16x256xi1>, vector<16x256xf32>
    %c224_i32_402 = arith.constant 224 : i32
    %1184 = tpu.dynamic_rotate %1 by %c224_i32_402 dim 1 : vector<16x256xf32>, i32 -> vector<16x256xf32>
    %c-2_i32_403 = arith.constant -2 : i32
    %1185 = vector.broadcast %c-2_i32_403 : i32 to vector<1x256xi32>
    %1186 = arith.cmpi sge, %4, %1185 : vector<1x256xi32>
    %c14_i32_404 = arith.constant 14 : i32
    %1187 = vector.broadcast %c14_i32_404 : i32 to vector<1x256xi32>
    %1188 = arith.cmpi slt, %4, %1187 : vector<1x256xi32>
    %1189 = arith.andi %1186, %1188 : vector<1x256xi1>
    %c0_i32_405 = arith.constant 0 : i32
    %1190 = vector.broadcast %c0_i32_405 : i32 to vector<1x256xi32>
    %1191 = arith.cmpi sge, %6, %1190 : vector<1x256xi32>
    %1192 = arith.andi %1189, %1191 : vector<1x256xi1>
    %c16_i32_406 = arith.constant 16 : i32
    %1193 = vector.broadcast %c16_i32_406 : i32 to vector<1x256xi32>
    %1194 = arith.cmpi slt, %6, %1193 : vector<1x256xi32>
    %1195 = arith.andi %1192, %1194 : vector<1x256xi1>
    %cst_407 = arith.constant 0.000000e+00 : f32
    %1196 = vector.shape_cast %1195 : vector<1x256xi1> to vector<1x256xi1>
    %1197 = vector.broadcast %1196 : vector<1x256xi1> to vector<16x256xi1>
    %1198 = vector.broadcast %cst_407 : f32 to vector<16x256xf32>
    %1199 = arith.select %1197, %1184, %1198 : vector<16x256xi1>, vector<16x256xf32>
    %c223_i32_408 = arith.constant 223 : i32
    %1200 = tpu.dynamic_rotate %1 by %c223_i32_408 dim 1 : vector<16x256xf32>, i32 -> vector<16x256xf32>
    %c-2_i32_409 = arith.constant -2 : i32
    %1201 = vector.broadcast %c-2_i32_409 : i32 to vector<1x256xi32>
    %1202 = arith.cmpi sge, %4, %1201 : vector<1x256xi32>
    %c14_i32_410 = arith.constant 14 : i32
    %1203 = vector.broadcast %c14_i32_410 : i32 to vector<1x256xi32>
    %1204 = arith.cmpi slt, %4, %1203 : vector<1x256xi32>
    %1205 = arith.andi %1202, %1204 : vector<1x256xi1>
    %c-1_i32_411 = arith.constant -1 : i32
    %1206 = vector.broadcast %c-1_i32_411 : i32 to vector<1x256xi32>
    %1207 = arith.cmpi sge, %6, %1206 : vector<1x256xi32>
    %1208 = arith.andi %1205, %1207 : vector<1x256xi1>
    %c15_i32_412 = arith.constant 15 : i32
    %1209 = vector.broadcast %c15_i32_412 : i32 to vector<1x256xi32>
    %1210 = arith.cmpi slt, %6, %1209 : vector<1x256xi32>
    %1211 = arith.andi %1208, %1210 : vector<1x256xi1>
    %cst_413 = arith.constant 0.000000e+00 : f32
    %1212 = vector.shape_cast %1211 : vector<1x256xi1> to vector<1x256xi1>
    %1213 = vector.broadcast %1212 : vector<1x256xi1> to vector<16x256xi1>
    %1214 = vector.broadcast %cst_413 : f32 to vector<16x256xf32>
    %1215 = arith.select %1213, %1200, %1214 : vector<16x256xi1>, vector<16x256xf32>
    %c222_i32_414 = arith.constant 222 : i32
    %1216 = tpu.dynamic_rotate %1 by %c222_i32_414 dim 1 : vector<16x256xf32>, i32 -> vector<16x256xf32>
    %c-2_i32_415 = arith.constant -2 : i32
    %1217 = vector.broadcast %c-2_i32_415 : i32 to vector<1x256xi32>
    %1218 = arith.cmpi sge, %4, %1217 : vector<1x256xi32>
    %c14_i32_416 = arith.constant 14 : i32
    %1219 = vector.broadcast %c14_i32_416 : i32 to vector<1x256xi32>
    %1220 = arith.cmpi slt, %4, %1219 : vector<1x256xi32>
    %1221 = arith.andi %1218, %1220 : vector<1x256xi1>
    %c-2_i32_417 = arith.constant -2 : i32
    %1222 = vector.broadcast %c-2_i32_417 : i32 to vector<1x256xi32>
    %1223 = arith.cmpi sge, %6, %1222 : vector<1x256xi32>
    %1224 = arith.andi %1221, %1223 : vector<1x256xi1>
    %c14_i32_418 = arith.constant 14 : i32
    %1225 = vector.broadcast %c14_i32_418 : i32 to vector<1x256xi32>
    %1226 = arith.cmpi slt, %6, %1225 : vector<1x256xi32>
    %1227 = arith.andi %1224, %1226 : vector<1x256xi1>
    %cst_419 = arith.constant 0.000000e+00 : f32
    %1228 = vector.shape_cast %1227 : vector<1x256xi1> to vector<1x256xi1>
    %1229 = vector.broadcast %1228 : vector<1x256xi1> to vector<16x256xi1>
    %1230 = vector.broadcast %cst_419 : f32 to vector<16x256xf32>
    %1231 = arith.select %1229, %1216, %1230 : vector<16x256xi1>, vector<16x256xf32>
    %c221_i32 = arith.constant 221 : i32
    %1232 = tpu.dynamic_rotate %1 by %c221_i32 dim 1 : vector<16x256xf32>, i32 -> vector<16x256xf32>
    %c-2_i32_420 = arith.constant -2 : i32
    %1233 = vector.broadcast %c-2_i32_420 : i32 to vector<1x256xi32>
    %1234 = arith.cmpi sge, %4, %1233 : vector<1x256xi32>
    %c14_i32_421 = arith.constant 14 : i32
    %1235 = vector.broadcast %c14_i32_421 : i32 to vector<1x256xi32>
    %1236 = arith.cmpi slt, %4, %1235 : vector<1x256xi32>
    %1237 = arith.andi %1234, %1236 : vector<1x256xi1>
    %c-3_i32_422 = arith.constant -3 : i32
    %1238 = vector.broadcast %c-3_i32_422 : i32 to vector<1x256xi32>
    %1239 = arith.cmpi sge, %6, %1238 : vector<1x256xi32>
    %1240 = arith.andi %1237, %1239 : vector<1x256xi1>
    %c13_i32_423 = arith.constant 13 : i32
    %1241 = vector.broadcast %c13_i32_423 : i32 to vector<1x256xi32>
    %1242 = arith.cmpi slt, %6, %1241 : vector<1x256xi32>
    %1243 = arith.andi %1240, %1242 : vector<1x256xi1>
    %cst_424 = arith.constant 0.000000e+00 : f32
    %1244 = vector.shape_cast %1243 : vector<1x256xi1> to vector<1x256xi1>
    %1245 = vector.broadcast %1244 : vector<1x256xi1> to vector<16x256xi1>
    %1246 = vector.broadcast %cst_424 : f32 to vector<16x256xf32>
    %1247 = arith.select %1245, %1232, %1246 : vector<16x256xi1>, vector<16x256xf32>
    %c211_i32 = arith.constant 211 : i32
    %1248 = tpu.dynamic_rotate %1 by %c211_i32 dim 1 : vector<16x256xf32>, i32 -> vector<16x256xf32>
    %c-3_i32_425 = arith.constant -3 : i32
    %1249 = vector.broadcast %c-3_i32_425 : i32 to vector<1x256xi32>
    %1250 = arith.cmpi sge, %4, %1249 : vector<1x256xi32>
    %c13_i32_426 = arith.constant 13 : i32
    %1251 = vector.broadcast %c13_i32_426 : i32 to vector<1x256xi32>
    %1252 = arith.cmpi slt, %4, %1251 : vector<1x256xi32>
    %1253 = arith.andi %1250, %1252 : vector<1x256xi1>
    %c3_i32_427 = arith.constant 3 : i32
    %1254 = vector.broadcast %c3_i32_427 : i32 to vector<1x256xi32>
    %1255 = arith.cmpi sge, %6, %1254 : vector<1x256xi32>
    %1256 = arith.andi %1253, %1255 : vector<1x256xi1>
    %c19_i32_428 = arith.constant 19 : i32
    %1257 = vector.broadcast %c19_i32_428 : i32 to vector<1x256xi32>
    %1258 = arith.cmpi slt, %6, %1257 : vector<1x256xi32>
    %1259 = arith.andi %1256, %1258 : vector<1x256xi1>
    %cst_429 = arith.constant 0.000000e+00 : f32
    %1260 = vector.shape_cast %1259 : vector<1x256xi1> to vector<1x256xi1>
    %1261 = vector.broadcast %1260 : vector<1x256xi1> to vector<16x256xi1>
    %1262 = vector.broadcast %cst_429 : f32 to vector<16x256xf32>
    %1263 = arith.select %1261, %1248, %1262 : vector<16x256xi1>, vector<16x256xf32>
    %c210_i32 = arith.constant 210 : i32
    %1264 = tpu.dynamic_rotate %1 by %c210_i32 dim 1 : vector<16x256xf32>, i32 -> vector<16x256xf32>
    %c-3_i32_430 = arith.constant -3 : i32
    %1265 = vector.broadcast %c-3_i32_430 : i32 to vector<1x256xi32>
    %1266 = arith.cmpi sge, %4, %1265 : vector<1x256xi32>
    %c13_i32_431 = arith.constant 13 : i32
    %1267 = vector.broadcast %c13_i32_431 : i32 to vector<1x256xi32>
    %1268 = arith.cmpi slt, %4, %1267 : vector<1x256xi32>
    %1269 = arith.andi %1266, %1268 : vector<1x256xi1>
    %c2_i32_432 = arith.constant 2 : i32
    %1270 = vector.broadcast %c2_i32_432 : i32 to vector<1x256xi32>
    %1271 = arith.cmpi sge, %6, %1270 : vector<1x256xi32>
    %1272 = arith.andi %1269, %1271 : vector<1x256xi1>
    %c18_i32_433 = arith.constant 18 : i32
    %1273 = vector.broadcast %c18_i32_433 : i32 to vector<1x256xi32>
    %1274 = arith.cmpi slt, %6, %1273 : vector<1x256xi32>
    %1275 = arith.andi %1272, %1274 : vector<1x256xi1>
    %cst_434 = arith.constant 0.000000e+00 : f32
    %1276 = vector.shape_cast %1275 : vector<1x256xi1> to vector<1x256xi1>
    %1277 = vector.broadcast %1276 : vector<1x256xi1> to vector<16x256xi1>
    %1278 = vector.broadcast %cst_434 : f32 to vector<16x256xf32>
    %1279 = arith.select %1277, %1264, %1278 : vector<16x256xi1>, vector<16x256xf32>
    %c209_i32 = arith.constant 209 : i32
    %1280 = tpu.dynamic_rotate %1 by %c209_i32 dim 1 : vector<16x256xf32>, i32 -> vector<16x256xf32>
    %c-3_i32_435 = arith.constant -3 : i32
    %1281 = vector.broadcast %c-3_i32_435 : i32 to vector<1x256xi32>
    %1282 = arith.cmpi sge, %4, %1281 : vector<1x256xi32>
    %c13_i32_436 = arith.constant 13 : i32
    %1283 = vector.broadcast %c13_i32_436 : i32 to vector<1x256xi32>
    %1284 = arith.cmpi slt, %4, %1283 : vector<1x256xi32>
    %1285 = arith.andi %1282, %1284 : vector<1x256xi1>
    %c1_i32_437 = arith.constant 1 : i32
    %1286 = vector.broadcast %c1_i32_437 : i32 to vector<1x256xi32>
    %1287 = arith.cmpi sge, %6, %1286 : vector<1x256xi32>
    %1288 = arith.andi %1285, %1287 : vector<1x256xi1>
    %c17_i32_438 = arith.constant 17 : i32
    %1289 = vector.broadcast %c17_i32_438 : i32 to vector<1x256xi32>
    %1290 = arith.cmpi slt, %6, %1289 : vector<1x256xi32>
    %1291 = arith.andi %1288, %1290 : vector<1x256xi1>
    %cst_439 = arith.constant 0.000000e+00 : f32
    %1292 = vector.shape_cast %1291 : vector<1x256xi1> to vector<1x256xi1>
    %1293 = vector.broadcast %1292 : vector<1x256xi1> to vector<16x256xi1>
    %1294 = vector.broadcast %cst_439 : f32 to vector<16x256xf32>
    %1295 = arith.select %1293, %1280, %1294 : vector<16x256xi1>, vector<16x256xf32>
    %c208_i32 = arith.constant 208 : i32
    %1296 = tpu.dynamic_rotate %1 by %c208_i32 dim 1 : vector<16x256xf32>, i32 -> vector<16x256xf32>
    %c-3_i32_440 = arith.constant -3 : i32
    %1297 = vector.broadcast %c-3_i32_440 : i32 to vector<1x256xi32>
    %1298 = arith.cmpi sge, %4, %1297 : vector<1x256xi32>
    %c13_i32_441 = arith.constant 13 : i32
    %1299 = vector.broadcast %c13_i32_441 : i32 to vector<1x256xi32>
    %1300 = arith.cmpi slt, %4, %1299 : vector<1x256xi32>
    %1301 = arith.andi %1298, %1300 : vector<1x256xi1>
    %c0_i32_442 = arith.constant 0 : i32
    %1302 = vector.broadcast %c0_i32_442 : i32 to vector<1x256xi32>
    %1303 = arith.cmpi sge, %6, %1302 : vector<1x256xi32>
    %1304 = arith.andi %1301, %1303 : vector<1x256xi1>
    %c16_i32_443 = arith.constant 16 : i32
    %1305 = vector.broadcast %c16_i32_443 : i32 to vector<1x256xi32>
    %1306 = arith.cmpi slt, %6, %1305 : vector<1x256xi32>
    %1307 = arith.andi %1304, %1306 : vector<1x256xi1>
    %cst_444 = arith.constant 0.000000e+00 : f32
    %1308 = vector.shape_cast %1307 : vector<1x256xi1> to vector<1x256xi1>
    %1309 = vector.broadcast %1308 : vector<1x256xi1> to vector<16x256xi1>
    %1310 = vector.broadcast %cst_444 : f32 to vector<16x256xf32>
    %1311 = arith.select %1309, %1296, %1310 : vector<16x256xi1>, vector<16x256xf32>
    %c207_i32 = arith.constant 207 : i32
    %1312 = tpu.dynamic_rotate %1 by %c207_i32 dim 1 : vector<16x256xf32>, i32 -> vector<16x256xf32>
    %c-3_i32_445 = arith.constant -3 : i32
    %1313 = vector.broadcast %c-3_i32_445 : i32 to vector<1x256xi32>
    %1314 = arith.cmpi sge, %4, %1313 : vector<1x256xi32>
    %c13_i32_446 = arith.constant 13 : i32
    %1315 = vector.broadcast %c13_i32_446 : i32 to vector<1x256xi32>
    %1316 = arith.cmpi slt, %4, %1315 : vector<1x256xi32>
    %1317 = arith.andi %1314, %1316 : vector<1x256xi1>
    %c-1_i32_447 = arith.constant -1 : i32
    %1318 = vector.broadcast %c-1_i32_447 : i32 to vector<1x256xi32>
    %1319 = arith.cmpi sge, %6, %1318 : vector<1x256xi32>
    %1320 = arith.andi %1317, %1319 : vector<1x256xi1>
    %c15_i32_448 = arith.constant 15 : i32
    %1321 = vector.broadcast %c15_i32_448 : i32 to vector<1x256xi32>
    %1322 = arith.cmpi slt, %6, %1321 : vector<1x256xi32>
    %1323 = arith.andi %1320, %1322 : vector<1x256xi1>
    %cst_449 = arith.constant 0.000000e+00 : f32
    %1324 = vector.shape_cast %1323 : vector<1x256xi1> to vector<1x256xi1>
    %1325 = vector.broadcast %1324 : vector<1x256xi1> to vector<16x256xi1>
    %1326 = vector.broadcast %cst_449 : f32 to vector<16x256xf32>
    %1327 = arith.select %1325, %1312, %1326 : vector<16x256xi1>, vector<16x256xf32>
    %c206_i32 = arith.constant 206 : i32
    %1328 = tpu.dynamic_rotate %1 by %c206_i32 dim 1 : vector<16x256xf32>, i32 -> vector<16x256xf32>
    %c-3_i32_450 = arith.constant -3 : i32
    %1329 = vector.broadcast %c-3_i32_450 : i32 to vector<1x256xi32>
    %1330 = arith.cmpi sge, %4, %1329 : vector<1x256xi32>
    %c13_i32_451 = arith.constant 13 : i32
    %1331 = vector.broadcast %c13_i32_451 : i32 to vector<1x256xi32>
    %1332 = arith.cmpi slt, %4, %1331 : vector<1x256xi32>
    %1333 = arith.andi %1330, %1332 : vector<1x256xi1>
    %c-2_i32_452 = arith.constant -2 : i32
    %1334 = vector.broadcast %c-2_i32_452 : i32 to vector<1x256xi32>
    %1335 = arith.cmpi sge, %6, %1334 : vector<1x256xi32>
    %1336 = arith.andi %1333, %1335 : vector<1x256xi1>
    %c14_i32_453 = arith.constant 14 : i32
    %1337 = vector.broadcast %c14_i32_453 : i32 to vector<1x256xi32>
    %1338 = arith.cmpi slt, %6, %1337 : vector<1x256xi32>
    %1339 = arith.andi %1336, %1338 : vector<1x256xi1>
    %cst_454 = arith.constant 0.000000e+00 : f32
    %1340 = vector.shape_cast %1339 : vector<1x256xi1> to vector<1x256xi1>
    %1341 = vector.broadcast %1340 : vector<1x256xi1> to vector<16x256xi1>
    %1342 = vector.broadcast %cst_454 : f32 to vector<16x256xf32>
    %1343 = arith.select %1341, %1328, %1342 : vector<16x256xi1>, vector<16x256xf32>
    %c205_i32 = arith.constant 205 : i32
    %1344 = tpu.dynamic_rotate %1 by %c205_i32 dim 1 : vector<16x256xf32>, i32 -> vector<16x256xf32>
    %c-3_i32_455 = arith.constant -3 : i32
    %1345 = vector.broadcast %c-3_i32_455 : i32 to vector<1x256xi32>
    %1346 = arith.cmpi sge, %4, %1345 : vector<1x256xi32>
    %c13_i32_456 = arith.constant 13 : i32
    %1347 = vector.broadcast %c13_i32_456 : i32 to vector<1x256xi32>
    %1348 = arith.cmpi slt, %4, %1347 : vector<1x256xi32>
    %1349 = arith.andi %1346, %1348 : vector<1x256xi1>
    %c-3_i32_457 = arith.constant -3 : i32
    %1350 = vector.broadcast %c-3_i32_457 : i32 to vector<1x256xi32>
    %1351 = arith.cmpi sge, %6, %1350 : vector<1x256xi32>
    %1352 = arith.andi %1349, %1351 : vector<1x256xi1>
    %c13_i32_458 = arith.constant 13 : i32
    %1353 = vector.broadcast %c13_i32_458 : i32 to vector<1x256xi32>
    %1354 = arith.cmpi slt, %6, %1353 : vector<1x256xi32>
    %1355 = arith.andi %1352, %1354 : vector<1x256xi1>
    %cst_459 = arith.constant 0.000000e+00 : f32
    %1356 = vector.shape_cast %1355 : vector<1x256xi1> to vector<1x256xi1>
    %1357 = vector.broadcast %1356 : vector<1x256xi1> to vector<16x256xi1>
    %1358 = vector.broadcast %cst_459 : f32 to vector<16x256xf32>
    %1359 = arith.select %1357, %1344, %1358 : vector<16x256xi1>, vector<16x256xf32>
    %1360 = tpu.concatenate %607, %623, %639, %655, %671, %687, %703, %719, %735, %751, %767, %783, %799, %815, %831, %847 in 0 : vector<16x256xf32>, vector<16x256xf32>, vector<16x256xf32>, vector<16x256xf32>, vector<16x256xf32>, vector<16x256xf32>, vector<16x256xf32>, vector<16x256xf32>, vector<16x256xf32>, vector<16x256xf32>, vector<16x256xf32>, vector<16x256xf32>, vector<16x256xf32>, vector<16x256xf32>, vector<16x256xf32>, vector<16x256xf32> -> vector<256x256xf32>
    %1361 = tpu.concatenate %863, %879, %895, %911, %927, %943, %959, %975, %1, %991, %1007, %1023, %1039, %1055, %1071, %1087 in 0 : vector<16x256xf32>, vector<16x256xf32>, vector<16x256xf32>, vector<16x256xf32>, vector<16x256xf32>, vector<16x256xf32>, vector<16x256xf32>, vector<16x256xf32>, vector<16x256xf32>, vector<16x256xf32>, vector<16x256xf32>, vector<16x256xf32>, vector<16x256xf32>, vector<16x256xf32>, vector<16x256xf32>, vector<16x256xf32> -> vector<256x256xf32>
    %1362 = tpu.concatenate %1103, %1119, %1135, %1151, %1167, %1183, %1199, %1215, %1231, %1247, %1263, %1279, %1295, %1311, %1327, %1343 in 0 : vector<16x256xf32>, vector<16x256xf32>, vector<16x256xf32>, vector<16x256xf32>, vector<16x256xf32>, vector<16x256xf32>, vector<16x256xf32>, vector<16x256xf32>, vector<16x256xf32>, vector<16x256xf32>, vector<16x256xf32>, vector<16x256xf32>, vector<16x256xf32>, vector<16x256xf32>, vector<16x256xf32>, vector<16x256xf32> -> vector<256x256xf32>
    %1363 = tpu.concatenate %1360, %1361, %1362, %1359 in 0 : vector<256x256xf32>, vector<256x256xf32>, vector<256x256xf32>, vector<16x256xf32> -> vector<784x256xf32>
    %c0_460 = arith.constant 0 : index
    %c0_461 = arith.constant 0 : index
    %1364 = vector.load %arg5[%c0_460, %c0_461] : memref<16x784xf32, #tpu.memory_space<vmem>>, vector<16x784xf32>
    %cst_462 = arith.constant dense<0.000000e+00> : vector<16x256xf32>
    %1365 = tpu.matmul %1364, %1363, %cst_462 {dimension_numbers = #tpu.dot_dimension_numbers<[1], [0], [0], [1], [0, 0, 1, 1], [], []>} : vector<16x784xf32>, vector<784x256xf32>, vector<16x256xf32> -> vector<16x256xf32>
    %cst_463 = arith.constant dense<0.000000e+00> : vector<16xf32>
    %1366 = vector.multi_reduction <add>, %1365, %cst_463 [1] : vector<16x256xf32> to vector<16xf32>
    %1367 = vector.shape_cast %1366 : vector<16xf32> to vector<16x1xf32>
    %cst_464 = arith.constant 2.560000e+02 : f32
    %1368 = vector.broadcast %cst_464 : f32 to vector<16x1xf32>
    %1369 = arith.divf %1367, %1368 : vector<16x1xf32>
    %1370 = vector.broadcast %1369 : vector<16x1xf32> to vector<16x256xf32>
    %1371 = arith.subf %1365, %1370 : vector<16x256xf32>
    %1372 = arith.mulf %1371, %1371 : vector<16x256xf32>
    %cst_465 = arith.constant dense<0.000000e+00> : vector<16xf32>
    %1373 = vector.multi_reduction <add>, %1372, %cst_465 [1] : vector<16x256xf32> to vector<16xf32>
    %1374 = vector.shape_cast %1373 : vector<16xf32> to vector<16x1xf32>
    %cst_466 = arith.constant 2.560000e+02 : f32
    %1375 = vector.broadcast %cst_466 : f32 to vector<16x1xf32>
    %1376 = arith.divf %1374, %1375 : vector<16x1xf32>
    %cst_467 = arith.constant 9.99999974E-6 : f32
    %1377 = vector.broadcast %cst_467 : f32 to vector<16x1xf32>
    %1378 = arith.addf %1376, %1377 : vector<16x1xf32>
    %1379 = math.rsqrt %1378 : vector<16x1xf32>
    %1380 = vector.broadcast %1379 : vector<16x1xf32> to vector<16x256xf32>
    %1381 = arith.mulf %1371, %1380 : vector<16x256xf32>
    %cst_468 = arith.constant 0.000000e+00 : f32
    %1382 = vector.broadcast %cst_468 : f32 to vector<16x256xf32>
    %1383 = arith.cmpf oge, %1381, %1382 : vector<16x256xf32>
    %cst_469 = arith.constant 2.000000e-01 : f32
    %1384 = vector.broadcast %cst_469 : f32 to vector<16x256xf32>
    %1385 = arith.mulf %1384, %1381 : vector<16x256xf32>
    %1386 = arith.select %1383, %1381, %1385 : vector<16x256xi1>, vector<16x256xf32>
    %1387 = tpu.concatenate %29, %181 in 0 : vector<16x256xf32>, vector<16x256xf32> -> vector<32x256xf32>
    %c17_i32_470 = arith.constant 17 : i32
    %1388 = tpu.dynamic_rotate %1387 by %c17_i32_470 dim 1 : vector<32x256xf32>, i32 -> vector<32x256xf32>
    %c1_i32_471 = arith.constant 1 : i32
    %1389 = vector.broadcast %c1_i32_471 : i32 to vector<1x256xi32>
    %1390 = arith.cmpi sge, %4, %1389 : vector<1x256xi32>
    %c17_i32_472 = arith.constant 17 : i32
    %1391 = vector.broadcast %c17_i32_472 : i32 to vector<1x256xi32>
    %1392 = arith.cmpi slt, %4, %1391 : vector<1x256xi32>
    %1393 = arith.andi %1390, %1392 : vector<1x256xi1>
    %c1_i32_473 = arith.constant 1 : i32
    %1394 = vector.broadcast %c1_i32_473 : i32 to vector<1x256xi32>
    %1395 = arith.cmpi sge, %6, %1394 : vector<1x256xi32>
    %1396 = arith.andi %1393, %1395 : vector<1x256xi1>
    %c17_i32_474 = arith.constant 17 : i32
    %1397 = vector.broadcast %c17_i32_474 : i32 to vector<1x256xi32>
    %1398 = arith.cmpi slt, %6, %1397 : vector<1x256xi32>
    %1399 = arith.andi %1396, %1398 : vector<1x256xi1>
    %cst_475 = arith.constant 0.000000e+00 : f32
    %1400 = vector.shape_cast %1399 : vector<1x256xi1> to vector<1x256xi1>
    %1401 = vector.broadcast %1400 : vector<1x256xi1> to vector<32x256xi1>
    %1402 = vector.broadcast %cst_475 : f32 to vector<32x256xf32>
    %1403 = arith.select %1401, %1388, %1402 : vector<32x256xi1>, vector<32x256xf32>
    %c16_i32_476 = arith.constant 16 : i32
    %1404 = tpu.dynamic_rotate %1387 by %c16_i32_476 dim 1 : vector<32x256xf32>, i32 -> vector<32x256xf32>
    %c1_i32_477 = arith.constant 1 : i32
    %1405 = vector.broadcast %c1_i32_477 : i32 to vector<1x256xi32>
    %1406 = arith.cmpi sge, %4, %1405 : vector<1x256xi32>
    %c17_i32_478 = arith.constant 17 : i32
    %1407 = vector.broadcast %c17_i32_478 : i32 to vector<1x256xi32>
    %1408 = arith.cmpi slt, %4, %1407 : vector<1x256xi32>
    %1409 = arith.andi %1406, %1408 : vector<1x256xi1>
    %c0_i32_479 = arith.constant 0 : i32
    %1410 = vector.broadcast %c0_i32_479 : i32 to vector<1x256xi32>
    %1411 = arith.cmpi sge, %6, %1410 : vector<1x256xi32>
    %1412 = arith.andi %1409, %1411 : vector<1x256xi1>
    %c16_i32_480 = arith.constant 16 : i32
    %1413 = vector.broadcast %c16_i32_480 : i32 to vector<1x256xi32>
    %1414 = arith.cmpi slt, %6, %1413 : vector<1x256xi32>
    %1415 = arith.andi %1412, %1414 : vector<1x256xi1>
    %cst_481 = arith.constant 0.000000e+00 : f32
    %1416 = vector.shape_cast %1415 : vector<1x256xi1> to vector<1x256xi1>
    %1417 = vector.broadcast %1416 : vector<1x256xi1> to vector<32x256xi1>
    %1418 = vector.broadcast %cst_481 : f32 to vector<32x256xf32>
    %1419 = arith.select %1417, %1404, %1418 : vector<32x256xi1>, vector<32x256xf32>
    %c15_i32_482 = arith.constant 15 : i32
    %1420 = tpu.dynamic_rotate %1387 by %c15_i32_482 dim 1 : vector<32x256xf32>, i32 -> vector<32x256xf32>
    %c1_i32_483 = arith.constant 1 : i32
    %1421 = vector.broadcast %c1_i32_483 : i32 to vector<1x256xi32>
    %1422 = arith.cmpi sge, %4, %1421 : vector<1x256xi32>
    %c17_i32_484 = arith.constant 17 : i32
    %1423 = vector.broadcast %c17_i32_484 : i32 to vector<1x256xi32>
    %1424 = arith.cmpi slt, %4, %1423 : vector<1x256xi32>
    %1425 = arith.andi %1422, %1424 : vector<1x256xi1>
    %c-1_i32_485 = arith.constant -1 : i32
    %1426 = vector.broadcast %c-1_i32_485 : i32 to vector<1x256xi32>
    %1427 = arith.cmpi sge, %6, %1426 : vector<1x256xi32>
    %1428 = arith.andi %1425, %1427 : vector<1x256xi1>
    %c15_i32_486 = arith.constant 15 : i32
    %1429 = vector.broadcast %c15_i32_486 : i32 to vector<1x256xi32>
    %1430 = arith.cmpi slt, %6, %1429 : vector<1x256xi32>
    %1431 = arith.andi %1428, %1430 : vector<1x256xi1>
    %cst_487 = arith.constant 0.000000e+00 : f32
    %1432 = vector.shape_cast %1431 : vector<1x256xi1> to vector<1x256xi1>
    %1433 = vector.broadcast %1432 : vector<1x256xi1> to vector<32x256xi1>
    %1434 = vector.broadcast %cst_487 : f32 to vector<32x256xf32>
    %1435 = arith.select %1433, %1420, %1434 : vector<32x256xi1>, vector<32x256xf32>
    %c1_i32_488 = arith.constant 1 : i32
    %1436 = tpu.dynamic_rotate %1387 by %c1_i32_488 dim 1 : vector<32x256xf32>, i32 -> vector<32x256xf32>
    %c0_i32_489 = arith.constant 0 : i32
    %1437 = vector.broadcast %c0_i32_489 : i32 to vector<1x256xi32>
    %1438 = arith.cmpi sge, %4, %1437 : vector<1x256xi32>
    %c16_i32_490 = arith.constant 16 : i32
    %1439 = vector.broadcast %c16_i32_490 : i32 to vector<1x256xi32>
    %1440 = arith.cmpi slt, %4, %1439 : vector<1x256xi32>
    %1441 = arith.andi %1438, %1440 : vector<1x256xi1>
    %c1_i32_491 = arith.constant 1 : i32
    %1442 = vector.broadcast %c1_i32_491 : i32 to vector<1x256xi32>
    %1443 = arith.cmpi sge, %6, %1442 : vector<1x256xi32>
    %1444 = arith.andi %1441, %1443 : vector<1x256xi1>
    %c17_i32_492 = arith.constant 17 : i32
    %1445 = vector.broadcast %c17_i32_492 : i32 to vector<1x256xi32>
    %1446 = arith.cmpi slt, %6, %1445 : vector<1x256xi32>
    %1447 = arith.andi %1444, %1446 : vector<1x256xi1>
    %cst_493 = arith.constant 0.000000e+00 : f32
    %1448 = vector.shape_cast %1447 : vector<1x256xi1> to vector<1x256xi1>
    %1449 = vector.broadcast %1448 : vector<1x256xi1> to vector<32x256xi1>
    %1450 = vector.broadcast %cst_493 : f32 to vector<32x256xf32>
    %1451 = arith.select %1449, %1436, %1450 : vector<32x256xi1>, vector<32x256xf32>
    %c255_i32_494 = arith.constant 255 : i32
    %1452 = tpu.dynamic_rotate %1387 by %c255_i32_494 dim 1 : vector<32x256xf32>, i32 -> vector<32x256xf32>
    %c0_i32_495 = arith.constant 0 : i32
    %1453 = vector.broadcast %c0_i32_495 : i32 to vector<1x256xi32>
    %1454 = arith.cmpi sge, %4, %1453 : vector<1x256xi32>
    %c16_i32_496 = arith.constant 16 : i32
    %1455 = vector.broadcast %c16_i32_496 : i32 to vector<1x256xi32>
    %1456 = arith.cmpi slt, %4, %1455 : vector<1x256xi32>
    %1457 = arith.andi %1454, %1456 : vector<1x256xi1>
    %c-1_i32_497 = arith.constant -1 : i32
    %1458 = vector.broadcast %c-1_i32_497 : i32 to vector<1x256xi32>
    %1459 = arith.cmpi sge, %6, %1458 : vector<1x256xi32>
    %1460 = arith.andi %1457, %1459 : vector<1x256xi1>
    %c15_i32_498 = arith.constant 15 : i32
    %1461 = vector.broadcast %c15_i32_498 : i32 to vector<1x256xi32>
    %1462 = arith.cmpi slt, %6, %1461 : vector<1x256xi32>
    %1463 = arith.andi %1460, %1462 : vector<1x256xi1>
    %cst_499 = arith.constant 0.000000e+00 : f32
    %1464 = vector.shape_cast %1463 : vector<1x256xi1> to vector<1x256xi1>
    %1465 = vector.broadcast %1464 : vector<1x256xi1> to vector<32x256xi1>
    %1466 = vector.broadcast %cst_499 : f32 to vector<32x256xf32>
    %1467 = arith.select %1465, %1452, %1466 : vector<32x256xi1>, vector<32x256xf32>
    %c241_i32_500 = arith.constant 241 : i32
    %1468 = tpu.dynamic_rotate %1387 by %c241_i32_500 dim 1 : vector<32x256xf32>, i32 -> vector<32x256xf32>
    %c-1_i32_501 = arith.constant -1 : i32
    %1469 = vector.broadcast %c-1_i32_501 : i32 to vector<1x256xi32>
    %1470 = arith.cmpi sge, %4, %1469 : vector<1x256xi32>
    %c15_i32_502 = arith.constant 15 : i32
    %1471 = vector.broadcast %c15_i32_502 : i32 to vector<1x256xi32>
    %1472 = arith.cmpi slt, %4, %1471 : vector<1x256xi32>
    %1473 = arith.andi %1470, %1472 : vector<1x256xi1>
    %c1_i32_503 = arith.constant 1 : i32
    %1474 = vector.broadcast %c1_i32_503 : i32 to vector<1x256xi32>
    %1475 = arith.cmpi sge, %6, %1474 : vector<1x256xi32>
    %1476 = arith.andi %1473, %1475 : vector<1x256xi1>
    %c17_i32_504 = arith.constant 17 : i32
    %1477 = vector.broadcast %c17_i32_504 : i32 to vector<1x256xi32>
    %1478 = arith.cmpi slt, %6, %1477 : vector<1x256xi32>
    %1479 = arith.andi %1476, %1478 : vector<1x256xi1>
    %cst_505 = arith.constant 0.000000e+00 : f32
    %1480 = vector.shape_cast %1479 : vector<1x256xi1> to vector<1x256xi1>
    %1481 = vector.broadcast %1480 : vector<1x256xi1> to vector<32x256xi1>
    %1482 = vector.broadcast %cst_505 : f32 to vector<32x256xf32>
    %1483 = arith.select %1481, %1468, %1482 : vector<32x256xi1>, vector<32x256xf32>
    %c240_i32_506 = arith.constant 240 : i32
    %1484 = tpu.dynamic_rotate %1387 by %c240_i32_506 dim 1 : vector<32x256xf32>, i32 -> vector<32x256xf32>
    %c-1_i32_507 = arith.constant -1 : i32
    %1485 = vector.broadcast %c-1_i32_507 : i32 to vector<1x256xi32>
    %1486 = arith.cmpi sge, %4, %1485 : vector<1x256xi32>
    %c15_i32_508 = arith.constant 15 : i32
    %1487 = vector.broadcast %c15_i32_508 : i32 to vector<1x256xi32>
    %1488 = arith.cmpi slt, %4, %1487 : vector<1x256xi32>
    %1489 = arith.andi %1486, %1488 : vector<1x256xi1>
    %c0_i32_509 = arith.constant 0 : i32
    %1490 = vector.broadcast %c0_i32_509 : i32 to vector<1x256xi32>
    %1491 = arith.cmpi sge, %6, %1490 : vector<1x256xi32>
    %1492 = arith.andi %1489, %1491 : vector<1x256xi1>
    %c16_i32_510 = arith.constant 16 : i32
    %1493 = vector.broadcast %c16_i32_510 : i32 to vector<1x256xi32>
    %1494 = arith.cmpi slt, %6, %1493 : vector<1x256xi32>
    %1495 = arith.andi %1492, %1494 : vector<1x256xi1>
    %cst_511 = arith.constant 0.000000e+00 : f32
    %1496 = vector.shape_cast %1495 : vector<1x256xi1> to vector<1x256xi1>
    %1497 = vector.broadcast %1496 : vector<1x256xi1> to vector<32x256xi1>
    %1498 = vector.broadcast %cst_511 : f32 to vector<32x256xf32>
    %1499 = arith.select %1497, %1484, %1498 : vector<32x256xi1>, vector<32x256xf32>
    %c239_i32_512 = arith.constant 239 : i32
    %1500 = tpu.dynamic_rotate %1387 by %c239_i32_512 dim 1 : vector<32x256xf32>, i32 -> vector<32x256xf32>
    %c-1_i32_513 = arith.constant -1 : i32
    %1501 = vector.broadcast %c-1_i32_513 : i32 to vector<1x256xi32>
    %1502 = arith.cmpi sge, %4, %1501 : vector<1x256xi32>
    %c15_i32_514 = arith.constant 15 : i32
    %1503 = vector.broadcast %c15_i32_514 : i32 to vector<1x256xi32>
    %1504 = arith.cmpi slt, %4, %1503 : vector<1x256xi32>
    %1505 = arith.andi %1502, %1504 : vector<1x256xi1>
    %c-1_i32_515 = arith.constant -1 : i32
    %1506 = vector.broadcast %c-1_i32_515 : i32 to vector<1x256xi32>
    %1507 = arith.cmpi sge, %6, %1506 : vector<1x256xi32>
    %1508 = arith.andi %1505, %1507 : vector<1x256xi1>
    %c15_i32_516 = arith.constant 15 : i32
    %1509 = vector.broadcast %c15_i32_516 : i32 to vector<1x256xi32>
    %1510 = arith.cmpi slt, %6, %1509 : vector<1x256xi32>
    %1511 = arith.andi %1508, %1510 : vector<1x256xi1>
    %cst_517 = arith.constant 0.000000e+00 : f32
    %1512 = vector.shape_cast %1511 : vector<1x256xi1> to vector<1x256xi1>
    %1513 = vector.broadcast %1512 : vector<1x256xi1> to vector<32x256xi1>
    %1514 = vector.broadcast %cst_517 : f32 to vector<32x256xf32>
    %1515 = arith.select %1513, %1500, %1514 : vector<32x256xi1>, vector<32x256xf32>
    %1516 = tpu.concatenate %1403, %1419, %1435, %1451, %1387, %1467, %1483, %1499, %1515 in 0 : vector<32x256xf32>, vector<32x256xf32>, vector<32x256xf32>, vector<32x256xf32>, vector<32x256xf32>, vector<32x256xf32>, vector<32x256xf32>, vector<32x256xf32>, vector<32x256xf32> -> vector<288x256xf32>
    %c0_518 = arith.constant 0 : index
    %c0_519 = arith.constant 0 : index
    %1517 = vector.load %arg8[%c0_518, %c0_519] : memref<16x288xf32, #tpu.memory_space<vmem>>, vector<16x288xf32>
    %cst_520 = arith.constant dense<0.000000e+00> : vector<16x256xf32>
    %1518 = tpu.matmul %1517, %1516, %cst_520 {dimension_numbers = #tpu.dot_dimension_numbers<[1], [0], [0], [1], [0, 0, 1, 1], [], []>} : vector<16x288xf32>, vector<288x256xf32>, vector<16x256xf32> -> vector<16x256xf32>
    %cst_521 = arith.constant dense<0.000000e+00> : vector<16xf32>
    %1519 = vector.multi_reduction <add>, %1518, %cst_521 [1] : vector<16x256xf32> to vector<16xf32>
    %1520 = vector.shape_cast %1519 : vector<16xf32> to vector<16x1xf32>
    %cst_522 = arith.constant 2.560000e+02 : f32
    %1521 = vector.broadcast %cst_522 : f32 to vector<16x1xf32>
    %1522 = arith.divf %1520, %1521 : vector<16x1xf32>
    %1523 = vector.broadcast %1522 : vector<16x1xf32> to vector<16x256xf32>
    %1524 = arith.subf %1518, %1523 : vector<16x256xf32>
    %1525 = arith.mulf %1524, %1524 : vector<16x256xf32>
    %cst_523 = arith.constant dense<0.000000e+00> : vector<16xf32>
    %1526 = vector.multi_reduction <add>, %1525, %cst_523 [1] : vector<16x256xf32> to vector<16xf32>
    %1527 = vector.shape_cast %1526 : vector<16xf32> to vector<16x1xf32>
    %cst_524 = arith.constant 2.560000e+02 : f32
    %1528 = vector.broadcast %cst_524 : f32 to vector<16x1xf32>
    %1529 = arith.divf %1527, %1528 : vector<16x1xf32>
    %cst_525 = arith.constant 9.99999974E-6 : f32
    %1530 = vector.broadcast %cst_525 : f32 to vector<16x1xf32>
    %1531 = arith.addf %1529, %1530 : vector<16x1xf32>
    %1532 = math.rsqrt %1531 : vector<16x1xf32>
    %1533 = vector.broadcast %1532 : vector<16x1xf32> to vector<16x256xf32>
    %1534 = arith.mulf %1524, %1533 : vector<16x256xf32>
    %cst_526 = arith.constant 0.000000e+00 : f32
    %1535 = vector.broadcast %cst_526 : f32 to vector<16x256xf32>
    %1536 = arith.cmpf oge, %1534, %1535 : vector<16x256xf32>
    %cst_527 = arith.constant 2.000000e-01 : f32
    %1537 = vector.broadcast %cst_527 : f32 to vector<16x256xf32>
    %1538 = arith.mulf %1537, %1534 : vector<16x256xf32>
    %1539 = arith.select %1536, %1534, %1538 : vector<16x256xi1>, vector<16x256xf32>
    %c0_528 = arith.constant 0 : index
    %c0_529 = arith.constant 0 : index
    %1540 = vector.load %arg6[%c0_528, %c0_529] : memref<16x16xf32, #tpu.memory_space<vmem>>, vector<16x16xf32>
    %cst_530 = arith.constant dense<0.000000e+00> : vector<16x256xf32>
    %1541 = tpu.matmul %1540, %591, %cst_530 {dimension_numbers = #tpu.dot_dimension_numbers<[1], [0], [0], [1], [0, 0, 1, 1], [], []>} : vector<16x16xf32>, vector<16x256xf32>, vector<16x256xf32> -> vector<16x256xf32>
    %cst_531 = arith.constant dense<0.000000e+00> : vector<16xf32>
    %1542 = vector.multi_reduction <add>, %1541, %cst_531 [1] : vector<16x256xf32> to vector<16xf32>
    %1543 = vector.shape_cast %1542 : vector<16xf32> to vector<16x1xf32>
    %cst_532 = arith.constant 2.560000e+02 : f32
    %1544 = vector.broadcast %cst_532 : f32 to vector<16x1xf32>
    %1545 = arith.divf %1543, %1544 : vector<16x1xf32>
    %1546 = vector.broadcast %1545 : vector<16x1xf32> to vector<16x256xf32>
    %1547 = arith.subf %1541, %1546 : vector<16x256xf32>
    %1548 = arith.mulf %1547, %1547 : vector<16x256xf32>
    %cst_533 = arith.constant dense<0.000000e+00> : vector<16xf32>
    %1549 = vector.multi_reduction <add>, %1548, %cst_533 [1] : vector<16x256xf32> to vector<16xf32>
    %1550 = vector.shape_cast %1549 : vector<16xf32> to vector<16x1xf32>
    %cst_534 = arith.constant 2.560000e+02 : f32
    %1551 = vector.broadcast %cst_534 : f32 to vector<16x1xf32>
    %1552 = arith.divf %1550, %1551 : vector<16x1xf32>
    %cst_535 = arith.constant 9.99999974E-6 : f32
    %1553 = vector.broadcast %cst_535 : f32 to vector<16x1xf32>
    %1554 = arith.addf %1552, %1553 : vector<16x1xf32>
    %1555 = math.rsqrt %1554 : vector<16x1xf32>
    %1556 = vector.broadcast %1555 : vector<16x1xf32> to vector<16x256xf32>
    %1557 = arith.mulf %1547, %1556 : vector<16x256xf32>
    %cst_536 = arith.constant 0.000000e+00 : f32
    %1558 = vector.broadcast %cst_536 : f32 to vector<16x256xf32>
    %1559 = arith.cmpf oge, %1557, %1558 : vector<16x256xf32>
    %cst_537 = arith.constant 2.000000e-01 : f32
    %1560 = vector.broadcast %cst_537 : f32 to vector<16x256xf32>
    %1561 = arith.mulf %1560, %1557 : vector<16x256xf32>
    %1562 = arith.select %1559, %1557, %1561 : vector<16x256xi1>, vector<16x256xf32>
    %1563 = tpu.concatenate %1539, %1562 in 0 : vector<16x256xf32>, vector<16x256xf32> -> vector<32x256xf32>
    %c17_i32_538 = arith.constant 17 : i32
    %1564 = tpu.dynamic_rotate %1563 by %c17_i32_538 dim 1 : vector<32x256xf32>, i32 -> vector<32x256xf32>
    %c1_i32_539 = arith.constant 1 : i32
    %1565 = vector.broadcast %c1_i32_539 : i32 to vector<1x256xi32>
    %1566 = arith.cmpi sge, %4, %1565 : vector<1x256xi32>
    %c17_i32_540 = arith.constant 17 : i32
    %1567 = vector.broadcast %c17_i32_540 : i32 to vector<1x256xi32>
    %1568 = arith.cmpi slt, %4, %1567 : vector<1x256xi32>
    %1569 = arith.andi %1566, %1568 : vector<1x256xi1>
    %c1_i32_541 = arith.constant 1 : i32
    %1570 = vector.broadcast %c1_i32_541 : i32 to vector<1x256xi32>
    %1571 = arith.cmpi sge, %6, %1570 : vector<1x256xi32>
    %1572 = arith.andi %1569, %1571 : vector<1x256xi1>
    %c17_i32_542 = arith.constant 17 : i32
    %1573 = vector.broadcast %c17_i32_542 : i32 to vector<1x256xi32>
    %1574 = arith.cmpi slt, %6, %1573 : vector<1x256xi32>
    %1575 = arith.andi %1572, %1574 : vector<1x256xi1>
    %cst_543 = arith.constant 0.000000e+00 : f32
    %1576 = vector.shape_cast %1575 : vector<1x256xi1> to vector<1x256xi1>
    %1577 = vector.broadcast %1576 : vector<1x256xi1> to vector<32x256xi1>
    %1578 = vector.broadcast %cst_543 : f32 to vector<32x256xf32>
    %1579 = arith.select %1577, %1564, %1578 : vector<32x256xi1>, vector<32x256xf32>
    %c16_i32_544 = arith.constant 16 : i32
    %1580 = tpu.dynamic_rotate %1563 by %c16_i32_544 dim 1 : vector<32x256xf32>, i32 -> vector<32x256xf32>
    %c1_i32_545 = arith.constant 1 : i32
    %1581 = vector.broadcast %c1_i32_545 : i32 to vector<1x256xi32>
    %1582 = arith.cmpi sge, %4, %1581 : vector<1x256xi32>
    %c17_i32_546 = arith.constant 17 : i32
    %1583 = vector.broadcast %c17_i32_546 : i32 to vector<1x256xi32>
    %1584 = arith.cmpi slt, %4, %1583 : vector<1x256xi32>
    %1585 = arith.andi %1582, %1584 : vector<1x256xi1>
    %c0_i32_547 = arith.constant 0 : i32
    %1586 = vector.broadcast %c0_i32_547 : i32 to vector<1x256xi32>
    %1587 = arith.cmpi sge, %6, %1586 : vector<1x256xi32>
    %1588 = arith.andi %1585, %1587 : vector<1x256xi1>
    %c16_i32_548 = arith.constant 16 : i32
    %1589 = vector.broadcast %c16_i32_548 : i32 to vector<1x256xi32>
    %1590 = arith.cmpi slt, %6, %1589 : vector<1x256xi32>
    %1591 = arith.andi %1588, %1590 : vector<1x256xi1>
    %cst_549 = arith.constant 0.000000e+00 : f32
    %1592 = vector.shape_cast %1591 : vector<1x256xi1> to vector<1x256xi1>
    %1593 = vector.broadcast %1592 : vector<1x256xi1> to vector<32x256xi1>
    %1594 = vector.broadcast %cst_549 : f32 to vector<32x256xf32>
    %1595 = arith.select %1593, %1580, %1594 : vector<32x256xi1>, vector<32x256xf32>
    %c15_i32_550 = arith.constant 15 : i32
    %1596 = tpu.dynamic_rotate %1563 by %c15_i32_550 dim 1 : vector<32x256xf32>, i32 -> vector<32x256xf32>
    %c1_i32_551 = arith.constant 1 : i32
    %1597 = vector.broadcast %c1_i32_551 : i32 to vector<1x256xi32>
    %1598 = arith.cmpi sge, %4, %1597 : vector<1x256xi32>
    %c17_i32_552 = arith.constant 17 : i32
    %1599 = vector.broadcast %c17_i32_552 : i32 to vector<1x256xi32>
    %1600 = arith.cmpi slt, %4, %1599 : vector<1x256xi32>
    %1601 = arith.andi %1598, %1600 : vector<1x256xi1>
    %c-1_i32_553 = arith.constant -1 : i32
    %1602 = vector.broadcast %c-1_i32_553 : i32 to vector<1x256xi32>
    %1603 = arith.cmpi sge, %6, %1602 : vector<1x256xi32>
    %1604 = arith.andi %1601, %1603 : vector<1x256xi1>
    %c15_i32_554 = arith.constant 15 : i32
    %1605 = vector.broadcast %c15_i32_554 : i32 to vector<1x256xi32>
    %1606 = arith.cmpi slt, %6, %1605 : vector<1x256xi32>
    %1607 = arith.andi %1604, %1606 : vector<1x256xi1>
    %cst_555 = arith.constant 0.000000e+00 : f32
    %1608 = vector.shape_cast %1607 : vector<1x256xi1> to vector<1x256xi1>
    %1609 = vector.broadcast %1608 : vector<1x256xi1> to vector<32x256xi1>
    %1610 = vector.broadcast %cst_555 : f32 to vector<32x256xf32>
    %1611 = arith.select %1609, %1596, %1610 : vector<32x256xi1>, vector<32x256xf32>
    %c1_i32_556 = arith.constant 1 : i32
    %1612 = tpu.dynamic_rotate %1563 by %c1_i32_556 dim 1 : vector<32x256xf32>, i32 -> vector<32x256xf32>
    %c0_i32_557 = arith.constant 0 : i32
    %1613 = vector.broadcast %c0_i32_557 : i32 to vector<1x256xi32>
    %1614 = arith.cmpi sge, %4, %1613 : vector<1x256xi32>
    %c16_i32_558 = arith.constant 16 : i32
    %1615 = vector.broadcast %c16_i32_558 : i32 to vector<1x256xi32>
    %1616 = arith.cmpi slt, %4, %1615 : vector<1x256xi32>
    %1617 = arith.andi %1614, %1616 : vector<1x256xi1>
    %c1_i32_559 = arith.constant 1 : i32
    %1618 = vector.broadcast %c1_i32_559 : i32 to vector<1x256xi32>
    %1619 = arith.cmpi sge, %6, %1618 : vector<1x256xi32>
    %1620 = arith.andi %1617, %1619 : vector<1x256xi1>
    %c17_i32_560 = arith.constant 17 : i32
    %1621 = vector.broadcast %c17_i32_560 : i32 to vector<1x256xi32>
    %1622 = arith.cmpi slt, %6, %1621 : vector<1x256xi32>
    %1623 = arith.andi %1620, %1622 : vector<1x256xi1>
    %cst_561 = arith.constant 0.000000e+00 : f32
    %1624 = vector.shape_cast %1623 : vector<1x256xi1> to vector<1x256xi1>
    %1625 = vector.broadcast %1624 : vector<1x256xi1> to vector<32x256xi1>
    %1626 = vector.broadcast %cst_561 : f32 to vector<32x256xf32>
    %1627 = arith.select %1625, %1612, %1626 : vector<32x256xi1>, vector<32x256xf32>
    %c255_i32_562 = arith.constant 255 : i32
    %1628 = tpu.dynamic_rotate %1563 by %c255_i32_562 dim 1 : vector<32x256xf32>, i32 -> vector<32x256xf32>
    %c0_i32_563 = arith.constant 0 : i32
    %1629 = vector.broadcast %c0_i32_563 : i32 to vector<1x256xi32>
    %1630 = arith.cmpi sge, %4, %1629 : vector<1x256xi32>
    %c16_i32_564 = arith.constant 16 : i32
    %1631 = vector.broadcast %c16_i32_564 : i32 to vector<1x256xi32>
    %1632 = arith.cmpi slt, %4, %1631 : vector<1x256xi32>
    %1633 = arith.andi %1630, %1632 : vector<1x256xi1>
    %c-1_i32_565 = arith.constant -1 : i32
    %1634 = vector.broadcast %c-1_i32_565 : i32 to vector<1x256xi32>
    %1635 = arith.cmpi sge, %6, %1634 : vector<1x256xi32>
    %1636 = arith.andi %1633, %1635 : vector<1x256xi1>
    %c15_i32_566 = arith.constant 15 : i32
    %1637 = vector.broadcast %c15_i32_566 : i32 to vector<1x256xi32>
    %1638 = arith.cmpi slt, %6, %1637 : vector<1x256xi32>
    %1639 = arith.andi %1636, %1638 : vector<1x256xi1>
    %cst_567 = arith.constant 0.000000e+00 : f32
    %1640 = vector.shape_cast %1639 : vector<1x256xi1> to vector<1x256xi1>
    %1641 = vector.broadcast %1640 : vector<1x256xi1> to vector<32x256xi1>
    %1642 = vector.broadcast %cst_567 : f32 to vector<32x256xf32>
    %1643 = arith.select %1641, %1628, %1642 : vector<32x256xi1>, vector<32x256xf32>
    %c241_i32_568 = arith.constant 241 : i32
    %1644 = tpu.dynamic_rotate %1563 by %c241_i32_568 dim 1 : vector<32x256xf32>, i32 -> vector<32x256xf32>
    %c-1_i32_569 = arith.constant -1 : i32
    %1645 = vector.broadcast %c-1_i32_569 : i32 to vector<1x256xi32>
    %1646 = arith.cmpi sge, %4, %1645 : vector<1x256xi32>
    %c15_i32_570 = arith.constant 15 : i32
    %1647 = vector.broadcast %c15_i32_570 : i32 to vector<1x256xi32>
    %1648 = arith.cmpi slt, %4, %1647 : vector<1x256xi32>
    %1649 = arith.andi %1646, %1648 : vector<1x256xi1>
    %c1_i32_571 = arith.constant 1 : i32
    %1650 = vector.broadcast %c1_i32_571 : i32 to vector<1x256xi32>
    %1651 = arith.cmpi sge, %6, %1650 : vector<1x256xi32>
    %1652 = arith.andi %1649, %1651 : vector<1x256xi1>
    %c17_i32_572 = arith.constant 17 : i32
    %1653 = vector.broadcast %c17_i32_572 : i32 to vector<1x256xi32>
    %1654 = arith.cmpi slt, %6, %1653 : vector<1x256xi32>
    %1655 = arith.andi %1652, %1654 : vector<1x256xi1>
    %cst_573 = arith.constant 0.000000e+00 : f32
    %1656 = vector.shape_cast %1655 : vector<1x256xi1> to vector<1x256xi1>
    %1657 = vector.broadcast %1656 : vector<1x256xi1> to vector<32x256xi1>
    %1658 = vector.broadcast %cst_573 : f32 to vector<32x256xf32>
    %1659 = arith.select %1657, %1644, %1658 : vector<32x256xi1>, vector<32x256xf32>
    %c240_i32_574 = arith.constant 240 : i32
    %1660 = tpu.dynamic_rotate %1563 by %c240_i32_574 dim 1 : vector<32x256xf32>, i32 -> vector<32x256xf32>
    %c-1_i32_575 = arith.constant -1 : i32
    %1661 = vector.broadcast %c-1_i32_575 : i32 to vector<1x256xi32>
    %1662 = arith.cmpi sge, %4, %1661 : vector<1x256xi32>
    %c15_i32_576 = arith.constant 15 : i32
    %1663 = vector.broadcast %c15_i32_576 : i32 to vector<1x256xi32>
    %1664 = arith.cmpi slt, %4, %1663 : vector<1x256xi32>
    %1665 = arith.andi %1662, %1664 : vector<1x256xi1>
    %c0_i32_577 = arith.constant 0 : i32
    %1666 = vector.broadcast %c0_i32_577 : i32 to vector<1x256xi32>
    %1667 = arith.cmpi sge, %6, %1666 : vector<1x256xi32>
    %1668 = arith.andi %1665, %1667 : vector<1x256xi1>
    %c16_i32_578 = arith.constant 16 : i32
    %1669 = vector.broadcast %c16_i32_578 : i32 to vector<1x256xi32>
    %1670 = arith.cmpi slt, %6, %1669 : vector<1x256xi32>
    %1671 = arith.andi %1668, %1670 : vector<1x256xi1>
    %cst_579 = arith.constant 0.000000e+00 : f32
    %1672 = vector.shape_cast %1671 : vector<1x256xi1> to vector<1x256xi1>
    %1673 = vector.broadcast %1672 : vector<1x256xi1> to vector<32x256xi1>
    %1674 = vector.broadcast %cst_579 : f32 to vector<32x256xf32>
    %1675 = arith.select %1673, %1660, %1674 : vector<32x256xi1>, vector<32x256xf32>
    %c239_i32_580 = arith.constant 239 : i32
    %1676 = tpu.dynamic_rotate %1563 by %c239_i32_580 dim 1 : vector<32x256xf32>, i32 -> vector<32x256xf32>
    %c-1_i32_581 = arith.constant -1 : i32
    %1677 = vector.broadcast %c-1_i32_581 : i32 to vector<1x256xi32>
    %1678 = arith.cmpi sge, %4, %1677 : vector<1x256xi32>
    %c15_i32_582 = arith.constant 15 : i32
    %1679 = vector.broadcast %c15_i32_582 : i32 to vector<1x256xi32>
    %1680 = arith.cmpi slt, %4, %1679 : vector<1x256xi32>
    %1681 = arith.andi %1678, %1680 : vector<1x256xi1>
    %c-1_i32_583 = arith.constant -1 : i32
    %1682 = vector.broadcast %c-1_i32_583 : i32 to vector<1x256xi32>
    %1683 = arith.cmpi sge, %6, %1682 : vector<1x256xi32>
    %1684 = arith.andi %1681, %1683 : vector<1x256xi1>
    %c15_i32_584 = arith.constant 15 : i32
    %1685 = vector.broadcast %c15_i32_584 : i32 to vector<1x256xi32>
    %1686 = arith.cmpi slt, %6, %1685 : vector<1x256xi32>
    %1687 = arith.andi %1684, %1686 : vector<1x256xi1>
    %cst_585 = arith.constant 0.000000e+00 : f32
    %1688 = vector.shape_cast %1687 : vector<1x256xi1> to vector<1x256xi1>
    %1689 = vector.broadcast %1688 : vector<1x256xi1> to vector<32x256xi1>
    %1690 = vector.broadcast %cst_585 : f32 to vector<32x256xf32>
    %1691 = arith.select %1689, %1676, %1690 : vector<32x256xi1>, vector<32x256xf32>
    %1692 = tpu.concatenate %1579, %1595, %1611, %1627, %1563, %1643, %1659, %1675, %1691 in 0 : vector<32x256xf32>, vector<32x256xf32>, vector<32x256xf32>, vector<32x256xf32>, vector<32x256xf32>, vector<32x256xf32>, vector<32x256xf32>, vector<32x256xf32>, vector<32x256xf32> -> vector<288x256xf32>
    %c0_586 = arith.constant 0 : index
    %c0_587 = arith.constant 0 : index
    %1693 = vector.load %arg9[%c0_586, %c0_587] : memref<16x288xf32, #tpu.memory_space<vmem>>, vector<16x288xf32>
    %cst_588 = arith.constant dense<0.000000e+00> : vector<16x256xf32>
    %1694 = tpu.matmul %1693, %1692, %cst_588 {dimension_numbers = #tpu.dot_dimension_numbers<[1], [0], [0], [1], [0, 0, 1, 1], [], []>} : vector<16x288xf32>, vector<288x256xf32>, vector<16x256xf32> -> vector<16x256xf32>
    %cst_589 = arith.constant dense<0.000000e+00> : vector<16xf32>
    %1695 = vector.multi_reduction <add>, %1694, %cst_589 [1] : vector<16x256xf32> to vector<16xf32>
    %1696 = vector.shape_cast %1695 : vector<16xf32> to vector<16x1xf32>
    %cst_590 = arith.constant 2.560000e+02 : f32
    %1697 = vector.broadcast %cst_590 : f32 to vector<16x1xf32>
    %1698 = arith.divf %1696, %1697 : vector<16x1xf32>
    %1699 = vector.broadcast %1698 : vector<16x1xf32> to vector<16x256xf32>
    %1700 = arith.subf %1694, %1699 : vector<16x256xf32>
    %1701 = arith.mulf %1700, %1700 : vector<16x256xf32>
    %cst_591 = arith.constant dense<0.000000e+00> : vector<16xf32>
    %1702 = vector.multi_reduction <add>, %1701, %cst_591 [1] : vector<16x256xf32> to vector<16xf32>
    %1703 = vector.shape_cast %1702 : vector<16xf32> to vector<16x1xf32>
    %cst_592 = arith.constant 2.560000e+02 : f32
    %1704 = vector.broadcast %cst_592 : f32 to vector<16x1xf32>
    %1705 = arith.divf %1703, %1704 : vector<16x1xf32>
    %cst_593 = arith.constant 9.99999974E-6 : f32
    %1706 = vector.broadcast %cst_593 : f32 to vector<16x1xf32>
    %1707 = arith.addf %1705, %1706 : vector<16x1xf32>
    %1708 = math.rsqrt %1707 : vector<16x1xf32>
    %1709 = vector.broadcast %1708 : vector<16x1xf32> to vector<16x256xf32>
    %1710 = arith.mulf %1700, %1709 : vector<16x256xf32>
    %cst_594 = arith.constant 0.000000e+00 : f32
    %1711 = vector.broadcast %cst_594 : f32 to vector<16x256xf32>
    %1712 = arith.cmpf oge, %1710, %1711 : vector<16x256xf32>
    %cst_595 = arith.constant 2.000000e-01 : f32
    %1713 = vector.broadcast %cst_595 : f32 to vector<16x256xf32>
    %1714 = arith.mulf %1713, %1710 : vector<16x256xf32>
    %1715 = arith.select %1712, %1710, %1714 : vector<16x256xi1>, vector<16x256xf32>
    %c0_596 = arith.constant 0 : index
    %c0_597 = arith.constant 0 : index
    %1716 = vector.load %arg7[%c0_596, %c0_597] : memref<16x16xf32, #tpu.memory_space<vmem>>, vector<16x16xf32>
    %cst_598 = arith.constant dense<0.000000e+00> : vector<16x256xf32>
    %1717 = tpu.matmul %1716, %1386, %cst_598 {dimension_numbers = #tpu.dot_dimension_numbers<[1], [0], [0], [1], [0, 0, 1, 1], [], []>} : vector<16x16xf32>, vector<16x256xf32>, vector<16x256xf32> -> vector<16x256xf32>
    %cst_599 = arith.constant dense<0.000000e+00> : vector<16xf32>
    %1718 = vector.multi_reduction <add>, %1717, %cst_599 [1] : vector<16x256xf32> to vector<16xf32>
    %1719 = vector.shape_cast %1718 : vector<16xf32> to vector<16x1xf32>
    %cst_600 = arith.constant 2.560000e+02 : f32
    %1720 = vector.broadcast %cst_600 : f32 to vector<16x1xf32>
    %1721 = arith.divf %1719, %1720 : vector<16x1xf32>
    %1722 = vector.broadcast %1721 : vector<16x1xf32> to vector<16x256xf32>
    %1723 = arith.subf %1717, %1722 : vector<16x256xf32>
    %1724 = arith.mulf %1723, %1723 : vector<16x256xf32>
    %cst_601 = arith.constant dense<0.000000e+00> : vector<16xf32>
    %1725 = vector.multi_reduction <add>, %1724, %cst_601 [1] : vector<16x256xf32> to vector<16xf32>
    %1726 = vector.shape_cast %1725 : vector<16xf32> to vector<16x1xf32>
    %cst_602 = arith.constant 2.560000e+02 : f32
    %1727 = vector.broadcast %cst_602 : f32 to vector<16x1xf32>
    %1728 = arith.divf %1726, %1727 : vector<16x1xf32>
    %cst_603 = arith.constant 9.99999974E-6 : f32
    %1729 = vector.broadcast %cst_603 : f32 to vector<16x1xf32>
    %1730 = arith.addf %1728, %1729 : vector<16x1xf32>
    %1731 = math.rsqrt %1730 : vector<16x1xf32>
    %1732 = vector.broadcast %1731 : vector<16x1xf32> to vector<16x256xf32>
    %1733 = arith.mulf %1723, %1732 : vector<16x256xf32>
    %cst_604 = arith.constant 0.000000e+00 : f32
    %1734 = vector.broadcast %cst_604 : f32 to vector<16x256xf32>
    %1735 = arith.cmpf oge, %1733, %1734 : vector<16x256xf32>
    %cst_605 = arith.constant 2.000000e-01 : f32
    %1736 = vector.broadcast %cst_605 : f32 to vector<16x256xf32>
    %1737 = arith.mulf %1736, %1733 : vector<16x256xf32>
    %1738 = arith.select %1735, %1733, %1737 : vector<16x256xi1>, vector<16x256xf32>
    %1739 = tpu.concatenate %1715, %1738 in 0 : vector<16x256xf32>, vector<16x256xf32> -> vector<32x256xf32>
    %c17_i32_606 = arith.constant 17 : i32
    %1740 = tpu.dynamic_rotate %1739 by %c17_i32_606 dim 1 : vector<32x256xf32>, i32 -> vector<32x256xf32>
    %c1_i32_607 = arith.constant 1 : i32
    %1741 = vector.broadcast %c1_i32_607 : i32 to vector<1x256xi32>
    %1742 = arith.cmpi sge, %4, %1741 : vector<1x256xi32>
    %c17_i32_608 = arith.constant 17 : i32
    %1743 = vector.broadcast %c17_i32_608 : i32 to vector<1x256xi32>
    %1744 = arith.cmpi slt, %4, %1743 : vector<1x256xi32>
    %1745 = arith.andi %1742, %1744 : vector<1x256xi1>
    %c1_i32_609 = arith.constant 1 : i32
    %1746 = vector.broadcast %c1_i32_609 : i32 to vector<1x256xi32>
    %1747 = arith.cmpi sge, %6, %1746 : vector<1x256xi32>
    %1748 = arith.andi %1745, %1747 : vector<1x256xi1>
    %c17_i32_610 = arith.constant 17 : i32
    %1749 = vector.broadcast %c17_i32_610 : i32 to vector<1x256xi32>
    %1750 = arith.cmpi slt, %6, %1749 : vector<1x256xi32>
    %1751 = arith.andi %1748, %1750 : vector<1x256xi1>
    %cst_611 = arith.constant 0.000000e+00 : f32
    %1752 = vector.shape_cast %1751 : vector<1x256xi1> to vector<1x256xi1>
    %1753 = vector.broadcast %1752 : vector<1x256xi1> to vector<32x256xi1>
    %1754 = vector.broadcast %cst_611 : f32 to vector<32x256xf32>
    %1755 = arith.select %1753, %1740, %1754 : vector<32x256xi1>, vector<32x256xf32>
    %c16_i32_612 = arith.constant 16 : i32
    %1756 = tpu.dynamic_rotate %1739 by %c16_i32_612 dim 1 : vector<32x256xf32>, i32 -> vector<32x256xf32>
    %c1_i32_613 = arith.constant 1 : i32
    %1757 = vector.broadcast %c1_i32_613 : i32 to vector<1x256xi32>
    %1758 = arith.cmpi sge, %4, %1757 : vector<1x256xi32>
    %c17_i32_614 = arith.constant 17 : i32
    %1759 = vector.broadcast %c17_i32_614 : i32 to vector<1x256xi32>
    %1760 = arith.cmpi slt, %4, %1759 : vector<1x256xi32>
    %1761 = arith.andi %1758, %1760 : vector<1x256xi1>
    %c0_i32_615 = arith.constant 0 : i32
    %1762 = vector.broadcast %c0_i32_615 : i32 to vector<1x256xi32>
    %1763 = arith.cmpi sge, %6, %1762 : vector<1x256xi32>
    %1764 = arith.andi %1761, %1763 : vector<1x256xi1>
    %c16_i32_616 = arith.constant 16 : i32
    %1765 = vector.broadcast %c16_i32_616 : i32 to vector<1x256xi32>
    %1766 = arith.cmpi slt, %6, %1765 : vector<1x256xi32>
    %1767 = arith.andi %1764, %1766 : vector<1x256xi1>
    %cst_617 = arith.constant 0.000000e+00 : f32
    %1768 = vector.shape_cast %1767 : vector<1x256xi1> to vector<1x256xi1>
    %1769 = vector.broadcast %1768 : vector<1x256xi1> to vector<32x256xi1>
    %1770 = vector.broadcast %cst_617 : f32 to vector<32x256xf32>
    %1771 = arith.select %1769, %1756, %1770 : vector<32x256xi1>, vector<32x256xf32>
    %c15_i32_618 = arith.constant 15 : i32
    %1772 = tpu.dynamic_rotate %1739 by %c15_i32_618 dim 1 : vector<32x256xf32>, i32 -> vector<32x256xf32>
    %c1_i32_619 = arith.constant 1 : i32
    %1773 = vector.broadcast %c1_i32_619 : i32 to vector<1x256xi32>
    %1774 = arith.cmpi sge, %4, %1773 : vector<1x256xi32>
    %c17_i32_620 = arith.constant 17 : i32
    %1775 = vector.broadcast %c17_i32_620 : i32 to vector<1x256xi32>
    %1776 = arith.cmpi slt, %4, %1775 : vector<1x256xi32>
    %1777 = arith.andi %1774, %1776 : vector<1x256xi1>
    %c-1_i32_621 = arith.constant -1 : i32
    %1778 = vector.broadcast %c-1_i32_621 : i32 to vector<1x256xi32>
    %1779 = arith.cmpi sge, %6, %1778 : vector<1x256xi32>
    %1780 = arith.andi %1777, %1779 : vector<1x256xi1>
    %c15_i32_622 = arith.constant 15 : i32
    %1781 = vector.broadcast %c15_i32_622 : i32 to vector<1x256xi32>
    %1782 = arith.cmpi slt, %6, %1781 : vector<1x256xi32>
    %1783 = arith.andi %1780, %1782 : vector<1x256xi1>
    %cst_623 = arith.constant 0.000000e+00 : f32
    %1784 = vector.shape_cast %1783 : vector<1x256xi1> to vector<1x256xi1>
    %1785 = vector.broadcast %1784 : vector<1x256xi1> to vector<32x256xi1>
    %1786 = vector.broadcast %cst_623 : f32 to vector<32x256xf32>
    %1787 = arith.select %1785, %1772, %1786 : vector<32x256xi1>, vector<32x256xf32>
    %c1_i32_624 = arith.constant 1 : i32
    %1788 = tpu.dynamic_rotate %1739 by %c1_i32_624 dim 1 : vector<32x256xf32>, i32 -> vector<32x256xf32>
    %c0_i32_625 = arith.constant 0 : i32
    %1789 = vector.broadcast %c0_i32_625 : i32 to vector<1x256xi32>
    %1790 = arith.cmpi sge, %4, %1789 : vector<1x256xi32>
    %c16_i32_626 = arith.constant 16 : i32
    %1791 = vector.broadcast %c16_i32_626 : i32 to vector<1x256xi32>
    %1792 = arith.cmpi slt, %4, %1791 : vector<1x256xi32>
    %1793 = arith.andi %1790, %1792 : vector<1x256xi1>
    %c1_i32_627 = arith.constant 1 : i32
    %1794 = vector.broadcast %c1_i32_627 : i32 to vector<1x256xi32>
    %1795 = arith.cmpi sge, %6, %1794 : vector<1x256xi32>
    %1796 = arith.andi %1793, %1795 : vector<1x256xi1>
    %c17_i32_628 = arith.constant 17 : i32
    %1797 = vector.broadcast %c17_i32_628 : i32 to vector<1x256xi32>
    %1798 = arith.cmpi slt, %6, %1797 : vector<1x256xi32>
    %1799 = arith.andi %1796, %1798 : vector<1x256xi1>
    %cst_629 = arith.constant 0.000000e+00 : f32
    %1800 = vector.shape_cast %1799 : vector<1x256xi1> to vector<1x256xi1>
    %1801 = vector.broadcast %1800 : vector<1x256xi1> to vector<32x256xi1>
    %1802 = vector.broadcast %cst_629 : f32 to vector<32x256xf32>
    %1803 = arith.select %1801, %1788, %1802 : vector<32x256xi1>, vector<32x256xf32>
    %c255_i32_630 = arith.constant 255 : i32
    %1804 = tpu.dynamic_rotate %1739 by %c255_i32_630 dim 1 : vector<32x256xf32>, i32 -> vector<32x256xf32>
    %c0_i32_631 = arith.constant 0 : i32
    %1805 = vector.broadcast %c0_i32_631 : i32 to vector<1x256xi32>
    %1806 = arith.cmpi sge, %4, %1805 : vector<1x256xi32>
    %c16_i32_632 = arith.constant 16 : i32
    %1807 = vector.broadcast %c16_i32_632 : i32 to vector<1x256xi32>
    %1808 = arith.cmpi slt, %4, %1807 : vector<1x256xi32>
    %1809 = arith.andi %1806, %1808 : vector<1x256xi1>
    %c-1_i32_633 = arith.constant -1 : i32
    %1810 = vector.broadcast %c-1_i32_633 : i32 to vector<1x256xi32>
    %1811 = arith.cmpi sge, %6, %1810 : vector<1x256xi32>
    %1812 = arith.andi %1809, %1811 : vector<1x256xi1>
    %c15_i32_634 = arith.constant 15 : i32
    %1813 = vector.broadcast %c15_i32_634 : i32 to vector<1x256xi32>
    %1814 = arith.cmpi slt, %6, %1813 : vector<1x256xi32>
    %1815 = arith.andi %1812, %1814 : vector<1x256xi1>
    %cst_635 = arith.constant 0.000000e+00 : f32
    %1816 = vector.shape_cast %1815 : vector<1x256xi1> to vector<1x256xi1>
    %1817 = vector.broadcast %1816 : vector<1x256xi1> to vector<32x256xi1>
    %1818 = vector.broadcast %cst_635 : f32 to vector<32x256xf32>
    %1819 = arith.select %1817, %1804, %1818 : vector<32x256xi1>, vector<32x256xf32>
    %c241_i32_636 = arith.constant 241 : i32
    %1820 = tpu.dynamic_rotate %1739 by %c241_i32_636 dim 1 : vector<32x256xf32>, i32 -> vector<32x256xf32>
    %c-1_i32_637 = arith.constant -1 : i32
    %1821 = vector.broadcast %c-1_i32_637 : i32 to vector<1x256xi32>
    %1822 = arith.cmpi sge, %4, %1821 : vector<1x256xi32>
    %c15_i32_638 = arith.constant 15 : i32
    %1823 = vector.broadcast %c15_i32_638 : i32 to vector<1x256xi32>
    %1824 = arith.cmpi slt, %4, %1823 : vector<1x256xi32>
    %1825 = arith.andi %1822, %1824 : vector<1x256xi1>
    %c1_i32_639 = arith.constant 1 : i32
    %1826 = vector.broadcast %c1_i32_639 : i32 to vector<1x256xi32>
    %1827 = arith.cmpi sge, %6, %1826 : vector<1x256xi32>
    %1828 = arith.andi %1825, %1827 : vector<1x256xi1>
    %c17_i32_640 = arith.constant 17 : i32
    %1829 = vector.broadcast %c17_i32_640 : i32 to vector<1x256xi32>
    %1830 = arith.cmpi slt, %6, %1829 : vector<1x256xi32>
    %1831 = arith.andi %1828, %1830 : vector<1x256xi1>
    %cst_641 = arith.constant 0.000000e+00 : f32
    %1832 = vector.shape_cast %1831 : vector<1x256xi1> to vector<1x256xi1>
    %1833 = vector.broadcast %1832 : vector<1x256xi1> to vector<32x256xi1>
    %1834 = vector.broadcast %cst_641 : f32 to vector<32x256xf32>
    %1835 = arith.select %1833, %1820, %1834 : vector<32x256xi1>, vector<32x256xf32>
    %c240_i32_642 = arith.constant 240 : i32
    %1836 = tpu.dynamic_rotate %1739 by %c240_i32_642 dim 1 : vector<32x256xf32>, i32 -> vector<32x256xf32>
    %c-1_i32_643 = arith.constant -1 : i32
    %1837 = vector.broadcast %c-1_i32_643 : i32 to vector<1x256xi32>
    %1838 = arith.cmpi sge, %4, %1837 : vector<1x256xi32>
    %c15_i32_644 = arith.constant 15 : i32
    %1839 = vector.broadcast %c15_i32_644 : i32 to vector<1x256xi32>
    %1840 = arith.cmpi slt, %4, %1839 : vector<1x256xi32>
    %1841 = arith.andi %1838, %1840 : vector<1x256xi1>
    %c0_i32_645 = arith.constant 0 : i32
    %1842 = vector.broadcast %c0_i32_645 : i32 to vector<1x256xi32>
    %1843 = arith.cmpi sge, %6, %1842 : vector<1x256xi32>
    %1844 = arith.andi %1841, %1843 : vector<1x256xi1>
    %c16_i32_646 = arith.constant 16 : i32
    %1845 = vector.broadcast %c16_i32_646 : i32 to vector<1x256xi32>
    %1846 = arith.cmpi slt, %6, %1845 : vector<1x256xi32>
    %1847 = arith.andi %1844, %1846 : vector<1x256xi1>
    %cst_647 = arith.constant 0.000000e+00 : f32
    %1848 = vector.shape_cast %1847 : vector<1x256xi1> to vector<1x256xi1>
    %1849 = vector.broadcast %1848 : vector<1x256xi1> to vector<32x256xi1>
    %1850 = vector.broadcast %cst_647 : f32 to vector<32x256xf32>
    %1851 = arith.select %1849, %1836, %1850 : vector<32x256xi1>, vector<32x256xf32>
    %c239_i32_648 = arith.constant 239 : i32
    %1852 = tpu.dynamic_rotate %1739 by %c239_i32_648 dim 1 : vector<32x256xf32>, i32 -> vector<32x256xf32>
    %c-1_i32_649 = arith.constant -1 : i32
    %1853 = vector.broadcast %c-1_i32_649 : i32 to vector<1x256xi32>
    %1854 = arith.cmpi sge, %4, %1853 : vector<1x256xi32>
    %c15_i32_650 = arith.constant 15 : i32
    %1855 = vector.broadcast %c15_i32_650 : i32 to vector<1x256xi32>
    %1856 = arith.cmpi slt, %4, %1855 : vector<1x256xi32>
    %1857 = arith.andi %1854, %1856 : vector<1x256xi1>
    %c-1_i32_651 = arith.constant -1 : i32
    %1858 = vector.broadcast %c-1_i32_651 : i32 to vector<1x256xi32>
    %1859 = arith.cmpi sge, %6, %1858 : vector<1x256xi32>
    %1860 = arith.andi %1857, %1859 : vector<1x256xi1>
    %c15_i32_652 = arith.constant 15 : i32
    %1861 = vector.broadcast %c15_i32_652 : i32 to vector<1x256xi32>
    %1862 = arith.cmpi slt, %6, %1861 : vector<1x256xi32>
    %1863 = arith.andi %1860, %1862 : vector<1x256xi1>
    %cst_653 = arith.constant 0.000000e+00 : f32
    %1864 = vector.shape_cast %1863 : vector<1x256xi1> to vector<1x256xi1>
    %1865 = vector.broadcast %1864 : vector<1x256xi1> to vector<32x256xi1>
    %1866 = vector.broadcast %cst_653 : f32 to vector<32x256xf32>
    %1867 = arith.select %1865, %1852, %1866 : vector<32x256xi1>, vector<32x256xf32>
    %1868 = tpu.concatenate %1755, %1771, %1787, %1803, %1739, %1819, %1835, %1851, %1867 in 0 : vector<32x256xf32>, vector<32x256xf32>, vector<32x256xf32>, vector<32x256xf32>, vector<32x256xf32>, vector<32x256xf32>, vector<32x256xf32>, vector<32x256xf32>, vector<32x256xf32> -> vector<288x256xf32>
    %c0_654 = arith.constant 0 : index
    %c0_655 = arith.constant 0 : index
    %1869 = vector.load %arg10[%c0_654, %c0_655] : memref<16x288xf32, #tpu.memory_space<vmem>>, vector<16x288xf32>
    %cst_656 = arith.constant dense<0.000000e+00> : vector<16x256xf32>
    %1870 = tpu.matmul %1869, %1868, %cst_656 {dimension_numbers = #tpu.dot_dimension_numbers<[1], [0], [0], [1], [0, 0, 1, 1], [], []>} : vector<16x288xf32>, vector<288x256xf32>, vector<16x256xf32> -> vector<16x256xf32>
    %cst_657 = arith.constant dense<0.000000e+00> : vector<16xf32>
    %1871 = vector.multi_reduction <add>, %1870, %cst_657 [1] : vector<16x256xf32> to vector<16xf32>
    %1872 = vector.shape_cast %1871 : vector<16xf32> to vector<16x1xf32>
    %cst_658 = arith.constant 2.560000e+02 : f32
    %1873 = vector.broadcast %cst_658 : f32 to vector<16x1xf32>
    %1874 = arith.divf %1872, %1873 : vector<16x1xf32>
    %1875 = vector.broadcast %1874 : vector<16x1xf32> to vector<16x256xf32>
    %1876 = arith.subf %1870, %1875 : vector<16x256xf32>
    %1877 = arith.mulf %1876, %1876 : vector<16x256xf32>
    %cst_659 = arith.constant dense<0.000000e+00> : vector<16xf32>
    %1878 = vector.multi_reduction <add>, %1877, %cst_659 [1] : vector<16x256xf32> to vector<16xf32>
    %1879 = vector.shape_cast %1878 : vector<16xf32> to vector<16x1xf32>
    %cst_660 = arith.constant 2.560000e+02 : f32
    %1880 = vector.broadcast %cst_660 : f32 to vector<16x1xf32>
    %1881 = arith.divf %1879, %1880 : vector<16x1xf32>
    %cst_661 = arith.constant 9.99999974E-6 : f32
    %1882 = vector.broadcast %cst_661 : f32 to vector<16x1xf32>
    %1883 = arith.addf %1881, %1882 : vector<16x1xf32>
    %1884 = math.rsqrt %1883 : vector<16x1xf32>
    %1885 = vector.broadcast %1884 : vector<16x1xf32> to vector<16x256xf32>
    %1886 = arith.mulf %1876, %1885 : vector<16x256xf32>
    %cst_662 = arith.constant 0.000000e+00 : f32
    %1887 = vector.broadcast %cst_662 : f32 to vector<16x256xf32>
    %1888 = arith.cmpf oge, %1886, %1887 : vector<16x256xf32>
    %cst_663 = arith.constant 2.000000e-01 : f32
    %1889 = vector.broadcast %cst_663 : f32 to vector<16x256xf32>
    %1890 = arith.mulf %1889, %1886 : vector<16x256xf32>
    %1891 = arith.select %1888, %1886, %1890 : vector<16x256xi1>, vector<16x256xf32>
    %1892 = tpu.concatenate %29, %1539, %1715, %1891 in 0 : vector<16x256xf32>, vector<16x256xf32>, vector<16x256xf32>, vector<16x256xf32> -> vector<64x256xf32>
    %c0_664 = arith.constant 0 : index
    %c0_665 = arith.constant 0 : index
    %1893 = vector.load %arg11[%c0_664, %c0_665] : memref<16x64xf32, #tpu.memory_space<vmem>>, vector<16x64xf32>
    %cst_666 = arith.constant dense<0.000000e+00> : vector<16x256xf32>
    %1894 = tpu.matmul %1893, %1892, %cst_666 {dimension_numbers = #tpu.dot_dimension_numbers<[1], [0], [0], [1], [0, 0, 1, 1], [], []>} : vector<16x64xf32>, vector<64x256xf32>, vector<16x256xf32> -> vector<16x256xf32>
    %cst_667 = arith.constant dense<0.000000e+00> : vector<16xf32>
    %1895 = vector.multi_reduction <add>, %1894, %cst_667 [1] : vector<16x256xf32> to vector<16xf32>
    %1896 = vector.shape_cast %1895 : vector<16xf32> to vector<16x1xf32>
    %cst_668 = arith.constant 2.560000e+02 : f32
    %1897 = vector.broadcast %cst_668 : f32 to vector<16x1xf32>
    %1898 = arith.divf %1896, %1897 : vector<16x1xf32>
    %1899 = vector.broadcast %1898 : vector<16x1xf32> to vector<16x256xf32>
    %1900 = arith.subf %1894, %1899 : vector<16x256xf32>
    %1901 = arith.mulf %1900, %1900 : vector<16x256xf32>
    %cst_669 = arith.constant dense<0.000000e+00> : vector<16xf32>
    %1902 = vector.multi_reduction <add>, %1901, %cst_669 [1] : vector<16x256xf32> to vector<16xf32>
    %1903 = vector.shape_cast %1902 : vector<16xf32> to vector<16x1xf32>
    %cst_670 = arith.constant 2.560000e+02 : f32
    %1904 = vector.broadcast %cst_670 : f32 to vector<16x1xf32>
    %1905 = arith.divf %1903, %1904 : vector<16x1xf32>
    %cst_671 = arith.constant 9.99999974E-6 : f32
    %1906 = vector.broadcast %cst_671 : f32 to vector<16x1xf32>
    %1907 = arith.addf %1905, %1906 : vector<16x1xf32>
    %1908 = math.rsqrt %1907 : vector<16x1xf32>
    %1909 = vector.broadcast %1908 : vector<16x1xf32> to vector<16x256xf32>
    %1910 = arith.mulf %1900, %1909 : vector<16x256xf32>
    %cst_672 = arith.constant 0.000000e+00 : f32
    %1911 = vector.broadcast %cst_672 : f32 to vector<16x256xf32>
    %1912 = arith.cmpf oge, %1910, %1911 : vector<16x256xf32>
    %cst_673 = arith.constant 2.000000e-01 : f32
    %1913 = vector.broadcast %cst_673 : f32 to vector<16x256xf32>
    %1914 = arith.mulf %1913, %1910 : vector<16x256xf32>
    %1915 = arith.select %1912, %1910, %1914 : vector<16x256xi1>, vector<16x256xf32>
    %cst_674 = arith.constant dense<0.000000e+00> : vector<16xf32>
    %1916 = vector.multi_reduction <add>, %1, %cst_674 [1] : vector<16x256xf32> to vector<16xf32>
    %1917 = vector.shape_cast %1916 : vector<16xf32> to vector<16x1xf32>
    %cst_675 = arith.constant 2.560000e+02 : f32
    %1918 = vector.broadcast %cst_675 : f32 to vector<16x1xf32>
    %1919 = arith.divf %1917, %1918 : vector<16x1xf32>
    %c0_676 = arith.constant 0 : index
    %c0_677 = arith.constant 0 : index
    %1920 = vector.load %arg12[%c0_676, %c0_677] : memref<4x16xf32, #tpu.memory_space<vmem>>, vector<4x16xf32>
    %cst_678 = arith.constant dense<0.000000e+00> : vector<4x1xf32>
    %1921 = tpu.matmul %1920, %1919, %cst_678 {dimension_numbers = #tpu.dot_dimension_numbers<[1], [0], [0], [1], [0, 0, 1, 1], [], []>} : vector<4x16xf32>, vector<16x1xf32>, vector<4x1xf32> -> vector<4x1xf32>
    %c0_679 = arith.constant 0 : index
    %c0_680 = arith.constant 0 : index
    %1922 = vector.load %arg13[%c0_679, %c0_680] : memref<4x1xf32, #tpu.memory_space<vmem>>, vector<4x1xf32>
    %1923 = arith.addf %1921, %1922 : vector<4x1xf32>
    %cst_681 = arith.constant 0.000000e+00 : f32
    %1924 = vector.broadcast %cst_681 : f32 to vector<4x1xf32>
    %1925 = arith.maximumf %1923, %1924 : vector<4x1xf32>
    %c0_682 = arith.constant 0 : index
    %c0_683 = arith.constant 0 : index
    %1926 = vector.load %arg14[%c0_682, %c0_683] : memref<16x4xf32, #tpu.memory_space<vmem>>, vector<16x4xf32>
    %cst_684 = arith.constant dense<0.000000e+00> : vector<16x1xf32>
    %1927 = tpu.matmul %1926, %1925, %cst_684 {dimension_numbers = #tpu.dot_dimension_numbers<[1], [0], [0], [1], [0, 0, 1, 1], [], []>} : vector<16x4xf32>, vector<4x1xf32>, vector<16x1xf32> -> vector<16x1xf32>
    %c0_685 = arith.constant 0 : index
    %c0_686 = arith.constant 0 : index
    %1928 = vector.load %arg15[%c0_685, %c0_686] : memref<16x1xf32, #tpu.memory_space<vmem>>, vector<16x1xf32>
    %1929 = arith.addf %1927, %1928 : vector<16x1xf32>
    %1930 = arith.negf %1929 : vector<16x1xf32>
    %1931 = math.exp %1930 : vector<16x1xf32>
    %cst_687 = arith.constant 1.000000e+00 : f32
    %1932 = vector.broadcast %cst_687 : f32 to vector<16x1xf32>
    %1933 = arith.addf %1932, %1931 : vector<16x1xf32>
    %1934 = arith.divf %1932, %1933 : vector<16x1xf32>
    %1935 = vector.broadcast %1934 : vector<16x1xf32> to vector<16x256xf32>
    %1936 = arith.mulf %1915, %1935 : vector<16x256xf32>
    %1937 = arith.addf %1, %1936 : vector<16x256xf32>
    %c0_688 = arith.constant 0 : index
    %c0_689 = arith.constant 0 : index
    %c0_690 = arith.constant 0 : index
    %1938 = vector.load %arg16[%c0_688, %c0_689, %c0_690] : memref<1x16x256xf32, #tpu.memory_space<vmem>>, vector<1x16x256xf32>
    %1939 = vector.shape_cast %1938 : vector<1x16x256xf32> to vector<16x256xf32>
    %1940 = vector.shape_cast %1937 : vector<16x256xf32> to vector<1x16x256xf32>
    tpu.vector_store %arg16[%c0_688, %c0_689, %c0_690], %1940 {strides = array<i32>} : memref<1x16x256xf32, #tpu.memory_space<vmem>>, vector<1x16x256xf32>,
    return
  }
  func.func @transform_0(%arg0: i32) -> (i32, i32, i32) {
    %c0_i32 = arith.constant 0 : i32
    %c0_i32_0 = arith.constant 0 : i32
    %c0_i32_1 = arith.constant 0 : i32
    return %arg0, %c0_i32, %c0_i32_0 : i32, i32, i32
  }
  func.func @transform_1(%arg0: i32) -> (i32, i32) {
    %c0_i32 = arith.constant 0 : i32
    %c0_i32_0 = arith.constant 0 : i32
    %c0_i32_1 = arith.constant 0 : i32
    return %c0_i32, %c0_i32_0 : i32, i32
  }
  func.func @transform_2(%arg0: i32) -> (i32, i32) {
    %c0_i32 = arith.constant 0 : i32
    %c0_i32_0 = arith.constant 0 : i32
    %c0_i32_1 = arith.constant 0 : i32
    return %c0_i32, %c0_i32_0 : i32, i32
  }
  func.func @transform_3(%arg0: i32) -> (i32, i32) {
    %c0_i32 = arith.constant 0 : i32
    %c0_i32_0 = arith.constant 0 : i32
    %c0_i32_1 = arith.constant 0 : i32
    return %c0_i32, %c0_i32_0 : i32, i32
  }
  func.func @transform_4(%arg0: i32) -> (i32, i32) {
    %c0_i32 = arith.constant 0 : i32
    %c0_i32_0 = arith.constant 0 : i32
    %c0_i32_1 = arith.constant 0 : i32
    return %c0_i32, %c0_i32_0 : i32, i32
  }
  func.func @transform_5(%arg0: i32) -> (i32, i32) {
    %c0_i32 = arith.constant 0 : i32
    %c0_i32_0 = arith.constant 0 : i32
    %c0_i32_1 = arith.constant 0 : i32
    return %c0_i32, %c0_i32_0 : i32, i32
  }
  func.func @transform_6(%arg0: i32) -> (i32, i32) {
    %c0_i32 = arith.constant 0 : i32
    %c0_i32_0 = arith.constant 0 : i32
    %c0_i32_1 = arith.constant 0 : i32
    return %c0_i32, %c0_i32_0 : i32, i32
  }
  func.func @transform_7(%arg0: i32) -> (i32, i32) {
    %c0_i32 = arith.constant 0 : i32
    %c0_i32_0 = arith.constant 0 : i32
    %c0_i32_1 = arith.constant 0 : i32
    return %c0_i32, %c0_i32_0 : i32, i32
  }
  func.func @transform_8(%arg0: i32) -> (i32, i32) {
    %c0_i32 = arith.constant 0 : i32
    %c0_i32_0 = arith.constant 0 : i32
    %c0_i32_1 = arith.constant 0 : i32
    return %c0_i32, %c0_i32_0 : i32, i32
  }
  func.func @transform_9(%arg0: i32) -> (i32, i32) {
    %c0_i32 = arith.constant 0 : i32
    %c0_i32_0 = arith.constant 0 : i32
    %c0_i32_1 = arith.constant 0 : i32
    return %c0_i32, %c0_i32_0 : i32, i32
  }
  func.func @transform_10(%arg0: i32) -> (i32, i32) {
    %c0_i32 = arith.constant 0 : i32
    %c0_i32_0 = arith.constant 0 : i32
    %c0_i32_1 = arith.constant 0 : i32
    return %c0_i32, %c0_i32_0 : i32, i32
  }
  func.func @transform_11(%arg0: i32) -> (i32, i32) {
    %c0_i32 = arith.constant 0 : i32
    %c0_i32_0 = arith.constant 0 : i32
    %c0_i32_1 = arith.constant 0 : i32
    return %c0_i32, %c0_i32_0 : i32, i32
  }
  func.func @transform_12(%arg0: i32) -> (i32, i32) {
    %c0_i32 = arith.constant 0 : i32
    %c0_i32_0 = arith.constant 0 : i32
    %c0_i32_1 = arith.constant 0 : i32
    return %c0_i32, %c0_i32_0 : i32, i32
  }
  func.func @transform_13(%arg0: i32) -> (i32, i32) {
    %c0_i32 = arith.constant 0 : i32
    %c0_i32_0 = arith.constant 0 : i32
    %c0_i32_1 = arith.constant 0 : i32
    return %c0_i32, %c0_i32_0 : i32, i32
  }
  func.func @transform_14(%arg0: i32) -> (i32, i32) {
    %c0_i32 = arith.constant 0 : i32
    %c0_i32_0 = arith.constant 0 : i32
    %c0_i32_1 = arith.constant 0 : i32
    return %c0_i32, %c0_i32_0 : i32, i32
  }
  func.func @transform_15(%arg0: i32) -> (i32, i32, i32) {
    %c0_i32 = arith.constant 0 : i32
    %c0_i32_0 = arith.constant 0 : i32
    %c0_i32_1 = arith.constant 0 : i32
    return %arg0, %c0_i32, %c0_i32_0 : i32, i32, i32
  }
}

</mosaic_0001>

<bundles_post_ra>
// kernel: msfb_forward.1
= control target key start
LH: loop header
LB: loop body
LE: loop exit
PB: predicated region body
PF: predicated region fallthrough
CT: control target
= control target key end

     0   :  { %s5502_s18 = smov 0   ;;  %s11057_s0 = inlined_call_operand.vmem [shape: f32[2,16,256], index: 0, kind: input, shape index: {}]   ;;  %s11058_s1 = inlined_call_operand.vmem [shape: f32[16,16], index: 1, kind: input, shape index: {}]   ;;  %s11059_s2 = inlined_call_operand.vmem [shape: f32[16,144], index: 2, kind: input, shape index: {}]   ;;  %s11060_s3 = inlined_call_operand.vmem [shape: f32[16,400], index: 3, kind: input, shape index: {}]   ;;  %s11061_s4 = inlined_call_operand.vmem [shape: f32[16,784], index: 4, kind: input, shape index: {}]   ;;  %s11062_s5 = inlined_call_operand.vmem [shape: f32[16,16], index: 5, kind: input, shape index: {}]   ;;  %s11063_s6 = inlined_call_operand.vmem [shape: f32[16,16], index: 6, kind: input, shape index: {}]   ;;  %s11064_s7 = inlined_call_operand.vmem [shape: f32[16,288], index: 7, kind: input, shape index: {}]   ;;  %s11065_s8 = inlined_call_operand.vmem [shape: f32[16,288], index: 8, kind: input, shape index: {}]   ;;  %s11066_s9 = inlined_call_operand.vmem [shape: f32[16,288], index: 9, kind: input, shape index: {}]   ;;  %s11067_s10 = inlined_call_operand.vmem [shape: f32[16,64], index: 10, kind: input, shape index: {}]   ;;  %s11068_s11 = inlined_call_operand.vmem [shape: f32[4,16], index: 11, kind: input, shape index: {}]   ;;  %s11069_s12 = inlined_call_operand.vmem [shape: f32[4,1], index: 12, kind: input, shape index: {}]   ;;  %s11070_s13 = inlined_call_operand.vmem [shape: f32[16,4], index: 13, kind: input, shape index: {}]   ;;  %s11071_s14 = inlined_call_operand.vmem [shape: f32[16,1], index: 14, kind: input, shape index: {}]   ;;  %s11072_s15 = inlined_call_operand.vmem [shape: f32[2,16,256], index: 15, kind: output, shape index: {}]  }
   0x1 LB: > { %s4669_s19 = sadd.s32 4294967295, %s5370_s18   ;;  %p4673_p0 = scmp.ge.s32.totalorder %s5370_s18, 1  ;;  %s5370_s18 = sphi %s5502_s18, %s25_s18  }
   0x2   : > { %p437_p1 = scmp.lt.s32.totalorder %s5370_s18, 3 }
   0x4   : > { %p438_p2 = pnand %p4673_p0, %p437_p1 }
   0x6   : > { %441 = sbr.rel (%p438_p2) target bundleno = 3471 (0xd8f), region = 80 }
   0xb   : > { %p485_p3 = scmp.lt.s32.totalorder %s4669_s19, 1  ;;  %s11387_s24 = smov 113   ;;  %v499_v6 = vlaneseq  ;;  %v11639_v16 = vmov 0  ;;  %v11642_v18 = vmov 0  ;;  %v506_v19 = vld [vmem:[%s11058_s1] sm:$0xff]  ;;  %vm11077_vm7 = vcmask 130048  }
   0xc   : > { %s11391_s25 = smov 112   ;;  %s11381_s26 = smov 127   ;;  %v507_v25 = vld [vmem:[%s11058_s1 + $0x8] sm:$0xff]  ;;  %v11649_v28 = vmov 0  ;;  %v11652_v29 = vmov 0  ;;  %v11659_v37 = vmov 0 }
   0xd   : > { %s12859_s19 = smov (!%p485_p3, %s4669_s19), 1  ;;  %s11397_s27 = smov 1   ;;  %v5616_v8 = vand.u32 127, %v499_v6  ;;  %v11662_v38 = vmov 0  ;;  %v11665_v39 = vmov 0  ;;  %v11668_v40 = vmov 0 }
   0xe   : > { %s11073_s20 = sshll.u32 %s12859_s19, 5  ;;  %s11395_s28 = smov 15   ;;  %v11675_v50 = vmov 0  ;;  %v11678_v52 = vmov 0  ;;  %v11683_v55 = vmov 0  ;;  %v11686_v56 = vmov 0 }
   0xf   : > { %s5518_s23 = scalar_lea.vmem %s11057_s0, %s11073_s20  ;;  %s11393_s29 = smov 16   ;;  %v501_v9 = vadd.s32 128, %v5616_v8  ;;  %v5623_v10 = vshra.s32 %v5616_v8, 4  ;;  %v5634_v15 = vand.u32 15, %v5616_v8  ;;  %vm11074_vm5 = vcmp.lt.s32.totalorder %v5616_v8, 112 }
  0x10   : > { %v5521_v0 = vld [vmem:[%s5518_s23 + $0x10] sm:$0xff]  ;;  %v5528_v1 = vld [vmem:[%s5518_s23] sm:$0xff]  ;;  %v5531_v2 = vld [vmem:[%s5518_s23 + $0x18] sm:$0xff]  ;;  %s11375_s30 = smov 111   ;;  %s11389_s16 = smov 17   ;;  %vm11075_vm10 = vcmp.lt.s32.totalorder %v5616_v8, 113 }
  0x11   : > { %781 = vrot.lane.b32.xlu2 %v5521_v0, %s11387_s24  ;;  %812 = vrot.lane.b32.xlu0 %v5521_v0, %s11391_s25  ;;  %v5539_v3 = vld [vmem:[%s5518_s23 + $0x8] sm:$0xff]  ;;  %s5380_s17 = smov 95   ;;  %s5381_s21 = smov 114   ;;  %11637 = vst [vmem:[#allocation2_spill] sm:$0xff] %v5623_v10  ;;  %v5627_v13 = vshra.s32 %v501_v9, 4  ;;  %vm792_vm0 = vcmp.ge.s32.totalorder %v5623_v10, 4294967295 }
  0x12   : > { %810 = vrot.lane.b32.xlu1 %v5528_v1, %s11391_s25  ;;  %529 = vmatpush.msra.mxu0 %v5521_v0  ;;  %s5382_s22 = smov 18   ;;  %s5383_s20 = smov 96   ;;  %vm794_vm1 = vcmp.lt.s32.totalorder %v5623_v10, 15  ;;  %v5643_v17 = vand.u32 15, %v501_v9  ;;  %vm11078_vm8 = vcmp.ge.s32.totalorder %v5634_v15, 1  ;;  %vm736_vm13 = vcmp.ge.s32.totalorder %v5623_v10, 0 }
  0x13   : > { %552 = vmatpush.msra.mxu1 %v5531_v2  ;;  %5240 = vmatpush.msra.mxu3 %v5531_v2  ;;  %11638 = vst [vmem:[#allocation3_spill] sm:$0xff] %v5627_v13  ;;  %vm793_vm2 = vcmp.ge.s32.totalorder %v5627_v13, 4294967295  ;;  %vm795_vm3 = vcmp.lt.s32.totalorder %v5627_v13, 15  ;;  %vm5638_vm4 = vmand %vm792_vm0, %vm794_vm1  ;;  %vm738_vm14 = vcmp.lt.s32.totalorder %v5623_v10, 16  ;;  %vm737_vm15 = vcmp.ge.s32.totalorder %v5627_v13, 0 }
  0x14   : > { %530 = vmatpush.msra.mxu0 %v5528_v1  ;;  %v11640_v16 = vsel %vm5638_vm4, 4294967295, %v11639_v16  ;;  %vm5646_vm6 = vmand %vm793_vm2, %vm795_vm3  ;;  %vm11079_vm9 = vcmp.ge.s32.totalorder %v5643_v17, 1  ;;  %vm739_vm0 = vcmp.lt.s32.totalorder %v5627_v13, 16  ;;  %vm11081_vm1 = vcmp.lt.s32.totalorder %v5634_v15, 15 }
  0x15   : > { %553 = vmatpush.msra.mxu1 %v5539_v3  ;;  %5241 = vmatpush.msra.mxu3 %v5539_v3  ;;  %11641 = vst [vmem:[#allocation4_spill] sm:$0xff] %v11640_v16  ;;  %v11643_v18 = vsel %vm5646_vm6, 4294967295, %v11642_v18  ;;  %vm5696_vm11 = vmand %vm5638_vm4, %vm11078_vm8  ;;  %vm11080_vm3 = vcmp.lt.s32.totalorder %v5643_v17, 15  ;;  %v11690_v59 = vmov 0  ;;  %v11698_v63 = vmov 0 }
  0x16   : > { %11644 = vst [vmem:[#allocation5_spill] sm:$0xff] %v11643_v18  ;;  %4678 = vmatmul.msk.f32.vlgmr.msra.gmra.mxu0 %vm11077_vm7, %v506_v19  ;;  %4680 = vmatmul.msk.f32.vlgmr.msra.gmra.mxu1 %vm11077_vm7, %v506_v19  ;;  %v11650_v28 = vsel %vm5696_vm11, 4294967295, %v11649_v28  ;;  %vm5704_vm12 = vmand %vm5646_vm6, %vm11079_vm9 }
  0x17   : > { %4681 = vmatmul.msk.f32.vlgmr.msra.gmra.mxu3 %vm11077_vm7, %v507_v25  ;;  %11651 = vst [vmem:[#allocation10_spill] sm:$0xff] %v11650_v28  ;;  %v11653_v29 = vsel %vm5704_vm12, 4294967295, %v11652_v29  ;;  %vm5752_vm2 = vmand %vm736_vm13, %vm738_vm14 }
  0x18   : > { %11654 = vst [vmem:[#allocation11_spill] sm:$0xff] %v11653_v29  ;;  %v11660_v37 = vsel %vm5752_vm2, 4294967295, %v11659_v37  ;;  %vm5770_vm13 = vmand %vm5752_vm2, %vm11081_vm1 }
  0x19   : > { %785 = vrot.lane.b32.xlu2 %v5531_v2, %s11387_s24  ;;  %816 = vrot.lane.b32.xlu0 %v5531_v2, %s11391_s25  ;;  %11661 = vst [vmem:[#allocation16_spill] sm:$0xff] %v11660_v37  ;;  %v11666_v39 = vsel %vm5770_vm13, 4294967295, %v11665_v39 }
  0x1a   : > { %814 = vrot.lane.b32.xlu1 %v5539_v3, %s11391_s25  ;;  %11667 = vst [vmem:[#allocation18_spill] sm:$0xff] %v11666_v39  ;;  %s5405_s25 = smov 49  }
  0x1e   : > { %4679 = vmatmul.msk.f32.gmra.mxu0 %vm11077_vm7, %v507_v25  ;;  %vm643_vm7 = vcmp.ge.s32.totalorder %v5623_v10, 1 }
  0x21   : > { %756 = vrot.lane.b32.xlu2 %v5521_v0, %s11381_s26  ;;  %779 = vrot.lane.b32.xlu0 %v5528_v1, %s11387_s24 }
  0x22   : > { %783 = vrot.lane.b32.xlu1 %v5539_v3, %s11387_s24  ;;  %s5403_s24 = smov 48  }
  0x29   : > { %758 = vrot.lane.b32.xlu2 %v5539_v3, %s11381_s26  ;;  %760 = vrot.lane.b32.xlu0 %v5531_v2, %s11381_s26 }
  0x2a   : > { %754 = vrot.lane.b32.xlu1 %v5528_v1, %s11381_s26  ;;  %s5402_s26 = smov 47  }
  0x31   : > { %723 = vrot.lane.b32.xlu2 %v5528_v1, %s11397_s27  ;;  %725 = vrot.lane.b32.xlu0 %v5521_v0, %s11397_s27 }
  0x32   : > { %729 = vrot.lane.b32.xlu1 %v5531_v2, %s11397_s27 }
  0x39   : > { %700 = vrot.lane.b32.xlu2 %v5531_v2, %s11395_s28  ;;  %727 = vrot.lane.b32.xlu0 %v5539_v3, %s11397_s27  ;;  %s5407_s27 = smov 80  }
  0x3a   : > { %696 = vrot.lane.b32.xlu1 %v5521_v0, %s11395_s28 }
  0x41   : > { %667 = vrot.lane.b32.xlu2 %v5521_v0, %s11393_s29  ;;  %694 = vrot.lane.b32.xlu0 %v5528_v1, %s11395_s28 }
  0x42   : > { %698 = vrot.lane.b32.xlu1 %v5539_v3, %s11395_s28  ;;  %s5409_s28 = smov 51  }
  0x49   : > { %669 = vrot.lane.b32.xlu2 %v5539_v3, %s11393_s29  ;;  %671 = vrot.lane.b32.xlu0 %v5531_v2, %s11393_s29 }
  0x4a   : > { %665 = vrot.lane.b32.xlu1 %v5528_v1, %s11393_s29  ;;  %s5416_s29 = smov 109  }
  0x51   : > { %837 = vrot.lane.b32.xlu2 %v5521_v0, %s11375_s30  ;;  %632 = vrot.lane.b32.xlu0 %v5521_v0, %s11389_s16 }
  0x52   : > { %636 = vrot.lane.b32.xlu1 %v5531_v2, %s11389_s16 }
  0x59   : > { %634 = vrot.lane.b32.xlu2 %v5539_v3, %s11389_s16  ;;  %841 = vrot.lane.b32.xlu0 %v5531_v2, %s11375_s30 }
  0x5a   : > { %630 = vrot.lane.b32.xlu1 %v5528_v1, %s11389_s16  ;;  %s5404_s16 = smov 78  }
  0x61   : > { %1396 = vrot.lane.b32.xlu2 %v5521_v0, %s5380_s17  ;;  %835 = vrot.lane.b32.xlu0 %v5528_v1, %s11375_s30 }
  0x62   : > { %839 = vrot.lane.b32.xlu1 %v5539_v3, %s11375_s30  ;;  %s5401_s30 = smov 29  }
  0x69   : > { %1398 = vrot.lane.b32.xlu2 %v5539_v3, %s5380_s17  ;;  %1400 = vrot.lane.b32.xlu0 %v5531_v2, %s5380_s17 }
  0x6a   : > { %1394 = vrot.lane.b32.xlu1 %v5528_v1, %s5380_s17  ;;  %s5384_s17 = smov 126  }
  0x6b   : > { %v5606_v4 = vpop.permute.xlu2 %781 }
  0x71   : > { %1265 = vrot.lane.b32.xlu2 %v5521_v0, %s5381_s21  ;;  %1165 = vrot.lane.b32.xlu0 %v5521_v0, %s5382_s22 }
  0x72   : > { %1169 = vrot.lane.b32.xlu1 %v5531_v2, %s5382_s22 }
  0x73   : > { %v786_v5 = vpop.permute.xlu2 %785 }
  0x74   : > { %v5715_v30 = vsel %vm11075_vm10, %v5606_v4, %v786_v5  ;;  %v5725_v31 = vsel %vm11075_vm10, %v786_v5, %v5606_v4 }
  0x75   : > { %11655 = vst [vmem:[#allocation12_spill] sm:$0xff] %v5715_v30 }
  0x76   : > { %11656 = vst [vmem:[#allocation13_spill] sm:$0xff] %v5725_v31 }
  0x79   : > { %1375 = vrot.lane.b32.xlu2 %v5531_v2, %s5383_s20  ;;  %1269 = vrot.lane.b32.xlu0 %v5531_v2, %s5381_s21 }
  0x7a   : > { %1371 = vrot.lane.b32.xlu1 %v5521_v0, %s5383_s20 }
  0x7b   : > { %v5614_v7 = vpop.permute.xlu2 %756 }
  0x81   : > { %1263 = vrot.lane.b32.xlu2 %v5528_v1, %s5381_s21  ;;  %1163 = vrot.lane.b32.xlu0 %v5528_v1, %s5382_s22 }
  0x82   : > { %1167 = vrot.lane.b32.xlu1 %v5539_v3, %s5382_s22  ;;  %s5385_s22 = smov 30  }
  0x83   : > { %v813_v11 = vpop.permute.xlu0 %812  ;;  %v5625_v12 = vpop.permute.xlu2 %758 }
  0x84   : > { %v811_v14 = vpop.permute.xlu1 %810 }
  0x89   : > { %1373 = vrot.lane.b32.xlu2 %v5539_v3, %s5383_s20  ;;  %1267 = vrot.lane.b32.xlu0 %v5539_v3, %s5381_s21  ;;  %s5387_s21 = smov 98  }
  0x8a   : > { %1369 = vrot.lane.b32.xlu1 %v5528_v1, %s5383_s20  ;;  %s5386_s20 = smov 97  }
  0x8b   : > { %v817_v20 = vpop.permute.xlu0 %816  ;;  %v5653_v21 = vpop.permute.xlu2 %723 }
  0x8c   : > { %v815_v22 = vpop.permute.xlu1 %814  ;;  %v5659_v23 = vsel %vm11074_vm5, %v813_v11, %v817_v20  ;;  %v5663_v24 = vsel %vm11074_vm5, %v817_v20, %v813_v11 }
  0x8d   : > { %11645 = vst [vmem:[#allocation6_spill] sm:$0xff] %v5659_v23  ;;  %4682 = vmatpush.msk.msra.mxu2 %vm5638_vm4, %v5659_v23  ;;  %4700 = vmatpush.msk.msrb.mxu0 %vm5646_vm6, %v5663_v24  ;;  %v5677_v26 = vsel %vm11074_vm5, %v811_v14, %v815_v22  ;;  %v5681_v27 = vsel %vm11074_vm5, %v815_v22, %v811_v14  ;;  %vm5757_vm5 = vmand %vm737_vm15, %vm739_vm0  ;;  %vm11082_vm15 = vcmp.lt.s32.totalorder %v5616_v8, 1 }
  0x8e   : > { %11646 = vst [vmem:[#allocation7_spill] sm:$0xff] %v5663_v24  ;;  %v11663_v38 = vsel %vm5757_vm5, 4294967295, %v11662_v38  ;;  %vm5780_vm14 = vmand %vm5757_vm5, %vm11080_vm3  ;;  %vm646_vm3 = vcmp.lt.s32.totalorder %v5627_v13, 17 }
  0x8f   : > { %11647 = vst [vmem:[#allocation8_spill] sm:$0xff] %v5677_v26  ;;  %4683 = vmatpush.msk.msra.mxu2 %vm5638_vm4, %v5677_v26  ;;  %4701 = vmatpush.msk.msrb.mxu0 %vm5646_vm6, %v5681_v27  ;;  %v11669_v40 = vsel %vm5780_vm14, 4294967295, %v11668_v40  ;;  %vm5831_vm0 = vmand %vm5752_vm2, %vm11078_vm8  ;;  %vm645_vm8 = vcmp.lt.s32.totalorder %v5623_v10, 17 }
  0x90   : > { %11648 = vst [vmem:[#allocation9_spill] sm:$0xff] %v5681_v27  ;;  %v11676_v50 = vsel %vm5831_vm0, 4294967295, %v11675_v50  ;;  %vm5863_vm1 = vmand %vm643_vm7, %vm645_vm8  ;;  %vm11689_vm8 = vcmp.lt.s32.totalorder %v5634_v15, 15  ;;  %vm11697_vm7 = vcmp.lt.s32.totalorder %v5643_v17, 15 }
  0x91   : > { %1240 = vrot.lane.b32.xlu2 %v5521_v0, %s5384_s17  ;;  %1136 = vrot.lane.b32.xlu0 %v5521_v0, %s5385_s22  ;;  %11664 = vst [vmem:[#allocation17_spill] sm:$0xff] %v11663_v38  ;;  %v11684_v55 = vsel %vm5863_vm1, 4294967295, %v11683_v55 }
  0x92   : > { %1140 = vrot.lane.b32.xlu1 %v5531_v2, %s5385_s22  ;;  %4684 = vmatpush.msk.msra.mxu2 %vm5696_vm11, %v5715_v30  ;;  %11670 = vst [vmem:[#allocation19_spill] sm:$0xff] %v11669_v40 }
  0x93   : > { %4702 = vmatpush.msk.msrb.mxu0 %vm5704_vm12, %v5725_v31  ;;  %v5730_v32 = vpop.permute.xlu2 %700  ;;  %v780_v33 = vpop.permute.xlu0 %779  ;;  %11677 = vst [vmem:[#allocation24_spill] sm:$0xff] %v11676_v50 }
  0x94   : > { %v784_v34 = vpop.permute.xlu1 %783  ;;  %11685 = vst [vmem:[#allocation28_spill] sm:$0xff] %v11684_v55 }
  0x95   : > { %v5739_v35 = vsel %vm11075_vm10, %v780_v33, %v784_v34  ;;  %v5743_v36 = vsel %vm11075_vm10, %v784_v34, %v780_v33  ;;  %vm11076_vm10 = vcmp.lt.s32.totalorder %v5616_v8, 127  ;;  %v11712_v33 = vmov 0 }
  0x96   : > { %11657 = vst [vmem:[#allocation14_spill] sm:$0xff] %v5739_v35  ;;  %4685 = vmatpush.msk.msra.mxu2 %vm5696_vm11, %v5739_v35  ;;  %4703 = vmatpush.msk.msrb.mxu0 %vm5704_vm12, %v5743_v36  ;;  %vm5884_vm12 = vmand %vm5863_vm1, %vm11689_vm8  ;;  %vm11701_vm8 = vcmp.lt.s32.totalorder %v5616_v8, 15 }
  0x97   : > { %11658 = vst [vmem:[#allocation15_spill] sm:$0xff] %v5743_v36  ;;  %v11691_v59 = vsel %vm5884_vm12, 4294967295, %v11690_v59 }
  0x98   : > { %11692 = vst [vmem:[#allocation30_spill] sm:$0xff] %v11691_v59 }
  0x99   : > { %1350 = vrot.lane.b32.xlu2 %v5531_v2, %s5386_s20  ;;  %1244 = vrot.lane.b32.xlu0 %v5531_v2, %s5384_s17 }
  0x9a   : > { %1346 = vrot.lane.b32.xlu1 %v5521_v0, %s5386_s20 }
  0x9b   : > { %v5784_v41 = vpop.permute.xlu2 %667  ;;  %v761_v42 = vpop.permute.xlu0 %760 }
  0x9c   : > { %v755_v43 = vpop.permute.xlu1 %754  ;;  %v5789_v44 = vsel %vm11076_vm10, %v5614_v7, %v761_v42  ;;  %v5794_v45 = vsel %vm11076_vm10, %v761_v42, %v5614_v7  ;;  %v11716_v42 = vmov 0 }
  0x9d   : > { %11671 = vst [vmem:[#allocation20_spill] sm:$0xff] %v5789_v44  ;;  %4686 = vmatpush.msk.msra.mxu2 %vm5770_vm13, %v5789_v44  ;;  %4704 = vmatpush.msk.msrb.mxu0 %vm5780_vm14, %v5794_v45  ;;  %v5805_v46 = vsel %vm11076_vm10, %v755_v43, %v5625_v12  ;;  %v5810_v47 = vsel %vm11076_vm10, %v5625_v12, %v755_v43  ;;  %vm5840_vm10 = vmand %vm5757_vm5, %vm11079_vm9  ;;  %vm644_vm9 = vcmp.ge.s32.totalorder %v5627_v13, 1 }
  0x9e   : > { %11672 = vst [vmem:[#allocation21_spill] sm:$0xff] %v5794_v45  ;;  %v11679_v52 = vsel %vm5840_vm10, 4294967295, %v11678_v52  ;;  %v11765_v45 = vmov 0 }
  0x9f   : > { %11673 = vst [vmem:[#allocation22_spill] sm:$0xff] %v5805_v46  ;;  %4687 = vmatpush.msk.msra.mxu2 %vm5770_vm13, %v5805_v46  ;;  %4705 = vmatpush.msk.msrb.mxu0 %vm5780_vm14, %v5810_v47 }
  0xa0   : > { %11674 = vst [vmem:[#allocation23_spill] sm:$0xff] %v5810_v47 }
  0xa1   : > { %1238 = vrot.lane.b32.xlu2 %v5528_v1, %s5384_s17  ;;  %1134 = vrot.lane.b32.xlu0 %v5528_v1, %s5385_s22  ;;  %11680 = vst [vmem:[#allocation25_spill] sm:$0xff] %v11679_v52 }
  0xa2   : > { %1138 = vrot.lane.b32.xlu1 %v5539_v3, %s5385_s22  ;;  %876 = vmatpush.msra.mxu2 %v5521_v0  ;;  %s5389_s22 = smov 32  }
  0xa3   : > { %v670_v48 = vpop.permute.xlu2 %669  ;;  %v726_v49 = vpop.permute.xlu0 %725  ;;  %922 = vmatpush.msrb.mxu0 %v5531_v2 }
  0xa4   : > { %v730_v51 = vpop.permute.xlu1 %729  ;;  %877 = vmatpush.msra.mxu2 %v5528_v1 }
  0xa5   : > { %923 = vmatpush.msrb.mxu0 %v5539_v3  ;;  %v5847_v53 = vsel %vm11082_vm15, %v730_v51, %v726_v49  ;;  %v5851_v54 = vsel %vm11082_vm15, %v726_v49, %v730_v51  ;;  %vm5871_vm15 = vmand %vm644_vm9, %vm646_vm3  ;;  %vm11693_vm9 = vcmp.lt.s32.totalorder %v5616_v8, 1  ;;  %v11722_v51 = vmov 0 }
  0xa6   : > { %11681 = vst [vmem:[#allocation26_spill] sm:$0xff] %v5847_v53  ;;  %4688 = vmatpush.msk.msra.mxu2 %vm5831_vm0, %v5847_v53  ;;  %v11687_v56 = vsel %vm5871_vm15, 4294967295, %v11686_v56  ;;  %vm11695_vm3 = vmmov %vm11693_vm9 }
  0xa7   : > { %11682 = vst [vmem:[#allocation27_spill] sm:$0xff] %v5851_v54  ;;  %4706 = vmatpush.msk.msrb.mxu0 %vm5840_vm10, %v5851_v54  ;;  %vm5902_vm14 = vmand %vm5871_vm15, %vm11697_vm7 }
  0xa8   : > { %11688 = vst [vmem:[#allocation29_spill] sm:$0xff] %v11687_v56  ;;  %v11699_v63 = vsel %vm5902_vm14, 4294967295, %v11698_v63  ;;  %vm11704_vm7 = vmmov %vm11701_vm8 }
  0xa9   : > { %1348 = vrot.lane.b32.xlu2 %v5539_v3, %s5386_s20  ;;  %1242 = vrot.lane.b32.xlu0 %v5539_v3, %s5384_s17  ;;  %11700 = vst [vmem:[#allocation33_spill] sm:$0xff] %v11699_v63  ;;  %s5388_s17 = smov 31  }
  0xaa   : > { %1344 = vrot.lane.b32.xlu1 %v5528_v1, %s5386_s20  ;;  %s5390_s20 = smov 110  }
  0xab   : > { %v5877_v57 = vpop.permute.xlu2 %837  ;;  %v728_v58 = vpop.permute.xlu0 %727 }
  0xac   : > { %v697_v60 = vpop.permute.xlu1 %696  ;;  %v5891_v61 = vsel %vm11693_vm9, %v728_v58, %v5653_v21  ;;  %v5896_v62 = vsel %vm11695_vm3, %v5653_v21, %v728_v58  ;;  %vm11702_vm9 = vmmov %vm11701_vm8  ;;  %v11726_v58 = vmov 0 }
  0xad   : > { %11694 = vst [vmem:[#allocation31_spill] sm:$0xff] %v5891_v61  ;;  %4689 = vmatpush.msk.msra.mxu2 %vm5831_vm0, %v5891_v61  ;;  %4707 = vmatpush.msk.msrb.mxu0 %vm5840_vm10, %v5896_v62  ;;  %v5915_v4 = vsel %vm11701_vm8, %v5730_v32, %v697_v60  ;;  %v5920_v5 = vsel %vm11702_vm9, %v697_v60, %v5730_v32  ;;  %vm11705_vm3 = vmmov %vm11704_vm7  ;;  %vm11087_vm8 = vcmp.lt.s32.totalorder %v5616_v8, 16  ;;  %vm11090_vm9 = vcmp.lt.s32.totalorder %v5616_v8, 17 }
  0xae   : > { %11696 = vst [vmem:[#allocation32_spill] sm:$0xff] %v5896_v62  ;;  %vm11725_vm10 = vcmp.lt.s32.totalorder %v5643_v17, 15 }
  0xaf   : > { %11703 = vst [vmem:[#allocation34_spill] sm:$0xff] %v5920_v5  ;;  %4690 = vmatpush.msk.msra.mxu2 %vm5884_vm12, %v5915_v4  ;;  %4708 = vmatpush.msk.msrb.mxu0 %vm5902_vm14, %v5920_v5  ;;  %vm6037_vm5 = vmand %vm5646_vm6, %vm11725_vm10  ;;  %vm11731_vm10 = vcmp.lt.s32.totalorder %v5616_v8, 17  ;;  %vm11737_vm6 = vcmask 130048   ;;  %v11739_v5 = vmov 0 }
  0xb0   : > { %v11727_v58 = vsel %vm6037_vm5, 4294967295, %v11726_v58 }
  0xb1   : > { %1315 = vrot.lane.b32.xlu2 %v5521_v0, %s5387_s21  ;;  %1111 = vrot.lane.b32.xlu0 %v5521_v0, %s5388_s17  ;;  %11728 = vst [vmem:[#allocation45_spill] sm:$0xff] %v11727_v58 }
  0xb2   : > { %1115 = vrot.lane.b32.xlu1 %v5531_v2, %s5388_s17 }
  0xb3   : > { %v635_v6 = vpop.permute.xlu2 %634  ;;  %v695_v7 = vpop.permute.xlu0 %694 }
  0xb4   : > { %v699_v9 = vpop.permute.xlu1 %698 }
  0xb5   : > { %v5933_v11 = vsel %vm11704_vm7, %v699_v9, %v695_v7  ;;  %v5937_v12 = vsel %vm11705_vm3, %v695_v7, %v699_v9  ;;  %vm11711_vm7 = vcmp.ge.s32.totalorder %v5634_v15, 1 }
  0xb6   : > { %11706 = vst [vmem:[#allocation35_spill] sm:$0xff] %v5937_v12  ;;  %4691 = vmatpush.msk.msra.mxu2 %vm5884_vm12, %v5933_v11  ;;  %4709 = vmatpush.msk.msrb.mxu0 %vm5902_vm14, %v5937_v12  ;;  %vm5990_vm3 = vmand %vm5863_vm1, %vm11711_vm7  ;;  %vm11721_vm7 = vcmp.lt.s32.totalorder %v5634_v15, 15 }
  0xb7   : > { %v11713_v33 = vsel %vm5990_vm3, 4294967295, %v11712_v33  ;;  %vm11738_vm12 = vmmov %vm11737_vm6 }
  0xb8   : > { %11714 = vst [vmem:[#allocation40_spill] sm:$0xff] %v11713_v33 }
  0xb9   : > { %1113 = vrot.lane.b32.xlu2 %v5539_v3, %s5388_s17  ;;  %1319 = vrot.lane.b32.xlu0 %v5531_v2, %s5387_s21 }
  0xba   : > { %1109 = vrot.lane.b32.xlu1 %v5528_v1, %s5388_s17  ;;  %s5394_s17 = smov 14  }
  0xbb   : > { %v5949_v14 = vpop.permute.xlu2 %1396  ;;  %v672_v19 = vpop.permute.xlu0 %671 }
  0xbc   : > { %v666_v20 = vpop.permute.xlu1 %665  ;;  %v5954_v21 = vsel %vm11087_vm8, %v672_v19, %v5784_v41  ;;  %v5959_v22 = vsel %vm11087_vm8, %v5784_v41, %v672_v19 }
  0xbd   : > { %11707 = vst [vmem:[#allocation36_spill] sm:$0xff] %v5954_v21  ;;  %4692 = vmatpush.msk.msra.mxu2 %vm5863_vm1, %v5954_v21  ;;  %4710 = vmatpush.msk.msrb.mxu0 %vm5871_vm15, %v5959_v22  ;;  %v5969_v25 = vsel %vm11087_vm8, %v670_v48, %v666_v20  ;;  %v5973_v32 = vsel %vm11087_vm8, %v666_v20, %v670_v48  ;;  %vm11715_vm8 = vcmp.ge.s32.totalorder %v5643_v17, 1 }
  0xbe   : > { %11708 = vst [vmem:[#allocation37_spill] sm:$0xff] %v5959_v22  ;;  %vm6000_vm14 = vmand %vm5871_vm15, %vm11715_vm8  ;;  %vm11107_vm8 = vcmp.lt.s32.totalorder %v5616_v8, 111 }
  0xbf   : > { %11709 = vst [vmem:[#allocation38_spill] sm:$0xff] %v5969_v25  ;;  %4693 = vmatpush.msk.msra.mxu2 %vm5863_vm1, %v5969_v25  ;;  %4711 = vmatpush.msk.msrb.mxu0 %vm5871_vm15, %v5973_v32  ;;  %v11717_v42 = vsel %vm6000_vm14, 4294967295, %v11716_v42 }
  0xc0   : > { %11710 = vst [vmem:[#allocation39_spill] sm:$0xff] %v5973_v32 }
  0xc1   : > { %1086 = vrot.lane.b32.xlu2 %v5521_v0, %s5389_s22  ;;  %1313 = vrot.lane.b32.xlu0 %v5528_v1, %s5387_s21  ;;  %11718 = vst [vmem:[#allocation41_spill] sm:$0xff] %v11717_v42 }
  0xc2   : > { %1317 = vrot.lane.b32.xlu1 %v5539_v3, %s5387_s21  ;;  %s5393_s21 = smov 2  }
  0xc3   : > { %v5994_v34 = vpop.permute.xlu2 %1398  ;;  %v633_v41 = vpop.permute.xlu0 %632 }
  0xc4   : > { %v637_v43 = vpop.permute.xlu1 %636 }
  0xc5   : > { %v6006_v48 = vsel %vm11090_vm9, %v637_v43, %v633_v41  ;;  %v6010_v49 = vsel %vm11090_vm9, %v633_v41, %v637_v43  ;;  %vm6027_vm9 = vmand %vm5638_vm4, %vm11721_vm7  ;;  %v860_v41 = vld [vmem:[%s11059_s2] sm:$0xff] }
  0xc6   : > { %11719 = vst [vmem:[#allocation42_spill] sm:$0xff] %v6006_v48  ;;  %4694 = vmatpush.msk.msra.mxu2 %vm5990_vm3, %v6006_v48  ;;  %4712 = vmatpush.msk.msrb.mxu0 %vm6000_vm14, %v6010_v49  ;;  %v11723_v51 = vsel %vm6027_vm9, 4294967295, %v11722_v51  ;;  %vm11733_vm7 = vmmov %vm11731_vm10  ;;  %v12231_v16 = vld [vmem:[#allocation38_spill] sm:$0xff] }
  0xc7   : > { %11720 = vst [vmem:[#allocation43_spill] sm:$0xff] %v6010_v49 }
  0xc8   : > { %11724 = vst [vmem:[#allocation44_spill] sm:$0xff] %v11723_v51 }
  0xc9   : > { %1294 = vrot.lane.b32.xlu2 %v5531_v2, %s5390_s20  ;;  %1090 = vrot.lane.b32.xlu0 %v5531_v2, %s5389_s22 }
  0xca   : > { %1290 = vrot.lane.b32.xlu1 %v5521_v0, %s5390_s20 }
  0xcb   : > { %v6041_v60 = vpop.permute.xlu2 %1265  ;;  %v842_v7 = vpop.permute.xlu0 %841 }
  0xcc   : > { %v631_v9 = vpop.permute.xlu1 %630  ;;  %v6046_v19 = vsel %vm11107_vm8, %v5877_v57, %v842_v7  ;;  %v6051_v20 = vsel %vm11107_vm8, %v842_v7, %v5877_v57 }
  0xcd   : > { %11729 = vst [vmem:[#allocation46_spill] sm:$0xff] %v6046_v19  ;;  %v6058_v43 = vsel %vm11731_vm10, %v635_v6, %v631_v9  ;;  %4696 = vmatpush.msk.msrb.mxu3 %vm6027_vm9, %v6046_v19  ;;  %v6065_v12 = vsel %vm11733_vm7, %v631_v9, %v635_v6  ;;  %4714 = vmatpush.msk.msrb.mxu1 %vm6037_vm5, %v6051_v20  ;;  %v861_v9 = vld [vmem:[%s11059_s2 + $0x8] sm:$0xff]  ;;  %vm1326_vm10 = vcmp.ge.s32.totalorder %v5623_v10, 4294967294  ;;  %vm1328_vm7 = vcmp.lt.s32.totalorder %v5623_v10, 14 }
  0xce   : > { %11730 = vst [vmem:[#allocation47_spill] sm:$0xff] %v6051_v20  ;;  %4695 = vmatpush.msk.msra.mxu2 %vm5990_vm3, %v6058_v43  ;;  %4713 = vmatpush.msk.msrb.mxu0 %vm6000_vm14, %v6065_v12  ;;  %vm6105_vm14 = vmand %vm1326_vm10, %vm1328_vm7  ;;  %vm11153_vm10 = vcmp.ge.s32.totalorder %v5634_v15, 2  ;;  %vm11143_vm7 = vcmp.lt.s32.totalorder %v5616_v8, 114 }
  0xcf   : > { %11732 = vst [vmem:[#allocation48_spill] sm:$0xff] %v6058_v43  ;;  %886 = vmatmul.f32.vlgmr.msra.gmra.mxu2 %v860_v41  ;;  %932 = vmatmul.f32.vlgmr.msrb.gmra.mxu0 %v860_v41  ;;  %v11740_v5 = vsel %vm6105_vm14, 4294967295, %v11739_v5 }
  0xd0   : > { %11734 = vst [vmem:[#allocation49_spill] sm:$0xff] %v6065_v12 }
  0xd1   : > { %1288 = vrot.lane.b32.xlu2 %v5528_v1, %s5390_s20  ;;  %1084 = vrot.lane.b32.xlu0 %v5528_v1, %s5389_s22 }
  0xd2   : > { %1088 = vrot.lane.b32.xlu1 %v5539_v3, %s5389_s22  ;;  %s5391_s22 = smov 33  }
  0xd3   : > { %v6082_v57 = vpop.permute.xlu2 %1375  ;;  %v836_v6 = vpop.permute.xlu0 %835 }
  0xd4   : > { %v840_v7 = vpop.permute.xlu1 %839 }
  0xd5   : > { %v6091_v41 = vsel %vm11107_vm8, %v836_v6, %v840_v7  ;;  %v6095_v63 = vsel %vm11107_vm8, %v840_v7, %v836_v6  ;;  %vm11116_vm8 = vcmp.lt.s32.totalorder %v5616_v8, 95  ;;  %v11742_v6 = vmov 0 }
  0xd6   : > { %11735 = vst [vmem:[#allocation50_spill] sm:$0xff] %v6091_v41  ;;  %4697 = vmatpush.msk.msrb.mxu3 %vm6027_vm9, %v6091_v41  ;;  %4715 = vmatpush.msk.msrb.mxu1 %vm6037_vm5, %v6095_v63 }
  0xd7   : > { %11736 = vst [vmem:[#allocation51_spill] sm:$0xff] %v6095_v63  ;;  %4698 = vmatmul.msk.f32.vlgmr.msrb.gmra.mxu3 %vm11737_vm6, %v861_v9  ;;  %4716 = vmatmul.msk.f32.vlgmr.msrb.gmra.mxu1 %vm11738_vm12, %v861_v9  ;;  %vm11741_vm6 = vcmp.lt.s32.totalorder %v5634_v15, 15 }
  0xd8   : > { %4718 = vmatpush.msk.msra.mxu3 %vm5863_vm1, %v5954_v21  ;;  %vm6124_vm12 = vmand %vm6105_vm14, %vm11741_vm6 }
  0xd9   : > { %1065 = vrot.lane.b32.xlu2 %v5531_v2, %s5391_s22  ;;  %1292 = vrot.lane.b32.xlu0 %v5539_v3, %s5390_s20  ;;  %v11743_v6 = vsel %vm6124_vm12, 4294967295, %v11742_v6  ;;  %s5392_s20 = smov 34   ;;  %vm6176_vm6 = vmand %vm5638_vm4, %vm11153_vm10 }
  0xda   : > { %4719 = vmatpush.msk.msra.mxu3 %vm5863_vm1, %v5969_v25  ;;  %1061 = vrot.lane.b32.xlu1 %v5521_v0, %s5391_s22  ;;  %11744 = vst [vmem:[#allocation52_spill] sm:$0xff] %v11743_v6 }
  0xdb   : > { %v6128_v7 = vpop.permute.xlu2 %1263  ;;  %v6130_v9 = vpop.permute.xlu0 %1400 }
  0xdc   : > { %11745 = vst [vmem:[#allocation53_spill] sm:$0xff] %v6128_v7  ;;  %4720 = vmatpush.msk.msra.mxu3 %vm5990_vm3, %v6006_v48  ;;  %v6135_v21 = vpop.permute.xlu1 %1394  ;;  %v6141_v25 = vsel %vm11116_vm8, %v5949_v14, %v6130_v9 }
  0xdd   : > { %11746 = vst [vmem:[#allocation54_spill] sm:$0xff] %v6141_v25  ;;  %4748 = vmatpush.msk.msrb.mxu2 %vm6124_vm12, %v6141_v25  ;;  %v6153_v48 = vsel %vm11116_vm8, %v6135_v21, %v5994_v34  ;;  %vm11144_vm8 = vcmp.lt.s32.totalorder %v5616_v8, 96 }
  0xde   : > { %4721 = vmatpush.msk.msra.mxu3 %vm5990_vm3, %v6058_v43  ;;  %11747 = vst [vmem:[#allocation55_spill] sm:$0xff] %v6153_v48  ;;  %vm1039_vm3 = vcmp.lt.s32.totalorder %v5623_v10, 18 }
  0xdf   : > { %4749 = vmatpush.msk.msrb.mxu2 %vm6124_vm12, %v6153_v48  ;;  %v11749_v48 = vmov 0  ;;  %vm11170_vm12 = vcmp.lt.s32.totalorder %v5616_v8, 30 }
  0xe0   : > { %v11750_v48 = vsel %vm6176_vm6, 4294967295, %v11749_v48 }
  0xe1   : > { %1026 = vrot.lane.b32.xlu2 %v5521_v0, %s5392_s20  ;;  %1059 = vrot.lane.b32.xlu0 %v5528_v1, %s5391_s22  ;;  %11751 = vst [vmem:[#allocation57_spill] sm:$0xff] %v11750_v48 }
  0xe2   : > { %1063 = vrot.lane.b32.xlu1 %v5539_v3, %s5391_s22  ;;  %s5395_s22 = smov 94  }
  0xe3   : > { %v6161_v25 = vpop.permute.xlu2 %1373  ;;  %v6163_v43 = vpop.permute.xlu0 %1165 }
  0xe4   : > { %11748 = vst [vmem:[#allocation56_spill] sm:$0xff] %v6161_v25  ;;  %v6165_v33 = vpop.permute.xlu1 %1169 }
  0xe9   : > { %1219 = vrot.lane.b32.xlu2 %v5531_v2, %s5393_s21  ;;  %1030 = vrot.lane.b32.xlu0 %v5531_v2, %s5392_s20 }
  0xea   : > { %1215 = vrot.lane.b32.xlu1 %v5521_v0, %s5393_s21 }
  0xeb   : > { %v6181_v6 = vpop.permute.xlu2 %1240  ;;  %v6183_v36 = vpop.permute.xlu0 %1269 }
  0xec   : > { %11752 = vst [vmem:[#allocation58_spill] sm:$0xff] %v6181_v6  ;;  %v6189_v29 = vsel %vm11143_vm7, %v6041_v60, %v6183_v36  ;;  %v6191_v31 = vpop.permute.xlu1 %1371 }
  0xed   : > { %11753 = vst [vmem:[#allocation59_spill] sm:$0xff] %v6189_v29  ;;  %4734 = vmatpush.msk.msra.mxu1 %vm6176_vm6, %v6189_v29  ;;  %v6200_v27 = vsel %vm11144_vm8, %v6191_v31, %v6082_v57 }
  0xee   : > { %11754 = vst [vmem:[#allocation60_spill] sm:$0xff] %v6200_v27  ;;  %4750 = vmatpush.msk.msrb.mxu2 %vm6105_vm14, %v6200_v27 }
  0xf1   : > { %1213 = vrot.lane.b32.xlu2 %v5528_v1, %s5393_s21  ;;  %1024 = vrot.lane.b32.xlu0 %v5528_v1, %s5392_s20 }
  0xf2   : > { %1028 = vrot.lane.b32.xlu1 %v5539_v3, %s5392_s20  ;;  %s5397_s20 = smov 19  }
  0xf3   : > { %v6208_v24 = vpop.permute.xlu2 %1350  ;;  %v6210_v62 = vpop.permute.xlu0 %1163 }
  0xf4   : > { %11755 = vst [vmem:[#allocation61_spill] sm:$0xff] %v6208_v24  ;;  %v6212_v29 = vpop.permute.xlu1 %1167 }
  0xf9   : > { %1194 = vrot.lane.b32.xlu2 %v5531_v2, %s5394_s17  ;;  %1217 = vrot.lane.b32.xlu0 %v5539_v3, %s5393_s21  ;;  %s5399_s21 = smov 45  }
  0xfa   : > { %1190 = vrot.lane.b32.xlu1 %v5521_v0, %s5394_s17 }
  0xfb   : > { %v6217_v27 = vpop.permute.xlu2 %1238  ;;  %v6219_v63 = vpop.permute.xlu0 %1267 }
  0xfc   : > { %11756 = vst [vmem:[#allocation62_spill] sm:$0xff] %v6219_v63  ;;  %v6221_v52 = vpop.permute.xlu1 %1369  ;;  %v6227_v54 = vsel %vm11143_vm7, %v6128_v7, %v6219_v63  ;;  %vm11166_vm7 = vcmp.lt.s32.totalorder %v5616_v8, 18 }
  0xfd   : > { %11757 = vst [vmem:[#allocation63_spill] sm:$0xff] %v6221_v52  ;;  %4735 = vmatpush.msk.msra.mxu1 %vm6176_vm6, %v6227_v54  ;;  %v6236_v58 = vsel %vm11144_vm8, %v6221_v52, %v6161_v25  ;;  %vm6251_vm8 = vmand %vm5863_vm1, %vm11153_vm10  ;;  %v6261_v48 = vsel %vm11166_vm7, %v6165_v33, %v6163_v43  ;;  %v6267_v47 = vsel %vm11166_vm7, %v6212_v29, %v6210_v62  ;;  %vm1037_vm10 = vcmp.ge.s32.totalorder %v5623_v10, 2 }
  0xfe   : > { %11758 = vst [vmem:[#allocation64_spill] sm:$0xff] %v6227_v54  ;;  %4751 = vmatpush.msk.msrb.mxu2 %vm6105_vm14, %v6236_v58  ;;  %v11760_v54 = vmov 0  ;;  %4722 = vmatpush.msk.msra.mxu3 %vm6251_vm8, %v6261_v48  ;;  %vm11174_vm6 = vcmp.lt.s32.totalorder %v5634_v15, 14  ;;  %vm6278_vm5 = vmand %vm1037_vm10, %vm1039_vm3  ;;  %v11769_v10 = vmov 0  ;;  %vm11776_vm3 = vcmp.ge.s32.totalorder %v5634_v15, 1 }
  0xff   : > { %11759 = vst [vmem:[#allocation65_spill] sm:$0xff] %v6236_v58  ;;  %v11761_v54 = vsel %vm6251_vm8, 4294967295, %v11760_v54  ;;  %v11766_v45 = vsel %vm6278_vm5, 4294967295, %v11765_v45  ;;  %vm6295_vm7 = vmand %vm6278_vm5, %vm11174_vm6 }
 0x100   : > { %11762 = vst [vmem:[#allocation66_spill] sm:$0xff] %v11761_v54  ;;  %4723 = vmatpush.msk.msra.mxu3 %vm6251_vm8, %v6267_v47  ;;  %v11770_v10 = vsel %vm6295_vm7, 4294967295, %v11769_v10  ;;  %vm6307_vm10 = vmand %vm5752_vm2, %vm11174_vm6  ;;  %vm11781_vm6 = vcmp.lt.s32.totalorder %v5616_v8, 126 }
 0x101   : > { %1421 = vrot.lane.b32.xlu2 %v5521_v0, %s5395_s22  ;;  %1188 = vrot.lane.b32.xlu0 %v5528_v1, %s5394_s17  ;;  %11763 = vst [vmem:[#allocation67_spill] sm:$0xff] %v6261_v48  ;;  %vm6321_vm8 = vmand %vm6105_vm14, %vm11776_vm3  ;;  %vm11787_vm3 = vcmask 130048  }
 0x102   : > { %1192 = vrot.lane.b32.xlu1 %v5539_v3, %s5394_s17  ;;  %11764 = vst [vmem:[#allocation68_spill] sm:$0xff] %v6267_v47  ;;  %v11772_v47 = vmov 0  ;;  %s5396_s17 = smov 35  }
 0x103   : > { %v6244_v20 = vpop.permute.xlu0 %1136  ;;  %v6269_v40 = vpop.permute.xlu2 %1348  ;;  %11767 = vst [vmem:[#allocation69_spill] sm:$0xff] %v11766_v45  ;;  %v11773_v47 = vsel %vm6307_vm10, 4294967295, %v11772_v47 }
 0x104   : > { %v6255_v58 = vpop.permute.xlu1 %1140  ;;  %11771 = vst [vmem:[#allocation71_spill] sm:$0xff] %v11770_v10 }
 0x105   : > { %v6289_v38 = vsel %vm11170_vm12, %v6255_v58, %v6244_v20  ;;  %11774 = vst [vmem:[#allocation72_spill] sm:$0xff] %v11773_v47  ;;  %vm11184_vm12 = vcmp.lt.s32.totalorder %v5616_v8, 97 }
 0x106   : > { %11768 = vst [vmem:[#allocation70_spill] sm:$0xff] %v6289_v38  ;;  %4724 = vmatpush.msk.msra.mxu3 %vm6295_vm7, %v6289_v38 }
 0x109   : > { %1423 = vrot.lane.b32.xlu2 %v5539_v3, %s5395_s22  ;;  %1425 = vrot.lane.b32.xlu0 %v5531_v2, %s5395_s22  ;;  %v11777_v2 = vmov 0 }
 0x10a   : > { %1419 = vrot.lane.b32.xlu1 %v5528_v1, %s5395_s22  ;;  %v11778_v2 = vsel %vm6321_vm8, 4294967295, %v11777_v2  ;;  %s5400_s22 = smov 46  }
 0x10b   : > { %v6315_v3 = vpop.permute.xlu0 %1244  ;;  %11779 = vst [vmem:[#allocation74_spill] sm:$0xff] %v11778_v2  ;;  %v6345_v54 = vpop.permute.xlu2 %1315 }
 0x10c   : > { %11775 = vst [vmem:[#allocation73_spill] sm:$0xff] %v6315_v3  ;;  %v6325_v63 = vpop.permute.xlu1 %1346  ;;  %v6331_v7 = vsel %vm11781_vm6, %v6181_v6, %v6315_v3  ;;  %v863_v6 = vld [vmem:[%s11059_s2 + $0x18] sm:$0xff]  ;;  %vm11785_vm6 = vcmp.lt.s32.totalorder %v5616_v8, 30  ;;  %v6445_v2 = vpop.f32.mrf.mxu3 }
 0x10d   : > { %11780 = vst [vmem:[#allocation75_spill] sm:$0xff] %v6325_v63  ;;  %4736 = vmatpush.msk.msra.mxu1 %vm6307_vm10, %v6331_v7  ;;  %v6340_v38 = vsel %vm11184_vm12, %v6325_v63, %v6208_v24  ;;  %4699 = vmatmul.msk.f32.gmra.mxu3 %vm11787_vm3, %v863_v6  ;;  %vm11788_vm12 = vmmov %vm11787_vm3  ;;  %vm11197_vm3 = vcmp.lt.s32.totalorder %v5616_v8, 31 }
 0x10e   : > { %11782 = vst [vmem:[#allocation76_spill] sm:$0xff] %v6331_v7  ;;  %4752 = vmatpush.msk.msrb.mxu2 %vm6321_vm8, %v6340_v38  ;;  %v862_v7 = vld [vmem:[%s11059_s2 + $0x10] sm:$0xff]  ;;  %4717 = vmatmul.msk.f32.gmra.mxu1 %vm11788_vm12, %v863_v6  ;;  %vm11792_vm12 = vcmp.lt.s32.totalorder %v5616_v8, 97 }
 0x10f   : > { %11783 = vst [vmem:[#allocation77_spill] sm:$0xff] %v6340_v38  ;;  %889 = vmatmul.f32.gmra.mxu2 %v862_v7  ;;  %935 = vmatmul.f32.gmra.mxu0 %v862_v7  ;;  %v6395_v7 = vpop.f32.mrf.mxu0 }
 0x110   : > { %11784 = vst [vmem:[#allocation78_spill] sm:$0xff] %v6345_v54 }
 0x111   : > { %11794 = vst [vmem:[#allocation83_spill] sm:$0xff] %v6395_v7 }
 0x112   : > { %11806 = vst [vmem:[#allocation89_spill] sm:$0xff] %v6445_v2 }
 0x113   : > { %v6347_v48 = vpop.permute.xlu0 %1134  ;;  %v6368_v38 = vpop.permute.xlu2 %1113 }
 0x114   : > { %v6349_v3 = vpop.permute.xlu1 %1138 }
 0x115   : > { %v6361_v24 = vsel %vm11785_vm6, %v6349_v3, %v6347_v48  ;;  %vm11790_vm6 = vcmp.lt.s32.totalorder %v5616_v8, 126 }
 0x116   : > { %11786 = vst [vmem:[#allocation79_spill] sm:$0xff] %v6361_v24  ;;  %4725 = vmatpush.msk.msra.mxu3 %vm6295_vm7, %v6361_v24  ;;  %vm11849_vm7 = vcmp.lt.s32.totalorder %v5634_v15, 14 }
 0x11b   : > { %v6370_v63 = vpop.permute.xlu0 %1242 }
 0x11c   : > { %11789 = vst [vmem:[#allocation80_spill] sm:$0xff] %v6370_v63  ;;  %v6372_v25 = vpop.permute.xlu1 %1344  ;;  %v6378_v52 = vsel %vm11790_vm6, %v6217_v27, %v6370_v63  ;;  %vm11795_vm6 = vcmp.lt.s32.totalorder %v5634_v15, 15 }
 0x11d   : > { %11791 = vst [vmem:[#allocation81_spill] sm:$0xff] %v6378_v52  ;;  %4737 = vmatpush.msk.msra.mxu1 %vm6307_vm10, %v6378_v52  ;;  %v6387_v6 = vsel %vm11792_vm12, %v6372_v25, %v6269_v40  ;;  %v6401_v52 = vpop.permute.xlu2 %1086  ;;  %vm6410_vm12 = vmand %vm6278_vm5, %vm11795_vm6  ;;  %vm11219_vm6 = vcmp.lt.s32.totalorder %v5616_v8, 98  ;;  %vm11231_vm10 = vcmp.lt.s32.totalorder %v5616_v8, 110 }
 0x11e   : > { %11793 = vst [vmem:[#allocation82_spill] sm:$0xff] %v6387_v6  ;;  %4753 = vmatpush.msk.msrb.mxu2 %vm6321_vm8, %v6387_v6  ;;  %vm11814_vm8 = vcmp.lt.s32.totalorder %v5634_v15, 14 }
 0x11f   : > { %4738 = vmatpush.msk.msra.mxu1 %vm5770_vm13, %v5789_v44  ;;  %v11796_v44 = vmov 0 }
 0x120   : > { %v11797_v44 = vsel %vm6410_vm12, 4294967295, %v11796_v44 }
 0x121   : > { %4739 = vmatpush.msk.msra.mxu1 %vm5770_vm13, %v5805_v46  ;;  %11798 = vst [vmem:[#allocation84_spill] sm:$0xff] %v11797_v44  ;;  %vm11800_vm13 = vcmp.ge.s32.totalorder %v5634_v15, 2  ;;  %v11815_v44 = vmov 0 }
 0x123   : > { %v6403_v47 = vpop.permute.xlu0 %1111  ;;  %1487 = vmatpush.msra.mxu1 %v5521_v0  ;;  %v11801_v0 = vmov 0 }
 0x124   : > { %v6414_v6 = vpop.permute.xlu1 %1115 }
 0x125   : > { %1488 = vmatpush.msra.mxu1 %v5528_v1  ;;  %v6421_v46 = vsel %vm11197_vm3, %v6414_v6, %v6403_v47  ;;  %vm6437_vm3 = vmand %vm6105_vm14, %vm11800_vm13  ;;  %v6441_v1 = vpop.f32.mrf.mxu0  ;;  %v6455_v10 = vpop.permute.xlu2 %1294  ;;  %vm11809_vm13 = vcmp.lt.s32.totalorder %v5616_v8, 31 }
 0x126   : > { %11799 = vst [vmem:[#allocation85_spill] sm:$0xff] %v6421_v46  ;;  %4726 = vmatpush.msk.msra.mxu3 %vm6410_vm12, %v6421_v46  ;;  %v11802_v0 = vsel %vm6437_vm3, 4294967295, %v11801_v0  ;;  %v564_v50 = vadd.f32 %v6445_v2, %v6441_v1 }
 0x127   : > { %4740 = vmatpush.msk.msra.mxu1 %vm5831_vm0, %v5847_v53  ;;  %11803 = vst [vmem:[#allocation86_spill] sm:$0xff] %v11802_v0 }
 0x128   : > { %11804 = vst [vmem:[#allocation87_spill] sm:$0xff] %v6441_v1 }
 0x129   : > { %4741 = vmatpush.msk.msra.mxu1 %vm5831_vm0, %v5891_v61  ;;  %11808 = vst [vmem:[#allocation91_spill] sm:$0xff] %v6455_v10 }
 0x12b   : > { %v6443_v39 = vpop.permute.xlu0 %1319 }
 0x12c   : > { %11805 = vst [vmem:[#allocation88_spill] sm:$0xff] %v6443_v39  ;;  %v6447_v46 = vpop.permute.xlu1 %1109  ;;  %v6453_v24 = vsel %vm11219_vm6, %v6345_v54, %v6443_v39  ;;  %v6475_v54 = vpop.f32.mrf.mxu1 }
 0x12d   : > { %11807 = vst [vmem:[#allocation90_spill] sm:$0xff] %v6453_v24  ;;  %v6461_v61 = vsel %vm11809_vm13, %v6368_v38, %v6447_v46  ;;  %4754 = vmatpush.msk.msrb.mxu2 %vm6437_vm3, %v6453_v24  ;;  %v6486_v24 = vpop.permute.xlu2 %1288  ;;  %vm11236_vm13 = vcmp.lt.s32.totalorder %v5616_v8, 32 }
 0x12e   : > { %11810 = vst [vmem:[#allocation92_spill] sm:$0xff] %v6461_v61  ;;  %4727 = vmatpush.msk.msra.mxu3 %vm6410_vm12, %v6461_v61  ;;  %vm11848_vm12 = vcmp.lt.s32.totalorder %v5616_v8, 2 }
 0x12f   : > { %11812 = vst [vmem:[#allocation94_spill] sm:$0xff] %v6475_v54 }
 0x132   : > { %565 = vadd.xlane.f32.xlu2 %v564_v50  ;;  %v561_v50 = vadd.f32 %v6475_v54, %v6395_v7 }
 0x133   : > { %v6471_v53 = vpop.permute.xlu0 %1313 }
 0x134   : > { %v6473_v39 = vpop.permute.xlu1 %1317 }
 0x135   : > { %11811 = vst [vmem:[#allocation93_spill] sm:$0xff] %v6473_v39  ;;  %v6481_v63 = vsel %vm11219_vm6, %v6471_v53, %v6473_v39  ;;  %vm6498_vm6 = vmand %vm5638_vm4, %vm11814_vm8  ;;  %v6522_v54 = vpop.permute.xlu2 %1065  ;;  %vm11250_vm8 = vcmp.lt.s32.totalorder %v5616_v8, 33 }
 0x136   : > { %11813 = vst [vmem:[#allocation95_spill] sm:$0xff] %v6481_v63  ;;  %4755 = vmatpush.msk.msrb.mxu2 %vm6437_vm3, %v6481_v63  ;;  %v11816_v44 = vsel %vm6498_vm6, 4294967295, %v11815_v44 }
 0x137   : > { %11817 = vst [vmem:[#allocation96_spill] sm:$0xff] %v11816_v44 }
 0x13a   : > { %562 = vadd.xlane.f32.xlu2 %v561_v50 }
 0x13b   : > { %v6492_v61 = vpop.permute.xlu0 %1090 }
 0x13c   : > { %v6502_v63 = vpop.permute.xlu1 %1290  ;;  %v6508_v0 = vsel %vm11236_vm13, %v6492_v61, %v6401_v52 }
 0x13d   : > { %11818 = vst [vmem:[#allocation97_spill] sm:$0xff] %v6502_v63  ;;  %4728 = vmatpush.msk.msra.mxu3 %vm6278_vm5, %v6508_v0  ;;  %v6517_v50 = vsel %vm11231_vm10, %v6502_v63, %v6455_v10  ;;  %v6538_v1 = vpop.permute.xlu2 %1026  ;;  %vm11823_vm10 = vcmp.ge.s32.totalorder %v5634_v15, 1  ;;  %v11824_v10 = vmov 0 }
 0x13e   : > { %11819 = vst [vmem:[#allocation98_spill] sm:$0xff] %v6508_v0  ;;  %4756 = vmatpush.msk.msrb.mxu2 %vm6498_vm6, %v6517_v50  ;;  %vm6546_vm3 = vmand %vm6278_vm5, %vm11823_vm10 }
 0x13f   : > { %11820 = vst [vmem:[#allocation99_spill] sm:$0xff] %v6517_v50  ;;  %v11825_v10 = vsel %vm6546_vm3, 4294967295, %v11824_v10 }
 0x140   : > { %11826 = vst [vmem:[#allocation102_spill] sm:$0xff] %v11825_v10 }
 0x143   : > { %v6524_v7 = vpop.permute.xlu0 %1084 }
 0x144   : > { %v6526_v2 = vpop.permute.xlu1 %1088 }
 0x145   : > { %v6532_v0 = vsel %vm11236_vm13, %v6526_v2, %v6524_v7  ;;  %vm11827_vm13 = vcmp.lt.s32.totalorder %v5616_v8, 110 }
 0x146   : > { %11821 = vst [vmem:[#allocation100_spill] sm:$0xff] %v6532_v0  ;;  %4729 = vmatpush.msk.msra.mxu3 %vm6278_vm5, %v6532_v0 }
 0x14b   : > { %v6540_v50 = vpop.permute.xlu0 %1292 }
 0x14c   : > { %11822 = vst [vmem:[#allocation101_spill] sm:$0xff] %v6540_v50  ;;  %v6550_v63 = vpop.permute.xlu1 %1061  ;;  %v6556_v0 = vsel %vm11827_vm13, %v6486_v24, %v6540_v50  ;;  %vm11832_vm13 = vcmp.ge.s32.totalorder %v5634_v15, 2 }
 0x14d   : > { %11828 = vst [vmem:[#allocation103_spill] sm:$0xff] %v6556_v0  ;;  %v6562_v39 = vsel %vm11250_vm8, %v6522_v54, %v6550_v63  ;;  %4757 = vmatpush.msk.msrb.mxu2 %vm6498_vm6, %v6556_v0  ;;  %v6583_v0 = vpop.permute.xlu2 %1219  ;;  %vm11836_vm6 = vmmov %vm11832_vm13 }
 0x14e   : > { %11829 = vst [vmem:[#allocation104_spill] sm:$0xff] %v6562_v39  ;;  %4730 = vmatpush.msk.msra.mxu3 %vm6546_vm3, %v6562_v39  ;;  %vm6623_vm10 = vmand %vm5752_vm2, %vm11836_vm6  ;;  %vm11844_vm2 = vnez %v11717_v42 }
 0x14f   : > { %4758 = vmatpush.msk.msrb.mxu2 %vm6027_vm9, %v6046_v19 }
 0x151   : > { %4759 = vmatpush.msk.msrb.mxu2 %vm6027_vm9, %v6091_v41  ;;  %v933_v41 = vpop.f32.mrf.mxu0  ;;  %vm11268_vm9 = vcmp.lt.s32.totalorder %v5616_v8, 2 }
 0x152   : > { %v887_v39 = vpop.f32.mrf.mxu2 }
 0x153   : > { %v6576_v50 = vpop.permute.xlu0 %1059  ;;  %4760 = vmatpush.msk.msrb.mxu2 %vm5638_vm4, %v5659_v23 }
 0x154   : > { %v6581_v44 = vpop.permute.xlu1 %1063  ;;  %v956_v19 = vpop.f32.mrf.mxu1 }
 0x155   : > { %4761 = vmatpush.msk.msrb.mxu2 %vm5638_vm4, %v5677_v26  ;;  %v6592_v51 = vsel %vm11250_vm8, %v6581_v44, %v6576_v50  ;;  %v6600_v23 = vadd.f32 %v956_v19, %v933_v41  ;;  %vm6610_vm8 = vmand %vm6278_vm5, %vm11832_vm13  ;;  %vm11839_vm13 = vcmp.lt.s32.totalorder %v5616_v8, 34  ;;  %v6649_v37 = vpop.permute.xlu2 %1213 }
 0x156   : > { %11830 = vst [vmem:[#allocation105_spill] sm:$0xff] %v6592_v51  ;;  %4731 = vmatpush.msk.msra.mxu3 %vm6546_vm3, %v6592_v51  ;;  %v11833_v51 = vmov 0  ;;  %vm11842_vm6 = vmmov %vm11839_vm13  ;;  %vm11294_vm3 = vcmp.lt.s32.totalorder %v5616_v8, 14 }
 0x157   : > { %4762 = vmatpush.msk.msrb.mxu2 %vm5696_vm11, %v5715_v30  ;;  %11831 = vst [vmem:[#allocation106_spill] sm:$0xff] %v6600_v23  ;;  %v11834_v51 = vsel %vm6610_vm8, 4294967295, %v11833_v51  ;;  %vm6707_vm5 = vmand %vm5863_vm1, %vm11849_vm7  ;;  %vm11855_vm7 = vcmp.lt.s32.totalorder %v5616_v8, 18 }
 0x158   : > { %11835 = vst [vmem:[#allocation107_spill] sm:$0xff] %v11834_v51  ;;  %v6726_v55 = vsel %vm11855_vm7, %v6163_v43, %v6165_v33 }
 0x159   : > { %4763 = vmatpush.msk.msrb.mxu2 %vm5696_vm11, %v5739_v35  ;;  %11856 = vst [vmem:[#allocation113_spill] sm:$0xff] %v6726_v55 }
 0x15a   : > { %v910_v26 = vpop.f32.mrf.mxu3 }
 0x15b   : > { %v6615_v10 = vadd.f32 %v910_v26, %v887_v39  ;;  %v6617_v19 = vpop.permute.xlu0 %1030 }
 0x15c   : > { %v6627_v35 = vpop.permute.xlu1 %1215  ;;  %v6633_v45 = vsel %vm11839_vm13, %v6617_v19, %v6538_v1  ;;  %vm11287_vm13 = vcmp.ge.s32.totalorder %v5643_v17, 2 }
 0x15d   : > { %11840 = vst [vmem:[#allocation108_spill] sm:$0xff] %v6633_v45  ;;  %4732 = vmatpush.msk.msra.mxu3 %vm6610_vm8, %v6633_v45  ;;  %v6642_v26 = vsel %vm11268_vm9, %v6583_v0, %v6627_v35  ;;  %v962_v39 = vadd.f32 %v6600_v23, %v6615_v10  ;;  %v6654_v45 = vld [vmem:[%s11060_s3 + $0x10] sm:$0xff]  ;;  %vm1038_vm9 = vcmp.ge.s32.totalorder %v5627_v13, 2 }
 0x15e   : > { %4742 = vmatpush.msk.msra.mxu1 %vm6623_vm10, %v6642_v26  ;;  %11841 = vst [vmem:[#allocation109_spill] sm:$0xff] %v6654_v45  ;;  %1520 = vmatmul.f32.vlgmr.msrb.gmra.mxu2 %v6654_v45  ;;  %v11852_v45 = vmov 0 }
 0x15f   : > { %963 = vadd.xlane.f32.xlu1 %v962_v39  ;;  %v6677_v39 = vpop.permute.xlu2 %1194 }
 0x163   : > { %v6657_v28 = vpop.permute.xlu0 %1024 }
 0x164   : > { %v6659_v30 = vpop.permute.xlu1 %1028 }
 0x165   : > { %v6665_v23 = vsel %vm11842_vm6, %v6659_v30, %v6657_v28  ;;  %vm1040_vm6 = vcmp.lt.s32.totalorder %v5627_v13, 18 }
 0x166   : > { %11843 = vst [vmem:[#allocation110_spill] sm:$0xff] %v6665_v23  ;;  %4733 = vmatpush.msk.msra.mxu3 %vm6610_vm8, %v6665_v23  ;;  %vm6690_vm8 = vmand %vm5871_vm15, %vm11287_vm13 }
 0x167   : > { %vm6717_vm13 = vmand %vm1038_vm9, %vm1040_vm6  ;;  %vm11859_vm6 = vcmp.lt.s32.totalorder %v5616_v8, 30 }
 0x168   : > { %4768 = vmatpush.msk.msrb.mxu3 %vm5871_vm15, %v5959_v22  ;;  %v11845_v22 = vmov 0  ;;  %v11853_v45 = vsel %vm6717_vm13, 4294967295, %v11852_v45  ;;  %vm11857_vm9 = vmmov %vm11855_vm7  ;;  %v6750_v33 = vsel %vm11859_vm6, %v6244_v20, %v6255_v58  ;;  %v1422_v20 = vpop.permute.xlu2 %1421 }
 0x169   : > { %v11846_v22 = vsel %vm6690_vm8, 4294967295, %v11845_v22  ;;  %11854 = vst [vmem:[#allocation112_spill] sm:$0xff] %v11853_v45  ;;  %v6738_v42 = vsel %vm11857_vm9, %v6210_v62, %v6212_v29  ;;  %v11861_v29 = vmov 0  ;;  %vm11864_vm9 = vmmov %vm11859_vm6  ;;  %vm1327_vm6 = vcmp.ge.s32.totalorder %v5627_v13, 4294967294 }
 0x16a   : > { %4769 = vmatpush.msk.msrb.mxu3 %vm5871_vm15, %v5973_v32  ;;  %11847 = vst [vmem:[#allocation111_spill] sm:$0xff] %v11846_v22  ;;  %v6767_v62 = vsel %vm11864_vm9, %v6347_v48, %v6349_v3  ;;  %vm11868_vm9 = vcmp.lt.s32.totalorder %v5643_v17, 15  ;;  %v11869_v48 = vmov 0 }
 0x16b   : > { %v6684_v23 = vpop.permute.xlu0 %1217  ;;  %11858 = vst [vmem:[#allocation114_spill] sm:$0xff] %v6738_v42 }
 0x16c   : > { %4770 = vmatpush.msk.msrb.mxu3 %vm11844_vm2, %v6010_v49  ;;  %v6695_v32 = vpop.permute.xlu1 %1190  ;;  %v6701_v51 = vsel %vm11848_vm12, %v6684_v23, %v6649_v37  ;;  %v11850_v49 = vmov 0  ;;  %vm11295_vm12 = vcmp.lt.s32.totalorder %v5643_v17, 14  ;;  %11860 = vst [vmem:[#allocation115_spill] sm:$0xff] %v6750_v33 }
 0x16d   : > { %v11851_v49 = vsel %vm6707_vm5, 4294967295, %v11850_v49  ;;  %4743 = vmatpush.msk.msra.mxu1 %vm6623_vm10, %v6701_v51  ;;  %vm6756_vm7 = vmand %vm6717_vm13, %vm11295_vm12  ;;  %11865 = vst [vmem:[#allocation117_spill] sm:$0xff] %v6767_v62  ;;  %vm11866_vm12 = vcmp.lt.s32.totalorder %v5616_v8, 31 }
 0x16e   : > { %4771 = vmatpush.msk.msrb.mxu3 %vm11844_vm2, %v6065_v12  ;;  %v6732_v12 = vsel %vm11294_vm3, %v6677_v39, %v6695_v32  ;;  %v11862_v29 = vsel %vm6756_vm7, 4294967295, %v11861_v29  ;;  %vm1329_vm3 = vcmp.lt.s32.totalorder %v5627_v13, 14  ;;  %vm11872_vm2 = vcmp.lt.s32.totalorder %v5616_v8, 14 }
 0x16f   : > { %4744 = vmatpush.msk.msra.mxu1 %vm6707_vm5, %v6732_v12  ;;  %11863 = vst [vmem:[#allocation116_spill] sm:$0xff] %v11862_v29  ;;  %v11904_v29 = vmov 0 }
 0x170   : > { %4772 = vmatpush.msk.msrb.mxu3 %vm6690_vm8, %v6726_v55 }
 0x172   : > { %4773 = vmatpush.msk.msrb.mxu3 %vm6690_vm8, %v6738_v42  ;;  %v6782_v42 = vsel %vm11866_vm12, %v6403_v47, %v6414_v6  ;;  %vm6788_vm8 = vmand %vm6717_vm13, %vm11868_vm9  ;;  %v11873_v47 = vmov 0  ;;  %vm11876_vm9 = vnez %v11691_v59  ;;  %v6815_v6 = vld [vmem:[%s5518_s23 + $0x10] sm:$0xff] }
 0x173   : > { %v6774_v58 = vpop.permute.xlu0 %1188  ;;  %11867 = vst [vmem:[#allocation118_spill] sm:$0xff] %v6782_v42  ;;  %v11870_v48 = vsel %vm6788_vm8, 4294967295, %v11869_v48  ;;  %vm6801_vm12 = vmand %vm1327_vm6, %vm1329_vm3  ;;  %vm11879_vm3 = vcmp.lt.s32.totalorder %v5643_v17, 15 }
 0x174   : > { %4774 = vmatpush.msk.msrb.mxu3 %vm6756_vm7, %v6750_v33  ;;  %v6776_v43 = vpop.permute.xlu1 %1192  ;;  %11871 = vst [vmem:[#allocation119_spill] sm:$0xff] %v11870_v48  ;;  %v11874_v47 = vsel %vm6801_vm12, 4294967295, %v11873_v47  ;;  %vm6829_vm6 = vmand %vm6801_vm12, %vm11879_vm3  ;;  %v11963_v33 = vmov 0 }
 0x175   : > { %v6799_v3 = vsel %vm11872_vm2, %v6776_v43, %v6774_v58  ;;  %11875 = vst [vmem:[#allocation120_spill] sm:$0xff] %v11874_v47  ;;  %vm11877_vm2 = vcmp.lt.s32.totalorder %v5616_v8, 31  ;;  %v12012_v47 = vld [vmem:[#allocation11_spill] sm:$0xff] }
 0x176   : > { %4775 = vmatpush.msk.msrb.mxu3 %vm6756_vm7, %v6767_v62  ;;  %4745 = vmatpush.msk.msra.mxu1 %vm6707_vm5, %v6799_v3  ;;  %v6823_v62 = vsel %vm11877_vm2, %v6447_v46, %v6368_v38  ;;  %vm11883_vm5 = vcmp.lt.s32.totalorder %v5616_v8, 95  ;;  %vm11885_vm2 = vcmp.lt.s32.totalorder %v5616_v8, 32  ;;  %vm11889_vm7 = vcmp.lt.s32.totalorder %v5634_v15, 14 }
 0x177   : > { %11878 = vst [vmem:[#allocation121_spill] sm:$0xff] %v6823_v62  ;;  %v6841_v38 = vsel %vm11883_vm5, %v6130_v9, %v5949_v14  ;;  %v6850_v46 = vsel %vm11885_vm2, %v6401_v52, %v6492_v61  ;;  %vm11887_vm3 = vmmov %vm11885_vm2  ;;  %v11890_v14 = vmov 0  ;;  %v6869_v9 = vld [vmem:[%s11060_s3 + $0x8] sm:$0xff]  ;;  %vm11893_vm2 = vcmp.lt.s32.totalorder %v5643_v17, 14 }
 0x178   : > { %4776 = vmatpush.msk.msrb.mxu3 %vm6788_vm8, %v6782_v42  ;;  %4746 = vmatpush.msk.msra.mxu1 %vm11876_vm9, %v5915_v4  ;;  %v11880_v42 = vmov 0  ;;  %11884 = vst [vmem:[#allocation123_spill] sm:$0xff] %v6841_v38  ;;  %vm6862_vm5 = vmand %vm6105_vm14, %vm11889_vm7  ;;  %v11894_v61 = vmov 0 }
 0x179   : > { %1895 = vrot.lane.b32.xlu1 %v6815_v6, %s5396_s17  ;;  %v11881_v42 = vsel %vm6829_vm6, 4294967295, %v11880_v42  ;;  %11886 = vst [vmem:[#allocation124_spill] sm:$0xff] %v6850_v46  ;;  %v11891_v14 = vsel %vm6862_vm5, 4294967295, %v11890_v14  ;;  %vm6881_vm7 = vmand %vm6801_vm12, %vm11893_vm2  ;;  %vm11903_vm2 = vcmp.ge.s32.totalorder %v5643_v17, 1 }
 0x17a   : > { %11882 = vst [vmem:[#allocation122_spill] sm:$0xff] %v11881_v42  ;;  %4777 = vmatpush.msk.msrb.mxu3 %vm6788_vm8, %v6823_v62  ;;  %4747 = vmatpush.msk.msra.mxu1 %vm11876_vm9, %v5933_v11  ;;  %v6856_v62 = vsel %vm11887_vm3, %v6524_v7, %v6526_v2  ;;  %v11895_v61 = vsel %vm6881_vm7, 4294967295, %v11894_v61  ;;  %vm11897_vm3 = vcmp.lt.s32.totalorder %v5616_v8, 94  ;;  %vm11901_vm9 = vcmp.lt.s32.totalorder %v5616_v8, 95  ;;  %vm6903_vm14 = vmand %vm6717_vm13, %vm11903_vm2 }
 0x17b   : > { %11888 = vst [vmem:[#allocation125_spill] sm:$0xff] %v6856_v62  ;;  %v1426_v52 = vpop.permute.xlu0 %1425  ;;  %vm11899_vm8 = vmmov %vm11897_vm3  ;;  %v6897_v48 = vsel %vm11901_vm9, %v5994_v34, %v6135_v21  ;;  %v11905_v29 = vsel %vm6903_vm14, 4294967295, %v11904_v29  ;;  %1497 = vmatmul.f32.vlgmr.msra.gmra.mxu1 %v6869_v9  ;;  %v1424_v21 = vpop.permute.xlu2 %1423  ;;  %vm11909_vm9 = vcmp.lt.s32.totalorder %v5616_v8, 96  ;;  %vm11913_vm2 = vcmp.lt.s32.totalorder %v5616_v8, 94 }
 0x17c   : > { %11892 = vst [vmem:[#allocation126_spill] sm:$0xff] %v11891_v14  ;;  %4778 = vmatpush.msk.msrb.mxu3 %vm6717_vm13, %v6850_v46  ;;  %4798 = vmatpush.msk.msrb.mxu1 %vm6829_vm6, %v6841_v38  ;;  %v6887_v2 = vsel %vm11897_vm3, %v1422_v20, %v1426_v52  ;;  %v6891_v7 = vsel %vm11899_vm8, %v1426_v52, %v1422_v20  ;;  %v1420_v46 = vpop.permute.xlu1 %1419  ;;  %vm11907_vm8 = vcmp.lt.s32.totalorder %v5616_v8, 33 }
 0x17d   : > { %11896 = vst [vmem:[#allocation127_spill] sm:$0xff] %v11895_v61  ;;  %4764 = vmatpush.msk.msra.mxu0 %vm6862_vm5, %v6887_v2  ;;  %4814 = vmatpush.msk.msra.mxu2 %vm6881_vm7, %v6891_v7  ;;  %v6924_v34 = vsel %vm11907_vm8, %v6550_v63, %v6522_v54  ;;  %v6930_v20 = vsel %vm11909_vm9, %v6082_v57, %v6191_v31  ;;  %vm11911_vm3 = vmmov %vm11907_vm8  ;;  %vm11917_vm9 = vcmp.ge.s32.totalorder %v5643_v17, 2  ;;  %v11923_v63 = vmov 0  ;;  %v11939_v61 = vld [vmem:[#allocation66_spill] sm:$0xff] }
 0x17e   : > { %11898 = vst [vmem:[#allocation128_spill] sm:$0xff] %v6887_v2  ;;  %4779 = vmatpush.msk.msrb.mxu3 %vm6717_vm13, %v6856_v62  ;;  %4799 = vmatpush.msk.msrb.mxu1 %vm6829_vm6, %v6897_v48  ;;  %v6936_v52 = vsel %vm11911_vm3, %v6576_v50, %v6581_v44  ;;  %v6946_v54 = vsel %vm11913_vm2, %v1420_v46, %v1424_v21  ;;  %vm11915_vm8 = vmmov %vm11913_vm2  ;;  %vm11918_vm3 = vnez %v11643_v18  ;;  %v11919_v44 = vmov 0  ;;  %v6981_v50 = vld [vmem:[%s5518_s23 + $0x8] sm:$0xff]  ;;  %v11950_v62 = vld [vmem:[#allocation17_spill] sm:$0xff] }
 0x17f   : > { %11900 = vst [vmem:[#allocation129_spill] sm:$0xff] %v6891_v7  ;;  %v6950_v31 = vsel %vm11915_vm8, %v1424_v21, %v1420_v46  ;;  %vm6956_vm6 = vmand %vm11918_vm3, %vm11917_vm9  ;;  %4765 = vmatpush.msk.msra.mxu0 %vm6862_vm5, %v6946_v54  ;;  %v11928_v46 = vld [vmem:[#allocation63_spill] sm:$0xff]  ;;  %v11929_v21 = vld [vmem:[#allocation56_spill] sm:$0xff]  ;;  %vm11949_vm5 = vcmp.lt.s32.totalorder %v5643_v17, 14 }
 0x180   : > { %11902 = vst [vmem:[#allocation130_spill] sm:$0xff] %v6897_v48  ;;  %4780 = vmatpush.msk.msrb.mxu3 %vm6903_vm14, %v6924_v34  ;;  %4800 = vmatpush.msk.msrb.mxu1 %vm6801_vm12, %v6930_v20  ;;  %v11920_v44 = vsel %vm6956_vm6, 4294967295, %v11919_v44  ;;  %vm11922_vm2 = vmmov %vm11917_vm9  ;;  %vm11926_vm9 = vcmp.lt.s32.totalorder %v5616_v8, 114  ;;  %v11941_v7 = vld [vmem:[#allocation53_spill] sm:$0xff]  ;;  %v12024_v48 = vld [vmem:[#allocation12_spill] sm:$0xff] }
 0x181   : > { %11906 = vst [vmem:[#allocation131_spill] sm:$0xff] %v11905_v29  ;;  %4815 = vmatpush.msk.msra.mxu2 %vm6881_vm7, %v6950_v31  ;;  %vm6970_vm8 = vmand %vm6717_vm13, %vm11922_vm2  ;;  %v6978_v57 = vsel %vm11926_vm9, %v6183_v36, %v6041_v60  ;;  %1897 = vrot.lane.b32.xlu1 %v6981_v50, %s5396_s17  ;;  %vm11930_vm2 = vcmp.lt.s32.totalorder %v5616_v8, 96  ;;  %vm11932_vm7 = vcmp.ge.s32.totalorder %v5643_v17, 1  ;;  %v11933_v36 = vmov 0 }
 0x182   : > { %11908 = vst [vmem:[#allocation132_spill] sm:$0xff] %v6924_v34  ;;  %v11924_v63 = vsel %vm6970_vm8, 4294967295, %v11923_v63  ;;  %4781 = vmatpush.msk.msrb.mxu3 %vm6903_vm14, %v6936_v52  ;;  %vm6998_vm9 = vmand %vm6801_vm12, %vm11932_vm7  ;;  %4784 = vmatpush.msk.msrb.mxu0 %vm6956_vm6, %v6978_v57  ;;  %vm11940_vm7 = vnez %v11939_v61  ;;  %vm11943_vm14 = vcmp.lt.s32.totalorder %v5616_v8, 114  ;;  %vm11951_vm13 = vnez %v11950_v62  ;;  %v11969_v61 = vld [vmem:[#allocation78_spill] sm:$0xff] }
 0x183   : > { %11910 = vst [vmem:[#allocation133_spill] sm:$0xff] %v6930_v20  ;;  %v11934_v36 = vsel %vm6998_vm9, 4294967295, %v11933_v36  ;;  %vm7041_vm1 = vmand %vm11951_vm13, %vm11949_vm5  ;;  %v12019_v20 = vld [vmem:[#allocation6_spill] sm:$0xff] }
 0x184   : > { %11912 = vst [vmem:[#allocation134_spill] sm:$0xff] %v6936_v52  ;;  %v11942_v52 = vld [vmem:[#allocation62_spill] sm:$0xff] }
 0x185   : > { %11914 = vst [vmem:[#allocation135_spill] sm:$0xff] %v6946_v54  ;;  %v7029_v29 = vsel %vm11943_vm14, %v11942_v52, %v11941_v7  ;;  %v11955_v7 = vld [vmem:[#allocation68_spill] sm:$0xff]  ;;  %v11956_v52 = vld [vmem:[#allocation58_spill] sm:$0xff]  ;;  %vm11958_vm14 = vcmp.lt.s32.totalorder %v5616_v8, 126 }
 0x186   : > { %11916 = vst [vmem:[#allocation136_spill] sm:$0xff] %v6950_v31  ;;  %v6992_v31 = vsel %vm11930_vm2, %v11929_v21, %v11928_v46  ;;  %vm11936_vm2 = vcmp.lt.s32.totalorder %v5616_v8, 34  ;;  %v7017_v46 = vld [vmem:[%s11060_s3 + $0x18] sm:$0xff]  ;;  %v11938_v21 = vld [vmem:[#allocation67_spill] sm:$0xff]  ;;  %4785 = vmatpush.msk.msrb.mxu0 %vm6956_vm6, %v7029_v29 }
 0x187   : > { %11921 = vst [vmem:[#allocation137_spill] sm:$0xff] %v11920_v44  ;;  %4801 = vmatpush.msk.msrb.mxu1 %vm6801_vm12, %v6992_v31  ;;  %v7012_v60 = vsel %vm11936_vm2, %v6538_v1, %v6617_v19  ;;  %4834 = vmatpush.msk.msrb.mxu2 %vm11940_vm7, %v11938_v21  ;;  %v11945_v1 = vld [vmem:[#allocation75_spill] sm:$0xff]  ;;  %v11946_v19 = vld [vmem:[#allocation61_spill] sm:$0xff]  ;;  %vm11947_vm2 = vcmp.lt.s32.totalorder %v5616_v8, 97  ;;  %v11952_v21 = vmov 0 }
 0x188   : > { %11925 = vst [vmem:[#allocation138_spill] sm:$0xff] %v11924_v63  ;;  %4782 = vmatpush.msk.msrb.mxu3 %vm6970_vm8, %v7012_v60  ;;  %v7035_v34 = vsel %vm11947_vm2, %v11946_v19, %v11945_v1  ;;  %v11953_v21 = vsel %vm7041_vm1, 4294967295, %v11952_v21  ;;  %v11957_v1 = vld [vmem:[#allocation73_spill] sm:$0xff]  ;;  %vm11960_vm5 = vmmov %vm11947_vm2  ;;  %vm11962_vm2 = vcmp.ge.s32.totalorder %v5643_v17, 2 }
 0x189   : > { %11927 = vst [vmem:[#allocation139_spill] sm:$0xff] %v6978_v57  ;;  %4802 = vmatpush.msk.msrb.mxu1 %vm6998_vm9, %v7035_v34  ;;  %4835 = vmatpush.msk.msrb.mxu2 %vm11940_vm7, %v11955_v7  ;;  %v7058_v19 = vsel %vm11958_vm14, %v11957_v1, %v11956_v52  ;;  %vm7070_vm6 = vmand %vm6801_vm12, %vm11962_vm2  ;;  %vm11966_vm7 = vcmask 130048   ;;  %v11970_v7 = vld [vmem:[#allocation88_spill] sm:$0xff]  ;;  %v11973_v1 = vld [vmem:[#allocation93_spill] sm:$0xff]  ;;  %vm12013_vm12 = vnez %v12012_v47 }
 0x18a   : > { %11931 = vst [vmem:[#allocation63_spill] sm:$0xff] %v6992_v31  ;;  %v11964_v33 = vsel %vm7070_vm6, 4294967295, %v11963_v33  ;;  %4766 = vmatmul.msk.f32.vlgmr.msra.gmra.mxu0 %vm11966_vm7, %v7017_v46  ;;  %1945 = vrot.lane.b32.xlu1 %v6815_v6, %s5397_s20  ;;  %vm11976_vm7 = vcmp.lt.s32.totalorder %v5643_v17, 14  ;;  %v12011_v31 = vld [vmem:[#allocation13_spill] sm:$0xff] }
 0x18b   : > { %11935 = vst [vmem:[#allocation56_spill] sm:$0xff] %v11934_v36  ;;  %4786 = vmatpush.msk.msrb.mxu0 %vm7041_vm1, %v7058_v19  ;;  %v12002_v36 = vld [vmem:[#allocation7_spill] sm:$0xff] }
 0x18c   : > { %11937 = vst [vmem:[#allocation140_spill] sm:$0xff] %v7012_v60  ;;  %v7064_v60 = vsel %vm11960_vm5, %v6269_v40, %v6372_v25  ;;  %v11967_v40 = vld [vmem:[#allocation80_spill] sm:$0xff]  ;;  %vm11971_vm5 = vcmp.lt.s32.totalorder %v5616_v8, 98 }
 0x18d   : > { %11944 = vst [vmem:[#allocation67_spill] sm:$0xff] %v7029_v29  ;;  %4803 = vmatpush.msk.msrb.mxu1 %vm6998_vm9, %v7064_v60  ;;  %v7086_v25 = vsel %vm11958_vm14, %v11967_v40, %v6217_v27  ;;  %v7092_v52 = vsel %vm11971_vm5, %v11970_v7, %v11969_v61  ;;  %vm11974_vm2 = vmmov %vm11971_vm5  ;;  %v11977_v27 = vmov 0  ;;  %v11981_v40 = vld [vmem:[#allocation19_spill] sm:$0xff]  ;;  %v5398_v61 = vmov 256.0   ;;  %v11983_v7 = vld [vmem:[#allocation97_spill] sm:$0xff] }
 0x18e   : > { %11948 = vst [vmem:[#allocation66_spill] sm:$0xff] %v7035_v34  ;;  %v7098_v22 = vsel %vm11974_vm2, %v11973_v1, %v6471_v53  ;;  %4787 = vmatpush.msk.msrb.mxu0 %vm7041_vm1, %v7086_v25  ;;  %vm7112_vm14 = vmand %vm11918_vm3, %vm11976_vm7  ;;  %v11980_v53 = vld [vmem:[#allocation21_spill] sm:$0xff]  ;;  %vm11982_vm5 = vnez %v11981_v40  ;;  %5302 = vrcp.f32 %v5398_v61  ;;  %v11984_v1 = vld [vmem:[#allocation91_spill] sm:$0xff]  ;;  %vm11985_vm2 = vcmp.lt.s32.totalorder %v5616_v8, 110 }
 0x18f   : > { %11954 = vst [vmem:[#allocation53_spill] sm:$0xff] %v11953_v21  ;;  %4804 = vmatpush.msk.msrb.mxu1 %vm7070_vm6, %v7092_v52  ;;  %v11978_v27 = vsel %vm7112_vm14, 4294967295, %v11977_v27  ;;  %v7126_v55 = vsel %vm11985_vm2, %v11984_v1, %v11983_v7  ;;  %vm11989_vm7 = vmmov %vm11985_vm2  ;;  %v7141_v61 = vld [vmem:[%s5518_s23 + $0x18] sm:$0xff]  ;;  %v11991_v1 = vld [vmem:[#allocation47_spill] sm:$0xff]  ;;  %vm12007_vm9 = vcmp.lt.s32.totalorder %v5643_v17, 14  ;;  %vm11431_vm1 = vcmp.lt.s32.totalorder %v5634_v15, 13 }
 0x190   : > { %11959 = vst [vmem:[#allocation62_spill] sm:$0xff] %v7058_v19  ;;  %4788 = vmatpush.msk.msrb.mxu0 %vm11982_vm5, %v11980_v53  ;;  %v12032_v40 = vld [vmem:[#allocation57_spill] sm:$0xff]  ;;  %v913_v21 = vpop.f32.mrf.mxu3 }
 0x191   : > { %11961 = vst [vmem:[#allocation75_spill] sm:$0xff] %v7064_v60  ;;  %4805 = vmatpush.msk.msrb.mxu1 %vm7070_vm6, %v7098_v22  ;;  %v11988_v60 = vld [vmem:[#allocation101_spill] sm:$0xff] }
 0x192   : > { %11965 = vst [vmem:[#allocation61_spill] sm:$0xff] %v11964_v33  ;;  %v11992_v33 = vld [vmem:[#allocation45_spill] sm:$0xff]  ;;  %1868 = vrot.lane.b32.xlu1 %v6981_v50, %s5399_s21 }
 0x193   : > { %11968 = vst [vmem:[#allocation68_spill] sm:$0xff] %v7086_v25  ;;  %4806 = vmatpush.msk.msrb.mxu1 %vm7112_vm14, %v7126_v55  ;;  %vm11993_vm2 = vnez %v11992_v33  ;;  %v12004_v33 = vld [vmem:[#allocation9_spill] sm:$0xff] }
 0x194   : > { %11972 = vst [vmem:[#allocation58_spill] sm:$0xff] %v7092_v52  ;;  %v11987_v52 = vld [vmem:[#allocation23_spill] sm:$0xff]  ;;  %v5303_v7 = vpop.eup %5302 }
 0x195   : > { %11975 = vst [vmem:[#allocation73_spill] sm:$0xff] %v7098_v22  ;;  %4789 = vmatpush.msk.msrb.mxu0 %vm11982_vm5, %v11987_v52  ;;  %v7138_v22 = vsel %vm11989_vm7, %v11988_v60, %v6486_v24  ;;  %v11994_v24 = vld [vmem:[#allocation27_spill] sm:$0xff]  ;;  %v11995_v60 = vld [vmem:[#allocation25_spill] sm:$0xff]  ;;  %vm12033_vm5 = vnez %v12032_v40 }
 0x196   : > { %11979 = vst [vmem:[#allocation80_spill] sm:$0xff] %v11978_v27  ;;  %4807 = vmatpush.msk.msrb.mxu1 %vm7112_vm14, %v7138_v22  ;;  %vm11996_vm7 = vnez %v11995_v60  ;;  %vm11998_vm14 = vcmp.ge.s32.totalorder %v5643_v17, 2  ;;  %v12001_v27 = vld [vmem:[#allocation32_spill] sm:$0xff]  ;;  %v12026_v52 = vld [vmem:[#allocation35_spill] sm:$0xff]  ;;  %v12291_v60 = vld [vmem:[#allocation126_spill] sm:$0xff] }
 0x197   : > { %11986 = vst [vmem:[#allocation78_spill] sm:$0xff] %v7126_v55  ;;  %1579 = vmatpush.msrb.mxu0 %v7141_v61  ;;  %v11997_v55 = vld [vmem:[#allocation51_spill] sm:$0xff]  ;;  %vm7163_vm6 = vmand %vm11951_vm13, %vm11998_vm14 }
 0x198   : > { %11990 = vst [vmem:[#allocation88_spill] sm:$0xff] %v7138_v22  ;;  %4808 = vmatpush.msk.msrb.mxu1 %vm11993_vm2, %v11991_v1  ;;  %v568_v1 = vmul.f32 256.0, %v5303_v7  ;;  %v12254_v22 = vld [vmem:[#allocation76_spill] sm:$0xff] }
 0x199   : > { %1580 = vmatpush.msrb.mxu0 %v6981_v50 }
 0x19a   : > { %4809 = vmatpush.msk.msrb.mxu1 %vm11993_vm2, %v11997_v55  ;;  %vm12003_vm2 = vcmp.lt.s32.totalorder %v5616_v8, 2  ;;  %1841 = vrot.lane.b32.xlu1 %v6815_v6, %s5400_s22 }
 0x19b   : > { %4790 = vmatpush.msk.msrb.mxu0 %vm11996_vm7, %v11994_v24  ;;  %v7177_v55 = vsel %vm12003_vm2, %v6627_v35, %v6583_v0  ;;  %vm12005_vm14 = vmmov %vm12003_vm2  ;;  %v12008_v35 = vmov 0  ;;  %v569_v0 = vsub.f32 1.0, %v568_v1  ;;  %v12018_v1 = vld [vmem:[#allocation15_spill] sm:$0xff] }
 0x19c   : > { %4810 = vmatpush.msk.msrb.mxu1 %vm11918_vm3, %v12002_v36  ;;  %v7189_v34 = vsel %vm12005_vm14, %v6649_v37, %v6684_v23  ;;  %vm7195_vm2 = vmand %vm5871_vm15, %vm12007_vm9  ;;  %vm12014_vm9 = vcmp.lt.s32.totalorder %v5616_v8, 14 }
 0x19d   : > { %4791 = vmatpush.msk.msrb.mxu0 %vm11996_vm7, %v12001_v27  ;;  %12006 = vst [vmem:[#allocation93_spill] sm:$0xff] %v7189_v34  ;;  %v12009_v35 = vsel %vm7195_vm2, 4294967295, %v12008_v35  ;;  %v7211_v23 = vsel %vm12014_vm9, %v6695_v32, %v6677_v39  ;;  %vm12016_vm14 = vmmov %vm12014_vm9  ;;  %v570_v32 = vmul.f32 %v5303_v7, %v569_v0  ;;  %v12020_v39 = vld [vmem:[#allocation8_spill] sm:$0xff] }
 0x19e   : > { %4811 = vmatpush.msk.msrb.mxu1 %vm11918_vm3, %v12004_v33  ;;  %12010 = vst [vmem:[#allocation97_spill] sm:$0xff] %v12009_v35  ;;  %v7217_v37 = vsel %vm12016_vm14, %v6774_v58, %v6776_v43  ;;  %v12021_v58 = vld [vmem:[#allocation34_spill] sm:$0xff]  ;;  %v12022_v43 = vld [vmem:[#allocation33_spill] sm:$0xff]  ;;  %vm572_vm14 = vweird.f32 %v5303_v7 }
 0x19f   : > { %4792 = vmatpush.msk.msrb.mxu0 %vm7163_vm6, %v7177_v55  ;;  %12015 = vst [vmem:[#allocation91_spill] sm:$0xff] %v7211_v23  ;;  %vm12023_vm9 = vnez %v12022_v43  ;;  %v571_v38 = vadd.f32 %v5303_v7, %v570_v32  ;;  %v12031_v32 = vld [vmem:[#allocation59_spill] sm:$0xff]  ;;  %v12063_v33 = vld [vmem:[#allocation2_spill] sm:$0xff] }
 0x1a0   : > { %4812 = vmatpush.msk.msrb.mxu1 %vm12013_vm12, %v12011_v31  ;;  %12017 = vst [vmem:[#allocation101_spill] sm:$0xff] %v7217_v37 }
 0x1a1   : > { %4793 = vmatpush.msk.msrb.mxu0 %vm7163_vm6, %v7189_v34  ;;  %v7257_v53 = vsel %vm572_vm14, %v5303_v7, %v571_v38  ;;  %v12037_v38 = vld [vmem:[#allocation89_spill] sm:$0xff] }
 0x1a2   : > { %4813 = vmatpush.msk.msrb.mxu1 %vm12013_vm12, %v12018_v1  ;;  %1924 = vrot.lane.b32.xlu1 %v7141_v61, %s5401_s30  ;;  %12034 = vst [vmem:[#allocation27_spill] sm:$0xff] %v7257_v53  ;;  %vm11425_vm12 = vcmp.lt.s32.totalorder %v5616_v8, 45 }
 0x1a3   : > { %4794 = vmatpush.msk.msrb.mxu0 %vm7195_vm2, %v7211_v23 }
 0x1a4   : > { %4866 = vmatpush.msk.msra.mxu1 %vm5638_vm4, %v12019_v20  ;;  %v12027_v20 = vld [vmem:[#allocation26_spill] sm:$0xff] }
 0x1a5   : > { %4795 = vmatpush.msk.msrb.mxu0 %vm7195_vm2, %v7217_v37  ;;  %vm12169_vm2 = vcmp.ge.s32.totalorder %v5634_v15, 3 }
 0x1a6   : > { %4867 = vmatpush.msk.msra.mxu1 %vm5638_vm4, %v12020_v39  ;;  %v12029_v39 = vld [vmem:[#allocation14_spill] sm:$0xff] }
 0x1a7   : > { %4796 = vmatpush.msk.msrb.mxu0 %vm12023_vm9, %v12021_v58 }
 0x1a8   : > { %4868 = vmatpush.msk.msra.mxu1 %vm5696_vm11, %v12024_v48  ;;  %v12030_v48 = vld [vmem:[#allocation31_spill] sm:$0xff] }
 0x1a9   : > { %4797 = vmatpush.msk.msrb.mxu0 %vm12023_vm9, %v12026_v52 }
 0x1aa   : > { %4869 = vmatpush.msk.msra.mxu1 %vm5696_vm11, %v12029_v39  ;;  %v566_v39 = vpop.xlane.xlu2 %565 }
 0x1ab   : > { %4850 = vmatpush.msk.msra.mxu0 %vm5831_vm0, %v12027_v20  ;;  %v12035_v20 = vld [vmem:[#allocation64_spill] sm:$0xff]  ;;  %v575_v42 = vmul.f32 %v7257_v53, %v566_v39  ;;  %v12038_v39 = vld [vmem:[#allocation83_spill] sm:$0xff] }
 0x1ac   : > { %4870 = vmatpush.msk.msra.mxu1 %vm12033_vm5, %v12031_v32  ;;  %v7276_v32 = vld [vmem:[%s5518_s23] sm:$0xff] }
 0x1ad   : > { %4851 = vmatpush.msk.msra.mxu0 %vm5831_vm0, %v12030_v48  ;;  %v12036_v48 = vld [vmem:[#allocation87_spill] sm:$0xff]  ;;  %v7273_v7 = vsub.f32 %v12037_v38, %v575_v42  ;;  %1918 = vrot.lane.b32.xlu1 %v7276_v32, %s5401_s30 }
 0x1ae   : > { %4871 = vmatpush.msk.msra.mxu1 %vm12033_vm5, %v12035_v20  ;;  %v7270_v0 = vsub.f32 %v12036_v48, %v575_v42  ;;  %v12039_v42 = vld [vmem:[#allocation94_spill] sm:$0xff]  ;;  %vm12043_vm5 = vcmask 130048  }
 0x1af   : > { %4852 = vmatpush.msk.msra.mxu0 %vm6623_vm10, %v6642_v26  ;;  %v583_v40 = vmul.f32 %v7273_v7, %v7273_v7  ;;  %vm12045_vm14 = vmmov %vm12043_vm5 }
 0x1b0   : > { %v582_v26 = vmul.f32 %v7270_v0, %v7270_v0 }
 0x1b1   : > { %4853 = vmatpush.msk.msra.mxu0 %vm6623_vm10, %v6701_v51  ;;  %vm12040_vm10 = vcmp.lt.s32.totalorder %v5616_v8, 34 }
 0x1b2   : > { %v587_v20 = vadd.f32 %v583_v40, %v582_v26  ;;  %v563_v41 = vpop.xlane.xlu2 %562  ;;  %v890_v40 = vpop.f32.mrf.mxu2 }
 0x1b3   : > { %v574_v51 = vmul.f32 %v7257_v53, %v563_v41  ;;  %v936_v41 = vpop.f32.mrf.mxu0 }
 0x1b4   : > { %588 = vadd.xlane.f32.xlu2 %v587_v20  ;;  %v959_v20 = vpop.f32.mrf.mxu1 }
 0x1b5   : > { %v7286_v48 = vsub.f32 %v12038_v39, %v574_v51  ;;  %v7289_v38 = vsub.f32 %v12039_v42, %v574_v51  ;;  %1820 = vrot.lane.b32.xlu1 %v7141_v61, %s5402_s26  ;;  %v7297_v39 = vadd.f32 %v913_v21, %v890_v40  ;;  %v7299_v51 = vadd.f32 %v959_v20, %v936_v41  ;;  %v1444_v40 = vld [vmem:[%s11060_s3] sm:$0xff] }
 0x1b6   : > { %v7311_v21 = vsel %vm12040_vm10, %v6657_v28, %v6659_v30  ;;  %1474 = vmatmul.f32.vlgmr.msra.gmra.mxu3 %v1444_v40  ;;  %vm12047_vm10 = vmmov %vm12043_vm5 }
 0x1b7   : > { %v580_v25 = vmul.f32 %v7286_v48, %v7286_v48  ;;  %v581_v26 = vmul.f32 %v7289_v38, %v7289_v38  ;;  %v965_v42 = vadd.f32 %v7299_v51, %v7297_v39  ;;  %12041 = vst [vmem:[#allocation32_spill] sm:$0xff] %v7311_v21  ;;  %4783 = vmatpush.msk.msrb.mxu3 %vm6970_vm8, %v7311_v21  ;;  %vm1719_vm8 = vcmp.lt.s32.totalorder %v12063_v33, 19 }
 0x1b9   : > { %v584_v19 = vadd.f32 %v581_v26, %v580_v25  ;;  %v12042_v25 = vld [vmem:[#allocation106_spill] sm:$0xff] }
 0x1bb   : > { %585 = vadd.xlane.f32.xlu0 %v584_v19 }
 0x1bd   : > { %1791 = vrot.lane.b32.xlu1 %v6815_v6, %s5403_s24 }
 0x1c3   : > { %966 = vadd.xlane.f32.xlu0 %v965_v42  ;;  %v1448_v42 = vld [vmem:[%s11060_s3 + $0x20] sm:$0xff] }
 0x1c4   : > { %1477 = vmatmul.f32.gmra.mxu3 %v1448_v42 }
 0x1c5   : > { %2280 = vrot.lane.b32.xlu1 %v7141_v61, %s5404_s16 }
 0x1cc   : > { %1899 = vrot.lane.b32.xlu2 %v7141_v61, %s5396_s17  ;;  %1566 = vmatmul.f32.vlgmr.msrb.gmra.mxu3 %v1444_v40 }
 0x1cd   : > { %2274 = vrot.lane.b32.xlu1 %v7276_v32, %s5404_s16 }
 0x1d2   : > { %v964_v28 = vpop.xlane.xlu1 %963 }
 0x1d3   : > { %v968_v30 = vmul.f32 %v964_v28, %v7257_v53  ;;  %v1450_v28 = vld [vmem:[%s11060_s3 + $0x30] sm:$0xff] }
 0x1d4   : > { %1870 = vrot.lane.b32.xlu2 %v7141_v61, %s5399_s21  ;;  %1523 = vmatmul.f32.gmra.mxu2 %v1450_v28 }
 0x1d5   : > { %1770 = vrot.lane.b32.xlu1 %v7141_v61, %s5405_s25  ;;  %v7342_v19 = vsub.f32 %v6615_v10, %v968_v30  ;;  %v7345_v26 = vsub.f32 %v12042_v25, %v968_v30  ;;  %v1451_v30 = vld [vmem:[%s11060_s3 + $0x38] sm:$0xff]  ;;  %v1449_v25 = vld [vmem:[%s11060_s3 + $0x28] sm:$0xff]  ;;  %1569 = vmatmul.f32.gmra.mxu3 %v1448_v42 }
 0x1d6   : > { %4767 = vmatmul.msk.f32.gmra.mxu0 %vm12043_vm5, %v1451_v30  ;;  %1500 = vmatmul.f32.gmra.mxu1 %v1449_v25  ;;  %vm11409_vm5 = vcmp.ge.s32.totalorder %v5634_v15, 3  ;;  %v12051_v42 = vld [vmem:[#allocation69_spill] sm:$0xff] }
 0x1d7   : > { %1893 = vrot.lane.b32.xlu0 %v7276_v32, %s5396_s17  ;;  %v974_v41 = vmul.f32 %v7342_v19, %v7342_v19  ;;  %v975_v10 = vmul.f32 %v7345_v26, %v7345_v26  ;;  %s5414_s17 = smov 13  }
 0x1d9   : > { %v978_v20 = vadd.f32 %v975_v10, %v974_v41  ;;  %v12046_v10 = vld [vmem:[#allocation109_spill] sm:$0xff] }
 0x1dc   : > { %1864 = vrot.lane.b32.xlu2 %v7276_v32, %s5399_s21  ;;  %4816 = vmatmul.msk.f32.vlgmr.msra.gmra.mxu2 %vm12045_vm14, %v7017_v46  ;;  %vm11419_vm14 = vcmp.lt.s32.totalorder %v5616_v8, 35 }
 0x1de   : > { %1589 = vmatmul.f32.vlgmr.msrb.gmra.mxu0 %v6869_v9  ;;  %1612 = vmatmul.f32.vlgmr.msrb.gmra.mxu1 %v12046_v10 }
 0x1df   : > { %1866 = vrot.lane.b32.xlu0 %v6815_v6, %s5399_s21  ;;  %s5415_s21 = smov 115  }
 0x1e4   : > { %1947 = vrot.lane.b32.xlu2 %v6981_v50, %s5397_s20  ;;  %4817 = vmatmul.msk.f32.gmra.mxu2 %vm12047_vm10, %v1451_v30  ;;  %vm12052_vm10 = vnez %v12051_v42 }
 0x1e5   : > { %vm7419_vm11 = vmand %vm12052_vm10, %vm11409_vm5  ;;  %vm1717_vm5 = vcmp.ge.s32.totalorder %v12063_v33, 3 }
 0x1e6   : > { %1592 = vmatmul.f32.gmra.mxu0 %v1449_v25  ;;  %1615 = vmatmul.f32.gmra.mxu1 %v1450_v28  ;;  %vm7474_vm0 = vmand %vm1717_vm5, %vm1719_vm8  ;;  %vm12069_vm8 = vcmp.ge.s32.totalorder %v5634_v15, 3 }
 0x1e7   : > { %1949 = vrot.lane.b32.xlu0 %v7141_v61, %s5397_s20  ;;  %vm8011_vm15 = vmand %vm7474_vm0, %vm12169_vm2  ;;  %vm11507_vm2 = vcmp.lt.s32.totalorder %v5616_v8, 115 }
 0x1eb   : > { %v7379_v41 = vpop.permute.xlu1 %1895 }
 0x1ec   : > { %1920 = vrot.lane.b32.xlu2 %v6815_v6, %s5401_s30  ;;  %12044 = vst [vmem:[#allocation6_spill] sm:$0xff] %v7379_v41 }
 0x1ef   : > { %1943 = vrot.lane.b32.xlu0 %v7276_v32, %s5397_s20  ;;  %s5413_s20 = smov 82  }
 0x1f4   : > { %1843 = vrot.lane.b32.xlu2 %v6981_v50, %s5400_s22 }
 0x1f7   : > { %1845 = vrot.lane.b32.xlu0 %v7141_v61, %s5400_s22 }
 0x1fc   : > { %1816 = vrot.lane.b32.xlu2 %v6815_v6, %s5402_s26 }
 0x1ff   : > { %1839 = vrot.lane.b32.xlu0 %v7276_v32, %s5400_s22  ;;  %979 = vadd.xlane.f32.xlu1 %v978_v20  ;;  %v7390_v20 = vpop.permute.xlu1 %1897  ;;  %s5417_s22 = smov 83  }
 0x200   : > { %12048 = vst [vmem:[#allocation8_spill] sm:$0xff] %v7390_v20 }
 0x204   : > { %1818 = vrot.lane.b32.xlu2 %v6981_v50, %s5402_s26 }
 0x207   : > { %1922 = vrot.lane.b32.xlu0 %v6981_v50, %s5401_s30  ;;  %v7400_v9 = vpop.permute.xlu1 %1945  ;;  %s5410_s30 = smov 81  }
 0x208   : > { %12049 = vst [vmem:[#allocation12_spill] sm:$0xff] %v7400_v9 }
 0x20c   : > { %2276 = vrot.lane.b32.xlu2 %v6815_v6, %s5404_s16 }
 0x20f   : > { %1814 = vrot.lane.b32.xlu0 %v7276_v32, %s5402_s26  ;;  %s5406_s26 = smov 79   ;;  %v7410_v40 = vpop.permute.xlu1 %1868 }
 0x210   : > { %12050 = vst [vmem:[#allocation26_spill] sm:$0xff] %v7410_v40 }
 0x214   : > { %1793 = vrot.lane.b32.xlu2 %v6981_v50, %s5403_s24 }
 0x217   : > { %1795 = vrot.lane.b32.xlu0 %v7141_v61, %s5403_s24  ;;  %v7436_v10 = vpop.permute.xlu1 %1841 }
 0x218   : > { %1764 = vrot.lane.b32.xlu1 %v7276_v32, %s5405_s25  ;;  %12056 = vst [vmem:[#allocation31_spill] sm:$0xff] %v7436_v10 }
 0x21c   : > { %1766 = vrot.lane.b32.xlu2 %v6815_v6, %s5405_s25 }
 0x21f   : > { %1789 = vrot.lane.b32.xlu0 %v7276_v32, %s5403_s24  ;;  %s5408_s24 = smov 50  }
 0x220   : > { %2253 = vrot.lane.b32.xlu1 %v6981_v50, %s5406_s26 }
 0x224   : > { %2255 = vrot.lane.b32.xlu2 %v7141_v61, %s5406_s26 }
 0x227   : > { %v7404_v46 = vpop.xlane.xlu2 %588  ;;  %2278 = vrot.lane.b32.xlu0 %v6981_v50, %s5404_s16  ;;  %s5412_s16 = smov 99  }
 0x228   : > { %2226 = vrot.lane.b32.xlu1 %v6815_v6, %s5407_s27 }
 0x22c   : > { %2249 = vrot.lane.b32.xlu2 %v7276_v32, %s5406_s26 }
 0x22e   : > { %v7440_v63 = vpop.xlane.xlu0 %585 }
 0x22f   : > { %v7423_v30 = vpop.permute.xlu2 %1899  ;;  %2251 = vrot.lane.b32.xlu0 %v6815_v6, %s5406_s26  ;;  %s5418_s26 = smov 125  }
 0x230   : > { %12055 = vst [vmem:[#allocation14_spill] sm:$0xff] %v7423_v30  ;;  %v1905_v25 = vsel %vm11419_vm14, %v7423_v30, %v7379_v41  ;;  %1743 = vrot.lane.b32.xlu1 %v6981_v50, %s5408_s24 }
 0x231   : > { %4818 = vmatpush.msk.msra.mxu3 %vm7419_vm11, %v1905_v25  ;;  %v7448_v25 = vpop.permute.xlu1 %1924 }
 0x232   : > { %12058 = vst [vmem:[#allocation57_spill] sm:$0xff] %v7448_v25 }
 0x234   : > { %1745 = vrot.lane.b32.xlu2 %v7141_v61, %s5408_s24 }
 0x236   : > { %v967_v44 = vpop.xlane.xlu0 %966 }
 0x237   : > { %v7438_v21 = vpop.permute.xlu2 %1870  ;;  %1768 = vrot.lane.b32.xlu0 %v6981_v50, %s5405_s25  ;;  %s5411_s25 = smov 3   ;;  %v969_v54 = vmul.f32 %v967_v44, %v7257_v53 }
 0x238   : > { %12057 = vst [vmem:[#allocation59_spill] sm:$0xff] %v7438_v21  ;;  %1706 = vrot.lane.b32.xlu1 %v6815_v6, %s5409_s28 }
 0x239   : > { %v7456_v57 = vpop.permute.xlu1 %1918  ;;  %v7507_v43 = vsub.f32 %v7299_v51, %v969_v54 }
 0x23a   : > { %12060 = vst [vmem:[#allocation87_spill] sm:$0xff] %v7456_v57 }
 0x23b   : > { %v977_v51 = vmul.f32 %v7507_v43, %v7507_v43 }
 0x23c   : > { %1739 = vrot.lane.b32.xlu2 %v7276_v32, %s5408_s24 }
 0x23f   : > { %v7450_v29 = vpop.permute.xlu2 %1864 }
 0x240   : > { %12059 = vst [vmem:[#allocation64_spill] sm:$0xff] %v7450_v29  ;;  %2205 = vrot.lane.b32.xlu1 %v7141_v61, %s5410_s30  ;;  %v1875_v28 = vsel %vm11425_vm12, %v7410_v40, %v7450_v29  ;;  %v12070_v29 = vld [vmem:[#allocation28_spill] sm:$0xff] }
 0x241   : > { %v7486_v52 = vpop.permute.xlu1 %1820  ;;  %vm12071_vm5 = vnez %v12070_v29 }
 0x242   : > { %12067 = vst [vmem:[#allocation106_spill] sm:$0xff] %v7486_v52 }
 0x244   : > { %2228 = vrot.lane.b32.xlu2 %v6981_v50, %s5407_s27 }
 0x247   : > { %v7460_v47 = vpop.permute.xlu2 %1947 }
 0x248   : > { %12062 = vst [vmem:[#allocation83_spill] sm:$0xff] %v7460_v47  ;;  %1995 = vrot.lane.b32.xlu1 %v6815_v6, %s5411_s25 }
 0x249   : > { %v7458_v1 = vpop.permute.xlu0 %1893 }
 0x24a   : > { %12061 = vst [vmem:[#allocation89_spill] sm:$0xff] %v7458_v1  ;;  %v1904_v31 = vsel %vm11419_vm14, %v7390_v20, %v7458_v1  ;;  %vm1883_vm14 = vmand %vm7474_vm0, %vm11431_vm1  ;;  %v7504_v20 = vsub.f32 %v7297_v39, %v969_v54 }
 0x24b   : > { %4819 = vmatpush.msk.msra.mxu3 %vm7419_vm11, %v1904_v31  ;;  %vm11430_vm11 = vcmp.lt.s32.totalorder %v5616_v8, 19 }
 0x24c   : > { %2201 = vrot.lane.b32.xlu2 %v6815_v6, %s5410_s30  ;;  %v976_v39 = vmul.f32 %v7504_v20, %v7504_v20 }
 0x24f   : > { %v7501_v1 = vpop.permute.xlu2 %1920 }
 0x250   : > { %2203 = vrot.lane.b32.xlu1 %v6981_v50, %s5410_s30  ;;  %12068 = vst [vmem:[#allocation109_spill] sm:$0xff] %v7501_v1 }
 0x251   : > { %v7484_v36 = vpop.permute.xlu0 %1866 }
 0x252   : > { %12066 = vst [vmem:[#allocation94_spill] sm:$0xff] %v7484_v36  ;;  %v1876_v31 = vsel %vm11425_vm12, %v7438_v21, %v7484_v36  ;;  %vm7514_vm12 = vmand %vm12071_vm5, %vm12069_vm8  ;;  %v981_v36 = vadd.f32 %v977_v51, %v976_v39 }
 0x253   : > { %4820 = vmatpush.msk.msra.mxu3 %vm1883_vm14, %v1876_v31  ;;  %vm7555_vm8 = vmand %vm12052_vm10, %vm11431_vm1  ;;  %vm12082_vm1 = vcmp.lt.s32.totalorder %v5634_v15, 14 }
 0x254   : > { %1708 = vrot.lane.b32.xlu2 %v6981_v50, %s5409_s28 }
 0x255   : > { %4821 = vmatpush.msk.msra.mxu3 %vm1883_vm14, %v1875_v28  ;;  %v7534_v28 = vpop.permute.xlu1 %1791  ;;  %vm11432_vm14 = vcmp.lt.s32.totalorder %v5616_v8, 29 }
 0x256   : > { %12075 = vst [vmem:[#allocation2_spill] sm:$0xff] %v7534_v28 }
 0x257   : > { %v7536_v40 = vpop.permute.xlu2 %1843 }
 0x258   : > { %2095 = vrot.lane.b32.xlu1 %v6815_v6, %s5412_s16  ;;  %12076 = vst [vmem:[#allocation141_spill] sm:$0xff] %v7536_v40 }
 0x259   : > { %v7518_v31 = vpop.permute.xlu0 %1949 }
 0x25a   : > { %12074 = vst [vmem:[#allocation69_spill] sm:$0xff] %v7518_v31  ;;  %v1955_v54 = vsel %vm11430_vm11, %v7518_v31, %v7400_v9  ;;  %v1930_v31 = vsel %vm11432_vm14, %v7448_v25, %v7501_v1  ;;  %vm7574_vm14 = vmand %vm7474_vm0, %vm12082_vm1  ;;  %vm11446_vm1 = vcmp.lt.s32.totalorder %v5616_v8, 47  ;;  %v12096_v1 = vld [vmem:[#allocation70_spill] sm:$0xff] }
 0x25b   : > { %4836 = vmatpush.msk.msrb.mxu2 %vm7514_vm12, %v1955_v54 }
 0x25c   : > { %2199 = vrot.lane.b32.xlu2 %v7276_v32, %s5410_s30  ;;  %s12174_s30 = smov 16  }
 0x25d   : > { %v7565_v39 = vpop.permute.xlu1 %2280 }
 0x25e   : > { %12080 = vst [vmem:[#allocation143_spill] sm:$0xff] %v7565_v39 }
 0x25f   : > { %v7568_v51 = vpop.permute.xlu2 %1816 }
 0x260   : > { %2180 = vrot.lane.b32.xlu1 %v7141_v61, %s5413_s20  ;;  %12081 = vst [vmem:[#allocation144_spill] sm:$0xff] %v7568_v51 }
 0x261   : > { %982 = vadd.xlane.f32.xlu0 %v981_v36  ;;  %v7539_v9 = vpop.permute.xlu0 %1943 }
 0x262   : > { %12077 = vst [vmem:[#allocation142_spill] sm:$0xff] %v7539_v9  ;;  %v1954_v54 = vsel %vm11430_vm11, %v7460_v47, %v7539_v9  ;;  %vm11449_vm11 = vcmp.lt.s32.totalorder %v5616_v8, 46 }
 0x263   : > { %4837 = vmatpush.msk.msrb.mxu2 %vm7514_vm12, %v1954_v54  ;;  %vm12089_vm12 = vcmp.lt.s32.totalorder %v5634_v15, 15 }
 0x264   : > { %1997 = vrot.lane.b32.xlu2 %v6981_v50, %s5411_s25  ;;  %vm7611_vm3 = vmand %vm7474_vm0, %vm12089_vm12  ;;  %vm12094_vm12 = vcmp.lt.s32.totalorder %v5616_v8, 29 }
 0x265   : > { %4838 = vmatpush.msk.msrb.mxu2 %vm7555_vm8, %v1930_v31  ;;  %v7591_v31 = vpop.permute.xlu1 %2274 }
 0x266   : > { %12086 = vst [vmem:[#allocation146_spill] sm:$0xff] %v7591_v31 }
 0x267   : > { %v7595_v9 = vpop.permute.xlu2 %1818 }
 0x268   : > { %1974 = vrot.lane.b32.xlu1 %v7141_v61, %s5414_s17  ;;  %12088 = vst [vmem:[#allocation148_spill] sm:$0xff] %v7595_v9 }
 0x269   : > { %v7578_v25 = vpop.permute.xlu0 %1845 }
 0x26a   : > { %12085 = vst [vmem:[#allocation145_spill] sm:$0xff] %v7578_v25  ;;  %v1851_v44 = vsel %vm11449_vm11, %v7578_v25, %v7436_v10  ;;  %v12102_v25 = vld [vmem:[#allocation84_spill] sm:$0xff] }
 0x26b   : > { %4822 = vmatpush.msk.msra.mxu3 %vm7574_vm14, %v1851_v44  ;;  %v1826_v44 = vsel %vm11446_vm1, %v7486_v52, %v7568_v51 }
 0x26c   : > { %2176 = vrot.lane.b32.xlu2 %v6815_v6, %s5413_s20 }
 0x26d   : > { %v7625_v52 = vpop.permute.xlu1 %1770 }
 0x26e   : > { %12093 = vst [vmem:[#allocation150_spill] sm:$0xff] %v7625_v52 }
 0x270   : > { %2049 = vrot.lane.b32.xlu1 %v7141_v61, %s5415_s21 }
 0x271   : > { %v7593_v54 = vpop.permute.xlu0 %1839 }
 0x272   : > { %12087 = vst [vmem:[#allocation147_spill] sm:$0xff] %v7593_v54  ;;  %v1850_v47 = vsel %vm11449_vm11, %v7536_v40, %v7593_v54  ;;  %v12099_v40 = vld [vmem:[#allocation79_spill] sm:$0xff] }
 0x273   : > { %4823 = vmatpush.msk.msra.mxu3 %vm7574_vm14, %v1850_v47  ;;  %v7637_v47 = vpop.permute.xlu2 %2276 }
 0x274   : > { %1970 = vrot.lane.b32.xlu2 %v6815_v6, %s5414_s17  ;;  %12095 = vst [vmem:[#allocation151_spill] sm:$0xff] %v7637_v47 }
 0x275   : > { %1741 = vrot.lane.b32.xlu0 %v6815_v6, %s5408_s24  ;;  %4824 = vmatpush.msk.msra.mxu3 %vm7611_vm3, %v1826_v44  ;;  %v12097_v44 = vld [vmem:[#allocation71_spill] sm:$0xff]  ;;  %s12151_s24 = smov 1  }
 0x276   : > { %vm12098_vm14 = vnez %v12097_v44  ;;  %v12107_v44 = vld [vmem:[#allocation100_spill] sm:$0xff] }
 0x278   : > { %2097 = vrot.lane.b32.xlu1 %v6981_v50, %s5412_s16 }
 0x279   : > { %v7623_v51 = vpop.permute.xlu0 %1922 }
 0x27a   : > { %12092 = vst [vmem:[#allocation149_spill] sm:$0xff] %v7623_v51  ;;  %v1929_v54 = vsel %vm12094_vm12, %v7623_v51, %v7456_v57  ;;  %v12101_v51 = vld [vmem:[#allocation85_spill] sm:$0xff]  ;;  %vm12103_vm12 = vnez %v12102_v25  ;;  %v12109_v25 = vld [vmem:[#allocation104_spill] sm:$0xff] }
 0x27b   : > { %4839 = vmatpush.msk.msrb.mxu2 %vm7555_vm8, %v1929_v54  ;;  %v12104_v54 = vld [vmem:[#allocation92_spill] sm:$0xff]  ;;  %vm11459_vm8 = vcmp.lt.s32.totalorder %v5616_v8, 48 }
 0x27c   : > { %2045 = vrot.lane.b32.xlu2 %v6815_v6, %s5415_s21 }
 0x27d   : > { %2230 = vrot.lane.b32.xlu0 %v7141_v61, %s5407_s27  ;;  %4840 = vmatpush.msk.msrb.mxu2 %vm12098_vm14, %v12096_v1  ;;  %v12106_v1 = vld [vmem:[#allocation98_spill] sm:$0xff] }
 0x27f   : > { %4841 = vmatpush.msk.msrb.mxu2 %vm12098_vm14, %v12099_v40  ;;  %v7662_v40 = vpop.xlane.xlu1 %979  ;;  %vm2158_vm14 = vcmp.lt.s32.totalorder %v12063_v33, 13 }
 0x280   : > { %2178 = vrot.lane.b32.xlu1 %v6981_v50, %s5413_s20  ;;  %v984_v13 = vmul.f32 %v7662_v40, %v7257_v53  ;;  %v591_v40 = vmul.f32 %v7404_v46, %v7257_v53 }
 0x281   : > { %v7647_v57 = vpop.permute.xlu0 %1814  ;;  %4842 = vmatpush.msk.msrb.mxu2 %vm12103_vm12, %v12101_v51  ;;  %v7669_v51 = vpop.permute.xlu2 %1793 }
 0x282   : > { %12100 = vst [vmem:[#allocation70_spill] sm:$0xff] %v7647_v57  ;;  %v1825_v36 = vsel %vm11446_vm1, %v7595_v9, %v7647_v57  ;;  %vm11460_vm1 = vcmp.lt.s32.totalorder %v5616_v8, 78  ;;  %v12124_v57 = vld [vmem:[#allocation110_spill] sm:$0xff]  ;;  %v1498_v9 = vpop.f32.mrf.mxu1 }
 0x283   : > { %4825 = vmatpush.msk.msra.mxu3 %vm7611_vm3, %v1825_v36  ;;  %4843 = vmatpush.msk.msrb.mxu2 %vm12103_vm12, %v12104_v54  ;;  %12105 = vst [vmem:[#allocation71_spill] sm:$0xff] %v7669_v51  ;;  %vm2156_vm3 = vcmp.ge.s32.totalorder %v12063_v33, 4294967293  ;;  %v12110_v36 = vld [vmem:[#allocation102_spill] sm:$0xff]  ;;  %v12112_v33 = vmov 0 }
 0x284   : > { %2093 = vrot.lane.b32.xlu2 %v7276_v32, %s5412_s16  ;;  %vm12111_vm12 = vnez %v12110_v36 }
 0x285   : > { %2224 = vrot.lane.b32.xlu0 %v7276_v32, %s5407_s27  ;;  %4844 = vmatpush.msk.msrb.mxu2 %vm12052_vm10, %v12106_v1  ;;  %v12116_v1 = vld [vmem:[#allocation105_spill] sm:$0xff]  ;;  %s5419_s27 = smov 93  }
 0x287   : > { %4845 = vmatpush.msk.msrb.mxu2 %vm12052_vm10, %v12107_v44  ;;  %vm7695_vm10 = vmand %vm2156_vm3, %vm2158_vm14  ;;  %v1544_v44 = vpop.f32.mrf.mxu0  ;;  %vm12120_vm3 = vcmp.lt.s32.totalorder %v5634_v15, 14 }
 0x288   : > { %1968 = vrot.lane.b32.xlu1 %v7276_v32, %s5414_s17  ;;  %v12113_v33 = vsel %vm7695_vm10, 4294967295, %v12112_v33  ;;  %vm7714_vm14 = vmand %vm7695_vm10, %vm12120_vm3 }
 0x289   : > { %v7680_v10 = vpop.permute.xlu0 %1795  ;;  %4846 = vmatpush.msk.msrb.mxu2 %vm12111_vm12, %v12109_v25  ;;  %12114 = vst [vmem:[#allocation85_spill] sm:$0xff] %v12113_v33  ;;  %v1475_v25 = vpop.f32.mrf.mxu3  ;;  %v12250_v33 = vld [vmem:[#allocation50_spill] sm:$0xff] }
 0x28a   : > { %12108 = vst [vmem:[#allocation79_spill] sm:$0xff] %v7680_v10  ;;  %v1801_v54 = vsel %vm11459_vm8, %v7680_v10, %v7534_v28  ;;  %v7699_v42 = vpop.permute.xlu1 %1764  ;;  %v12117_v28 = vld [vmem:[#allocation108_spill] sm:$0xff]  ;;  %v12118_v10 = vld [vmem:[#allocation107_spill] sm:$0xff]  ;;  %v7718_v36 = vpop.permute.xlu2 %1766  ;;  %v1499_v41 = vadd.f32 %v1498_v9, %v1475_v25  ;;  %v986_v9 = vadd.f32 1e-05, %v984_v13 }
 0x28b   : > { %4826 = vmatpush.msk.msra.mxu3 %vm7474_vm0, %v1801_v54  ;;  %12115 = vst [vmem:[#allocation84_spill] sm:$0xff] %v7699_v42  ;;  %4847 = vmatpush.msk.msrb.mxu2 %vm12111_vm12, %v12116_v1  ;;  %vm12119_vm11 = vnez %v12118_v10  ;;  %vm11489_vm12 = vcmp.lt.s32.totalorder %v5616_v8, 49  ;;  %v2284_v1 = vsel %vm11460_vm1, %v7637_v47, %v7565_v39  ;;  %v1521_v39 = vpop.f32.mrf.mxu2  ;;  %v593_v13 = vadd.f32 1e-05, %v591_v40 }
 0x28c   : > { %2174 = vrot.lane.b32.xlu2 %v7276_v32, %s5413_s20  ;;  %12123 = vst [vmem:[#allocation92_spill] sm:$0xff] %v7718_v36  ;;  %v1776_v10 = vsel %vm11489_vm12, %v7625_v52, %v7718_v36  ;;  %v1522_v35 = vadd.f32 %v1521_v39, %v1499_v41  ;;  %5304 = vrsqrt.f32 %v986_v9  ;;  %s12213_s20 = smov 17  }
 0x28d   : > { %1710 = vrot.lane.b32.xlu0 %v7141_v61, %s5409_s28  ;;  %4848 = vmatpush.msk.msrb.mxu2 %vm12119_vm11, %v12117_v28  ;;  %5306 = vrsqrt.f32 %v593_v13 }
 0x28e   : > { %v7817_v41 = vadd.f32 %v1544_v44, %v1522_v35 }
 0x28f   : > { %4849 = vmatpush.msk.msrb.mxu2 %vm12119_vm11, %v12124_v57  ;;  %vm12126_vm11 = vcmp.ge.s32.totalorder %v5634_v15, 1  ;;  %v7758_v47 = vpop.f32.mrf.mxu0 }
 0x290   : > { %2043 = vrot.lane.b32.xlu1 %v7276_v32, %s5415_s21  ;;  %vm7746_vm3 = vmand %vm7474_vm0, %vm12126_vm11  ;;  %vm11488_vm11 = vcmp.lt.s32.totalorder %v5616_v8, 79  ;;  %12139 = vst [vmem:[#allocation152_spill] sm:$0xff] %v7817_v41 }
 0x291   : > { %4896 = vmatpush.msk.msra.mxu2 %vm7714_vm14, %v2284_v1  ;;  %v7730_v28 = vpop.permute.xlu0 %1789  ;;  %v7760_v36 = vpop.f32.mrf.mxu3 }
 0x292   : > { %12125 = vst [vmem:[#allocation98_spill] sm:$0xff] %v7730_v28  ;;  %v1800_v21 = vsel %vm11459_vm8, %v7669_v51, %v7730_v28  ;;  %v7752_v1 = vpop.permute.xlu1 %2253  ;;  %v7772_v28 = vpop.permute.xlu2 %2255  ;;  %vm12133_vm8 = vcmp.lt.s32.totalorder %v5634_v15, 15 }
 0x293   : > { %4827 = vmatpush.msk.msra.mxu3 %vm7474_vm0, %v1800_v21  ;;  %12129 = vst [vmem:[#allocation100_spill] sm:$0xff] %v7752_v1  ;;  %v7779_v58 = vpop.f32.mrf.mxu2 }
 0x294   : > { %12131 = vst [vmem:[#allocation102_spill] sm:$0xff] %v7772_v28 }
 0x295   : > { %1704 = vrot.lane.b32.xlu0 %v7276_v32, %s5409_s28  ;;  %4828 = vmatpush.msk.msra.mxu3 %vm7746_vm3, %v1776_v10  ;;  %v1501_v10 = vpop.f32.mrf.mxu1  ;;  %s12159_s28 = smov 15  }
 0x297   : > { %v1590_v54 = vpop.f32.mrf.mxu0 }
 0x298   : > { %2047 = vrot.lane.b32.xlu1 %v6981_v50, %s5415_s21 }
 0x299   : > { %v7762_v52 = vpop.permute.xlu0 %2278 }
 0x29a   : > { %12130 = vst [vmem:[#allocation104_spill] sm:$0xff] %v7762_v52  ;;  %v2283_v21 = vsel %vm11460_vm1, %v7591_v31, %v7762_v52  ;;  %v7774_v51 = vpop.permute.xlu1 %2226  ;;  %vm7785_vm1 = vmand %vm7695_vm10, %vm12133_vm8  ;;  %v1567_v31 = vpop.f32.mrf.mxu3 }
 0x29b   : > { %4897 = vmatpush.msk.msra.mxu2 %vm7714_vm14, %v2283_v21  ;;  %12132 = vst [vmem:[#allocation105_spill] sm:$0xff] %v7774_v51  ;;  %v7799_v2 = vpop.permute.xlu2 %2249  ;;  %v1591_v37 = vadd.f32 %v1590_v54, %v1567_v31 }
 0x29c   : > { %12137 = vst [vmem:[#allocation107_spill] sm:$0xff] %v7799_v2  ;;  %v2258_v57 = vsel %vm11488_vm11, %v7799_v2, %v7752_v1 }
 0x29d   : > { %1999 = vrot.lane.b32.xlu0 %v7141_v61, %s5411_s25  ;;  %v1613_v45 = vpop.f32.mrf.mxu1 }
 0x29e   : > { %v1614_v23 = vadd.f32 %v1613_v45, %v1591_v37 }
 0x2a0   : > { %2070 = vrot.lane.b32.xlu1 %v6815_v6, %s5416_s29 }
 0x2a1   : > { %v7789_v21 = vpop.permute.xlu0 %2251 }
 0x2a2   : > { %12136 = vst [vmem:[#allocation108_spill] sm:$0xff] %v7789_v21  ;;  %v2259_v14 = vsel %vm11488_vm11, %v7789_v21, %v7772_v28  ;;  %v7801_v30 = vpop.permute.xlu1 %1743  ;;  %v1636_v28 = vpop.f32.mrf.mxu2 }
 0x2a3   : > { %4898 = vmatpush.msk.msra.mxu2 %vm7785_vm1, %v2259_v14  ;;  %v7821_v37 = vadd.f32 %v1636_v28, %v1614_v23  ;;  %v7825_v39 = vpop.permute.xlu2 %1745  ;;  %v5305_v23 = vpop.eup %5304 }
 0x2a4   : > { %v989_v25 = vmul.f32 %v5305_v23, %v986_v9  ;;  %v5307_v54 = vpop.eup %5306  ;;  %vm995_vm8 = vweird.f32 %v5305_v23 }
 0x2a5   : > { %1993 = vrot.lane.b32.xlu0 %v7276_v32, %s5411_s25  ;;  %12140 = vst [vmem:[#allocation153_spill] sm:$0xff] %v7821_v37  ;;  %v1642_v31 = vadd.f32 %v7821_v37, %v7817_v41  ;;  %4899 = vmatpush.msk.msra.mxu2 %vm7785_vm1, %v2258_v57  ;;  %v1593_v37 = vpop.f32.mrf.mxu0  ;;  %v1502_v41 = vadd.f32 %v1501_v10, %v7760_v36  ;;  %v1616_v52 = vpop.f32.mrf.mxu1  ;;  %vm994_vm1 = vweird.f32 %v986_v9  ;;  %s5420_s25 = smov 77  }
 0x2a6   : > { %v990_v46 = vmul.f32 %v5305_v23, %v989_v25  ;;  %vm996_vm14 = vmor %vm994_vm1, %vm995_vm8  ;;  %v590_v10 = vmul.f32 %v7440_v63, %v7257_v53  ;;  %vm610_vm8 = vweird.f32 %v593_v13 }
 0x2a7   : > { %v1525_v36 = vadd.f32 %v7779_v58, %v1502_v41 }
 0x2a8   : > { %2145 = vrot.lane.b32.xlu1 %v6815_v6, %s5417_s22  ;;  %v991_v40 = vmul.f32 0.5, %v990_v46  ;;  %v7874_v62 = vadd.f32 1e-05, %v590_v10 }
 0x2a9   : > { %v7807_v56 = vpop.permute.xlu0 %1768  ;;  %v7870_v9 = vadd.f32 %v7758_v47, %v1525_v36 }
 0x2aa   : > { %12138 = vst [vmem:[#allocation110_spill] sm:$0xff] %v7807_v56  ;;  %v1775_v14 = vsel %vm11489_vm12, %v7807_v56, %v7699_v42  ;;  %v7819_v45 = vpop.permute.xlu1 %1706  ;;  %v992_v25 = vsub.f32 1.5, %v991_v40  ;;  %v1570_v56 = vpop.f32.mrf.mxu3  ;;  %5308 = vrsqrt.f32 %v7874_v62 }
 0x2ab   : > { %4829 = vmatpush.msk.msra.mxu3 %vm7746_vm3, %v1775_v14  ;;  %v7835_v44 = vpop.permute.xlu2 %1739  ;;  %v1594_v1 = vadd.f32 %v1593_v37, %v1570_v56  ;;  %12147 = vst [vmem:[#allocation160_spill] sm:$0xff] %v7870_v9  ;;  %vm611_vm3 = vweird.f32 %v5307_v54 }
 0x2ac   : > { %12142 = vst [vmem:[#allocation155_spill] sm:$0xff] %v7835_v44  ;;  %v993_v34 = vmul.f32 %v5305_v23, %v992_v25  ;;  %vm612_vm1 = vmor %vm610_vm8, %vm611_vm3  ;;  %vm11492_vm8 = vcmp.lt.s32.totalorder %v5616_v8, 50 }
 0x2ad   : > { %2099 = vrot.lane.b32.xlu0 %v7141_v61, %s5412_s16  ;;  %v1617_v56 = vadd.f32 %v1616_v52, %v1594_v1  ;;  %s12209_s16 = smov 112  }
 0x2ae   : > { %v7865_v37 = vsel %vm996_vm14, %v5305_v23, %v993_v34 }
 0x2af   : > { %v1008_v40 = vmul.f32 %v7865_v37, %v7342_v19 }
 0x2b0   : > { %2024 = vrot.lane.b32.xlu1 %v7141_v61, %s5418_s26  ;;  %v5309_v52 = vpop.eup %5308 }
 0x2b1   : > { %v1016_v63 = vmul.f32 0.2, %v1008_v40  ;;  %vm1012_vm14 = vcmp.ge.f32.partialorder %v1008_v40, 0.0 }
 0x2b2   : > { %v7833_v35 = vpop.permute.xlu1 %2205 }
 0x2b3   : > { %12141 = vst [vmem:[#allocation154_spill] sm:$0xff] %v7833_v35  ;;  %v7847_v14 = vpop.permute.xlu2 %2228  ;;  %v7889_v23 = vsel %vm1012_vm14, %v1008_v40, %v1016_v63  ;;  %vm12154_vm14 = vcmp.ge.s32.totalorder %v5634_v15, 2 }
 0x2b4   : > { %12143 = vst [vmem:[#allocation156_spill] sm:$0xff] %v7847_v14  ;;  %vm1752_vm11 = vmand %vm7474_vm0, %vm12154_vm14  ;;  %vm11495_vm14 = vcmp.lt.s32.totalorder %v5616_v8, 80 }
 0x2b5   : > { %1643 = vadd.xlane.f32.xlu2 %v1642_v31  ;;  %v605_v31 = vmul.f32 %v5307_v54, %v593_v13  ;;  %12150 = vst [vmem:[#allocation163_spill] sm:$0xff] %v7889_v23 }
 0x2b7   : > { %v606_v42 = vmul.f32 %v5307_v54, %v605_v31  ;;  %v1639_v31 = vpop.f32.mrf.mxu2 }
 0x2b8   : > { %2072 = vrot.lane.b32.xlu1 %v6981_v50, %s5416_s29  ;;  %v7872_v25 = vadd.f32 %v1639_v31, %v1617_v56 }
 0x2b9   : > { %v607_v2 = vmul.f32 0.5, %v606_v42 }
 0x2ba   : > { %v7839_v28 = vpop.permute.xlu1 %1995  ;;  %12148 = vst [vmem:[#allocation161_spill] sm:$0xff] %v7872_v25  ;;  %v1645_v58 = vadd.f32 %v7872_v25, %v7870_v9 }
 0x2bb   : > { %v7856_v46 = vpop.permute.xlu2 %2201  ;;  %v608_v42 = vsub.f32 1.5, %v607_v2 }
 0x2bc   : > { %12145 = vst [vmem:[#allocation158_spill] sm:$0xff] %v7856_v46 }
 0x2c0   : > { %2147 = vrot.lane.b32.xlu1 %v6981_v50, %s5417_s22 }
 0x2c2   : > { %v7851_v21 = vpop.permute.xlu1 %2203 }
 0x2c3   : > { %12144 = vst [vmem:[#allocation157_spill] sm:$0xff] %v7851_v21  ;;  %v7885_v47 = vpop.permute.xlu2 %1708 }
 0x2c8   : > { %2120 = vrot.lane.b32.xlu1 %v6815_v6, %s5419_s27 }
 0x2ca   : > { %v7858_v57 = vpop.permute.xlu1 %2095 }
 0x2cb   : > { %12146 = vst [vmem:[#allocation159_spill] sm:$0xff] %v7858_v57  ;;  %v7898_v10 = vpop.permute.xlu2 %2199 }
 0x2cc   : > { %12152 = vst [vmem:[#allocation164_spill] sm:$0xff] %v7898_v10 }
 0x2cd   : > { %2020 = vrot.lane.b32.xlu2 %v6815_v6, %s5418_s26  ;;  %v609_v6 = vmul.f32 %v5307_v54, %v608_v42  ;;  %v595_v42 = vmul.f32 %v5309_v52, %v7874_v62 }
 0x2cf   : > { %v613_v1 = vsel %vm612_vm1, %v5307_v54, %v609_v6  ;;  %v596_v6 = vmul.f32 %v5309_v52, %v595_v42 }
 0x2d0   : > { %2122 = vrot.lane.b32.xlu1 %v6981_v50, %s5419_s27  ;;  %v617_v13 = vmul.f32 %v613_v1, %v7273_v7 }
 0x2d2   : > { %v7878_v2 = vpop.permute.xlu1 %2180  ;;  %v625_v54 = vmul.f32 0.2, %v617_v13  ;;  %vm621_vm3 = vcmp.ge.f32.partialorder %v617_v13, 0.0 }
 0x2d3   : > { %12149 = vst [vmem:[#allocation162_spill] sm:$0xff] %v7878_v2 }
 0x2d4   : > { %v983_v34 = vpop.xlane.xlu0 %982  ;;  %v7900_v31 = vsel %vm621_vm3, %v617_v13, %v625_v54 }
 0x2d5   : > { %2022 = vrot.lane.b32.xlu2 %v6981_v50, %s5418_s26  ;;  %v985_v19 = vmul.f32 %v983_v34, %v7257_v53  ;;  %12153 = vst [vmem:[#allocation165_spill] sm:$0xff] %v7900_v31 }
 0x2d7   : > { %v987_v41 = vadd.f32 1e-05, %v985_v19  ;;  %1646 = vadd.xlane.f32.xlu0 %v1645_v58  ;;  %v597_v19 = vmul.f32 0.5, %v596_v6 }
 0x2d8   : > { %2828 = vrot.lane.b32.xlu1 %v7889_v23, %s12151_s24 }
 0x2d9   : > { %5310 = vrsqrt.f32 %v987_v41  ;;  %vm1004_vm3 = vweird.f32 %v987_v41 }
 0x2da   : > { %v7893_v36 = vpop.permute.xlu1 %1974 }
 0x2dd   : > { %2118 = vrot.lane.b32.xlu2 %v7276_v32, %s5419_s27 }
 0x2df   : > { %v5311_v56 = vpop.eup %5310 }
 0x2e0   : > { %v999_v7 = vmul.f32 %v5311_v56, %v987_v41  ;;  %2834 = vrot.lane.b32.xlu1 %v7900_v31, %s12151_s24  ;;  %vm1005_vm1 = vweird.f32 %v5311_v56  ;;  %v598_v41 = vsub.f32 1.5, %v597_v19 }
 0x2e1   : > { %vm1006_vm12 = vmor %vm1004_vm3, %vm1005_vm1  ;;  %vm11496_vm3 = vcmp.lt.s32.totalorder %v5616_v8, 81 }
 0x2e2   : > { %v1000_v40 = vmul.f32 %v5311_v56, %v999_v7  ;;  %v7904_v63 = vpop.permute.xlu1 %2049  ;;  %v1750_v7 = vsel %vm11492_vm8, %v7801_v30, %v7835_v44  ;;  %v616_v44 = vmul.f32 %v613_v1, %v7270_v0  ;;  %v599_v19 = vmul.f32 %v5309_v52, %v598_v41 }
 0x2e4   : > { %v1001_v34 = vmul.f32 0.5, %v1000_v40  ;;  %v7921_v40 = vpop.permute.xlu2 %1997 }
 0x2e6   : > { %v1002_v58 = vsub.f32 1.5, %v1001_v34 }
 0x2e7   : > { %v7911_v13 = vpop.permute.xlu0 %1741 }
 0x2e8   : > { %v1003_v54 = vmul.f32 %v5311_v56, %v1002_v58  ;;  %v1751_v42 = vsel %vm11492_vm8, %v7825_v39, %v7911_v13 }
 0x2e9   : > { %4830 = vmatpush.msk.msra.mxu3 %vm1752_vm11, %v1751_v42 }
 0x2ea   : > { %v1007_v34 = vsel %vm1006_vm12, %v5311_v56, %v1003_v54  ;;  %v7927_v25 = vpop.permute.xlu1 %2097  ;;  %vm601_vm12 = vweird.f32 %v5309_v52 }
 0x2eb   : > { %v1010_v6 = vmul.f32 %v1007_v34, %v7504_v20  ;;  %v1011_v58 = vmul.f32 %v1007_v34, %v7507_v43  ;;  %1972 = vrot.lane.b32.xlu0 %v6981_v50, %s5414_s17  ;;  %4831 = vmatpush.msk.msra.mxu3 %vm1752_vm11, %v1750_v7  ;;  %12155 = vst [vmem:[#allocation166_spill] sm:$0xff] %v7927_v25  ;;  %s12217_s17 = smov 113  }
 0x2ec   : > { %v1009_v20 = vmul.f32 %v7865_v37, %v7345_v26  ;;  %v624_v26 = vmul.f32 0.2, %v616_v44 }
 0x2ed   : > { %vm1014_vm9 = vcmp.ge.f32.partialorder %v1010_v6, 0.0  ;;  %vm1015_vm8 = vcmp.ge.f32.partialorder %v1011_v58, 0.0  ;;  %v1018_v9 = vmul.f32 0.2, %v1010_v6  ;;  %v1019_v42 = vmul.f32 0.2, %v1011_v58 }
 0x2ee   : > { %v1017_v37 = vmul.f32 0.2, %v1009_v20  ;;  %vm1013_vm1 = vcmp.ge.f32.partialorder %v1009_v20, 0.0 }
 0x2ef   : > { %v7933_v56 = vsel %vm1014_vm9, %v1010_v6, %v1018_v9  ;;  %v7935_v43 = vsel %vm1015_vm8, %v1011_v58, %v1019_v42  ;;  %v7937_v50 = vpop.permute.xlu0 %2230  ;;  %vm600_vm9 = vweird.f32 %v7874_v62  ;;  %v7952_v9 = vpop.permute.xlu2 %2176  ;;  %vm620_vm8 = vcmp.ge.f32.partialorder %v616_v44, 0.0 }
 0x2f0   : > { %12156 = vst [vmem:[#allocation167_spill] sm:$0xff] %v7933_v56  ;;  %2838 = vrot.lane.b32.xlu2 %v7935_v43, %s12151_s24  ;;  %2798 = vrot.lane.b32.xlu1 %v7933_v56, %s12159_s28  ;;  %v2234_v0 = vsel %vm11495_vm14, %v7774_v51, %v7937_v50  ;;  %vm602_vm11 = vmor %vm600_vm9, %vm601_vm12  ;;  %v7957_v7 = vsel %vm620_vm8, %v616_v44, %v624_v26  ;;  %vm12165_vm12 = vcmp.ge.s32.totalorder %v5634_v15, 1 }
 0x2f1   : > { %12157 = vst [vmem:[#allocation168_spill] sm:$0xff] %v7935_v43  ;;  %4900 = vmatpush.msk.msra.mxu2 %vm7695_vm10, %v2234_v0  ;;  %v603_v1 = vsel %vm602_vm11, %v5309_v52, %v599_v19  ;;  %v7961_v6 = vsel %vm1013_vm1, %v1009_v20, %v1017_v37  ;;  %vm2212_vm9 = vmand %vm7695_vm10, %vm12165_vm12  ;;  %vm11510_vm1 = vcmp.lt.s32.totalorder %v5616_v8, 82  ;;  %vm12166_vm12 = vcmp.ge.s32.totalorder %v5634_v15, 2 }
 0x2f2   : > { %12158 = vst [vmem:[#allocation169_spill] sm:$0xff] %v7937_v50  ;;  %v7954_v54 = vpop.permute.xlu1 %2178  ;;  %v614_v34 = vmul.f32 %v603_v1, %v7286_v48  ;;  %v615_v62 = vmul.f32 %v603_v1, %v7289_v38  ;;  %v2209_v48 = vsel %vm11496_vm3, %v7856_v46, %v7833_v35  ;;  %v2208_v38 = vsel %vm11496_vm3, %v7898_v10, %v7851_v21  ;;  %v12192_v21 = vld [vmem:[#allocation74_spill] sm:$0xff] }
 0x2f3   : > { %2074 = vrot.lane.b32.xlu0 %v7141_v61, %s5416_s29  ;;  %12160 = vst [vmem:[#allocation170_spill] sm:$0xff] %v7952_v9  ;;  %vm11501_vm3 = vcmp.lt.s32.totalorder %v5616_v8, 51  ;;  %v12195_v35 = vld [vmem:[#allocation82_spill] sm:$0xff] }
 0x2f4   : > { %12161 = vst [vmem:[#allocation171_spill] sm:$0xff] %v7954_v54  ;;  %v622_v52 = vmul.f32 0.2, %v614_v34  ;;  %v623_v41 = vmul.f32 0.2, %v615_v62  ;;  %vm618_vm11 = vcmp.ge.f32.partialorder %v614_v34, 0.0 }
 0x2f5   : > { %12162 = vst [vmem:[#allocation172_spill] sm:$0xff] %v7957_v7  ;;  %vm619_vm8 = vcmp.ge.f32.partialorder %v615_v62, 0.0 }
 0x2f6   : > { %12163 = vst [vmem:[#allocation173_spill] sm:$0xff] %v7961_v6  ;;  %v8015_v26 = vsel %vm618_vm11, %v614_v34, %v622_v52  ;;  %v8017_v37 = vsel %vm619_vm8, %v615_v62, %v623_v41  ;;  %v12176_v52 = vld [vmem:[#allocation52_spill] sm:$0xff]  ;;  %vm11514_vm11 = vcmp.lt.s32.totalorder %v5616_v8, 3  ;;  %vm12183_vm8 = vnez %v11740_v5  ;;  %v8506_v5 = vld [vmem:[%s11061_s4 + $0x40] sm:$0xff] }
 0x2f7   : > { %v7963_v58 = vpop.permute.xlu0 %2224  ;;  %v8001_v19 = vpop.permute.xlu2 %1970  ;;  %12172 = vst [vmem:[#allocation175_spill] sm:$0xff] %v8015_v26  ;;  %vm12177_vm0 = vnez %v12176_v52 }
 0x2f8   : > { %12164 = vst [vmem:[#allocation174_spill] sm:$0xff] %v7963_v58  ;;  %2804 = vrot.lane.b32.xlu1 %v7961_v6, %s12159_s28  ;;  %2826 = vrot.lane.b32.xlu2 %v7957_v7, %s12151_s24  ;;  %v2233_v44 = vsel %vm11495_vm14, %v7963_v58, %v7847_v14  ;;  %vm7996_vm14 = vmand %vm7695_vm10, %vm12166_vm12  ;;  %v8122_v14 = vld [vmem:[%s5518_s23 + $0x8] sm:$0xff]  ;;  %v8150_v58 = vld [vmem:[%s5518_s23 + $0x18] sm:$0xff] }
 0x2f9   : > { %4901 = vmatpush.msk.msra.mxu2 %vm7695_vm10, %v2233_v44  ;;  %12173 = vst [vmem:[#allocation176_spill] sm:$0xff] %v8017_v37 }
 0x2fa   : > { %v7989_v42 = vpop.permute.xlu1 %1968 }
 0x2fb   : > { %2149 = vrot.lane.b32.xlu0 %v7141_v61, %s5417_s22  ;;  %4902 = vmatpush.msk.msra.mxu2 %vm2212_vm9, %v2209_v48  ;;  %v2184_v61 = vsel %vm11510_vm1, %v7952_v9, %v7878_v2  ;;  %v12189_v2 = vld [vmem:[#allocation65_spill] sm:$0xff] }
 0x2fc   : > { %v12191_v9 = vld [vmem:[#allocation77_spill] sm:$0xff] }
 0x2fd   : > { %4903 = vmatpush.msk.msra.mxu2 %vm2212_vm9, %v2208_v38  ;;  %v12175_v38 = vld [vmem:[#allocation54_spill] sm:$0xff]  ;;  %vm12179_vm9 = vcmp.ge.s32.totalorder %v5634_v15, 3 }
 0x2fe   : > { %vm12184_vm12 = vmmov %vm12179_vm9 }
 0x2ff   : > { %v8019_v1 = vpop.permute.xlu0 %1710  ;;  %4904 = vmatpush.msk.msra.mxu2 %vm7996_vm14, %v2184_v61  ;;  %v8039_v44 = vpop.permute.xlu2 %2045  ;;  %v12178_v61 = vld [vmem:[#allocation55_spill] sm:$0xff] }
 0x300   : > { %2792 = vrot.lane.b32.xlu1 %v8015_v26, %s12159_s28  ;;  %2832 = vrot.lane.b32.xlu2 %v8017_v37, %s12151_s24  ;;  %v1716_v18 = vsel %vm11501_vm3, %v8019_v1, %v7819_v45  ;;  %12199 = vst [vmem:[#allocation55_spill] sm:$0xff] %v8122_v14 }
 0x301   : > { %4832 = vmatpush.msk.msra.mxu3 %vm8011_vm15, %v1716_v18  ;;  %v2053_v18 = vsel %vm11507_vm2, %v8039_v44, %v7904_v63 }
 0x302   : > { %v8035_v34 = vpop.permute.xlu1 %2043 }
 0x303   : > { %2068 = vrot.lane.b32.xlu0 %v7276_v32, %s5416_s29  ;;  %s12275_s29 = smov 111  }
 0x307   : > { %v8037_v62 = vpop.permute.xlu0 %1704 }
 0x308   : > { %2774 = vrot.lane.b32.xlu1 %v7935_v43, %s12174_s30  ;;  %2796 = vrot.lane.b32.xlu2 %v7889_v23, %s12159_s28  ;;  %v1715_v48 = vsel %vm11501_vm3, %v7885_v47, %v8037_v62 }
 0x309   : > { %4833 = vmatpush.msk.msra.mxu3 %vm8011_vm15, %v1715_v48  ;;  %vm8066_vm15 = vmand %vm5638_vm4, %vm12179_vm9  ;;  %v12182_v48 = vld [vmem:[#allocation60_spill] sm:$0xff]  ;;  %vm12193_vm9 = vnez %v12192_v21 }
 0x30a   : > { %v8056_v41 = vpop.permute.xlu1 %2047  ;;  %4872 = vmatpush.msk.msra.mxu1 %vm8066_vm15, %v2053_v18  ;;  %v8103_v18 = vpop.permute.xlu2 %2093 }
 0x30b   : > { %4880 = vmatpush.msk.msrb.mxu3 %vm12177_vm0, %v12175_v38  ;;  %2143 = vrot.lane.b32.xlu0 %v7276_v32, %s5417_s22  ;;  %v12185_v38 = vld [vmem:[#allocation16_spill] sm:$0xff]  ;;  %12190 = vst [vmem:[#allocation54_spill] sm:$0xff] %v8103_v18 }
 0x30d   : > { %4881 = vmatpush.msk.msrb.mxu3 %vm12177_vm0, %v12178_v61  ;;  %vm12186_vm0 = vnez %v12185_v38 }
 0x30e   : > { %vm8082_vm3 = vmand %vm12186_vm0, %vm12184_vm12  ;;  %vm11529_vm12 = vcmp.lt.s32.totalorder %v5616_v8, 13 }
 0x30f   : > { %4882 = vmatpush.msk.msrb.mxu3 %vm12183_vm8, %v12182_v48  ;;  %v8088_v61 = vpop.permute.xlu0 %1999 }
 0x310   : > { %2764 = vrot.lane.b32.xlu1 %v7889_v23, %s12174_s30  ;;  %2802 = vrot.lane.b32.xlu2 %v7900_v31, %s12159_s28  ;;  %v2005_v48 = vsel %vm11514_vm11, %v8088_v61, %v7839_v28 }
 0x311   : > { %4883 = vmatpush.msk.msrb.mxu3 %vm12183_vm8, %v12189_v2  ;;  %4854 = vmatpush.msk.msra.mxu0 %vm8082_vm3, %v2005_v48  ;;  %v12196_v2 = vld [vmem:[#allocation90_spill] sm:$0xff] }
 0x312   : > { %v8110_v10 = vpop.permute.xlu1 %2070  ;;  %v12197_v48 = vld [vmem:[#allocation86_spill] sm:$0xff]  ;;  %v8154_v50 = vpop.permute.xlu2 %2174 }
 0x313   : > { %4884 = vmatpush.msk.msrb.mxu3 %vm12193_vm9, %v12191_v9  ;;  %2018 = vrot.lane.b32.xlu0 %v7276_v32, %s5418_s26  ;;  %12194 = vst [vmem:[#allocation52_spill] sm:$0xff] %v8110_v10  ;;  %vm12198_vm2 = vnez %v12197_v48 }
 0x314   : > { %12204 = vst [vmem:[#allocation60_spill] sm:$0xff] %v8154_v50 }
 0x315   : > { %4885 = vmatpush.msk.msrb.mxu3 %vm12193_vm9, %v12195_v35  ;;  %v1980_v35 = vsel %vm11529_vm12, %v7893_v36, %v8001_v19  ;;  %vm12200_vm9 = vcmp.lt.s32.totalorder %v5634_v15, 13 }
 0x316   : > { %vm8140_vm1 = vmand %vm12071_vm5, %vm12200_vm9  ;;  %vm12206_vm9 = vcmp.lt.s32.totalorder %v5616_v8, 82 }
 0x317   : > { %4886 = vmatpush.msk.msrb.mxu3 %vm12198_vm2, %v12196_v2  ;;  %v8119_v46 = vpop.permute.xlu0 %1993  ;;  %v12203_v2 = vld [vmem:[#allocation95_spill] sm:$0xff]  ;;  %v2183_v48 = vsel %vm12206_vm9, %v8154_v50, %v7954_v54 }
 0x318   : > { %2303 = vrot.lane.b32.xlu1 %v8122_v14, %s5420_s25  ;;  %2766 = vrot.lane.b32.xlu2 %v7933_v56, %s12174_s30  ;;  %v2004_v21 = vsel %vm11514_vm11, %v7921_v40, %v8119_v46 }
 0x319   : > { %4887 = vmatpush.msk.msrb.mxu3 %vm12198_vm2, %v12203_v2  ;;  %4855 = vmatpush.msk.msra.mxu0 %vm8082_vm3, %v2004_v21  ;;  %vm11526_vm2 = vcmp.lt.s32.totalorder %v5616_v8, 99  ;;  %vm12207_vm3 = vcmp.ge.s32.totalorder %v5634_v15, 3 }
 0x31a   : > { %v8158_v51 = vpop.permute.xlu1 %2145  ;;  %4905 = vmatpush.msk.msra.mxu2 %vm7996_vm14, %v2183_v48  ;;  %vm2106_vm11 = vmand %vm12183_vm8, %vm12207_vm3  ;;  %v2102_v20 = vsel %vm11526_vm2, %v8103_v18, %v7927_v25  ;;  %vm12212_vm14 = vcmp.lt.s32.totalorder %v5616_v8, 115  ;;  %v8246_v25 = vld [vmem:[%s5518_s23 + $0x10] sm:$0xff] }
 0x31b   : > { %2124 = vrot.lane.b32.xlu0 %v8150_v58, %s5419_s27  ;;  %4856 = vmatpush.msk.msra.mxu0 %vm8140_vm1, %v1980_v35  ;;  %12205 = vst [vmem:[#allocation16_spill] sm:$0xff] %v8158_v51  ;;  %s12242_s27 = smov 127  }
 0x31f   : > { %v8171_v52 = vpop.permute.xlu0 %2099 }
 0x320   : > { %12208 = vst [vmem:[#allocation65_spill] sm:$0xff] %v8171_v52  ;;  %2760 = vrot.lane.b32.xlu1 %v8015_v26, %s12174_s30  ;;  %2305 = vrot.lane.b32.xlu2 %v8150_v58, %s5420_s25  ;;  %v2103_v21 = vsel %vm11526_vm2, %v7858_v57, %v8171_v52  ;;  %v12258_v52 = vld [vmem:[#allocation29_spill] sm:$0xff] }
 0x321   : > { %4888 = vmatpush.msk.msrb.mxu3 %vm2106_vm11, %v2103_v21 }
 0x322   : > { %v8187_v35 = vpop.permute.xlu1 %2024 }
 0x323   : > { %2830 = vrot.lane.b32.xlu0 %v7933_v56, %s12151_s24  ;;  %4889 = vmatpush.msk.msrb.mxu3 %vm2106_vm11, %v2102_v20  ;;  %vm12219_vm11 = vcmp.lt.s32.totalorder %v5634_v15, 13 }
 0x324   : > { %vm8257_vm9 = vmand %vm12186_vm0, %vm12219_vm11  ;;  %vm12224_vm0 = vnez %v11851_v49 }
 0x325   : > { %vm12225_vm3 = vmmov %vm12219_vm11  ;;  %vm12229_vm11 = vnez %v11691_v59  ;;  %v12504_v59 = vld [vmem:[#allocation32_spill] sm:$0xff] }
 0x328   : > { %2934 = vrot.lane.b32.xlu1 %v7935_v43, %s12209_s16  ;;  %2299 = vrot.lane.b32.xlu2 %v7276_v32, %s5420_s25  ;;  %v2052_v32 = vsel %vm12212_vm14, %v8035_v34, %v8056_v41  ;;  %v8219_v20 = vpop.xlane.xlu2 %1643  ;;  %vm8310_vm14 = vmand %vm5638_vm4, %vm12225_vm3  ;;  %vm12232_vm3 = vcmp.ge.s32.totalorder %v5634_v15, 3 }
 0x329   : > { %4873 = vmatpush.msk.msra.mxu1 %vm8066_vm15, %v2052_v32  ;;  %vm11542_vm15 = vcmp.lt.s32.totalorder %v5616_v8, 125  ;;  %vm8349_vm2 = vmand %vm7695_vm10, %vm12232_vm3 }
 0x32a   : > { %v8195_v2 = vpop.permute.xlu1 %2072 }
 0x32b   : > { %2836 = vrot.lane.b32.xlu0 %v7961_v6, %s12151_s24  ;;  %12210 = vst [vmem:[#allocation77_spill] sm:$0xff] %v8195_v2 }
 0x330   : > { %2924 = vrot.lane.b32.xlu1 %v7889_v23, %s12209_s16  ;;  %2770 = vrot.lane.b32.xlu2 %v7900_v31, %s12174_s30  ;;  %v8229_v32 = vpop.permute.xlu2 %2020 }
 0x331   : > { %v2028_v57 = vsel %vm11542_vm15, %v8229_v32, %v8187_v35 }
 0x332   : > { %v8203_v48 = vpop.permute.xlu1 %2147  ;;  %4874 = vmatpush.msk.msra.mxu1 %vm8257_vm9, %v2028_v57 }
 0x333   : > { %2824 = vrot.lane.b32.xlu0 %v8015_v26, %s12151_s24  ;;  %12211 = vst [vmem:[#allocation74_spill] sm:$0xff] %v8203_v48 }
 0x338   : > { %2740 = vrot.lane.b32.xlu1 %v7961_v6, %s12213_s20  ;;  %2926 = vrot.lane.b32.xlu2 %v7933_v56, %s12209_s16  ;;  %v8243_v50 = vpop.permute.xlu2 %2022 }
 0x33a   : > { %v8217_v21 = vpop.permute.xlu1 %2120 }
 0x33b   : > { %2806 = vrot.lane.b32.xlu0 %v7935_v43, %s12159_s28  ;;  %12214 = vst [vmem:[#allocation82_spill] sm:$0xff] %v8217_v21 }
 0x340   : > { %2730 = vrot.lane.b32.xlu1 %v7957_v7, %s12213_s20  ;;  %2742 = vrot.lane.b32.xlu2 %v7935_v43, %s12213_s20  ;;  %v8273_v38 = vpop.permute.xlu2 %2118 }
 0x341   : > { %12223 = vst [vmem:[#allocation178_spill] sm:$0xff] %v8273_v38 }
 0x342   : > { %v8227_v0 = vpop.permute.xlu1 %2122 }
 0x343   : > { %2794 = vrot.lane.b32.xlu0 %v7957_v7, %s12159_s28  ;;  %12215 = vst [vmem:[#allocation90_spill] sm:$0xff] %v8227_v0 }
 0x348   : > { %2928 = vrot.lane.b32.xlu1 %v8017_v37, %s12209_s16  ;;  %2732 = vrot.lane.b32.xlu2 %v7889_v23, %s12213_s20 }
 0x34a   : > { %v8237_v54 = vpop.permute.xlu1 %2828  ;;  %v8250_v18 = vpop.xlane.xlu0 %1646 }
 0x34b   : > { %2800 = vrot.lane.b32.xlu0 %v8017_v37, %s12159_s28  ;;  %12216 = vst [vmem:[#allocation86_spill] sm:$0xff] %v8237_v54 }
 0x34c   : > { %12218 = vst [vmem:[#allocation95_spill] sm:$0xff] %v8250_v18 }
 0x350   : > { %2894 = vrot.lane.b32.xlu1 %v7933_v56, %s12217_s17  ;;  %2930 = vrot.lane.b32.xlu2 %v7900_v31, %s12209_s16 }
 0x352   : > { %v8271_v18 = vpop.permute.xlu1 %2834 }
 0x353   : > { %2301 = vrot.lane.b32.xlu0 %v8246_v25, %s5420_s25  ;;  %12222 = vst [vmem:[#allocation177_spill] sm:$0xff] %v8271_v18  ;;  %v8292_v18 = vld [vmem:[%s11061_s4] sm:$0xff] }
 0x354   : > { %2360 = vmatmul.f32.vlgmr.msra.gmra.mxu3 %v8292_v18 }
 0x358   : > { %2900 = vrot.lane.b32.xlu1 %v7961_v6, %s12217_s17  ;;  %2920 = vrot.lane.b32.xlu2 %v8015_v26, %s12209_s16 }
 0x35b   : > { %2772 = vrot.lane.b32.xlu0 %v7961_v6, %s12174_s30 }
 0x35d   : > { %v8277_v54 = vpop.permute.xlu0 %1972 }
 0x35e   : > { %v1979_v57 = vsel %vm11529_vm12, %v8277_v54, %v7989_v42 }
 0x35f   : > { %4857 = vmatpush.msk.msra.mxu0 %vm8140_vm1, %v1979_v57  ;;  %vm11541_vm1 = vcmp.lt.s32.totalorder %v5616_v8, 109 }
 0x360   : > { %2898 = vrot.lane.b32.xlu1 %v7900_v31, %s12217_s17  ;;  %2736 = vrot.lane.b32.xlu2 %v8017_v37, %s12213_s20 }
 0x361   : > { %4858 = vmatpush.msk.msra.mxu0 %vm12224_vm0, %v6732_v12  ;;  %v8314_v12 = vpop.permute.xlu2 %2838 }
 0x362   : > { %v8298_v14 = vpop.permute.xlu1 %2798 }
 0x363   : > { %2762 = vrot.lane.b32.xlu0 %v7957_v7, %s12174_s30  ;;  %4859 = vmatpush.msk.msra.mxu0 %vm12224_vm0, %v6799_v3  ;;  %v12230_v3 = vld [vmem:[#allocation36_spill] sm:$0xff]  ;;  %vm11540_vm0 = vcmp.lt.s32.totalorder %v5616_v8, 83 }
 0x365   : > { %v8316_v57 = vpop.permute.xlu0 %2074  ;;  %4860 = vmatpush.msk.msra.mxu0 %vm12229_vm11, %v5915_v4 }
 0x366   : > { %12228 = vst [vmem:[#allocation179_spill] sm:$0xff] %v8316_v57  ;;  %v2078_v49 = vsel %vm11541_vm1, %v8110_v10, %v8316_v57  ;;  %v12239_v57 = vld [vmem:[#allocation48_spill] sm:$0xff] }
 0x367   : > { %4861 = vmatpush.msk.msra.mxu0 %vm12229_vm11, %v5933_v11  ;;  %4890 = vmatpush.msk.msrb.mxu3 %vm8310_vm14, %v2078_v49  ;;  %v12244_v10 = vld [vmem:[#allocation96_spill] sm:$0xff]  ;;  %v12252_v11 = vld [vmem:[#allocation93_spill] sm:$0xff] }
 0x368   : > { %2888 = vrot.lane.b32.xlu1 %v8015_v26, %s12217_s17  ;;  %2892 = vrot.lane.b32.xlu2 %v7889_v23, %s12217_s17  ;;  %v12237_v23 = vld [vmem:[#allocation40_spill] sm:$0xff]  ;;  %vm12245_vm3 = vnez %v12244_v10 }
 0x369   : > { %4862 = vmatpush.msk.msra.mxu0 %vm12071_vm5, %v12230_v3  ;;  %v12236_v3 = vld [vmem:[#allocation42_spill] sm:$0xff]  ;;  %vm12238_vm12 = vnez %v12237_v23  ;;  %v8362_v29 = vpop.permute.xlu2 %2826  ;;  %v12243_v23 = vld [vmem:[#allocation99_spill] sm:$0xff] }
 0x36a   : > { %v8337_v4 = vpop.permute.xlu1 %2804 }
 0x36b   : > { %2768 = vrot.lane.b32.xlu0 %v8017_v37, %s12174_s30  ;;  %4863 = vmatpush.msk.msra.mxu0 %vm12071_vm5, %v12231_v16 }
 0x36d   : > { %v8353_v49 = vpop.permute.xlu0 %2149  ;;  %4864 = vmatpush.msk.msra.mxu0 %vm12238_vm12, %v12236_v3 }
 0x36e   : > { %12235 = vst [vmem:[#allocation36_spill] sm:$0xff] %v8353_v49  ;;  %v2153_v16 = vsel %vm11540_vm0, %v8158_v51, %v8353_v49 }
 0x36f   : > { %4865 = vmatpush.msk.msra.mxu0 %vm12238_vm12, %v12239_v57  ;;  %4906 = vmatpush.msk.msra.mxu2 %vm8349_vm2, %v2153_v16  ;;  %v8386_v16 = vld [vmem:[%s11061_s4 + $0x8] sm:$0xff] }
 0x370   : > { %2896 = vrot.lane.b32.xlu1 %v8017_v37, %s12217_s17  ;;  %2890 = vrot.lane.b32.xlu2 %v7957_v7, %s12217_s17  ;;  %12241 = vst [vmem:[#allocation42_spill] sm:$0xff] %v8386_v16 }
 0x371   : > { %2383 = vmatmul.f32.vlgmr.msrb.gmra.mxu2 %v8386_v16  ;;  %v8393_v51 = vpop.permute.xlu2 %2832  ;;  %v12248_v16 = vld [vmem:[#allocation44_spill] sm:$0xff] }
 0x372   : > { %v8373_v3 = vpop.permute.xlu1 %2792 }
 0x373   : > { %2734 = vrot.lane.b32.xlu0 %v7933_v56, %s12213_s20 }
 0x375   : > { %v8377_v49 = vpop.permute.xlu0 %2068 }
 0x376   : > { %12240 = vst [vmem:[#allocation38_spill] sm:$0xff] %v8377_v49  ;;  %v2077_v57 = vsel %vm11541_vm1, %v8377_v49, %v8195_v2  ;;  %v12246_v49 = vld [vmem:[#allocation103_spill] sm:$0xff]  ;;  %vm12253_vm1 = vcmp.lt.s32.totalorder %v5616_v8, 3 }
 0x377   : > { %4891 = vmatpush.msk.msrb.mxu3 %vm8310_vm14, %v2077_v57  ;;  %v12247_v57 = vld [vmem:[#allocation46_spill] sm:$0xff]  ;;  %vm12249_vm14 = vnez %v12248_v16  ;;  %v12290_v16 = vld [vmem:[#allocation128_spill] sm:$0xff] }
 0x378   : > { %2862 = vrot.lane.b32.xlu1 %v7933_v56, %s12242_s27 }
 0x379   : > { %4892 = vmatpush.msk.msrb.mxu3 %vm12245_vm3, %v12243_v23  ;;  %2386 = vmatmul.f32.gmra.mxu2 %v8506_v5 }
 0x37a   : > { %v8398_v2 = vpop.permute.xlu1 %2774 }
 0x37b   : > { %2932 = vrot.lane.b32.xlu0 %v7961_v6, %s12209_s16  ;;  %4893 = vmatpush.msk.msrb.mxu3 %vm12245_vm3, %v12246_v49  ;;  %vm11543_vm3 = vcmp.ge.s32.totalorder %v5643_v17, 3  ;;  %v8430_v49 = vpop.permute.xlu2 %2796 }
 0x37d   : > { %v8405_v9 = vpop.permute.xlu0 %2143  ;;  %4894 = vmatpush.msk.msrb.mxu3 %vm12249_vm14, %v12247_v57  ;;  %v12255_v57 = vld [vmem:[#allocation72_spill] sm:$0xff] }
 0x37e   : > { %v2152_v23 = vsel %vm11540_vm0, %v8405_v9, %v8203_v48  ;;  %vm11544_vm0 = vcmp.lt.s32.totalorder %v5643_v17, 13 }
 0x37f   : > { %4895 = vmatpush.msk.msrb.mxu3 %vm12249_vm14, %v12250_v33  ;;  %4907 = vmatpush.msk.msra.mxu2 %vm8349_vm2, %v2152_v23  ;;  %vm2007_vm2 = vmand %vm11951_vm13, %vm11543_vm3 }
 0x380   : > { %2870 = vrot.lane.b32.xlu1 %v7935_v43, %s12242_s27 }
 0x381   : > { %4948 = vmatpush.msk.msra.mxu3 %vm11996_vm7, %v11994_v24  ;;  %v12356_v24 = vld [vmem:[#allocation150_spill] sm:$0xff] }
 0x382   : > { %v8424_v10 = vpop.permute.xlu1 %2764 }
 0x383   : > { %4949 = vmatpush.msk.msra.mxu3 %vm11996_vm7, %v12001_v27  ;;  %2922 = vrot.lane.b32.xlu0 %v7957_v7, %s12209_s16 }
 0x385   : > { %4950 = vmatpush.msk.msra.mxu3 %vm7163_vm6, %v7177_v55  ;;  %v8437_v33 = vpop.permute.xlu0 %2018  ;;  %v2003_v55 = vsel %vm12253_vm1, %v7839_v28, %v8088_v61  ;;  %v12260_v28 = vld [vmem:[#allocation81_spill] sm:$0xff]  ;;  %v12288_v61 = vld [vmem:[#allocation6_spill] sm:$0xff] }
 0x386   : > { %v2027_v27 = vsel %vm11542_vm15, %v8437_v33, %v8243_v50  ;;  %vm12257_vm15 = vmmov %vm12253_vm1  ;;  %vm12261_vm1 = vcmp.lt.s32.totalorder %v5616_v8, 13 }
 0x387   : > { %4951 = vmatpush.msk.msra.mxu3 %vm7163_vm6, %v12252_v11  ;;  %4875 = vmatpush.msk.msra.mxu1 %vm8257_vm9, %v2027_v27  ;;  %vm12256_vm6 = vnez %v12255_v57  ;;  %v2002_v23 = vsel %vm12257_vm15, %v8119_v46, %v7921_v40  ;;  %vm12259_vm9 = vnez %v12258_v52  ;;  %v1978_v46 = vsel %vm12261_vm1, %v8001_v19, %v7893_v36  ;;  %v8491_v27 = vpop.permute.xlu2 %2802  ;;  %v12267_v57 = vld [vmem:[#allocation18_spill] sm:$0xff] }
 0x388   : > { %2868 = vrot.lane.b32.xlu1 %v7961_v6, %s12242_s27  ;;  %vm1984_vm3 = vmand %vm12259_vm9, %vm11544_vm0  ;;  %v1648_v40 = vmul.f32 %v8219_v20, %v7257_v53  ;;  %vm12262_vm15 = vcmp.lt.s32.totalorder %v5634_v15, 13  ;;  %v1977_v36 = vsel %vm12261_vm1, %v7989_v42, %v8277_v54  ;;  %vm11547_vm0 = vcmp.lt.s32.totalorder %v5616_v8, 93  ;;  %v12269_v20 = vld [vmem:[#allocation22_spill] sm:$0xff]  ;;  %v12270_v54 = vld [vmem:[#allocation3_spill] sm:$0xff] }
 0x389   : > { %4952 = vmatpush.msk.msra.mxu3 %vm2007_vm2, %v2003_v55  ;;  %4876 = vmatpush.msk.msra.mxu1 %vm12256_vm6, %v12254_v22  ;;  %v12266_v22 = vld [vmem:[#allocation20_spill] sm:$0xff]  ;;  %vm12279_vm1 = vcmp.ge.s32.totalorder %v5643_v17, 3 }
 0x38a   : > { %v8470_v11 = vpop.permute.xlu1 %2303  ;;  %v12271_v42 = vld [vmem:[#allocation152_spill] sm:$0xff] }
 0x38b   : > { %4953 = vmatpush.msk.msra.mxu3 %vm2007_vm2, %v2002_v23  ;;  %2738 = vrot.lane.b32.xlu0 %v7900_v31, %s12213_s20  ;;  %vm8487_vm2 = vmand %vm12183_vm8, %vm12262_vm15  ;;  %vm1718_vm8 = vcmp.ge.s32.totalorder %v12270_v54, 3  ;;  %vm1720_vm15 = vcmp.lt.s32.totalorder %v12270_v54, 19  ;;  %v8521_v23 = vsub.f32 %v12271_v42, %v1648_v40 }
 0x38c   : > { %4877 = vmatpush.msk.msra.mxu1 %vm12256_vm6, %v12260_v28  ;;  %vm12268_vm6 = vnez %v12267_v57  ;;  %v12273_v28 = vld [vmem:[#allocation153_spill] sm:$0xff] }
 0x38d   : > { %4954 = vmatpush.msk.msra.mxu3 %vm1984_vm3, %v1978_v46  ;;  %v8493_v55 = vpop.permute.xlu0 %2124  ;;  %12272 = vst [vmem:[#allocation99_spill] sm:$0xff] %v8521_v23  ;;  %v8524_v46 = vsub.f32 %v12273_v28, %v1648_v40  ;;  %v12280_v40 = vld [vmem:[#allocation112_spill] sm:$0xff]  ;;  %v12284_v28 = vld [vmem:[#allocation101_spill] sm:$0xff] }
 0x38e   : > { %12265 = vst [vmem:[#allocation48_spill] sm:$0xff] %v8493_v55  ;;  %4878 = vmatpush.msk.msra.mxu1 %vm12268_vm6, %v12266_v22  ;;  %v2128_v19 = vsel %vm11547_vm0, %v8217_v21, %v8493_v55  ;;  %v12276_v22 = vld [vmem:[#allocation91_spill] sm:$0xff]  ;;  %v8565_v57 = vld [vmem:[%s11061_s4 + $0x18] sm:$0xff]  ;;  %v12308_v21 = vld [vmem:[#allocation94_spill] sm:$0xff] }
 0x38f   : > { %4955 = vmatpush.msk.msra.mxu3 %vm1984_vm3, %v1977_v36  ;;  %4908 = vmatpush.msk.msra.mxu2 %vm8487_vm2, %v2128_v19  ;;  %12274 = vst [vmem:[#allocation96_spill] sm:$0xff] %v8524_v46  ;;  %v12277_v36 = vld [vmem:[#allocation97_spill] sm:$0xff]  ;;  %v2127_v19 = vsel %vm11547_vm0, %v8273_v38, %v8227_v0  ;;  %vm8551_vm0 = vmand %vm1718_vm8, %vm1720_vm15  ;;  %vm12292_vm8 = vnez %v12291_v60  ;;  %v12296_v0 = vld [vmem:[#allocation8_spill] sm:$0xff] }
 0x390   : > { %4879 = vmatpush.msk.msra.mxu1 %vm12268_vm6, %v12269_v20  ;;  %2958 = vrot.lane.b32.xlu1 %v7933_v56, %s12275_s29  ;;  %vm12278_vm3 = vnez %v12277_v36  ;;  %vm12281_vm6 = vnez %v12280_v40  ;;  %v5359_v56 = vld [vmem:[%s5518_s23] sm:$0xff]  ;;  %v1654_v36 = vmul.f32 %v8521_v23, %v8521_v23  ;;  %v12297_v38 = vld [vmem:[#allocation89_spill] sm:$0xff]  ;;  %v12307_v55 = vld [vmem:[#allocation59_spill] sm:$0xff] }
 0x391   : > { %4956 = vmatpush.msk.msra.mxu3 %vm12278_vm3, %v12276_v22  ;;  %4909 = vmatpush.msk.msra.mxu2 %vm8487_vm2, %v2127_v19  ;;  %vm8542_vm14 = vmand %vm12281_vm6, %vm12279_vm1  ;;  %vm12289_vm2 = vcmp.lt.s32.totalorder %v5616_v8, 35  ;;  %vm12299_vm1 = vcmp.lt.s32.totalorder %v5643_v17, 13  ;;  %v12311_v20 = vld [vmem:[#allocation9_spill] sm:$0xff]  ;;  %v12495_v40 = vld [vmem:[#allocation138_spill] sm:$0xff] }
 0x392   : > { %2427 = vmatpush.msra.mxu1 %v8246_v25  ;;  %v8546_v42 = vpop.permute.xlu1 %2760  ;;  %v12287_v25 = vld [vmem:[#allocation14_spill] sm:$0xff] }
 0x393   : > { %4957 = vmatpush.msk.msra.mxu3 %vm12278_vm3, %v12284_v28  ;;  %v1903_v19 = vsel %vm12289_vm2, %v12288_v61, %v12287_v25  ;;  %2728 = vrot.lane.b32.xlu0 %v8015_v26, %s12213_s20  ;;  %v1655_v28 = vmul.f32 %v8524_v46, %v8524_v46  ;;  %v12293_v25 = vld [vmem:[#allocation34_spill] sm:$0xff]  ;;  %vm12298_vm3 = vmmov %vm12289_vm2  ;;  %v12305_v46 = vld [vmem:[#allocation5_spill] sm:$0xff] }
 0x394   : > { %2428 = vmatpush.msra.mxu1 %v5359_v56  ;;  %4910 = vmatpush.msk.msra.mxu2 %vm12292_vm8, %v12290_v16  ;;  %v12294_v56 = vld [vmem:[#allocation33_spill] sm:$0xff]  ;;  %v1902_v23 = vsel %vm12298_vm3, %v12297_v38, %v12296_v0  ;;  %vm8589_vm2 = vmand %vm8551_vm0, %vm12299_vm1  ;;  %v12303_v0 = vld [vmem:[#allocation35_spill] sm:$0xff]  ;;  %vm12306_vm3 = vnez %v12305_v46  ;;  %vm12309_vm1 = vcmp.lt.s32.totalorder %v5616_v8, 45 }
 0x395   : > { %vm12295_vm15 = vnez %v12294_v56  ;;  %v8579_v61 = vpop.permute.xlu0 %2830  ;;  %2429 = vmatmul.f32.vlgmr.msra.gmra.mxu1 %v8565_v57  ;;  %v12304_v38 = vld [vmem:[#allocation7_spill] sm:$0xff]  ;;  %v1874_v48 = vsel %vm12309_vm1, %v12308_v21, %v12307_v55  ;;  %v1658_v60 = vadd.f32 %v1655_v28, %v1654_v36  ;;  %v12320_v28 = vld [vmem:[#allocation13_spill] sm:$0xff]  ;;  %v12347_v56 = vld [vmem:[#allocation2_spill] sm:$0xff] }
 0x396   : > { %4916 = vmatpush.msk.msrb.mxu1 %vm8542_vm14, %v1903_v19  ;;  %4958 = vmatpush.msk.msra.mxu3 %vm12295_vm15, %v12293_v25  ;;  %v12302_v19 = vld [vmem:[#allocation135_spill] sm:$0xff]  ;;  %v8599_v25 = vpop.permute.xlu2 %2766  ;;  %v12472_v46 = vld [vmem:[#allocation149_spill] sm:$0xff] }
 0x397   : > { %4911 = vmatpush.msk.msra.mxu2 %vm12292_vm8, %v12302_v19  ;;  %v12312_v19 = vld [vmem:[#allocation26_spill] sm:$0xff]  ;;  %vm12315_vm8 = vcmp.lt.s32.totalorder %v5643_v17, 14  ;;  %v12319_v36 = vld [vmem:[#allocation39_spill] sm:$0xff] }
 0x398   : > { %4917 = vmatpush.msk.msrb.mxu1 %vm8542_vm14, %v1902_v23  ;;  %4959 = vmatpush.msk.msra.mxu3 %vm12295_vm15, %v12303_v0  ;;  %v12310_v23 = vld [vmem:[#allocation37_spill] sm:$0xff]  ;;  %v12313_v0 = vld [vmem:[#allocation64_spill] sm:$0xff]  ;;  %vm12314_vm14 = vmmov %vm12309_vm1  ;;  %vm12332_vm15 = vcmp.lt.s32.totalorder %v5643_v17, 15 }
 0x399   : > { %4964 = vmatpush.msk.msrb.mxu2 %vm12306_vm3, %v12304_v38  ;;  %2866 = vrot.lane.b32.xlu1 %v7900_v31, %s12242_s27  ;;  %v1873_v21 = vsel %vm12314_vm14, %v12313_v0, %v12312_v19  ;;  %vm8629_vm1 = vmand %vm8551_vm0, %vm12315_vm8  ;;  %v12321_v38 = vld [vmem:[#allocation11_spill] sm:$0xff]  ;;  %vm12325_vm8 = vcmp.lt.s32.totalorder %v5616_v8, 46  ;;  %v12327_v0 = vld [vmem:[#allocation41_spill] sm:$0xff] }
 0x39a   : > { %4918 = vmatpush.msk.msrb.mxu1 %vm8589_vm2, %v1874_v48  ;;  %4960 = vmatpush.msk.msra.mxu3 %vm12259_vm9, %v12310_v23  ;;  %v8633_v55 = vpop.permute.xlu1 %2934  ;;  %vm12322_vm14 = vnez %v12321_v38  ;;  %v12323_v23 = vld [vmem:[#allocation145_spill] sm:$0xff]  ;;  %v12326_v16 = vld [vmem:[#allocation43_spill] sm:$0xff]  ;;  %vm1830_vm7 = vmand %vm8551_vm0, %vm12332_vm15  ;;  %vm12339_vm15 = vcmp.lt.s32.totalorder %v5616_v8, 47 }
 0x39b   : > { %4965 = vmatpush.msk.msrb.mxu2 %vm12306_vm3, %v12311_v20  ;;  %1659 = vadd.xlane.f32.xlu2 %v1658_v60  ;;  %12318 = vst [vmem:[#allocation103_spill] sm:$0xff] %v8633_v55  ;;  %v12324_v20 = vld [vmem:[#allocation31_spill] sm:$0xff]  ;;  %v12338_v38 = vld [vmem:[#allocation144_spill] sm:$0xff] }
 0x39c   : > { %4919 = vmatpush.msk.msrb.mxu1 %vm8589_vm2, %v1873_v21  ;;  %4961 = vmatpush.msk.msra.mxu3 %vm12259_vm9, %v12319_v36  ;;  %v1849_v19 = vsel %vm12325_vm8, %v12324_v20, %v12323_v23  ;;  %v8650_v60 = vld [vmem:[%s11061_s4 + $0x28] sm:$0xff]  ;;  %vm12328_vm2 = vnez %v12327_v0  ;;  %v12343_v0 = vld [vmem:[#allocation70_spill] sm:$0xff] }
 0x39d   : > { %4966 = vmatpush.msk.msrb.mxu2 %vm12322_vm14, %v12320_v28  ;;  %2902 = vrot.lane.b32.xlu0 %v7935_v43, %s12217_s17  ;;  %v12329_v21 = vld [vmem:[#allocation15_spill] sm:$0xff]  ;;  %v8662_v36 = vpop.permute.xlu0 %2836  ;;  %v12330_v28 = vld [vmem:[#allocation141_spill] sm:$0xff] }
 0x39e   : > { %4920 = vmatpush.msk.msrb.mxu1 %vm8629_vm1, %v1849_v19  ;;  %4962 = vmatpush.msk.msra.mxu3 %vm12328_vm2, %v12326_v16  ;;  %v12331_v23 = vld [vmem:[#allocation147_spill] sm:$0xff]  ;;  %v8678_v19 = vld [vmem:[%s11061_s4 + $0x38] sm:$0xff] }
 0x39f   : > { %4967 = vmatpush.msk.msrb.mxu2 %vm12322_vm14, %v12329_v21  ;;  %v1848_v20 = vsel %vm12325_vm8, %v12331_v23, %v12330_v28  ;;  %v12333_v16 = vld [vmem:[#allocation49_spill] sm:$0xff]  ;;  %v12334_v21 = vld [vmem:[#allocation139_spill] sm:$0xff]  ;;  %v12337_v23 = vld [vmem:[#allocation106_spill] sm:$0xff]  ;;  %2363 = vmatmul.f32.gmra.mxu3 %v8678_v19 }
 0x3a0   : > { %4921 = vmatpush.msk.msrb.mxu1 %vm8629_vm1, %v1848_v20  ;;  %2475 = vmatmul.f32.vlgmr.msra.gmra.mxu2 %v8650_v60  ;;  %v12335_v28 = vld [vmem:[#allocation137_spill] sm:$0xff]  ;;  %v1824_v48 = vsel %vm12339_vm15, %v12338_v38, %v12337_v23  ;;  %vm12340_vm1 = vcmp.ge.s32.totalorder %v5643_v17, 3  ;;  %v8696_v20 = vpop.permute.xlu2 %2305 }
 0x3a1   : > { %4963 = vmatpush.msk.msra.mxu3 %vm12328_vm2, %v12333_v16  ;;  %vm12336_vm8 = vnez %v12335_v28  ;;  %2964 = vrot.lane.b32.xlu1 %v7961_v6, %s12275_s29  ;;  %vm2057_vm14 = vmand %vm12306_vm3, %vm12340_vm1  ;;  %v12341_v16 = vld [vmem:[#allocation67_spill] sm:$0xff] }
 0x3a2   : > { %4968 = vmatpush.msk.msrb.mxu2 %vm12336_vm8, %v12334_v21  ;;  %4922 = vmatpush.msk.msrb.mxu1 %vm1830_vm7, %v1824_v48  ;;  %v12342_v21 = vld [vmem:[#allocation148_spill] sm:$0xff]  ;;  %vm12344_vm2 = vmmov %vm12339_vm15  ;;  %v8706_v23 = vpop.permute.xlu1 %2924  ;;  %vm12345_vm15 = vcmp.lt.s32.totalorder %v5616_v8, 115  ;;  %v12346_v6 = vld [vmem:[#allocation79_spill] sm:$0xff] }
 0x3a3   : > { %v1823_v38 = vsel %vm12344_vm2, %v12343_v0, %v12342_v21  ;;  %v2055_v48 = vsel %vm12345_vm15, %v7904_v63, %v8039_v44  ;;  %vm12349_vm2 = vmmov %vm12345_vm15  ;;  %v12351_v44 = vld [vmem:[#allocation71_spill] sm:$0xff] }
 0x3a4   : > { %4969 = vmatpush.msk.msrb.mxu2 %vm12336_vm8, %v12341_v16  ;;  %4923 = vmatpush.msk.msrb.mxu1 %vm1830_vm7, %v1823_v38  ;;  %vm12348_vm8 = vcmp.lt.s32.totalorder %v5616_v8, 48  ;;  %v2054_v0 = vsel %vm12349_vm2, %v8056_v41, %v8035_v34  ;;  %vm12350_vm7 = vcmp.lt.s32.totalorder %v5643_v17, 13  ;;  %v12352_v16 = vld [vmem:[#allocation98_spill] sm:$0xff]  ;;  %v12361_v38 = vld [vmem:[#allocation84_spill] sm:$0xff] }
 0x3a5   : > { %v1799_v28 = vsel %vm12348_vm8, %v12347_v56, %v12346_v6  ;;  %vm2034_vm1 = vmand %vm11951_vm13, %vm12350_vm7  ;;  %v8726_v63 = vpop.permute.xlu0 %2824  ;;  %vm12355_vm13 = vcmp.lt.s32.totalorder %v5616_v8, 125  ;;  %v8745_v41 = vld [vmem:[%s11061_s4 + $0x20] sm:$0xff]  ;;  %v12357_v56 = vld [vmem:[#allocation92_spill] sm:$0xff] }
 0x3a6   : > { %4970 = vmatpush.msk.msrb.mxu2 %vm2057_vm14, %v2055_v48  ;;  %4924 = vmatpush.msk.msrb.mxu1 %vm8551_vm0, %v1799_v28  ;;  %vm12353_vm15 = vmmov %vm12348_vm8  ;;  %vm12354_vm8 = vcmp.ge.s32.totalorder %v5643_v17, 1  ;;  %v2030_v34 = vsel %vm12355_vm13, %v8187_v35, %v8229_v32  ;;  %v12360_v32 = vld [vmem:[#allocation110_spill] sm:$0xff] }
 0x3a7   : > { %v1798_v6 = vsel %vm12353_vm15, %v12352_v16, %v12351_v44  ;;  %vm1778_vm12 = vmand %vm8551_vm0, %vm12354_vm8  ;;  %vm12363_vm15 = vcmp.ge.s32.totalorder %v5643_v17, 2  ;;  %2452 = vmatmul.f32.vlgmr.msrb.gmra.mxu3 %v8745_v41  ;;  %v12366_v16 = vld [vmem:[#allocation62_spill] sm:$0xff] }
 0x3a8   : > { %4971 = vmatpush.msk.msrb.mxu2 %vm2057_vm14, %v2054_v0  ;;  %4925 = vmatpush.msk.msrb.mxu1 %vm8551_vm0, %v1798_v6  ;;  %vm12358_vm14 = vcmp.lt.s32.totalorder %v5616_v8, 49  ;;  %vm12359_vm2 = vmmov %vm12355_vm13  ;;  %v8782_v44 = vpop.permute.xlu2 %2299  ;;  %v12367_v6 = vld [vmem:[#allocation53_spill] sm:$0xff] }
 0x3a9   : > { %v1774_v21 = vsel %vm12358_vm14, %v12357_v56, %v12356_v24  ;;  %2864 = vrot.lane.b32.xlu1 %v8017_v37, %s12242_s27  ;;  %v2029_v35 = vsel %vm12359_vm2, %v8243_v50, %v8437_v33  ;;  %vm12362_vm7 = vmmov %vm12358_vm14  ;;  %v8775_v50 = vld [vmem:[%s11061_s4 + $0x10] sm:$0xff]  ;;  %vm12373_vm14 = vcmp.ge.s32.totalorder %v5643_v17, 3 }
 0x3aa   : > { %4972 = vmatpush.msk.msrb.mxu2 %vm2034_vm1, %v2030_v34  ;;  %4926 = vmatpush.msk.msrb.mxu1 %vm1778_vm12, %v1774_v21  ;;  %v1773_v48 = vsel %vm12362_vm7, %v12361_v38, %v12360_v32  ;;  %vm8765_vm8 = vmand %vm8551_vm0, %vm12363_vm15  ;;  %v8770_v0 = vpop.permute.xlu1 %2740  ;;  %v8780_v33 = vld [vmem:[%s11061_s4 + $0x50] sm:$0xff]  ;;  %v12371_v21 = vld [vmem:[#allocation155_spill] sm:$0xff]  ;;  %vm12377_vm15 = vcmp.lt.s32.totalorder %v5616_v8, 51 }
 0x3ab   : > { %2406 = vmatmul.f32.vlgmr.msra.gmra.mxu0 %v8775_v50  ;;  %v12370_v24 = vld [vmem:[#allocation68_spill] sm:$0xff]  ;;  %vm1726_vm2 = vmand %vm8551_vm0, %vm12373_vm14  ;;  %2432 = vmatmul.f32.gmra.mxu1 %v8780_v33  ;;  %v1714_v32 = vsel %vm12377_vm15, %v7819_v45, %v8019_v1  ;;  %v12380_v45 = vld [vmem:[#allocation123_spill] sm:$0xff] }
 0x3ac   : > { %4973 = vmatpush.msk.msrb.mxu2 %vm2034_vm1, %v2029_v35  ;;  %4927 = vmatpush.msk.msrb.mxu1 %vm1778_vm12, %v1773_v48  ;;  %vm12368_vm1 = vnez %v12367_v6  ;;  %vm12369_vm12 = vcmp.lt.s32.totalorder %v5616_v8, 50  ;;  %vm12379_vm0 = vmmov %vm12377_vm15  ;;  %v12381_v1 = vld [vmem:[#allocation122_spill] sm:$0xff]  ;;  %v12388_v6 = vld [vmem:[#allocation133_spill] sm:$0xff] }
 0x3ad   : > { %v1749_v34 = vsel %vm12369_vm12, %v7911_v13, %v7825_v39  ;;  %v8797_v56 = vpop.permute.xlu0 %2806  ;;  %vm12372_vm13 = vmmov %vm12369_vm12  ;;  %v12374_v39 = vld [vmem:[#allocation21_spill] sm:$0xff]  ;;  %v12375_v13 = vld [vmem:[#allocation19_spill] sm:$0xff]  ;;  %v1713_v22 = vsel %vm12379_vm0, %v8037_v62, %v7885_v47 }
 0x3ae   : > { %4974 = vmatpush.msk.msrb.mxu2 %vm12368_vm1, %v12366_v16  ;;  %4928 = vmatpush.msk.msrb.mxu1 %vm8765_vm8, %v1749_v34  ;;  %v1748_v35 = vsel %vm12372_vm13, %v12371_v21, %v7801_v30  ;;  %vm12376_vm7 = vnez %v12375_v13  ;;  %v12378_v30 = vld [vmem:[#allocation23_spill] sm:$0xff]  ;;  %v12385_v16 = vld [vmem:[#allocation130_spill] sm:$0xff]  ;;  %v12389_v34 = vld [vmem:[#allocation120_spill] sm:$0xff] }
 0x3af   : > { %v12384_v47 = vld [vmem:[#allocation55_spill] sm:$0xff]  ;;  %vm12390_vm13 = vnez %v12389_v34 }
 0x3b0   : > { %4975 = vmatpush.msk.msrb.mxu2 %vm12368_vm1, %v12370_v24  ;;  %4929 = vmatpush.msk.msrb.mxu1 %vm8765_vm8, %v1748_v35  ;;  %vm12382_vm8 = vnez %v12381_v1  ;;  %v8834_v48 = vpop.permute.xlu2 %2770  ;;  %vm12383_vm1 = vcmp.lt.s32.totalorder %v5616_v8, 1  ;;  %v12391_v24 = vld [vmem:[#allocation86_spill] sm:$0xff]  ;;  %v12393_v35 = vld [vmem:[#allocation95_spill] sm:$0xff]  ;;  %v12399_v1 = vld [vmem:[#allocation56_spill] sm:$0xff] }
 0x3b1   : > { %2952 = vrot.lane.b32.xlu1 %v8015_v26, %s12275_s29  ;;  %v2847_v28 = vsel %vm12383_vm1, %v8314_v12, %v8579_v61  ;;  %vm12392_vm14 = vmmov %vm12383_vm1  ;;  %vm12400_vm15 = vnez %v12399_v1 }
 0x3b2   : > { %4976 = vmatpush.msk.msrb.mxu2 %vm12376_vm7, %v12374_v39  ;;  %4930 = vmatpush.msk.msrb.mxu1 %vm1726_vm2, %v1714_v32  ;;  %v8828_v38 = vpop.permute.xlu1 %2730  ;;  %v2846_v21 = vsel %vm12392_vm14, %v8662_v36, %v12391_v24  ;;  %v1649_v39 = vmul.f32 %v12393_v35, %v7257_v53  ;;  %v12394_v32 = vld [vmem:[#allocation63_spill] sm:$0xff]  ;;  %vm12401_vm0 = vmmov %vm12383_vm1 }
 0x3b3   : > { %2966 = vrot.lane.b32.xlu2 %v7935_v43, %s12275_s29 }
 0x3b4   : > { %4977 = vmatpush.msk.msrb.mxu2 %vm12376_vm7, %v12378_v30  ;;  %4931 = vmatpush.msk.msrb.mxu1 %vm1726_vm2, %v1713_v22  ;;  %vm12396_vm2 = vmmov %vm12383_vm1  ;;  %vm12422_vm7 = vcmp.lt.s32.totalorder %v5634_v15, 13  ;;  %v2335_v15 = vld [vmem:[%s11061_s4 + $0x58] sm:$0xff] }
 0x3b5   : > { %v8841_v62 = vpop.permute.xlu0 %2794  ;;  %2521 = vmatmul.f32.vlgmr.msrb.gmra.mxu1 %v8292_v18  ;;  %v12395_v18 = vld [vmem:[#allocation177_spill] sm:$0xff]  ;;  %2455 = vmatmul.f32.gmra.mxu3 %v2335_v15 }
 0x3b6   : > { %2588 = vmatpush.msrb.mxu2 %v8150_v58  ;;  %4978 = vmatpush.msk.msra.mxu1 %vm12382_vm8, %v12380_v45  ;;  %v12386_v58 = vld [vmem:[#allocation24_spill] sm:$0xff]  ;;  %v2845_v30 = vsel %vm12396_vm2, %v12395_v18, %v8362_v29  ;;  %v12398_v45 = vld [vmem:[#allocation66_spill] sm:$0xff]  ;;  %vm2157_vm2 = vcmp.ge.s32.totalorder %v12270_v54, 4294967293 }
 0x3b7   : > { %vm12387_vm12 = vnez %v12386_v58 }
 0x3b8   : > { %2589 = vmatpush.msrb.mxu2 %v12384_v47  ;;  %4979 = vmatpush.msk.msra.mxu1 %vm12382_vm8, %v12385_v16  ;;  %v12402_v47 = vld [vmem:[#allocation160_spill] sm:$0xff]  ;;  %vm12406_vm8 = vcmp.lt.s32.totalorder %v5616_v8, 15 }
 0x3b9   : > { %v8881_v16 = vsub.f32 %v12402_v47, %v1649_v39  ;;  %vm12411_vm14 = vmmov %vm12406_vm8  ;;  %v8914_v47 = vld [vmem:[%s11061_s4 + $0x48] sm:$0xff] }
 0x3ba   : > { %5014 = vmatpush.msk.msra.mxu2 %vm12387_vm12, %v2847_v28  ;;  %4980 = vmatpush.msk.msra.mxu1 %vm12390_vm13, %v12388_v6  ;;  %v8871_v22 = vpop.permute.xlu1 %2928  ;;  %v2844_v28 = vsel %vm12401_vm0, %v8393_v51, %v8726_v63  ;;  %v12403_v6 = vld [vmem:[#allocation161_spill] sm:$0xff]  ;;  %v2814_v1 = vsel %vm12411_vm14, %v8337_v4, %v8430_v49  ;;  %vm12412_vm0 = vcmp.ge.s32.totalorder %v5643_v17, 3 }
 0x3bb   : > { %2954 = vrot.lane.b32.xlu2 %v7957_v7, %s12275_s29  ;;  %12397 = vst [vmem:[#allocation46_spill] sm:$0xff] %v8871_v22  ;;  %2409 = vmatmul.f32.gmra.mxu0 %v8914_v47 }
 0x3bc   : > { %5015 = vmatpush.msk.msra.mxu2 %vm12387_vm12, %v2846_v21  ;;  %4981 = vmatpush.msk.msra.mxu1 %vm12390_vm13, %v12394_v32  ;;  %v8884_v21 = vsub.f32 %v12403_v6, %v1649_v39  ;;  %v12405_v32 = vld [vmem:[#allocation75_spill] sm:$0xff]  ;;  %v8900_v39 = vpop.permute.xlu2 %2926 }
 0x3bd   : > { %v8888_v35 = vpop.permute.xlu0 %2800  ;;  %2524 = vmatmul.f32.gmra.mxu1 %v8678_v19  ;;  %12407 = vst [vmem:[#allocation17_spill] sm:$0xff] %v8900_v39  ;;  %v1656_v19 = vmul.f32 %v8881_v16, %v8881_v16  ;;  %2567 = vmatmul.f32.vlgmr.msra.gmra.mxu3 %v8775_v50  ;;  %v12481_v50 = vld [vmem:[#allocation163_spill] sm:$0xff] }
 0x3be   : > { %5016 = vmatpush.msk.msra.mxu2 %vm12387_vm12, %v2845_v30  ;;  %4982 = vmatpush.msk.msra.mxu1 %vm12400_vm15, %v12398_v45  ;;  %12404 = vst [vmem:[#allocation50_spill] sm:$0xff] %v8884_v21  ;;  %v2815_v30 = vsel %vm12406_vm8, %v8797_v56, %v8298_v14  ;;  %v12408_v45 = vld [vmem:[#allocation58_spill] sm:$0xff]  ;;  %v1657_v6 = vmul.f32 %v8884_v21, %v8884_v21  ;;  %vm8926_vm8 = vmand %vm12390_vm13, %vm12412_vm0  ;;  %vm12418_vm0 = vcmp.lt.s32.totalorder %v5616_v8, 99  ;;  %v12473_v21 = vld [vmem:[#allocation87_spill] sm:$0xff] }
 0x3bf   : > { %vm8961_vm13 = vmand %vm7695_vm10, %vm12422_vm7  ;;  %vm12432_vm10 = vcmp.lt.s32.totalorder %v5616_v8, 16  ;;  %vm12435_vm7 = vcmp.lt.s32.totalorder %v5616_v8, 109 }
 0x3c0   : > { %5017 = vmatpush.msk.msra.mxu2 %vm12387_vm12, %v2844_v28  ;;  %4983 = vmatpush.msk.msra.mxu1 %vm12400_vm15, %v12405_v32  ;;  %v12409_v28 = vld [vmem:[#allocation61_spill] sm:$0xff]  ;;  %vm2159_vm15 = vcmp.lt.s32.totalorder %v12270_v54, 13 }
 0x3c1   : > { %vm12410_vm1 = vnez %v12409_v28  ;;  %v12415_v32 = vld [vmem:[#allocation73_spill] sm:$0xff]  ;;  %vm8946_vm12 = vmand %vm2157_vm2, %vm2159_vm15  ;;  %vm12429_vm15 = vcmp.lt.s32.totalorder %v5643_v17, 13 }
 0x3c2   : > { %5018 = vmatpush.msk.msra.mxu2 %vm12229_vm11, %v2815_v30  ;;  %4984 = vmatpush.msk.msra.mxu1 %vm12410_vm1, %v12408_v45  ;;  %v2813_v30 = vsel %vm12411_vm14, %v8491_v27, %v8841_v62  ;;  %v12416_v45 = vld [vmem:[#allocation159_spill] sm:$0xff]  ;;  %vm12428_vm2 = vmmov %vm12418_vm0 }
 0x3c3   : > { %2960 = vrot.lane.b32.xlu2 %v8017_v37, %s12275_s29 }
 0x3c4   : > { %5019 = vmatpush.msk.msra.mxu2 %vm12229_vm11, %v2814_v1  ;;  %4985 = vmatpush.msk.msra.mxu1 %vm12410_vm1, %v12415_v32  ;;  %v12417_v1 = vld [vmem:[#allocation65_spill] sm:$0xff]  ;;  %vm12421_vm1 = vmmov %vm12411_vm14  ;;  %vm2307_vm14 = vcmp.lt.s32.totalorder %v5616_v8, 77  ;;  %v8979_v32 = vpop.permute.xlu1 %2894 }
 0x3c5   : > { %v2105_v58 = vsel %vm12418_vm0, %v12417_v1, %v12416_v45  ;;  %v2812_v28 = vsel %vm12421_vm1, %v8888_v35, %v8373_v3  ;;  %v1661_v45 = vadd.f32 %v1657_v6, %v1656_v19  ;;  %v12427_v1 = vld [vmem:[#allocation166_spill] sm:$0xff]  ;;  %vm8975_vm0 = vmand %vm12306_vm3, %vm12429_vm15  ;;  %v2302_v13 = vpop.permute.xlu0 %2301  ;;  %v2783_v19 = vsel %vm12432_vm10, %v8398_v2, %v8599_v25  ;;  %v12433_v6 = vld [vmem:[#allocation52_spill] sm:$0xff]  ;;  %2570 = vmatmul.f32.gmra.mxu3 %v8914_v47 }
 0x3c6   : > { %5020 = vmatpush.msk.msra.mxu2 %vm12229_vm11, %v2813_v30  ;;  %4986 = vmatpush.msk.msra.mxu1 %vm8926_vm8, %v2105_v58  ;;  %v12426_v58 = vld [vmem:[#allocation54_spill] sm:$0xff]  ;;  %vm12436_vm1 = vmmov %vm12429_vm15  ;;  %v2311_v54 = vsel %vm2307_vm14, %v8696_v20, %v2302_v13  ;;  %vm12449_vm10 = vcmp.ge.s32.totalorder %v5643_v17, 3  ;;  %v12489_v47 = vld [vmem:[#allocation132_spill] sm:$0xff] }
 0x3c7   : > { %v2104_v37 = vsel %vm12428_vm2, %v12427_v1, %v12426_v58  ;;  %vm8995_vm2 = vmand %vm8946_vm12, %vm12436_vm1  ;;  %1662 = vadd.xlane.f32.xlu0 %v1661_v45  ;;  %v2310_v45 = vsel %vm2307_vm14, %v8470_v11, %v8782_v44  ;;  %v12453_v1 = vld [vmem:[#allocation114_spill] sm:$0xff]  ;;  %vm12458_vm1 = vcmp.lt.s32.totalorder %v5616_v8, 16 }
 0x3c8   : > { %5021 = vmatpush.msk.msra.mxu2 %vm12229_vm11, %v2812_v28  ;;  %4987 = vmatpush.msk.msra.mxu1 %vm8926_vm8, %v2104_v37  ;;  %v12434_v28 = vld [vmem:[#allocation179_spill] sm:$0xff]  ;;  %v2309_v37 = vsel %vm2307_vm14, %v2302_v13, %v8696_v20  ;;  %v12440_v20 = vld [vmem:[#allocation38_spill] sm:$0xff]  ;;  %v12441_v13 = vld [vmem:[#allocation77_spill] sm:$0xff] }
 0x3c9   : > { %v2080_v58 = vsel %vm12435_vm7, %v12434_v28, %v12433_v6  ;;  %v2308_v6 = vsel %vm2307_vm14, %v8782_v44, %v8470_v11  ;;  %4912 = vmatpush.msk.msrb.mxu0 %vm8961_vm13, %v2309_v37  ;;  %5010 = vmatpush.msk.msrb.mxu3 %vm8995_vm2, %v2311_v54  ;;  %vm12442_vm8 = vmmov %vm12435_vm7  ;;  %v2330_v28 = vld [vmem:[%s11061_s4 + $0x30] sm:$0xff]  ;;  %v9028_v37 = vpop.permute.xlu2 %2742  ;;  %v12443_v11 = vld [vmem:[#allocation113_spill] sm:$0xff] }
 0x3ca   : > { %5022 = vmatpush.msk.msra.mxu2 %vm12071_vm5, %v2783_v19  ;;  %4988 = vmatpush.msk.msra.mxu1 %vm8975_vm0, %v2080_v58  ;;  %v2079_v19 = vsel %vm12442_vm8, %v12441_v13, %v12440_v20  ;;  %v12444_v44 = vld [vmem:[#allocation111_spill] sm:$0xff]  ;;  %v12446_v58 = vld [vmem:[#allocation78_spill] sm:$0xff]  ;;  %v12447_v54 = vld [vmem:[#allocation80_spill] sm:$0xff] }
 0x3cb   : > { %4913 = vmatpush.msk.msrb.mxu0 %vm8961_vm13, %v2308_v6  ;;  %vm12445_vm14 = vnez %v12444_v44  ;;  %5011 = vmatpush.msk.msrb.mxu3 %vm8995_vm2, %v2310_v45  ;;  %vm12448_vm15 = vnez %v12447_v54  ;;  %vm9046_vm7 = vmand %vm12259_vm9, %vm12449_vm10  ;;  %vm12452_vm13 = vcmask 130048   ;;  %v12454_v45 = vld [vmem:[#allocation88_spill] sm:$0xff]  ;;  %v12455_v20 = vld [vmem:[#allocation69_spill] sm:$0xff]  ;;  %vm12466_vm10 = vcmp.lt.s32.totalorder %v5616_v8, 112 }
 0x3cc   : > { %4989 = vmatpush.msk.msra.mxu1 %vm8975_vm0, %v2079_v19  ;;  %4914 = vmatmul.msk.f32.vlgmr.msrb.gmra.mxu0 %vm12452_vm13, %v2330_v28  ;;  %v12456_v13 = vld [vmem:[#allocation12_spill] sm:$0xff]  ;;  %vm12457_vm0 = vcmp.lt.s32.totalorder %v5616_v8, 19  ;;  %v9072_v44 = vpop.permute.xlu1 %2900  ;;  %v12462_v54 = vld [vmem:[#allocation83_spill] sm:$0xff]  ;;  %vm12470_vm13 = vcmp.lt.s32.totalorder %v5616_v8, 29 }
 0x3cd   : > { %4932 = vmatpush.msk.msra.mxu0 %vm12445_vm14, %v12443_v11  ;;  %v9057_v6 = vpop.permute.xlu0 %2772  ;;  %v1953_v19 = vsel %vm12457_vm0, %v12456_v13, %v12455_v20  ;;  %vm12464_vm8 = vmmov %vm12457_vm0  ;;  %v2337_v13 = vld [vmem:[%s11061_s4 + $0x68] sm:$0xff]  ;;  %vm12475_vm0 = vcmask 130048  }
 0x3ce   : > { %4990 = vmatpush.msk.msra.mxu1 %vm12448_vm15, %v12446_v58  ;;  %v2782_v11 = vsel %vm12458_vm1, %v9057_v6, %v8424_v10  ;;  %v12459_v58 = vld [vmem:[#allocation47_spill] sm:$0xff] }
 0x3cf   : > { %4933 = vmatpush.msk.msra.mxu0 %vm12445_vm14, %v12453_v1  ;;  %v12460_v1 = vld [vmem:[#allocation45_spill] sm:$0xff]  ;;  %5023 = vmatpush.msk.msra.mxu2 %vm12071_vm5, %v2782_v11  ;;  %vm12465_vm14 = vcmp.lt.s32.totalorder %v5643_v17, 13  ;;  %v12467_v11 = vld [vmem:[#allocation51_spill] sm:$0xff] }
 0x3d0   : > { %4991 = vmatpush.msk.msra.mxu1 %vm12448_vm15, %v12454_v45  ;;  %vm12461_vm2 = vnez %v12460_v1  ;;  %v12463_v45 = vld [vmem:[#allocation142_spill] sm:$0xff]  ;;  %vm1934_vm15 = vmand %vm12281_vm6, %vm12465_vm14 }
 0x3d1   : > { %4934 = vmatpush.msk.msra.mxu0 %vm9046_vm7, %v1953_v19  ;;  %v1952_v20 = vsel %vm12464_vm8, %v12463_v45, %v12462_v54  ;;  %v2939_v19 = vsel %vm12466_vm10, %v8900_v39, %v8633_v55  ;;  %v12469_v54 = vld [vmem:[#allocation109_spill] sm:$0xff]  ;;  %vm12479_vm8 = vcmp.lt.s32.totalorder %v5616_v8, 16 }
 0x3d2   : > { %4992 = vmatpush.msk.msra.mxu1 %vm12461_vm2, %v12459_v58  ;;  %v12468_v58 = vld [vmem:[#allocation57_spill] sm:$0xff] }
 0x3d3   : > { %4935 = vmatpush.msk.msra.mxu0 %vm9046_vm7, %v1952_v20  ;;  %v1928_v45 = vsel %vm12470_vm13, %v12469_v54, %v12468_v58  ;;  %v9105_v20 = vpop.permute.xlu2 %2732  ;;  %vm12474_vm7 = vmmov %vm12470_vm13  ;;  %v12476_v58 = vld [vmem:[#allocation115_spill] sm:$0xff]  ;;  %v12477_v54 = vld [vmem:[#allocation116_spill] sm:$0xff] }
 0x3d4   : > { %4993 = vmatpush.msk.msra.mxu1 %vm12461_vm2, %v12467_v11  ;;  %v1927_v55 = vsel %vm12474_vm7, %v12473_v21, %v12472_v46  ;;  %4915 = vmatmul.msk.f32.gmra.mxu0 %vm12475_vm0, %v2337_v13  ;;  %vm12478_vm1 = vnez %v12477_v54  ;;  %v12482_v21 = vld [vmem:[#allocation118_spill] sm:$0xff]  ;;  %vm12493_vm13 = vmmov %vm12475_vm0  ;;  %vm12497_vm7 = vcmp.lt.s32.totalorder %v5616_v8, 17  ;;  %vm12498_vm0 = vcmp.lt.s32.totalorder %v5643_v17, 14 }
 0x3d5   : > { %4936 = vmatpush.msk.msra.mxu0 %vm1934_vm15, %v1928_v45  ;;  %2613 = vmatmul.f32.vlgmr.msra.gmra.mxu1 %v8745_v41  ;;  %v9114_v11 = vpop.permute.xlu0 %2762  ;;  %v9134_v41 = vpop.permute.xlu1 %2898  ;;  %v12483_v45 = vld [vmem:[#allocation119_spill] sm:$0xff] }
 0x3d6   : > { %5030 = vmatpush.msk.msrb.mxu1 %vm5638_vm4, %v2939_v19  ;;  %v9119_v19 = vld [vmem:[%s11061_s4 + $0x60] sm:$0xff]  ;;  %v2781_v46 = vsel %vm12479_vm8, %v8834_v48, %v9114_v11  ;;  %vm12484_vm14 = vnez %v12483_v45  ;;  %v12490_v45 = vld [vmem:[#allocation131_spill] sm:$0xff]  ;;  %5012 = vmatmul.msk.f32.vlgmr.msrb.gmra.mxu3 %vm12493_vm13, %v2330_v28  ;;  %v12499_v28 = vld [vmem:[#allocation40_spill] sm:$0xff]  ;;  %vm12509_vm13 = vcmp.lt.s32.totalorder %v5643_v17, 15 }
 0x3d7   : > { %4937 = vmatpush.msk.msra.mxu0 %vm1934_vm15, %v1927_v55  ;;  %2478 = vmatmul.f32.gmra.mxu2 %v9119_v19  ;;  %v12480_v55 = vld [vmem:[#allocation117_spill] sm:$0xff]  ;;  %vm12487_vm15 = vmmov %vm12479_vm8  ;;  %vm12491_vm10 = vnez %v12490_v45  ;;  %vm12500_vm8 = vnez %v12499_v28  ;;  %v12501_v45 = vld [vmem:[#allocation151_spill] sm:$0xff] }
 0x3d8   : > { %5024 = vmatpush.msk.msra.mxu2 %vm12071_vm5, %v2781_v46 }
 0x3d9   : > { %4938 = vmatpush.msk.msra.mxu0 %vm12478_vm1, %v12476_v58  ;;  %v12485_v58 = vld [vmem:[#allocation121_spill] sm:$0xff] }
 0x3db   : > { %4939 = vmatpush.msk.msra.mxu0 %vm12478_vm1, %v12480_v55  ;;  %2860 = vrot.lane.b32.xlu0 %v12481_v50, %s12242_s27  ;;  %v9145_v46 = vpop.permute.xlu2 %2930  ;;  %v12486_v55 = vld [vmem:[#allocation124_spill] sm:$0xff]  ;;  %vm2290_vm1 = vmand %vm8946_vm12, %vm12498_vm0  ;;  %vm12514_vm0 = vcmask 130048  }
 0x3dd   : > { %4940 = vmatpush.msk.msra.mxu0 %vm12484_vm14, %v12482_v21  ;;  %2616 = vmatmul.f32.gmra.mxu1 %v2335_v15  ;;  %v9147_v54 = vpop.permute.xlu0 %2768  ;;  %v12488_v15 = vld [vmem:[#allocation125_spill] sm:$0xff] }
 0x3de   : > { %v2780_v21 = vsel %vm12487_vm15, %v9147_v54, %v8546_v42  ;;  %vm12505_vm15 = vmmov %vm12497_vm7  ;;  %5013 = vmatmul.msk.f32.gmra.mxu3 %vm12514_vm0, %v2337_v13  ;;  %v12519_v13 = vld [vmem:[#allocation105_spill] sm:$0xff] }
 0x3df   : > { %4941 = vmatpush.msk.msra.mxu0 %vm12484_vm14, %v12485_v58  ;;  %2590 = vmatmul.f32.vlgmr.msrb.gmra.mxu2 %v8565_v57  ;;  %v9167_v58 = vpop.permute.xlu1 %2888  ;;  %vm12503_vm14 = vcmp.lt.s32.totalorder %v5616_v8, 78  ;;  %v2750_v39 = vsel %vm12505_vm15, %v8770_v0, %v9105_v20  ;;  %vm12521_vm15 = vcmp.lt.s32.totalorder %v5616_v8, 80 }
 0x3e0   : > { %5025 = vmatpush.msk.msra.mxu2 %vm12071_vm5, %v2780_v21  ;;  %v12494_v21 = vld [vmem:[#allocation140_spill] sm:$0xff]  ;;  %vm12599_vm5 = vcmp.lt.s32.totalorder %v5616_v8, 127 }
 0x3e1   : > { %4942 = vmatpush.msk.msra.mxu0 %vm12281_vm6, %v12486_v55  ;;  %v12492_v55 = vld [vmem:[#allocation134_spill] sm:$0xff] }
 0x3e3   : > { %4943 = vmatpush.msk.msra.mxu0 %vm12281_vm6, %v12488_v15  ;;  %2858 = vrot.lane.b32.xlu0 %v7957_v7, %s12242_s27  ;;  %vm12496_vm6 = vnez %v12495_v40  ;;  %v12511_v40 = vld [vmem:[#allocation108_spill] sm:$0xff] }
 0x3e5   : > { %4944 = vmatpush.msk.msra.mxu0 %vm12491_vm10, %v12489_v47  ;;  %v9173_v57 = vpop.permute.xlu0 %2734  ;;  %v9187_v47 = vpop.permute.xlu2 %2920 }
 0x3e6   : > { %v2751_v15 = vsel %vm12497_vm7, %v9028_v37, %v9173_v57  ;;  %vm12513_vm7 = vcmp.lt.s32.totalorder %v5616_v8, 79 }
 0x3e7   : > { %4945 = vmatpush.msk.msra.mxu0 %vm12491_vm10, %v12492_v55  ;;  %2593 = vmatmul.f32.gmra.mxu2 %v8780_v33  ;;  %v12502_v55 = vld [vmem:[#allocation143_spill] sm:$0xff]  ;;  %v12506_v33 = vld [vmem:[#allocation146_spill] sm:$0xff]  ;;  %vm12508_vm10 = vmmov %vm12503_vm14 }
 0x3e8   : > { %5026 = vmatpush.msk.msra.mxu2 %vm12500_vm8, %v2751_v15  ;;  %v12507_v15 = vld [vmem:[#allocation104_spill] sm:$0xff] }
 0x3e9   : > { %4946 = vmatpush.msk.msra.mxu0 %vm12496_vm6, %v12494_v21  ;;  %v2286_v21 = vsel %vm12503_vm14, %v12502_v55, %v12501_v45  ;;  %v2285_v45 = vsel %vm12508_vm10, %v12507_v15, %v12506_v33  ;;  %v12512_v55 = vld [vmem:[#allocation102_spill] sm:$0xff]  ;;  %v12515_v33 = vld [vmem:[#allocation107_spill] sm:$0xff]  ;;  %v12516_v15 = vld [vmem:[#allocation100_spill] sm:$0xff] }
 0x3ea   : > { %5027 = vmatpush.msk.msra.mxu2 %vm12500_vm8, %v2750_v39  ;;  %v2261_v39 = vsel %vm12513_vm7, %v12512_v55, %v12511_v40  ;;  %vm12517_vm14 = vmmov %vm12513_vm7  ;;  %vm12528_vm7 = vcmp.lt.s32.totalorder %v5616_v8, 81 }
 0x3eb   : > { %4947 = vmatpush.msk.msra.mxu0 %vm12496_vm6, %v12504_v59  ;;  %2956 = vrot.lane.b32.xlu0 %v12481_v50, %s12275_s29  ;;  %vm2265_vm6 = vmand %vm8946_vm12, %vm12509_vm13  ;;  %v12510_v59 = vld [vmem:[#allocation42_spill] sm:$0xff]  ;;  %v2260_v50 = vsel %vm12517_vm14, %v12516_v15, %v12515_v33  ;;  %v12523_v33 = vld [vmem:[#allocation156_spill] sm:$0xff]  ;;  %vm12525_vm13 = vcmp.ge.s32.totalorder %v5643_v17, 1 }
 0x3ec   : > { %2544 = vmatmul.f32.vlgmr.msra.gmra.mxu0 %v12510_v59  ;;  %v12520_v59 = vld [vmem:[#allocation169_spill] sm:$0xff]  ;;  %vm12524_vm10 = vmmov %vm12521_vm15  ;;  %v12526_v15 = vld [vmem:[#allocation158_spill] sm:$0xff] }
 0x3ed   : > { %4994 = vmatpush.msk.msrb.mxu0 %vm2290_vm1, %v2286_v21  ;;  %v9220_v21 = vpop.permute.xlu1 %2896  ;;  %v9222_v7 = vpop.permute.xlu0 %2932  ;;  %v2236_v40 = vsel %vm12521_vm15, %v12520_v59, %v12519_v13  ;;  %vm12531_vm0 = vmmov %vm12528_vm7 }
 0x3ee   : > { %v9238_v55 = vpop.permute.xlu2 %2736 }
 0x3ef   : > { %4995 = vmatpush.msk.msrb.mxu0 %vm2290_vm1, %v2285_v45  ;;  %vm12518_vm1 = vcmp.lt.s32.totalorder %v5616_v8, 112 }
 0x3f0   : > { %v2938_v45 = vsel %vm12518_vm1, %v8706_v23, %v9222_v7  ;;  %vm12532_vm14 = vmmov %vm12518_vm1  ;;  %vm12533_vm1 = vcmp.ge.s32.totalorder %v5643_v17, 2 }
 0x3f1   : > { %4996 = vmatpush.msk.msrb.mxu0 %vm2265_vm6, %v2261_v39  ;;  %5031 = vmatpush.msk.msrb.mxu1 %vm5638_vm4, %v2938_v45  ;;  %v12522_v39 = vld [vmem:[#allocation174_spill] sm:$0xff]  ;;  %vm2188_vm15 = vmand %vm8946_vm12, %vm12533_vm1 }
 0x3f2   : > { %v12527_v45 = vld [vmem:[#allocation154_spill] sm:$0xff] }
 0x3f3   : > { %4997 = vmatpush.msk.msrb.mxu0 %vm2265_vm6, %v2260_v50  ;;  %2856 = vrot.lane.b32.xlu0 %v8015_v26, %s12242_s27  ;;  %v2235_v50 = vsel %vm12524_vm10, %v12523_v33, %v12522_v39  ;;  %vm2213_vm6 = vmand %vm8946_vm12, %vm12525_vm13  ;;  %v2211_v13 = vsel %vm12528_vm7, %v12527_v45, %v12526_v15  ;;  %v12530_v39 = vld [vmem:[#allocation157_spill] sm:$0xff]  ;;  %v12534_v15 = vld [vmem:[#allocation170_spill] sm:$0xff]  ;;  %vm12536_vm10 = vcmp.lt.s32.totalorder %v5616_v8, 82  ;;  %vm12541_vm7 = vcmp.ge.s32.totalorder %v5643_v17, 3 }
 0x3f4   : > { %2547 = vmatmul.f32.gmra.mxu0 %v8506_v5  ;;  %v12535_v45 = vld [vmem:[#allocation162_spill] sm:$0xff]  ;;  %vm12537_vm13 = vmmov %vm12532_vm14 }
 0x3f5   : > { %4998 = vmatpush.msk.msrb.mxu0 %vm8946_vm12, %v2236_v40  ;;  %v9259_v59 = vpop.permute.xlu0 %2922  ;;  %v12529_v40 = vld [vmem:[#allocation164_spill] sm:$0xff] }
 0x3f6   : > { %v2210_v33 = vsel %vm12531_vm0, %v12530_v39, %v12529_v40  ;;  %v2937_v5 = vsel %vm12532_vm14, %v9259_v59, %v9145_v46  ;;  %v2936_v40 = vsel %vm12537_vm13, %v9187_v47, %v8871_v22  ;;  %v12538_v39 = vld [vmem:[#allocation60_spill] sm:$0xff]  ;;  %vm2163_vm0 = vmand %vm8946_vm12, %vm12541_vm7  ;;  %vm12544_vm14 = vcmp.lt.s32.totalorder %v5616_v8, 83  ;;  %v12557_v22 = vld [vmem:[#allocation127_spill] sm:$0xff] }
 0x3f7   : > { %4999 = vmatpush.msk.msrb.mxu0 %vm8946_vm12, %v2235_v50  ;;  %v9273_v50 = vpop.permute.xlu1 %2862  ;;  %5032 = vmatpush.msk.msrb.mxu1 %vm5638_vm4, %v2937_v5  ;;  %vm12546_vm1 = vmmov %vm12544_vm14  ;;  %vm12547_vm12 = vcmp.lt.s32.totalorder %v5616_v8, 17 }
 0x3f9   : > { %5000 = vmatpush.msk.msrb.mxu0 %vm2213_vm6, %v2211_v13  ;;  %v2186_v13 = vsel %vm12536_vm10, %v12535_v45, %v12534_v15  ;;  %5033 = vmatpush.msk.msrb.mxu1 %vm5638_vm4, %v2936_v40  ;;  %v9297_v15 = vpop.permute.xlu2 %2892  ;;  %v12542_v45 = vld [vmem:[#allocation16_spill] sm:$0xff] }
 0x3fb   : > { %5001 = vmatpush.msk.msrb.mxu0 %vm2213_vm6, %v2210_v33  ;;  %2962 = vrot.lane.b32.xlu0 %v7900_v31, %s12275_s29  ;;  %v12539_v33 = vld [vmem:[#allocation171_spill] sm:$0xff]  ;;  %vm12540_vm6 = vmmov %vm12536_vm10  ;;  %v12545_v31 = vld [vmem:[#allocation74_spill] sm:$0xff]  ;;  %vm12549_vm10 = vnez %v12389_v34 }
 0x3fc   : > { %v2185_v5 = vsel %vm12540_vm6, %v12539_v33, %v12538_v39  ;;  %v2154_v39 = vsel %vm12546_vm1, %v12545_v31, %v8405_v9  ;;  %v12550_v33 = vld [vmem:[#allocation82_spill] sm:$0xff]  ;;  %vm12552_vm6 = vcmp.lt.s32.totalorder %v5616_v8, 93  ;;  %vm12561_vm1 = vcmp.lt.s32.totalorder %v5616_v8, 1 }
 0x3fd   : > { %5002 = vmatpush.msk.msrb.mxu0 %vm2188_vm15, %v2186_v13  ;;  %v12543_v13 = vld [vmem:[#allocation36_spill] sm:$0xff]  ;;  %v9303_v30 = vpop.permute.xlu0 %2738  ;;  %v12553_v9 = vld [vmem:[#allocation178_spill] sm:$0xff]  ;;  %vm12555_vm7 = vmmov %vm12552_vm6 }
 0x3fe   : > { %v2155_v40 = vsel %vm12544_vm14, %v12543_v13, %v12542_v45  ;;  %v2749_v43 = vsel %vm12547_vm12, %v9303_v30, %v8828_v38  ;;  %v12554_v13 = vld [vmem:[#allocation90_spill] sm:$0xff]  ;;  %vm12559_vm14 = vmmov %vm12547_vm12 }
 0x3ff   : > { %5003 = vmatpush.msk.msrb.mxu0 %vm2188_vm15, %v2185_v5  ;;  %vm12548_vm15 = vcmp.lt.s32.totalorder %v5643_v17, 13  ;;  %5028 = vmatpush.msk.msra.mxu2 %vm12500_vm8, %v2749_v43  ;;  %v12551_v5 = vld [vmem:[#allocation48_spill] sm:$0xff]  ;;  %v9323_v31 = vpop.permute.xlu1 %2870  ;;  %v2129_v17 = vsel %vm12555_vm7, %v12554_v13, %v12553_v9  ;;  %v12571_v13 = vld [vmem:[#allocation33_spill] sm:$0xff] }
 0x400   : > { %vm2134_vm13 = vmand %vm12549_vm10, %vm12548_vm15  ;;  %v2130_v45 = vsel %vm12552_vm6, %v12551_v5, %v12550_v33  ;;  %v12560_v33 = vld [vmem:[#allocation136_spill] sm:$0xff]  ;;  %v2843_v5 = vsel %vm12561_vm1, %v8579_v61, %v8314_v12  ;;  %vm12567_vm6 = vcmp.lt.s32.totalorder %v5616_v8, 113 }
 0x401   : > { %5004 = vmatpush.msk.msrb.mxu0 %vm2163_vm0, %v2155_v40  ;;  %v9329_v34 = vpop.permute.xlu2 %2890  ;;  %vm12564_vm15 = vmmov %vm12561_vm1 }
 0x402   : > { %v2842_v9 = vsel %vm12564_vm15, %v12391_v24, %v8662_v36  ;;  %vm12565_vm10 = vmmov %vm12561_vm1 }
 0x403   : > { %5005 = vmatpush.msk.msrb.mxu0 %vm2163_vm0, %v2154_v39  ;;  %v12556_v39 = vld [vmem:[#allocation129_spill] sm:$0xff]  ;;  %vm12558_vm0 = vnez %v12557_v22  ;;  %v2841_v12 = vsel %vm12565_vm10, %v8362_v29, %v12395_v18  ;;  %v12568_v29 = vld [vmem:[#allocation10_spill] sm:$0xff] }
 0x404   : > { %vm12569_vm7 = vnez %v12568_v29 }
 0x405   : > { %5006 = vmatpush.msk.msrb.mxu0 %vm2134_vm13, %v2130_v45  ;;  %v2729_v40 = vpop.permute.xlu0 %2728  ;;  %v12562_v45 = vld [vmem:[#allocation25_spill] sm:$0xff] }
 0x406   : > { %v2748_v43 = vsel %vm12559_vm14, %v9238_v55, %v2729_v40  ;;  %vm12563_vm12 = vnez %v12562_v45  ;;  %vm12572_vm14 = vnez %v12571_v13 }
 0x407   : > { %5007 = vmatpush.msk.msrb.mxu0 %vm2134_vm13, %v2129_v17  ;;  %5029 = vmatpush.msk.msra.mxu2 %vm12500_vm8, %v2748_v43  ;;  %v9353_v22 = vpop.permute.xlu1 %2868  ;;  %vm12566_vm13 = vmmov %vm12561_vm1 }
 0x408   : > { %v2840_v36 = vsel %vm12566_vm13, %v8726_v63, %v8393_v51  ;;  %vm12573_vm1 = vmmov %vm12567_vm6 }
 0x409   : > { %5008 = vmatpush.msk.msrb.mxu0 %vm12558_vm0, %v12556_v39  ;;  %v2906_v51 = vsel %vm12573_vm1, %v9297_v15, %v9072_v44  ;;  %vm12575_vm10 = vmmov %vm12573_vm1 }
 0x40b   : > { %5009 = vmatpush.msk.msrb.mxu0 %vm12558_vm0, %v12560_v33  ;;  %vm12570_vm0 = vcmp.lt.s32.totalorder %v5616_v8, 15  ;;  %v12584_v33 = vld [vmem:[#allocation18_spill] sm:$0xff] }
 0x40c   : > { %2636 = vmatmul.f32.vlgmr.msrb.gmra.mxu0 %v8650_v60  ;;  %v2811_v18 = vsel %vm12570_vm0, %v8298_v14, %v8797_v56  ;;  %vm12574_vm15 = vmmov %vm12570_vm0  ;;  %v2905_v14 = vsel %vm12575_vm10, %v9329_v34, %v9134_v41 }
 0x40d   : > { %5048 = vmatpush.msk.msra.mxu0 %vm12563_vm12, %v2843_v5  ;;  %v2810_v63 = vsel %vm12574_vm15, %v8430_v49, %v8337_v4  ;;  %vm12576_vm13 = vmmov %vm12570_vm0  ;;  %vm12578_vm0 = vcmp.lt.s32.totalorder %v5616_v8, 111 }
 0x40e   : > { %v1660_v61 = vpop.xlane.xlu2 %1659  ;;  %v2809_v56 = vsel %vm12576_vm13, %v8841_v62, %v8491_v27  ;;  %vm12580_vm15 = vmmov %vm12576_vm13  ;;  %v12581_v62 = vld [vmem:[#allocation44_spill] sm:$0xff]  ;;  %vm12583_vm13 = vcmp.lt.s32.totalorder %v5616_v8, 127 }
 0x40f   : > { %5049 = vmatpush.msk.msra.mxu0 %vm12563_vm12, %v2842_v9  ;;  %v9363_v60 = vpop.permute.xlu0 %2902  ;;  %v2808_v27 = vsel %vm12580_vm15, %v8373_v3, %v8888_v35  ;;  %vm12582_vm10 = vnez %v12581_v62  ;;  %v2875_v43 = vsel %vm12583_vm13, %v9273_v50, %v9323_v31 }
 0x410   : > { %v2907_v24 = vsel %vm12567_vm6, %v8979_v32, %v9363_v60  ;;  %vm12577_vm6 = vmmov %vm12573_vm1 }
 0x411   : > { %5050 = vmatpush.msk.msra.mxu0 %vm12563_vm12, %v2841_v12  ;;  %5034 = vmatpush.msk.msrb.mxu1 %vm12569_vm7, %v2907_v24  ;;  %v2904_v49 = vsel %vm12577_vm6, %v9167_v58, %v9220_v21  ;;  %vm12579_vm1 = vmmov %vm12578_vm0  ;;  %vm12585_vm6 = vnez %v12584_v33 }
 0x413   : > { %5051 = vmatpush.msk.msra.mxu0 %vm12563_vm12, %v2840_v36  ;;  %5035 = vmatpush.msk.msrb.mxu1 %vm12569_vm7, %v2906_v51  ;;  %v9505_v51 = vpop.f32.mrf.mxu2 }
 0x414   : > { %2639 = vmatmul.f32.gmra.mxu0 %v9119_v19  ;;  %v2959_v19 = vpop.permute.xlu1 %2958 }
 0x415   : > { %5052 = vmatpush.msk.msra.mxu0 %vm12572_vm14, %v2811_v18  ;;  %5036 = vmatpush.msk.msrb.mxu1 %vm12569_vm7, %v2905_v14 }
 0x416   : > { %v2967_v4 = vpop.permute.xlu2 %2966 }
 0x417   : > { %5053 = vmatpush.msk.msra.mxu0 %vm12572_vm14, %v2810_v63  ;;  %v2971_v17 = vsel %vm12578_vm0, %v2959_v19, %v2967_v4  ;;  %v2975_v39 = vsel %vm12579_vm1, %v2967_v4, %v2959_v19  ;;  %5037 = vmatpush.msk.msrb.mxu1 %vm12569_vm7, %v2904_v49  ;;  %vm12586_vm0 = vcmp.lt.s32.totalorder %v5616_v8, 16  ;;  %v9515_v49 = vpop.f32.mrf.mxu1 }
 0x418   : > { %5042 = vmatpush.msk.msra.mxu3 %vm12582_vm10, %v2971_v17  ;;  %5076 = vmatpush.msk.msrb.mxu2 %vm12461_vm2, %v2975_v39  ;;  %v2779_v3 = vsel %vm12586_vm0, %v8599_v25, %v8398_v2  ;;  %vm12587_vm1 = vmmov %vm12586_vm0  ;;  %v12591_v25 = vld [vmem:[#allocation41_spill] sm:$0xff] }
 0x419   : > { %5054 = vmatpush.msk.msra.mxu0 %vm12572_vm14, %v2809_v56  ;;  %5038 = vmatpush.msk.msrb.mxu1 %vm12585_vm6, %v2875_v43  ;;  %v2778_v35 = vsel %vm12587_vm1, %v8424_v10, %v9057_v6  ;;  %vm12588_vm15 = vmmov %vm12586_vm0  ;;  %vm12592_vm1 = vnez %v12591_v25  ;;  %v12604_v25 = vld [vmem:[#allocation172_spill] sm:$0xff] }
 0x41a   : > { %v2777_v5 = vsel %vm12588_vm15, %v9114_v11, %v8834_v48  ;;  %vm12589_vm13 = vmmov %vm12586_vm0  ;;  %vm12590_vm0 = vcmp.lt.s32.totalorder %v5616_v8, 17 }
 0x41b   : > { %5055 = vmatpush.msk.msra.mxu0 %vm12572_vm14, %v2808_v27  ;;  %v2776_v2 = vsel %vm12589_vm13, %v8546_v42, %v9147_v54  ;;  %v2747_v10 = vsel %vm12590_vm0, %v9173_v57, %v9028_v37  ;;  %vm12593_vm15 = vmmov %vm12590_vm0  ;;  %v2744_v37 = vsel %vm12590_vm0, %v2729_v40, %v9238_v55  ;;  %v9486_v54 = vpop.f32.mrf.mxu3  ;;  %v2987_v57 = vld [vmem:[%s11064_s7 + $0x18] sm:$0xff] }
 0x41c   : > { %v2746_v48 = vsel %vm12593_vm15, %v9105_v20, %v8770_v0  ;;  %vm12594_vm13 = vmmov %vm12590_vm0  ;;  %v2984_v20 = vld [vmem:[%s11064_s7] sm:$0xff]  ;;  %vm12595_vm15 = vcmp.lt.s32.totalorder %v5616_v8, 127  ;;  %v9501_v24 = vpop.permute.xlu1 %2866  ;;  %vm12597_vm0 = vcmp.lt.s32.totalorder %v5616_v8, 111 }
 0x41d   : > { %5056 = vmatpush.msk.msra.mxu0 %vm12259_vm9, %v2779_v3  ;;  %v2745_v42 = vsel %vm12594_vm13, %v8828_v38, %v9303_v30  ;;  %3013 = vmatmul.f32.vlgmr.msra.gmra.mxu2 %v2984_v20  ;;  %v1664_v38 = vmul.f32 %v1660_v61, %v7257_v53  ;;  %vm12596_vm13 = vmmov %vm12595_vm15 }
 0x41f   : > { %5057 = vmatpush.msk.msra.mxu0 %vm12259_vm9, %v2778_v35  ;;  %v1666_v11 = vadd.f32 1e-05, %v1664_v38 }
 0x421   : > { %5058 = vmatpush.msk.msra.mxu0 %vm12259_vm9, %v2777_v5  ;;  %v9521_v5 = vpop.f32.mrf.mxu2 }
 0x423   : > { %5059 = vmatpush.msk.msra.mxu0 %vm12259_vm9, %v2776_v2  ;;  %v9503_v18 = vpop.f32.mrf.mxu3 }
 0x424   : > { %v2965_v43 = vpop.permute.xlu1 %2964 }
 0x425   : > { %5060 = vmatpush.msk.msra.mxu0 %vm12592_vm1, %v2747_v10  ;;  %3016 = vmatmul.f32.gmra.mxu2 %v2987_v57 }
 0x427   : > { %5061 = vmatpush.msk.msra.mxu0 %vm12592_vm1, %v2746_v48 }
 0x428   : > { %v9491_v55 = vpop.f32.mrf.mxu0 }
 0x429   : > { %5062 = vmatpush.msk.msra.mxu0 %vm12592_vm1, %v2745_v42 }
 0x42b   : > { %5063 = vmatpush.msk.msra.mxu0 %vm12592_vm1, %v2744_v37  ;;  %v9519_v35 = vpop.f32.mrf.mxu3 }
 0x42c   : > { %3082 = vmatmul.f32.vlgmr.msra.gmra.mxu0 %v2984_v20  ;;  %v2955_v20 = vpop.permute.xlu2 %2954 }
 0x434   : > { %3085 = vmatmul.f32.gmra.mxu0 %v2987_v57 }
 0x438   : > { %v9507_v56 = vpop.f32.mrf.mxu0 }
 0x43a   : > { %v1663_v6 = vpop.xlane.xlu0 %1662 }
 0x43b   : > { %v1665_v0 = vmul.f32 %v1663_v6, %v7257_v53 }
 0x43d   : > { %v1667_v30 = vadd.f32 1e-05, %v1665_v0  ;;  %v9533_v0 = vpop.f32.mrf.mxu1 }
 0x43f   : > { %5312 = vrsqrt.f32 %v1667_v30  ;;  %vm1684_vm1 = vweird.f32 %v1667_v30 }
 0x440   : > { %5314 = vrsqrt.f32 %v1666_v11 }
 0x445   : > { %v5313_v40 = vpop.eup %5312 }
 0x446   : > { %v5315_v61 = vpop.eup %5314  ;;  %v1679_v36 = vmul.f32 %v5313_v40, %v1667_v30 }
 0x447   : > { %v1669_v63 = vmul.f32 %v5315_v61, %v1666_v11  ;;  %vm1675_vm8 = vweird.f32 %v5315_v61 }
 0x448   : > { %v1680_v14 = vmul.f32 %v5313_v40, %v1679_v36 }
 0x449   : > { %v1670_v17 = vmul.f32 %v5315_v61, %v1669_v63  ;;  %v9527_v42 = vpop.f32.mrf.mxu0 }
 0x44a   : > { %v1681_v39 = vmul.f32 0.5, %v1680_v14  ;;  %v9543_v14 = vpop.f32.mrf.mxu3 }
 0x44b   : > { %v1671_v27 = vmul.f32 0.5, %v1670_v17  ;;  %v12600_v17 = vld [vmem:[#allocation167_spill] sm:$0xff] }
 0x44c   : > { %v1682_v3 = vsub.f32 1.5, %v1681_v39  ;;  %v12601_v39 = vld [vmem:[#allocation99_spill] sm:$0xff] }
 0x44d   : > { %v9493_v9 = vpop.permute.xlu0 %2860  ;;  %v1672_v37 = vsub.f32 1.5, %v1671_v27 }
 0x44e   : > { %v2874_v12 = vsel %vm12595_vm15, %v9493_v9, %v9353_v22  ;;  %vm12598_vm15 = vmmov %vm12597_vm0  ;;  %v1683_v6 = vmul.f32 %v5313_v40, %v1682_v3  ;;  %v12602_v3 = vld [vmem:[#allocation163_spill] sm:$0xff] }
 0x44f   : > { %5039 = vmatpush.msk.msrb.mxu1 %vm12585_vm6, %v2874_v12  ;;  %v1673_v38 = vmul.f32 %v5315_v61, %v1672_v37  ;;  %v9535_v12 = vpop.permute.xlu1 %2864  ;;  %v2961_v37 = vpop.permute.xlu2 %2960 }
 0x455   : > { %v9509_v19 = vpop.permute.xlu0 %2858 }
 0x456   : > { %v2873_v4 = vsel %vm12596_vm13, %v9509_v19, %v9501_v24  ;;  %vm1685_vm13 = vweird.f32 %v5313_v40 }
 0x457   : > { %5040 = vmatpush.msk.msrb.mxu1 %vm12585_vm6, %v2873_v4  ;;  %v9545_v4 = vpop.f32.mrf.mxu2 }
 0x45d   : > { %v2957_v2 = vpop.permute.xlu0 %2956 }
 0x45e   : > { %v2970_v10 = vsel %vm12597_vm0, %v2957_v2, %v2965_v43  ;;  %v2974_v48 = vsel %vm12598_vm15, %v2965_v43, %v2957_v2  ;;  %vm1686_vm0 = vmor %vm1684_vm1, %vm1685_vm13  ;;  %vm1674_vm15 = vweird.f32 %v1666_v11  ;;  %v2522_v43 = vpop.f32.mrf.mxu1 }
 0x45f   : > { %5043 = vmatpush.msk.msra.mxu3 %vm12582_vm10, %v2970_v10  ;;  %5077 = vmatpush.msk.msrb.mxu2 %vm12461_vm2, %v2974_v48  ;;  %v1687_v57 = vsel %vm1686_vm0, %v5313_v40, %v1683_v6  ;;  %vm1676_vm9 = vmor %vm1674_vm15, %vm1675_vm8  ;;  %v9550_v40 = vpop.f32.mrf.mxu0  ;;  %v12603_v10 = vld [vmem:[#allocation50_spill] sm:$0xff]  ;;  %vm11597_vm0 = vcmask 261120  }
 0x460   : > { %v1690_v30 = vmul.f32 %v1687_v57, %v8881_v16  ;;  %v1677_v11 = vsel %vm1676_vm9, %v5315_v61, %v1673_v38  ;;  %v1691_v48 = vmul.f32 %v1687_v57, %v12603_v10  ;;  %vm12606_vm9 = vcmp.lt.s32.totalorder %v5616_v8, 111  ;;  %v2953_v57 = vpop.permute.xlu1 %2952  ;;  %v2986_v10 = vld [vmem:[%s11064_s7 + $0x10] sm:$0xff] }
 0x461   : > { %v1688_v27 = vmul.f32 %v1677_v11, %v12601_v39  ;;  %vm12607_vm8 = vmmov %vm12606_vm9  ;;  %v9565_v39 = vld [vmem:[%s11064_s7 + $0x8] sm:$0xff] }
 0x462   : > { %v1698_v2 = vmul.f32 0.2, %v1690_v30  ;;  %vm12608_vm13 = vmmov %vm12607_vm8  ;;  %vm1695_vm15 = vcmp.ge.f32.partialorder %v1691_v48, 0.0 }
 0x463   : > { %vm1692_vm1 = vcmp.ge.f32.partialorder %v1688_v27, 0.0 }
 0x465   : > { %v9537_v36 = vpop.permute.xlu0 %2856 }
 0x466   : > { %v2872_v63 = vsel %vm12599_vm5, %v9537_v36, %v9535_v12  ;;  %vm1694_vm5 = vcmp.ge.f32.partialorder %v1690_v30, 0.0 }
 0x467   : > { %5041 = vmatpush.msk.msrb.mxu1 %vm12585_vm6, %v2872_v63  ;;  %v12605_v63 = vld [vmem:[#allocation96_spill] sm:$0xff] }
 0x468   : > { %v1689_v16 = vmul.f32 %v1677_v11, %v12605_v63  ;;  %v1699_v11 = vmul.f32 0.2, %v1691_v48  ;;  %v9577_v63 = vpop.f32.mrf.mxu2 }
 0x469   : > { %3032 = vmatpush.msrb.mxu1 %v12600_v17  ;;  %v1696_v17 = vmul.f32 0.2, %v1688_v27  ;;  %v2545_v28 = vpop.f32.mrf.mxu0 }
 0x46b   : > { %3033 = vmatpush.msrb.mxu1 %v12602_v3  ;;  %v1702_v3 = vsel %vm1694_vm5, %v1690_v30, %v1698_v2  ;;  %v12610_v30 = vld [vmem:[#allocation103_spill] sm:$0xff]  ;;  %vm12611_vm5 = vcmp.lt.s32.totalorder %v5616_v8, 112 }
 0x46d   : > { %v2963_v6 = vpop.permute.xlu0 %2962  ;;  %3034 = vmatpush.msrb.mxu1 %v12604_v25  ;;  %v1700_v25 = vsel %vm1692_vm1, %v1688_v27, %v1696_v17  ;;  %v2525_v27 = vpop.f32.mrf.mxu1  ;;  %vm12615_vm1 = vmmov %vm12611_vm5 }
 0x46e   : > { %v2969_v61 = vsel %vm12606_vm9, %v2955_v20, %v2963_v6  ;;  %v2973_v38 = vsel %vm12607_vm8, %v2963_v6, %v2955_v20  ;;  %v2968_v20 = vsel %vm12608_vm13, %v2953_v57, %v2961_v37  ;;  %v2568_v6 = vpop.f32.mrf.mxu3  ;;  %vm12612_vm9 = vmmov %vm12607_vm8  ;;  %vm1693_vm8 = vcmp.ge.f32.partialorder %v1689_v16, 0.0 }
 0x46f   : > { %3035 = vmatpush.msrb.mxu1 %v8015_v26  ;;  %5044 = vmatpush.msk.msra.mxu3 %vm12582_vm10, %v2969_v61  ;;  %v12609_v61 = vld [vmem:[#allocation17_spill] sm:$0xff]  ;;  %vm12614_vm13 = vmmov %vm12611_vm5  ;;  %v4153_v26 = vld [vmem:[%s11066_s9] sm:$0xff] }
 0x470   : > { %5078 = vmatpush.msk.msrb.mxu2 %vm12461_vm2, %v2973_v38  ;;  %v2943_v2 = vsel %vm12611_vm5, %v12610_v30, %v12609_v61  ;;  %v2972_v38 = vsel %vm12612_vm9, %v2961_v37, %v2953_v57  ;;  %3036 = vmatmul.f32.vlgmr.msrb.gmra.mxu1 %v9565_v39  ;;  %v2385_v61 = vadd.f32 %v9505_v51, %v9486_v54  ;;  %v12616_v51 = vld [vmem:[#allocation46_spill] sm:$0xff]  ;;  %vm12618_vm5 = vcmp.lt.s32.totalorder %v5616_v8, 113 }
 0x471   : > { %3219 = vmatpush.msra.mxu1 %v1702_v3  ;;  %5045 = vmatpush.msk.msra.mxu3 %vm12582_vm10, %v2968_v20  ;;  %v1697_v3 = vmul.f32 0.2, %v1689_v16  ;;  %v1703_v37 = vsel %vm1695_vm15, %v1691_v48, %v1699_v11  ;;  %v2942_v57 = vsel %vm12614_vm13, %v9222_v7, %v8706_v23  ;;  %v2941_v54 = vsel %vm12615_vm1, %v9145_v46, %v9259_v59  ;;  %v9613_v7 = vld [vmem:[%s11064_s7 + $0x20] sm:$0xff]  ;;  %vm12617_vm15 = vmmov %vm12615_vm1  ;;  %v2989_v46 = vld [vmem:[%s11064_s7 + $0x28] sm:$0xff] }
 0x472   : > { %5079 = vmatpush.msk.msrb.mxu2 %vm12461_vm2, %v2972_v38  ;;  %5046 = vmatmul.msk.f32.vlgmr.msra.gmra.mxu3 %vm11597_vm0, %v2986_v10  ;;  %v2408_v23 = vadd.f32 %v9491_v55, %v2385_v61  ;;  %v2940_v48 = vsel %vm12617_vm15, %v12616_v51, %v9187_v47  ;;  %v2911_v59 = vsel %vm12618_vm5, %v9363_v60, %v8979_v32  ;;  %v12619_v55 = vld [vmem:[#allocation11_spill] sm:$0xff]  ;;  %v2548_v60 = vpop.f32.mrf.mxu0  ;;  %vm12622_vm13 = vmmov %vm12618_vm5  ;;  %vm12624_vm15 = vcmp.lt.s32.totalorder %v5616_v8, 127 }
 0x473   : > { %5064 = vmatpush.msk.msrb.mxu3 %vm12306_vm3, %v2943_v2  ;;  %5080 = vmatmul.msk.f32.vlgmr.msrb.gmra.mxu2 %vm11597_vm0, %v2986_v10  ;;  %v1701_v17 = vsel %vm1693_vm8, %v1689_v16, %v1697_v3  ;;  %vm12620_vm9 = vnez %v12619_v55  ;;  %vm12621_vm8 = vmmov %vm12618_vm5 }
 0x474   : > { %3220 = vmatpush.msra.mxu1 %v1700_v25  ;;  %3242 = vmatpush.msra.mxu2 %v1703_v37  ;;  %v2546_v25 = vadd.f32 %v2545_v28, %v2522_v43  ;;  %v2388_v28 = vadd.f32 %v9521_v5, %v9503_v18  ;;  %v2591_v43 = vpop.f32.mrf.mxu2  ;;  %v2431_v16 = vadd.f32 %v9515_v49, %v2408_v23  ;;  %vm12623_vm1 = vmmov %vm12618_vm5  ;;  %vm12625_vm5 = vcmask 130048  }
 0x475   : > { %5065 = vmatpush.msk.msrb.mxu3 %vm12306_vm3, %v2942_v57  ;;  %v2910_v32 = vsel %vm12621_vm8, %v9072_v44, %v9297_v15  ;;  %v2909_v18 = vsel %vm12622_vm13, %v9134_v41, %v9329_v34  ;;  %v2614_v5 = vpop.f32.mrf.mxu1  ;;  %v2549_v44 = vadd.f32 %v2548_v60, %v2525_v27  ;;  %v2908_v15 = vsel %vm12623_vm1, %v9220_v21, %v9167_v58  ;;  %v3197_v41 = vld [vmem:[%s11062_s5] sm:$0xff]  ;;  %vm12628_vm13 = vmmov %vm12625_vm5 }
 0x476   : > { %3243 = vmatpush.msra.mxu2 %v1701_v17  ;;  %v2571_v47 = vpop.f32.mrf.mxu3  ;;  %v2569_v11 = vadd.f32 %v2568_v6, %v2546_v25  ;;  %v2411_v49 = vadd.f32 %v9507_v56, %v2388_v28  ;;  %v2454_v20 = vadd.f32 %v9519_v35, %v2431_v16  ;;  %v2879_v34 = vsel %vm12624_vm15, %v9323_v31, %v9273_v50  ;;  %v12626_v35 = vld [vmem:[#allocation19_spill] sm:$0xff]  ;;  %vm12629_vm1 = vmmov %vm12624_vm15  ;;  %v12636_v25 = vld [vmem:[#allocation176_spill] sm:$0xff] }
 0x477   : > { %5066 = vmatpush.msk.msrb.mxu3 %vm12306_vm3, %v2941_v54  ;;  %vm12627_vm8 = vnez %v12626_v35  ;;  %v2572_v21 = vadd.f32 %v2571_v47, %v2549_v44  ;;  %v2878_v6 = vsel %vm12629_vm1, %v9353_v22, %v9493_v9  ;;  %vm12630_vm15 = vmmov %vm12629_vm1 }
 0x478   : > { %3039 = vmatmul.f32.gmra.mxu1 %v9613_v7  ;;  %v2592_v10 = vadd.f32 %v2591_v43, %v2569_v11  ;;  %v2434_v56 = vadd.f32 %v9533_v0, %v2411_v49  ;;  %v2477_v58 = vadd.f32 %v9545_v4, %v2454_v20  ;;  %v2877_v0 = vsel %vm12630_vm15, %v9501_v24, %v9509_v19  ;;  %v3198_v24 = vld [vmem:[%s11062_s5 + $0x8] sm:$0xff] }
 0x479   : > { %5067 = vmatpush.msk.msrb.mxu3 %vm12306_vm3, %v2940_v48 }
 0x47a   : > { %5047 = vmatmul.msk.f32.gmra.mxu3 %vm11597_vm0, %v2989_v46  ;;  %v2615_v30 = vadd.f32 %v2614_v5, %v2592_v10  ;;  %v2457_v4 = vadd.f32 %v9543_v14, %v2434_v56  ;;  %v2500_v38 = vadd.f32 %v9527_v42, %v2477_v58  ;;  %v12632_v14 = vld [vmem:[#allocation168_spill] sm:$0xff] }
 0x47b   : > { %5068 = vmatpush.msk.msrb.mxu3 %vm12620_vm9, %v2911_v59  ;;  %5081 = vmatmul.msk.f32.gmra.mxu2 %vm11597_vm0, %v2989_v46 }
 0x47c   : > { %v2594_v31 = vpop.f32.mrf.mxu2  ;;  %v2480_v42 = vadd.f32 %v9577_v63, %v2457_v4 }
 0x47d   : > { %5069 = vmatpush.msk.msrb.mxu3 %vm12620_vm9, %v2910_v32  ;;  %v2595_v3 = vadd.f32 %v2594_v31, %v2572_v21  ;;  %v2617_v61 = vpop.f32.mrf.mxu1 }
 0x47e   : > { %v2660_v50 = vpop.f32.mrf.mxu3  ;;  %v2503_v54 = vadd.f32 %v9550_v40, %v2480_v42 }
 0x47f   : > { %5070 = vmatpush.msk.msrb.mxu3 %vm12620_vm9, %v2909_v18  ;;  %v2618_v57 = vadd.f32 %v2617_v61, %v2595_v3 }
 0x480   : > { %5082 = vmatmul.msk.f32.vlgmr.msra.gmra.mxu1 %vm12625_vm5, %v3197_v41  ;;  %vm12631_vm5 = vmmov %vm12629_vm1 }
 0x481   : > { %5071 = vmatpush.msk.msrb.mxu3 %vm12620_vm9, %v2908_v15  ;;  %v2876_v9 = vsel %vm12631_vm5, %v9535_v12, %v9537_v36  ;;  %vm12633_vm1 = vmmov %vm12628_vm13  ;;  %v12634_v12 = vld [vmem:[#allocation173_spill] sm:$0xff] }
 0x482   : > { %v12635_v36 = vld [vmem:[#allocation165_spill] sm:$0xff] }
 0x483   : > { %5072 = vmatpush.msk.msrb.mxu3 %vm12627_vm8, %v2879_v34  ;;  %5084 = vmatmul.msk.f32.vlgmr.msra.gmra.mxu2 %vm12628_vm13, %v3197_v41 }
 0x485   : > { %5073 = vmatpush.msk.msrb.mxu3 %vm12627_vm8, %v2878_v6 }
 0x486   : > { %v2663_v17 = vpop.f32.mrf.mxu3 }
 0x487   : > { %5074 = vmatpush.msk.msrb.mxu3 %vm12627_vm8, %v2877_v0 }
 0x488   : > { %5083 = vmatmul.msk.f32.gmra.mxu1 %vm12628_vm13, %v3198_v24 }
 0x489   : > { %v2637_v2 = vpop.f32.mrf.mxu0  ;;  %5075 = vmatpush.msk.msrb.mxu3 %vm12627_vm8, %v2876_v9 }
 0x48a   : > { %v2638_v22 = vadd.f32 %v2637_v2, %v2615_v30 }
 0x48b   : > { %3101 = vmatpush.msrb.mxu3 %v12632_v14  ;;  %5085 = vmatmul.msk.f32.gmra.mxu2 %vm12633_vm1, %v3198_v24 }
 0x48c   : > { %v2661_v19 = vadd.f32 %v2660_v50, %v2638_v22 }
 0x48d   : > { %3102 = vmatpush.msrb.mxu3 %v12634_v12 }
 0x48e   : > { %v2666_v37 = vadd.f32 %v2661_v19, %v2500_v38 }
 0x48f   : > { %3103 = vmatpush.msrb.mxu3 %v12635_v36 }
 0x490   : > { %2667 = vadd.xlane.f32.xlu0 %v2666_v37 }
 0x491   : > { %v2640_v27 = vpop.f32.mrf.mxu0  ;;  %3104 = vmatpush.msrb.mxu3 %v12636_v25 }
 0x492   : > { %v2641_v23 = vadd.f32 %v2640_v27, %v2618_v57  ;;  %3105 = vmatmul.f32.vlgmr.msrb.gmra.mxu3 %v9565_v39 }
 0x494   : > { %v2664_v51 = vadd.f32 %v2663_v17, %v2641_v23 }
 0x496   : > { %v2669_v63 = vadd.f32 %v2664_v51, %v2503_v54 }
 0x498   : > { %2670 = vadd.xlane.f32.xlu1 %v2669_v63 }
 0x49a   : > { %3108 = vmatmul.f32.gmra.mxu3 %v9613_v7 }
 0x4a0   : > { %v3014_v48 = vpop.f32.mrf.mxu2 }
 0x4a8   : > { %v3017_v46 = vpop.f32.mrf.mxu2 }
 0x4a9   : > { %v3083_v15 = vpop.f32.mrf.mxu0 }
 0x4b1   : > { %v3086_v30 = vpop.f32.mrf.mxu0 }
 0x4ed   : > { %v3037_v59 = vpop.f32.mrf.mxu1 }
 0x4ee   : > { %v3038_v10 = vadd.f32 %v3037_v59, %v3014_v48 }
 0x4f5   : > { %v3040_v47 = vpop.f32.mrf.mxu1  ;;  %v3060_v11 = vpop.f32.mrf.mxu3 }
 0x4f6   : > { %v3129_v28 = vpop.f32.mrf.mxu2  ;;  %v3061_v56 = vadd.f32 %v3060_v11, %v3038_v10  ;;  %v3041_v50 = vadd.f32 %v3040_v47, %v3017_v46 }
 0x4fd   : > { %v3222_v32 = vpop.f32.mrf.mxu1  ;;  %v3063_v5 = vpop.f32.mrf.mxu3 }
 0x4fe   : > { %v3132_v43 = vpop.f32.mrf.mxu2  ;;  %v3064_v22 = vadd.f32 %v3063_v5, %v3041_v50 }
 0x503   : > { %v2668_v16 = vpop.xlane.xlu0 %2667 }
 0x504   : > { %v2672_v40 = vmul.f32 %v2668_v16, %v7257_v53 }
 0x505   : > { %v3225_v31 = vpop.f32.mrf.mxu1 }
 0x506   : > { %v3245_v60 = vpop.f32.mrf.mxu2  ;;  %v9704_v18 = vsub.f32 %v2500_v38, %v2672_v40  ;;  %v9706_v49 = vsub.f32 %v2661_v19, %v2672_v40 }
 0x507   : > { %v3251_v39 = vadd.f32 %v3245_v60, %v3222_v32 }
 0x508   : > { %v2678_v7 = vmul.f32 %v9704_v18, %v9704_v18  ;;  %v2679_v20 = vmul.f32 %v9706_v49, %v9706_v49 }
 0x509   : > { %3252 = vadd.xlane.f32.xlu1 %v3251_v39 }
 0x50a   : > { %v2682_v44 = vadd.f32 %v2679_v20, %v2678_v7 }
 0x50b   : > { %v2671_v6 = vpop.xlane.xlu1 %2670 }
 0x50c   : > { %v2673_v2 = vmul.f32 %v2671_v6, %v7257_v53 }
 0x50e   : > { %v3248_v4 = vpop.f32.mrf.mxu2  ;;  %v9713_v61 = vsub.f32 %v2503_v54, %v2673_v2  ;;  %v9715_v24 = vsub.f32 %v2664_v51, %v2673_v2 }
 0x50f   : > { %v3254_v3 = vadd.f32 %v3248_v4, %v3225_v31 }
 0x510   : > { %v2680_v14 = vmul.f32 %v9713_v61, %v9713_v61  ;;  %v2681_v42 = vmul.f32 %v9715_v24, %v9715_v24 }
 0x511   : > { %2683 = vadd.xlane.f32.xlu1 %v2682_v44 }
 0x512   : > { %v2685_v37 = vadd.f32 %v2681_v42, %v2680_v14 }
 0x515   : > { %v3106_v41 = vpop.f32.mrf.mxu3 }
 0x516   : > { %v3107_v34 = vadd.f32 %v3106_v41, %v3083_v15 }
 0x518   : > { %v3130_v58 = vadd.f32 %v3129_v28, %v3107_v34 }
 0x51a   : > { %v3135_v21 = vadd.f32 %v3130_v58, %v3061_v56 }
 0x51c   : > { %3136 = vadd.xlane.f32.xlu0 %v3135_v21 }
 0x51d   : > { %v3109_v0 = vpop.f32.mrf.mxu3 }
 0x51e   : > { %v3110_v38 = vadd.f32 %v3109_v0, %v3086_v30 }
 0x520   : > { %v3133_v9 = vadd.f32 %v3132_v43, %v3110_v38 }
 0x522   : > { %v3138_v19 = vadd.f32 %v3133_v9, %v3064_v22 }
 0x524   : > { %3139 = vadd.xlane.f32.xlu2 %v3138_v19  ;;  %3255 = vadd.xlane.f32.xlu0 %v3254_v3 }
 0x52c   : > { %2686 = vadd.xlane.f32.xlu2 %v2685_v37 }
 0x57c   : > { %v3253_v57 = vpop.xlane.xlu1 %3252 }
 0x57d   : > { %v3257_v12 = vmul.f32 %v3253_v57, %v7257_v53 }
 0x57f   : > { %v9722_v27 = vsub.f32 %v3222_v32, %v3257_v12  ;;  %v9724_v17 = vsub.f32 %v3245_v60, %v3257_v12 }
 0x581   : > { %v3263_v54 = vmul.f32 %v9722_v27, %v9722_v27  ;;  %v3264_v23 = vmul.f32 %v9724_v17, %v9724_v17 }
 0x583   : > { %v3267_v51 = vadd.f32 %v3264_v23, %v3263_v54 }
 0x585   : > { %3268 = vadd.xlane.f32.xlu1 %v3267_v51 }
 0x58f   : > { %v3137_v63 = vpop.xlane.xlu0 %3136 }
 0x590   : > { %v3141_v48 = vmul.f32 %v3137_v63, %v7257_v53 }
 0x592   : > { %v3143_v46 = vsub.f32 %v3061_v56, %v3141_v48  ;;  %v3144_v59 = vsub.f32 %v3130_v58, %v3141_v48 }
 0x594   : > { %v3147_v28 = vmul.f32 %v3143_v46, %v3143_v46  ;;  %v3148_v47 = vmul.f32 %v3144_v59, %v3144_v59 }
 0x596   : > { %v3151_v43 = vadd.f32 %v3148_v47, %v3147_v28 }
 0x597   : > { %v3140_v16 = vpop.xlane.xlu2 %3139  ;;  %v3256_v11 = vpop.xlane.xlu0 %3255 }
 0x598   : > { %v3142_v40 = vmul.f32 %v3140_v16, %v7257_v53  ;;  %v3258_v32 = vmul.f32 %v3256_v11, %v7257_v53  ;;  %3152 = vadd.xlane.f32.xlu2 %v3151_v43 }
 0x59a   : > { %v3145_v60 = vsub.f32 %v3064_v22, %v3142_v40  ;;  %v9733_v39 = vsub.f32 %v3133_v9, %v3142_v40  ;;  %v9735_v5 = vsub.f32 %v3225_v31, %v3258_v32  ;;  %v9737_v7 = vsub.f32 %v3248_v4, %v3258_v32  ;;  %v9749_v22 = vpop.xlane.xlu1 %2683 }
 0x59c   : > { %v3149_v20 = vmul.f32 %v3145_v60, %v3145_v60  ;;  %v3150_v44 = vmul.f32 %v9733_v39, %v9733_v39  ;;  %v3265_v15 = vmul.f32 %v9735_v5, %v9735_v5  ;;  %v3266_v10 = vmul.f32 %v9737_v7, %v9737_v7 }
 0x59e   : > { %v3154_v41 = vadd.f32 %v3150_v44, %v3149_v20  ;;  %v3270_v34 = vadd.f32 %v3266_v10, %v3265_v15 }
 0x59f   : > { %v9745_v56 = vpop.xlane.xlu2 %2686 }
 0x5a0   : > { %3155 = vadd.xlane.f32.xlu0 %v3154_v41  ;;  %3271 = vadd.xlane.f32.xlu2 %v3270_v34 }
 0x5f8   : > { %v3269_v54 = vpop.xlane.xlu1 %3268 }
 0x5f9   : > { %v3273_v28 = vmul.f32 %v3269_v54, %v7257_v53 }
 0x60b   : > { %v3153_v58 = vpop.xlane.xlu2 %3152 }
 0x60c   : > { %v3157_v21 = vmul.f32 %v3153_v58, %v7257_v53 }
 0x60e   : > { %v3159_v6 = vadd.f32 1e-05, %v3157_v21 }
 0x610   : > { %5316 = vrsqrt.f32 %v3159_v6  ;;  %vm3167_vm5 = vweird.f32 %v3159_v6 }
 0x613   : > { %v3156_v30 = vpop.xlane.xlu0 %3155 }
 0x614   : > { %v3158_v50 = vmul.f32 %v3156_v30, %v7257_v53 }
 0x616   : > { %v5317_v31 = vpop.eup %5316  ;;  %v3160_v0 = vadd.f32 1e-05, %v3158_v50  ;;  %v3272_v50 = vpop.xlane.xlu2 %3271 }
 0x617   : > { %v3162_v4 = vmul.f32 %v5317_v31, %v3159_v6  ;;  %vm3168_vm15 = vweird.f32 %v5317_v31 }
 0x618   : > { %5318 = vrsqrt.f32 %v3160_v0  ;;  %vm3169_vm13 = vmor %vm3167_vm5, %vm3168_vm15  ;;  %vm3177_vm15 = vweird.f32 %v3160_v0 }
 0x619   : > { %v3163_v2 = vmul.f32 %v5317_v31, %v3162_v4  ;;  %v3274_v4 = vmul.f32 %v3272_v50, %v7257_v53 }
 0x61b   : > { %v3164_v38 = vmul.f32 0.5, %v3163_v2  ;;  %v3276_v2 = vadd.f32 1e-05, %v3274_v4 }
 0x61d   : > { %v3165_v9 = vsub.f32 1.5, %v3164_v38 }
 0x61e   : > { %v5319_v3 = vpop.eup %5318 }
 0x61f   : > { %v3166_v19 = vmul.f32 %v5317_v31, %v3165_v9  ;;  %v3172_v14 = vmul.f32 %v5319_v3, %v3160_v0 }
 0x621   : > { %v3170_v42 = vsel %vm3169_vm13, %v5317_v31, %v3166_v19  ;;  %v3173_v12 = vmul.f32 %v5319_v3, %v3172_v14 }
 0x622   : > { %v3181_v37 = vmul.f32 %v3170_v42, %v3143_v46  ;;  %v3182_v57 = vmul.f32 %v3170_v42, %v3144_v59  ;;  %v3275_v59 = vadd.f32 1e-05, %v3273_v28 }
 0x623   : > { %v3174_v46 = vmul.f32 0.5, %v3173_v12 }
 0x624   : > { %vm3185_vm1 = vcmp.ge.f32.partialorder %v3181_v37, 0.0  ;;  %vm3186_vm0 = vcmp.ge.f32.partialorder %v3182_v57, 0.0  ;;  %v3189_v23 = vmul.f32 0.2, %v3181_v37  ;;  %v3190_v51 = vmul.f32 0.2, %v3182_v57 }
 0x625   : > { %v3175_v47 = vsub.f32 1.5, %v3174_v46  ;;  %5320 = vrsqrt.f32 %v3275_v59 }
 0x626   : > { %v9751_v63 = vsel %vm3185_vm1, %v3181_v37, %v3189_v23  ;;  %v9753_v48 = vsel %vm3186_vm0, %v3182_v57, %v3190_v51  ;;  %vm3178_vm0 = vweird.f32 %v5319_v3  ;;  %5322 = vrsqrt.f32 %v3276_v2 }
 0x627   : > { %12637 = vst [vmem:[#allocation93_spill] sm:$0xff] %v9751_v63  ;;  %3417 = vrot.lane.b32.xlu1 %v9753_v48, %s12151_s24  ;;  %3505 = vrot.lane.b32.xlu0 %v9751_v63, %s12209_s16  ;;  %v3176_v43 = vmul.f32 %v5319_v3, %v3175_v47  ;;  %vm3179_vm5 = vmor %vm3177_vm15, %vm3178_vm0  ;;  %vm3283_vm15 = vweird.f32 %v3275_v59 }
 0x628   : > { %12638 = vst [vmem:[#allocation76_spill] sm:$0xff] %v9753_v48  ;;  %3409 = vrot.lane.b32.xlu2 %v9751_v63, %s12151_s24 }
 0x629   : > { %v3180_v16 = vsel %vm3179_vm5, %v5319_v3, %v3176_v43 }
 0x62a   : > { %v3183_v40 = vmul.f32 %v3180_v16, %v3145_v60  ;;  %v3184_v15 = vmul.f32 %v3180_v16, %v9733_v39 }
 0x62b   : > { %v5321_v11 = vpop.eup %5320 }
 0x62c   : > { %v3278_v32 = vmul.f32 %v5321_v11, %v3275_v59  ;;  %v3191_v20 = vmul.f32 0.2, %v3183_v40  ;;  %vm3187_vm13 = vcmp.ge.f32.partialorder %v3183_v40, 0.0  ;;  %v3192_v41 = vmul.f32 0.2, %v3184_v15 }
 0x62d   : > { %vm3188_vm1 = vcmp.ge.f32.partialorder %v3184_v15, 0.0  ;;  %vm3284_vm0 = vweird.f32 %v5321_v11 }
 0x62e   : > { %v3279_v44 = vmul.f32 %v5321_v11, %v3278_v32  ;;  %v9775_v10 = vsel %vm3187_vm13, %v3183_v40, %v3191_v20  ;;  %v9783_v58 = vsel %vm3188_vm1, %v3184_v15, %v3192_v41  ;;  %vm3285_vm5 = vmor %vm3283_vm15, %vm3284_vm0  ;;  %vm3293_vm0 = vweird.f32 %v3276_v2 }
 0x62f   : > { %3377 = vrot.lane.b32.xlu1 %v9751_v63, %s12159_s28  ;;  %3385 = vrot.lane.b32.xlu0 %v9753_v48, %s12159_s28  ;;  %12639 = vst [vmem:[#allocation72_spill] sm:$0xff] %v9775_v10 }
 0x630   : > { %3513 = vrot.lane.b32.xlu2 %v9753_v48, %s12209_s16  ;;  %v3280_v60 = vmul.f32 0.5, %v3279_v44  ;;  %12640 = vst [vmem:[#allocation29_spill] sm:$0xff] %v9783_v58 }
 0x632   : > { %v3281_v34 = vsub.f32 1.5, %v3280_v60 }
 0x634   : > { %v3282_v39 = vmul.f32 %v5321_v11, %v3281_v34 }
 0x636   : > { %v3286_v21 = vsel %vm3285_vm5, %v5321_v11, %v3282_v39 }
 0x637   : > { %3449 = vrot.lane.b32.xlu1 %v9753_v48, %s12242_s27  ;;  %3473 = vrot.lane.b32.xlu0 %v9751_v63, %s12217_s17  ;;  %v3298_v6 = vmul.f32 %v3286_v21, %v9724_v17  ;;  %v3297_v31 = vmul.f32 %v3286_v21, %v9722_v27  ;;  %v5323_v27 = vpop.eup %5322 }
 0x638   : > { %3481 = vrot.lane.b32.xlu2 %v9753_v48, %s12217_s17  ;;  %v3288_v9 = vmul.f32 %v5323_v27, %v3276_v2  ;;  %vm3294_vm15 = vweird.f32 %v5323_v27 }
 0x639   : > { %v3306_v30 = vmul.f32 0.2, %v3298_v6  ;;  %vm3302_vm13 = vcmp.ge.f32.partialorder %v3298_v6, 0.0  ;;  %v3305_v17 = vmul.f32 0.2, %v3297_v31  ;;  %vm3301_vm1 = vcmp.ge.f32.partialorder %v3297_v31, 0.0  ;;  %vm3295_vm5 = vmor %vm3293_vm0, %vm3294_vm15 }
 0x63a   : > { %v3289_v3 = vmul.f32 %v5323_v27, %v3288_v9  ;;  %vm12645_vm0 = vcmp.lt.s32.totalorder %v5616_v8, 1 }
 0x63b   : > { %v9799_v0 = vsel %vm3302_vm13, %v3298_v6, %v3306_v30  ;;  %v9808_v38 = vsel %vm3301_vm1, %v3297_v31, %v3305_v17  ;;  %vm12646_vm15 = vmmov %vm12645_vm0 }
 0x63c   : > { %12641 = vst [vmem:[#allocation81_spill] sm:$0xff] %v9799_v0  ;;  %v3290_v19 = vmul.f32 0.5, %v3289_v3 }
 0x63e   : > { %v3291_v14 = vsub.f32 1.5, %v3290_v19 }
 0x63f   : > { %3313 = vrot.lane.b32.xlu1 %v9751_v63, %s12213_s20  ;;  %3345 = vrot.lane.b32.xlu0 %v9751_v63, %s12174_s30 }
 0x640   : > { %3379 = vrot.lane.b32.xlu2 %v9775_v10, %s12159_s28  ;;  %v3292_v42 = vmul.f32 %v5323_v27, %v3291_v14 }
 0x642   : > { %v3296_v37 = vsel %vm3295_vm5, %v5323_v27, %v3292_v42  ;;  %vm12647_vm5 = vcmp.lt.s32.totalorder %v5616_v8, 127 }
 0x643   : > { %v3299_v57 = vmul.f32 %v3296_v37, %v9735_v5  ;;  %v3300_v54 = vmul.f32 %v3296_v37, %v9737_v7 }
 0x645   : > { %v3307_v12 = vmul.f32 0.2, %v3299_v57  ;;  %vm3303_vm13 = vcmp.ge.f32.partialorder %v3299_v57, 0.0  ;;  %v3308_v5 = vmul.f32 0.2, %v3300_v54  ;;  %vm3304_vm1 = vcmp.ge.f32.partialorder %v3300_v54, 0.0 }
 0x647   : > { %3353 = vrot.lane.b32.xlu0 %v9753_v48, %s12174_s30  ;;  %3411 = vrot.lane.b32.xlu1 %v9775_v10, %s12151_s24  ;;  %v9842_v23 = vsel %vm3303_vm13, %v3299_v57, %v3307_v12  ;;  %v9850_v51 = vsel %vm3304_vm1, %v3300_v54, %v3308_v5  ;;  %vm12648_vm13 = vmmov %vm12647_vm5  ;;  %vm12650_vm1 = vcmp.lt.s32.totalorder %v5616_v8, 15 }
 0x648   : > { %3323 = vrot.lane.b32.xlu2 %v9783_v58, %s12213_s20  ;;  %12642 = vst [vmem:[#allocation20_spill] sm:$0xff] %v9850_v51 }
 0x64f   : > { %3441 = vrot.lane.b32.xlu0 %v9751_v63, %s12242_s27  ;;  %3507 = vrot.lane.b32.xlu1 %v9775_v10, %s12209_s16 }
 0x650   : > { %3539 = vrot.lane.b32.xlu2 %v9775_v10, %s12275_s29 }
 0x657   : > { %3419 = vrot.lane.b32.xlu0 %v9783_v58, %s12151_s24  ;;  %3387 = vrot.lane.b32.xlu1 %v9783_v58, %s12159_s28 }
 0x658   : > { %3421 = vrot.lane.b32.xlu2 %v9799_v0, %s12151_s24 }
 0x65f   : > { %3515 = vrot.lane.b32.xlu0 %v9783_v58, %s12209_s16  ;;  %3475 = vrot.lane.b32.xlu1 %v9775_v10, %s12217_s17 }
 0x660   : > { %3509 = vrot.lane.b32.xlu2 %v9808_v38, %s12209_s16 }
 0x667   : > { %3483 = vrot.lane.b32.xlu0 %v9783_v58, %s12217_s17  ;;  %3451 = vrot.lane.b32.xlu1 %v9783_v58, %s12242_s27 }
 0x668   : > { %3389 = vrot.lane.b32.xlu2 %v9799_v0, %s12159_s28 }
 0x66f   : > { %3347 = vrot.lane.b32.xlu0 %v9775_v10, %s12174_s30  ;;  %3315 = vrot.lane.b32.xlu1 %v9775_v10, %s12213_s20 }
 0x670   : > { %3445 = vrot.lane.b32.xlu2 %v9808_v38, %s12242_s27 }
 0x677   : > { %3355 = vrot.lane.b32.xlu0 %v9783_v58, %s12174_s30  ;;  %3517 = vrot.lane.b32.xlu1 %v9799_v0, %s12209_s16 }
 0x678   : > { %3325 = vrot.lane.b32.xlu2 %v9799_v0, %s12213_s20 }
 0x67f   : > { %3443 = vrot.lane.b32.xlu0 %v9775_v10, %s12242_s27  ;;  %3477 = vrot.lane.b32.xlu1 %v9808_v38, %s12217_s17 }
 0x680   : > { %3541 = vrot.lane.b32.xlu2 %v9808_v38, %s12275_s29 }
 0x682   : > { %v3410_v7 = vpop.permute.xlu2 %3409 }
 0x687   : > { %3547 = vrot.lane.b32.xlu0 %v9783_v58, %s12275_s29  ;;  %3349 = vrot.lane.b32.xlu1 %v9808_v38, %s12174_s30 }
 0x688   : > { %3415 = vrot.lane.b32.xlu2 %v9842_v23, %s12151_s24 }
 0x68a   : > { %v9866_v59 = vpop.permute.xlu2 %3513 }
 0x68b   : > { %12644 = vst [vmem:[#allocation3_spill] sm:$0xff] %v9866_v59 }
 0x68f   : > { %3413 = vrot.lane.b32.xlu0 %v9808_v38, %s12151_s24  ;;  %3317 = vrot.lane.b32.xlu1 %v9808_v38, %s12213_s20 }
 0x690   : > { %3519 = vrot.lane.b32.xlu2 %v9850_v51, %s12209_s16 }
 0x692   : > { %v9886_v40 = vpop.permute.xlu2 %3481 }
 0x697   : > { %3381 = vrot.lane.b32.xlu0 %v9808_v38, %s12159_s28  ;;  %3423 = vrot.lane.b32.xlu1 %v9850_v51, %s12151_s24 }
 0x698   : > { %3479 = vrot.lane.b32.xlu2 %v9842_v23, %s12217_s17 }
 0x699   : > { %v3418_v28 = vpop.permute.xlu1 %3417  ;;  %v9864_v46 = vpop.permute.xlu0 %3505 }
 0x69a   : > { %12643 = vst [vmem:[#allocation22_spill] sm:$0xff] %v9864_v46  ;;  %v9870_v47 = vsel %vm12645_vm0, %v3410_v7, %v3418_v28  ;;  %v9874_v43 = vsel %vm12646_vm15, %v3418_v28, %v3410_v7  ;;  %v3380_v44 = vpop.permute.xlu2 %3379  ;;  %vm12651_vm0 = vmmov %vm12650_vm1 }
 0x69f   : > { %3485 = vrot.lane.b32.xlu0 %v9799_v0, %s12217_s17  ;;  %3383 = vrot.lane.b32.xlu1 %v9842_v23, %s12159_s28 }
 0x6a0   : > { %3359 = vrot.lane.b32.xlu2 %v9850_v51, %s12174_s30 }
 0x6a1   : > { %v9882_v16 = vpop.permute.xlu1 %3377  ;;  %v9884_v11 = vpop.permute.xlu0 %3385 }
 0x6a2   : > { %v3324_v41 = vpop.permute.xlu2 %3323 }
 0x6a7   : > { %3357 = vrot.lane.b32.xlu0 %v9799_v0, %s12174_s30  ;;  %3487 = vrot.lane.b32.xlu1 %v9850_v51, %s12217_s17 }
 0x6a8   : > { %3319 = vrot.lane.b32.xlu2 %v9842_v23, %s12213_s20 }
 0x6a9   : > { %v3450_v32 = vpop.permute.xlu1 %3449  ;;  %v9894_v20 = vpop.permute.xlu0 %3473 }
 0x6aa   : > { %v9916_v30 = vpop.permute.xlu2 %3539 }
 0x6af   : > { %3453 = vrot.lane.b32.xlu0 %v9799_v0, %s12242_s27  ;;  %3455 = vrot.lane.b32.xlu1 %v9850_v51, %s12242_s27 }
 0x6b0   : > { %3543 = vrot.lane.b32.xlu2 %v9842_v23, %s12275_s29 }
 0x6b1   : > { %v9902_v15 = vpop.permute.xlu1 %3313  ;;  %v9904_v60 = vpop.permute.xlu0 %3345 }
 0x6b2   : > { %v3422_v19 = vpop.permute.xlu2 %3421 }
 0x6b7   : > { %3549 = vrot.lane.b32.xlu0 %v9799_v0, %s12275_s29  ;;  %3545 = vrot.lane.b32.xlu1 %v9753_v48, %s12275_s29 }
 0x6b8   : > { %3321 = vrot.lane.b32.xlu2 %v9753_v48, %s12213_s20 }
 0x6b9   : > { %v3412_v34 = vpop.permute.xlu1 %3411  ;;  %v9912_v39 = vpop.permute.xlu0 %3353 }
 0x6ba   : > { %v3510_v12 = vpop.permute.xlu2 %3509 }
 0x6bf   : > { %3511 = vrot.lane.b32.xlu0 %v9842_v23, %s12209_s16 }
 0x6c1   : > { %v3508_v21 = vpop.permute.xlu1 %3507  ;;  %v3442_v6 = vpop.permute.xlu0 %3441 }
 0x6c2   : > { %v9920_v50 = vsel %vm12647_vm5, %v3442_v6, %v3450_v32  ;;  %v9924_v31 = vsel %vm12648_vm13, %v3450_v32, %v3442_v6  ;;  %vm12652_vm5 = vmmov %vm12646_vm15  ;;  %vm12653_vm13 = vcmp.lt.s32.totalorder %v5616_v8, 112  ;;  %v9962_v32 = vpop.permute.xlu2 %3389 }
 0x6c3   : > { %12649 = vst [vmem:[#allocation152_spill] sm:$0xff] %v9924_v31 }
 0x6c7   : > { %3391 = vrot.lane.b32.xlu0 %v9850_v51, %s12159_s28 }
 0x6c9   : > { %v3388_v4 = vpop.permute.xlu1 %3387  ;;  %v3420_v17 = vpop.permute.xlu0 %3419 }
 0x6ca   : > { %v9930_v2 = vsel %vm12650_vm1, %v3380_v44, %v3388_v4  ;;  %v9934_v27 = vsel %vm12651_vm0, %v3388_v4, %v3380_v44  ;;  %v3426_v9 = vsel %vm12646_vm15, %v3412_v34, %v3420_v17  ;;  %v3430_v3 = vsel %vm12652_vm5, %v3420_v17, %v3412_v34  ;;  %vm12654_vm1 = vmmov %vm12653_vm13 }
 0x6cb   : > { %vm12656_vm0 = vcmp.lt.s32.totalorder %v5616_v8, 113  ;;  %vm12659_vm5 = vcmp.lt.s32.totalorder %v5616_v8, 17 }
 0x6cc   : > { %vm12657_vm15 = vmmov %vm12656_vm0 }
 0x6cf   : > { %3351 = vrot.lane.b32.xlu0 %v9842_v23, %s12174_s30 }
 0x6d1   : > { %v3476_v14 = vpop.permute.xlu1 %3475  ;;  %v3516_v42 = vpop.permute.xlu0 %3515 }
 0x6d2   : > { %v9944_v37 = vsel %vm12653_vm13, %v3508_v21, %v3516_v42  ;;  %v9948_v57 = vsel %vm12654_vm1, %v3516_v42, %v3508_v21  ;;  %vm12660_vm13 = vmmov %vm12659_vm5 }
 0x6d3   : > { %12655 = vst [vmem:[#allocation153_spill] sm:$0xff] %v9948_v57  ;;  %v12672_v57 = vld [vmem:[#allocation24_spill] sm:$0xff] }
 0x6d7   : > { %3447 = vrot.lane.b32.xlu0 %v9842_v23, %s12242_s27 }
 0x6d9   : > { %v3452_v54 = vpop.permute.xlu1 %3451  ;;  %v3484_v5 = vpop.permute.xlu0 %3483 }
 0x6da   : > { %v9954_v7 = vsel %vm12656_vm0, %v3476_v14, %v3484_v5  ;;  %v9958_v28 = vsel %vm12657_vm15, %v3484_v5, %v3476_v14  ;;  %v9974_v14 = vpop.permute.xlu2 %3445  ;;  %vm12661_vm0 = vmmov %vm12654_vm1  ;;  %vm12663_vm15 = vcmp.lt.s32.totalorder %v5616_v8, 16 }
 0x6db   : > { %12658 = vst [vmem:[#allocation91_spill] sm:$0xff] %v9958_v28 }
 0x6df   : > { %3327 = vrot.lane.b32.xlu0 %v9850_v51, %s12213_s20 }
 0x6e1   : > { %v3316_v44 = vpop.permute.xlu1 %3315  ;;  %v3348_v34 = vpop.permute.xlu0 %3347 }
 0x6e2   : > { %v9966_v21 = vsel %vm12659_vm5, %v3316_v44, %v3324_v41  ;;  %v9970_v6 = vsel %vm12660_vm13, %v3324_v41, %v3316_v44  ;;  %vm12664_vm5 = vmmov %vm12663_vm15  ;;  %vm12665_vm13 = vcmp.lt.s32.totalorder %v5616_v8, 127 }
 0x6e7   : > { %3551 = vrot.lane.b32.xlu0 %v9850_v51, %s12275_s29 }
 0x6e9   : > { %v3518_v4 = vpop.permute.xlu1 %3517  ;;  %v3356_v17 = vpop.permute.xlu0 %3355 }
 0x6ea   : > { %v3523_v42 = vsel %vm12654_vm1, %v3510_v12, %v3518_v4  ;;  %v9980_v5 = vsel %vm12661_vm0, %v3518_v4, %v3510_v12  ;;  %v9984_v25 = vsel %vm12663_vm15, %v3348_v34, %v3356_v17  ;;  %v9988_v41 = vsel %vm12664_vm5, %v3356_v17, %v3348_v34  ;;  %vm12666_vm1 = vmmov %vm12665_vm13  ;;  %v3326_v4 = vpop.permute.xlu2 %3325 }
 0x6eb   : > { %12662 = vst [vmem:[#allocation97_spill] sm:$0xff] %v9980_v5  ;;  %vm12668_vm0 = vcmp.lt.s32.totalorder %v5616_v8, 17  ;;  %vm12670_vm5 = vcmp.lt.s32.totalorder %v5616_v8, 1 }
 0x6ec   : > { %vm12669_vm15 = vmmov %vm12668_vm0 }
 0x6ef   : > { %3537 = vrot.lane.b32.xlu0 %v9751_v63, %s12275_s29 }
 0x6f1   : > { %v3478_v44 = vpop.permute.xlu1 %3477  ;;  %v3444_v36 = vpop.permute.xlu0 %3443 }
 0x6f2   : > { %v9994_v48 = vsel %vm12665_vm13, %v3444_v36, %v3452_v54  ;;  %v9998_v12 = vsel %vm12666_vm1, %v3452_v54, %v3444_v36  ;;  %v10004_v34 = vpop.permute.xlu2 %3541  ;;  %vm12671_vm13 = vmmov %vm12670_vm5  ;;  %vm12673_vm1 = vnez %v12672_v57 }
 0x6f3   : > { %12667 = vst [vmem:[#allocation112_spill] sm:$0xff] %v9998_v12 }
 0x6f9   : > { %v10000_v58 = vpop.permute.xlu1 %3349  ;;  %v10002_v0 = vpop.permute.xlu0 %3547 }
 0x6fa   : > { %v3416_v28 = vpop.permute.xlu2 %3415 }
 0x701   : > { %v3318_v17 = vpop.permute.xlu1 %3317  ;;  %v3414_v51 = vpop.permute.xlu0 %3413 }
 0x702   : > { %v10008_v31 = vsel %vm12668_vm0, %v3318_v17, %v3326_v4  ;;  %v10012_v35 = vsel %vm12669_vm15, %v3326_v4, %v3318_v17  ;;  %vm12674_vm0 = vmmov %vm12670_vm5 }
 0x703   : > { %v3427_v5 = vsel %vm12674_vm0, %v3414_v51, %v3422_v19  ;;  %vm12675_vm15 = vmmov %vm12674_vm0 }
 0x704   : > { %v3431_v4 = vsel %vm12675_vm15, %v3422_v19, %v3414_v51 }
 0x709   : > { %v3424_v36 = vpop.permute.xlu1 %3423  ;;  %v3382_v54 = vpop.permute.xlu0 %3381 }
 0x70a   : > { %v3428_v12 = vsel %vm12670_vm5, %v3416_v28, %v3424_v36  ;;  %v3432_v55 = vsel %vm12671_vm13, %v3424_v36, %v3416_v28  ;;  %vm12676_vm5 = vcmp.lt.s32.totalorder %v5616_v8, 113  ;;  %vm12678_vm13 = vcmp.lt.s32.totalorder %v5616_v8, 112 }
 0x70b   : > { %5086 = vmatpush.msk.msrb.mxu0 %vm12673_vm1, %v3432_v55  ;;  %5120 = vmatpush.msk.msrb.mxu2 %vm12563_vm12, %v3428_v12  ;;  %vm12681_vm0 = vmmov %vm12678_vm13 }
 0x70c   : > { %v3521_v57 = vsel %vm12681_vm0, %v9864_v46, %v9866_v59  ;;  %vm12682_vm15 = vmmov %vm12676_vm5 }
 0x70d   : > { %5087 = vmatpush.msk.msrb.mxu0 %vm12673_vm1, %v3431_v4  ;;  %5121 = vmatpush.msk.msrb.mxu2 %vm12563_vm12, %v3427_v5 }
 0x70f   : > { %5088 = vmatpush.msk.msrb.mxu0 %vm12673_vm1, %v3430_v3  ;;  %5122 = vmatpush.msk.msrb.mxu2 %vm12563_vm12, %v3426_v9  ;;  %v10046_v3 = vpop.permute.xlu2 %3519  ;;  %v2689_v9 = vmul.f32 %v9745_v56, %v7257_v53 }
 0x711   : > { %5089 = vmatpush.msk.msrb.mxu0 %vm12673_vm1, %v9874_v43  ;;  %5123 = vmatpush.msk.msrb.mxu2 %vm12563_vm12, %v9870_v47  ;;  %v3486_v55 = vpop.permute.xlu0 %3485  ;;  %v2688_v43 = vmul.f32 %v9749_v22, %v7257_v53  ;;  %v10054_v12 = vadd.f32 1e-05, %v2689_v9  ;;  %v3384_v17 = vpop.permute.xlu1 %3383 }
 0x712   : > { %v10042_v51 = vsel %vm12676_vm5, %v3486_v55, %v3478_v44  ;;  %vm12683_vm5 = vcmp.lt.s32.totalorder %v5616_v8, 15 }
 0x713   : > { %12677 = vst [vmem:[#allocation101_spill] sm:$0xff] %v10042_v51  ;;  %v10058_v36 = vadd.f32 1e-05, %v2688_v43  ;;  %5324 = vrsqrt.f32 %v10054_v12  ;;  %vm12686_vm0 = vmmov %vm12683_vm5 }
 0x715   : > { %5326 = vrsqrt.f32 %v10058_v36 }
 0x717   : > { %v10056_v47 = vpop.permute.xlu2 %3479 }
 0x719   : > { %v3358_v19 = vpop.permute.xlu0 %3357  ;;  %v10072_v22 = vpop.eup %5324 }
 0x71a   : > { %v10074_v43 = vpop.permute.xlu1 %3487 }
 0x71b   : > { %12680 = vst [vmem:[#allocation14_spill] sm:$0xff] %v10074_v43  ;;  %v10085_v53 = vpop.eup %5326  ;;  %v3492_v51 = vsel %vm12682_vm15, %v10056_v47, %v10074_v43 }
 0x71c   : > { %v2693_v43 = vmul.f32 %v10085_v53, %v10058_v36 }
 0x71f   : > { %v3360_v9 = vpop.permute.xlu2 %3359 }
 0x721   : > { %v10044_v28 = vpop.permute.xlu0 %3453 }
 0x729   : > { %v10050_v5 = vpop.permute.xlu0 %3549 }
 0x731   : > { %v10061_v4 = vpop.permute.xlu0 %3511 }
 0x732   : > { %v3524_v56 = vsel %vm12678_vm13, %v10061_v4, %v10046_v3  ;;  %vm12684_vm13 = vmmov %vm12683_vm5 }
 0x733   : > { %5102 = vmatpush.msk.msrb.mxu1 %vm5638_vm4, %v3524_v56 }
 0x735   : > { %5103 = vmatpush.msk.msrb.mxu1 %vm5638_vm4, %v3523_v42  ;;  %v2703_v42 = vmul.f32 %v10072_v22, %v10054_v12 }
 0x737   : > { %5104 = vmatpush.msk.msrb.mxu1 %vm5638_vm4, %v9944_v37 }
 0x739   : > { %5105 = vmatpush.msk.msrb.mxu1 %vm5638_vm4, %v3521_v57  ;;  %v3392_v56 = vpop.permute.xlu0 %3391  ;;  %v3399_v57 = vsel %vm12686_vm0, %v9962_v32, %v3382_v54  ;;  %vm12687_vm4 = vmmov %vm12682_vm15 }
 0x73a   : > { %v3396_v37 = vsel %vm12683_vm5, %v3384_v17, %v3392_v56  ;;  %v3400_v59 = vsel %vm12684_vm13, %v3392_v56, %v3384_v17  ;;  %v3491_v45 = vsel %vm12687_vm4, %v3478_v44, %v3486_v55  ;;  %vm12688_vm15 = vmmov %vm12686_vm0  ;;  %vm12690_vm5 = vcmp.lt.s32.totalorder %v5616_v8, 113  ;;  %v3320_v44 = vpop.permute.xlu2 %3319 }
 0x73b   : > { %5090 = vmatpush.msk.msrb.mxu0 %vm12229_vm11, %v3400_v59  ;;  %5106 = vmatpush.msk.msrb.mxu1 %vm12569_vm7, %v3492_v51  ;;  %v3395_v59 = vsel %vm12688_vm15, %v3382_v54, %v9962_v32  ;;  %v2704_v51 = vmul.f32 %v10072_v22, %v2703_v42  ;;  %vm12689_vm4 = vmmov %vm12686_vm0  ;;  %v3489_v32 = vsel %vm12690_vm5, %v9894_v20, %v9886_v40 }
 0x73c   : > { %5124 = vmatpush.msk.msrb.mxu2 %vm12572_vm14, %v3396_v37  ;;  %vm12691_vm13 = vmmov %vm12686_vm0  ;;  %vm12692_vm0 = vcmp.lt.s32.totalorder %v5616_v8, 16 }
 0x73d   : > { %5091 = vmatpush.msk.msrb.mxu0 %vm12229_vm11, %v3399_v57  ;;  %5107 = vmatpush.msk.msrb.mxu1 %vm12569_vm7, %v3491_v45  ;;  %v3397_v45 = vsel %vm12689_vm4, %v9884_v11, %v9882_v16  ;;  %v2705_v54 = vmul.f32 0.5, %v2704_v51  ;;  %vm12693_vm15 = vmmov %vm12692_vm0 }
 0x73e   : > { %5125 = vmatpush.msk.msrb.mxu2 %vm12572_vm14, %v3395_v59  ;;  %vm12696_vm5 = vmmov %vm12692_vm0 }
 0x73f   : > { %5092 = vmatpush.msk.msrb.mxu0 %vm12229_vm11, %v9934_v27  ;;  %5108 = vmatpush.msk.msrb.mxu1 %vm12569_vm7, %v9954_v7  ;;  %v2694_v27 = vmul.f32 %v10085_v53, %v2693_v43  ;;  %v12694_v43 = vld [vmem:[#allocation28_spill] sm:$0xff]  ;;  %v3367_v56 = vsel %vm12696_vm5, %v3358_v19, %v10000_v58  ;;  %v2706_v42 = vsub.f32 1.5, %v2705_v54  ;;  %vm12700_vm5 = vcmp.lt.s32.totalorder %v5616_v8, 127 }
 0x740   : > { %5126 = vmatpush.msk.msrb.mxu2 %vm12572_vm14, %v9930_v2  ;;  %v3393_v2 = vsel %vm12691_vm13, %v9882_v16, %v9884_v11  ;;  %vm12695_vm4 = vnez %v12694_v43  ;;  %vm12697_vm13 = vnez %v12258_v52 }
 0x741   : > { %5093 = vmatpush.msk.msrb.mxu0 %vm12229_vm11, %v3397_v45  ;;  %5109 = vmatpush.msk.msrb.mxu1 %vm12569_vm7, %v3489_v32  ;;  %v3352_v7 = vpop.permute.xlu0 %3351  ;;  %v2695_v16 = vmul.f32 0.5, %v2694_v27  ;;  %vm12698_vm7 = vmmov %vm12692_vm0 }
 0x742   : > { %5127 = vmatpush.msk.msrb.mxu2 %vm12572_vm14, %v3393_v2  ;;  %v3364_v55 = vsel %vm12692_vm0, %v3352_v7, %v3360_v9  ;;  %v3368_v17 = vsel %vm12693_vm15, %v3360_v9, %v3352_v7  ;;  %v3363_v11 = vsel %vm12698_vm7, %v10000_v58, %v3358_v19  ;;  %v3365_v58 = vsel %vm12692_vm0, %v9912_v39, %v9904_v60  ;;  %v10176_v9 = vpop.permute.xlu1 %3455  ;;  %vm12699_vm7 = vmmov %vm12692_vm0  ;;  %v3544_v59 = vpop.permute.xlu2 %3543  ;;  %v12706_v2 = vld [vmem:[#allocation41_spill] sm:$0xff] }
 0x743   : > { %5094 = vmatpush.msk.msrb.mxu0 %vm12695_vm4, %v3368_v17  ;;  %v2696_v19 = vsub.f32 1.5, %v2695_v16  ;;  %vm2709_vm15 = vweird.f32 %v10072_v22  ;;  %vm2708_vm0 = vweird.f32 %v10054_v12  ;;  %v3570_v17 = vld [vmem:[%s11065_s8 + $0x8] sm:$0xff] }
 0x744   : > { %5128 = vmatpush.msk.msrb.mxu2 %vm12697_vm13, %v3364_v55 }
 0x745   : > { %5095 = vmatpush.msk.msrb.mxu0 %vm12695_vm4, %v3367_v56 }
 0x746   : > { %5129 = vmatpush.msk.msrb.mxu2 %vm12697_vm13, %v3363_v11 }
 0x747   : > { %5096 = vmatpush.msk.msrb.mxu0 %vm12695_vm4, %v9988_v41  ;;  %v3361_v41 = vsel %vm12699_vm7, %v9904_v60, %v9912_v39  ;;  %vm12701_vm7 = vmmov %vm12700_vm5  ;;  %v2697_v39 = vmul.f32 %v10085_v53, %v2696_v19 }
 0x748   : > { %5130 = vmatpush.msk.msrb.mxu2 %vm12697_vm13, %v9984_v25  ;;  %v2707_v25 = vmul.f32 %v10072_v22, %v2706_v42  ;;  %v3459_v60 = vsel %vm12701_vm7, %v9974_v14, %v10044_v28 }
 0x749   : > { %5097 = vmatpush.msk.msrb.mxu0 %vm12695_vm4, %v3365_v58  ;;  %v10184_v37 = vpop.permute.xlu0 %3447  ;;  %vm2710_vm4 = vmor %vm2708_vm0, %vm2709_vm15  ;;  %vm12702_vm15 = vcmp.lt.s32.totalorder %v5616_v8, 17 }
 0x74a   : > { %5131 = vmatpush.msk.msrb.mxu2 %vm12697_vm13, %v3361_v41  ;;  %v3460_v57 = vsel %vm12700_vm5, %v10184_v37, %v10176_v9  ;;  %vm2699_vm13 = vweird.f32 %v10085_v53  ;;  %v2711_v51 = vsel %vm2710_vm4, %v10072_v22, %v2707_v25  ;;  %vm2698_vm5 = vweird.f32 %v10058_v36  ;;  %vm12703_vm4 = vmmov %vm12702_vm15  ;;  %v12704_v22 = vld [vmem:[#allocation40_spill] sm:$0xff]  ;;  %v3573_v25 = vld [vmem:[%s11065_s8 + $0x20] sm:$0xff] }
 0x74b   : > { %5110 = vmatpush.msk.msrb.mxu1 %vm12585_vm6, %v3460_v57  ;;  %vm2700_vm14 = vmor %vm2698_vm5, %vm2699_vm13  ;;  %v2714_v45 = vmul.f32 %v2711_v51, %v9713_v61  ;;  %vm12705_vm0 = vnez %v12704_v22  ;;  %vm12707_vm13 = vnez %v12706_v2  ;;  %v12719_v57 = vld [vmem:[#allocation97_spill] sm:$0xff]  ;;  %v4158_v22 = vld [vmem:[%s11066_s9 + $0x28] sm:$0xff] }
 0x74c   : > { %v2701_v32 = vsel %vm2700_vm14, %v10085_v53, %v2697_v39  ;;  %vm12708_vm7 = vmmov %vm12703_vm4 }
 0x74d   : > { %5111 = vmatpush.msk.msrb.mxu1 %vm12585_vm6, %v3459_v60  ;;  %v2712_v61 = vmul.f32 %v2701_v32, %v9704_v18  ;;  %v2722_v53 = vmul.f32 0.2, %v2714_v45  ;;  %vm2718_vm14 = vcmp.ge.f32.partialorder %v2714_v45, 0.0  ;;  %v12722_v60 = vld [vmem:[#allocation3_spill] sm:$0xff] }
 0x74f   : > { %5112 = vmatpush.msk.msrb.mxu1 %vm12585_vm6, %v9994_v48  ;;  %v2715_v48 = vmul.f32 %v2711_v51, %v9715_v24  ;;  %v2720_v24 = vmul.f32 0.2, %v2712_v61  ;;  %v3574_v51 = vld [vmem:[%s11065_s8 + $0x28] sm:$0xff] }
 0x751   : > { %5113 = vmatpush.msk.msrb.mxu1 %vm12585_vm6, %v9920_v50  ;;  %v3328_v12 = vpop.permute.xlu0 %3327  ;;  %v3322_v50 = vpop.permute.xlu2 %3321  ;;  %v2723_v18 = vmul.f32 0.2, %v2715_v48  ;;  %vm2719_vm5 = vcmp.ge.f32.partialorder %v2715_v48, 0.0 }
 0x752   : > { %v3332_v27 = vsel %vm12702_vm15, %v3320_v44, %v3328_v12  ;;  %v3336_v36 = vsel %vm12703_vm4, %v3328_v12, %v3320_v44  ;;  %v2713_v44 = vmul.f32 %v2701_v32, %v9706_v49  ;;  %v3569_v49 = vld [vmem:[%s11065_s8] sm:$0xff]  ;;  %vm12709_vm15 = vmmov %vm12703_vm4  ;;  %vm2716_vm4 = vcmp.ge.f32.partialorder %v2712_v61, 0.0  ;;  %v4156_v32 = vld [vmem:[%s11066_s9 + $0x18] sm:$0xff] }
 0x753   : > { %5098 = vmatpush.msk.msrb.mxu0 %vm12705_vm0, %v3336_v36  ;;  %3616 = vmatpush.msrb.mxu1 %v9842_v23  ;;  %v2724_v55 = vsel %vm2716_vm4, %v2712_v61, %v2720_v24  ;;  %v12724_v12 = vld [vmem:[#allocation14_spill] sm:$0xff]  ;;  %v12731_v36 = vld [vmem:[#allocation91_spill] sm:$0xff] }
 0x754   : > { %5132 = vmatpush.msk.msrb.mxu2 %vm12707_vm13, %v3332_v27  ;;  %v12729_v27 = vld [vmem:[#allocation101_spill] sm:$0xff] }
 0x755   : > { %5099 = vmatpush.msk.msrb.mxu0 %vm12705_vm0, %v10012_v35  ;;  %3617 = vmatpush.msrb.mxu1 %v9808_v38  ;;  %v3333_v35 = vsel %vm12708_vm7, %v3322_v50, %v9902_v15  ;;  %v3329_v38 = vsel %vm12709_vm15, %v9902_v15, %v3322_v50  ;;  %vm12710_vm7 = vcmp.lt.s32.totalorder %v5616_v8, 111  ;;  %vm2717_vm15 = vcmp.ge.f32.partialorder %v2713_v44, 0.0 }
 0x756   : > { %5133 = vmatpush.msk.msrb.mxu2 %vm12707_vm13, %v10008_v31  ;;  %v2726_v31 = vsel %vm2718_vm14, %v2714_v45, %v2722_v53  ;;  %vm12711_vm6 = vmmov %vm12710_vm7  ;;  %v2727_v15 = vsel %vm2719_vm5, %v2715_v48, %v2723_v18  ;;  %v12742_v53 = vld [vmem:[#allocation81_spill] sm:$0xff] }
 0x757   : > { %5100 = vmatpush.msk.msrb.mxu0 %vm12705_vm0, %v9970_v6  ;;  %3618 = vmatpush.msrb.mxu1 %v9775_v10  ;;  %v2721_v6 = vmul.f32 0.2, %v2713_v44  ;;  %vm12712_vm14 = vmmov %vm12711_vm6  ;;  %v3559_v56 = vsel %vm12711_vm6, %v10050_v5, %v10004_v34 }
 0x758   : > { %5134 = vmatpush.msk.msrb.mxu2 %vm12707_vm13, %v9966_v21  ;;  %v3555_v54 = vsel %vm12712_vm14, %v10004_v34, %v10050_v5  ;;  %vm12713_vm5 = vmmov %vm12711_vm6  ;;  %v3572_v34 = vld [vmem:[%s11065_s8 + $0x18] sm:$0xff]  ;;  %v3546_v5 = vpop.permute.xlu1 %3545  ;;  %vm12717_vm14 = vcmp.lt.s32.totalorder %v5616_v8, 112 }
 0x759   : > { %5101 = vmatpush.msk.msrb.mxu0 %vm12705_vm0, %v3333_v35  ;;  %3619 = vmatpush.msrb.mxu1 %v9751_v63  ;;  %v3552_v23 = vpop.permute.xlu0 %3551  ;;  %v2725_v16 = vsel %vm2717_vm15, %v2713_v44, %v2721_v6  ;;  %v3554_v11 = vsel %vm12713_vm5, %v9916_v30, %v10002_v0  ;;  %vm12714_vm4 = vmmov %vm12713_vm5  ;;  %v3528_v41 = vsel %vm12717_vm14, %v10046_v3, %v10061_v4  ;;  %v12720_v3 = vld [vmem:[#allocation153_spill] sm:$0xff]  ;;  %v3781_v4 = vld [vmem:[%s11063_s6] sm:$0xff] }
 0x75a   : > { %5135 = vmatpush.msk.msrb.mxu2 %vm12707_vm13, %v3329_v38  ;;  %v3556_v21 = vsel %vm12710_vm7, %v3544_v59, %v3552_v23  ;;  %v3560_v7 = vsel %vm12711_vm6, %v3552_v23, %v3544_v59  ;;  %v3558_v42 = vsel %vm12714_vm4, %v10002_v0, %v9916_v30  ;;  %3620 = vmatmul.f32.vlgmr.msrb.gmra.mxu1 %v3570_v17  ;;  %vm12715_vm7 = vmmov %vm12714_vm4  ;;  %v3571_v30 = vld [vmem:[%s11065_s8 + $0x10] sm:$0xff]  ;;  %vm12718_vm6 = vcmask 261120   ;;  %v12721_v59 = vld [vmem:[#allocation22_spill] sm:$0xff] }
 0x75b   : > { %3803 = vmatpush.msra.mxu1 %v2726_v31  ;;  %3666 = vmatmul.f32.vlgmr.msrb.gmra.mxu2 %v3569_v49  ;;  %vm12716_vm15 = vmmov %vm12714_vm4  ;;  %vm12725_vm4 = vcmp.lt.s32.totalorder %v5616_v8, 113 }
 0x75c   : > { %5114 = vmatpush.msk.msra.mxu3 %vm12582_vm10, %v3556_v21  ;;  %3826 = vmatpush.msra.mxu2 %v2727_v15  ;;  %vm12723_vm5 = vmmov %vm12717_vm14  ;;  %v3496_v45 = vsel %vm12725_vm4, %v12724_v12, %v10056_v47  ;;  %v3782_v47 = vld [vmem:[%s11063_s6 + $0x8] sm:$0xff] }
 0x75d   : > { %5148 = vmatpush.msk.msra.mxu0 %vm12461_vm2, %v3560_v7  ;;  %3804 = vmatpush.msra.mxu1 %v2724_v55  ;;  %v3525_v39 = vsel %vm12723_vm5, %v12722_v60, %v12721_v59 }
 0x75e   : > { %5115 = vmatpush.msk.msra.mxu3 %vm12582_vm10, %v3555_v54  ;;  %3827 = vmatpush.msra.mxu2 %v2725_v16 }
 0x75f   : > { %5149 = vmatpush.msk.msra.mxu0 %vm12461_vm2, %v3559_v56 }
 0x760   : > { %5116 = vmatpush.msk.msra.mxu3 %vm12582_vm10, %v3554_v11  ;;  %3597 = vmatmul.f32.vlgmr.msrb.gmra.mxu0 %v3569_v49 }
 0x761   : > { %5150 = vmatpush.msk.msra.mxu0 %vm12461_vm2, %v3558_v42  ;;  %v3538_v58 = vpop.permute.xlu0 %3537 }
 0x762   : > { %v3553_v19 = vsel %vm12715_vm7, %v3538_v58, %v3546_v5  ;;  %v3557_v0 = vsel %vm12716_vm15, %v3546_v5, %v3538_v58  ;;  %3623 = vmatmul.f32.gmra.mxu1 %v3573_v25  ;;  %vm12726_vm7 = vcmask 130048   ;;  %vm12728_vm15 = vmmov %vm12718_vm6 }
 0x763   : > { %3669 = vmatmul.f32.gmra.mxu2 %v3572_v34  ;;  %5117 = vmatpush.msk.msra.mxu3 %vm12582_vm10, %v3553_v19  ;;  %vm12730_vm14 = vmmov %vm12726_vm7 }
 0x764   : > { %5151 = vmatpush.msk.msra.mxu0 %vm12461_vm2, %v3557_v0  ;;  %5118 = vmatmul.msk.f32.vlgmr.msra.gmra.mxu3 %vm12718_vm6, %v3571_v30  ;;  %vm12732_vm6 = vmmov %vm12725_vm4  ;;  %vm12734_vm4 = vcmp.lt.s32.totalorder %v5616_v8, 127 }
 0x765   : > { %5136 = vmatpush.msk.msrb.mxu3 %vm12306_vm3, %v3528_v41  ;;  %v3493_v48 = vsel %vm12732_vm6, %v9886_v40, %v9894_v20  ;;  %vm12733_vm5 = vmmov %vm12728_vm15  ;;  %v3464_v61 = vsel %vm12734_vm4, %v10176_v9, %v10184_v37  ;;  %v12738_v20 = vld [vmem:[#allocation112_spill] sm:$0xff] }
 0x766   : > { %vm12739_vm6 = vmmov %vm12733_vm5  ;;  %v12740_v9 = vld [vmem:[#allocation152_spill] sm:$0xff] }
 0x767   : > { %5137 = vmatpush.msk.msrb.mxu3 %vm12306_vm3, %v12719_v57  ;;  %v12741_v37 = vld [vmem:[#allocation20_spill] sm:$0xff] }
 0x768   : > { %3600 = vmatmul.f32.gmra.mxu0 %v3572_v34 }
 0x769   : > { %5138 = vmatpush.msk.msrb.mxu3 %vm12306_vm3, %v12720_v3 }
 0x76a   : > { %5154 = vmatmul.msk.f32.vlgmr.msra.gmra.mxu1 %vm12730_vm14, %v3781_v4  ;;  %vm12737_vm14 = vmmov %vm12726_vm7 }
 0x76b   : > { %5139 = vmatpush.msk.msrb.mxu3 %vm12306_vm3, %v3525_v39  ;;  %5156 = vmatmul.msk.f32.vlgmr.msra.gmra.mxu2 %vm12726_vm7, %v3781_v4  ;;  %v12745_v4 = vld [vmem:[#allocation27_spill] sm:$0xff] }
 0x76c   : > { %5119 = vmatmul.msk.f32.gmra.mxu3 %vm12728_vm15, %v3574_v51  ;;  %vm12736_vm15 = vmmov %vm12734_vm4 }
 0x76d   : > { %5140 = vmatpush.msk.msrb.mxu3 %vm12620_vm9, %v3496_v45  ;;  %v3463_v40 = vsel %vm12736_vm15, %v10044_v28, %v9974_v14  ;;  %v12743_v14 = vld [vmem:[#allocation29_spill] sm:$0xff]  ;;  %v12744_v28 = vld [vmem:[#allocation76_spill] sm:$0xff] }
 0x76f   : > { %5141 = vmatpush.msk.msrb.mxu3 %vm12620_vm9, %v12729_v27 }
 0x770   : > { %5152 = vmatmul.msk.f32.vlgmr.msra.gmra.mxu0 %vm12733_vm5, %v3571_v30 }
 0x771   : > { %5142 = vmatpush.msk.msrb.mxu3 %vm12620_vm9, %v12731_v36 }
 0x772   : > { %5155 = vmatmul.msk.f32.gmra.mxu1 %vm12737_vm14, %v3782_v47 }
 0x773   : > { %5143 = vmatpush.msk.msrb.mxu3 %vm12620_vm9, %v3493_v48  ;;  %5157 = vmatmul.msk.f32.gmra.mxu2 %vm12726_vm7, %v3782_v47 }
 0x775   : > { %5144 = vmatpush.msk.msrb.mxu3 %vm12627_vm8, %v3464_v61 }
 0x777   : > { %5145 = vmatpush.msk.msrb.mxu3 %vm12627_vm8, %v3463_v40 }
 0x778   : > { %5153 = vmatmul.msk.f32.gmra.mxu0 %vm12739_vm6, %v3574_v51 }
 0x779   : > { %5146 = vmatpush.msk.msrb.mxu3 %vm12627_vm8, %v12738_v20 }
 0x77b   : > { %5147 = vmatpush.msk.msrb.mxu3 %vm12627_vm8, %v12740_v9 }
 0x77d   : > { %3685 = vmatpush.msrb.mxu3 %v12741_v37 }
 0x77f   : > { %3686 = vmatpush.msrb.mxu3 %v12742_v53 }
 0x781   : > { %3687 = vmatpush.msrb.mxu3 %v12743_v14 }
 0x783   : > { %3688 = vmatpush.msrb.mxu3 %v12744_v28 }
 0x784   : > { %3689 = vmatmul.f32.vlgmr.msrb.gmra.mxu3 %v3570_v17 }
 0x78c   : > { %3692 = vmatmul.f32.gmra.mxu3 %v3573_v25 }
 0x7d7   : > { %v3621_v44 = vpop.f32.mrf.mxu1 }
 0x7dd   : > { %v3598_v31 = vpop.f32.mrf.mxu0 }
 0x7de   : > { %v3667_v18 = vpop.f32.mrf.mxu2  ;;  %v3622_v54 = vadd.f32 %v3621_v44, %v3598_v31 }
 0x7df   : > { %v3624_v35 = vpop.f32.mrf.mxu1 }
 0x7e5   : > { %v3601_v21 = vpop.f32.mrf.mxu0 }
 0x7e6   : > { %v3670_v49 = vpop.f32.mrf.mxu2  ;;  %v3625_v42 = vadd.f32 %v3624_v35, %v3601_v21 }
 0x7e7   : > { %v3806_v24 = vpop.f32.mrf.mxu1  ;;  %v3644_v6 = vpop.f32.mrf.mxu3 }
 0x7e8   : > { %v3645_v16 = vadd.f32 %v3644_v6, %v3622_v54 }
 0x7ed   : > { %v3713_v15 = vpop.f32.mrf.mxu0 }
 0x7ee   : > { %v3829_v38 = vpop.f32.mrf.mxu2 }
 0x7ef   : > { %v3835_v23 = vadd.f32 %v3829_v38, %v3806_v24  ;;  %v3647_v7 = vpop.f32.mrf.mxu3  ;;  %v3809_v5 = vpop.f32.mrf.mxu1 }
 0x7f0   : > { %v3648_v30 = vadd.f32 %v3647_v7, %v3625_v42 }
 0x7f1   : > { %3836 = vadd.xlane.f32.xlu0 %v3835_v23 }
 0x7f5   : > { %v3716_v34 = vpop.f32.mrf.mxu0 }
 0x7f6   : > { %v3832_v19 = vpop.f32.mrf.mxu2 }
 0x7f7   : > { %v3838_v25 = vadd.f32 %v3832_v19, %v3809_v5 }
 0x807   : > { %v3690_v55 = vpop.f32.mrf.mxu3 }
 0x808   : > { %v3691_v56 = vadd.f32 %v3690_v55, %v3667_v18 }
 0x80a   : > { %v3714_v11 = vadd.f32 %v3713_v15, %v3691_v56 }
 0x80c   : > { %v3719_v17 = vadd.f32 %v3714_v11, %v3645_v16 }
 0x80e   : > { %3720 = vadd.xlane.f32.xlu2 %v3719_v17 }
 0x80f   : > { %v3693_v58 = vpop.f32.mrf.mxu3 }
 0x810   : > { %v3694_v0 = vadd.f32 %v3693_v58, %v3670_v49 }
 0x812   : > { %v3717_v41 = vadd.f32 %v3716_v34, %v3694_v0 }
 0x814   : > { %v3722_v57 = vadd.f32 %v3717_v41, %v3648_v30 }
 0x816   : > { %3723 = vadd.xlane.f32.xlu1 %v3722_v57  ;;  %3839 = vadd.xlane.f32.xlu2 %v3838_v25 }
 0x864   : > { %v3837_v3 = vpop.xlane.xlu0 %3836 }
 0x865   : > { %v3841_v59 = vmul.f32 %v3837_v3, %v12745_v4 }
 0x867   : > { %v10383_v60 = vsub.f32 %v3806_v24, %v3841_v59  ;;  %v10385_v39 = vsub.f32 %v3829_v38, %v3841_v59 }
 0x869   : > { %v3847_v51 = vmul.f32 %v10383_v60, %v10383_v60  ;;  %v3848_v12 = vmul.f32 %v10385_v39, %v10385_v39 }
 0x86b   : > { %v3851_v45 = vadd.f32 %v3848_v12, %v3847_v51 }
 0x86d   : > { %3852 = vadd.xlane.f32.xlu1 %v3851_v45 }
 0x881   : > { %v3721_v27 = vpop.xlane.xlu2 %3720 }
 0x882   : > { %v3725_v36 = vmul.f32 %v3721_v27, %v12745_v4 }
 0x884   : > { %v3727_v47 = vsub.f32 %v3645_v16, %v3725_v36  ;;  %v3728_v48 = vsub.f32 %v3714_v11, %v3725_v36 }
 0x886   : > { %v3731_v61 = vmul.f32 %v3727_v47, %v3727_v47  ;;  %v3732_v40 = vmul.f32 %v3728_v48, %v3728_v48 }
 0x888   : > { %v3735_v20 = vadd.f32 %v3732_v40, %v3731_v61 }
 0x889   : > { %v3724_v9 = vpop.xlane.xlu1 %3723  ;;  %v3840_v37 = vpop.xlane.xlu2 %3839 }
 0x88a   : > { %v3726_v53 = vmul.f32 %v3724_v9, %v12745_v4  ;;  %v3842_v44 = vmul.f32 %v3840_v37, %v12745_v4  ;;  %3736 = vadd.xlane.f32.xlu0 %v3735_v20 }
 0x88c   : > { %v10394_v18 = vsub.f32 %v3648_v30, %v3726_v53  ;;  %v10396_v35 = vsub.f32 %v3717_v41, %v3726_v53  ;;  %v10398_v49 = vsub.f32 %v3809_v5, %v3842_v44  ;;  %v10400_v24 = vsub.f32 %v3832_v19, %v3842_v44 }
 0x88e   : > { %v3733_v38 = vmul.f32 %v10394_v18, %v10394_v18  ;;  %v3734_v23 = vmul.f32 %v10396_v35, %v10396_v35  ;;  %v3849_v31 = vmul.f32 %v10398_v49, %v10398_v49  ;;  %v3850_v6 = vmul.f32 %v10400_v24, %v10400_v24 }
 0x890   : > { %v3738_v21 = vadd.f32 %v3734_v23, %v3733_v38  ;;  %v3854_v7 = vadd.f32 %v3850_v6, %v3849_v31 }
 0x892   : > { %3739 = vadd.xlane.f32.xlu2 %v3738_v21  ;;  %3855 = vadd.xlane.f32.xlu0 %v3854_v7 }
 0x8e0   : > { %v3853_v56 = vpop.xlane.xlu1 %3852 }
 0x8e1   : > { %v3857_v11 = vmul.f32 %v3853_v56, %v12745_v4 }
 0x8e3   : > { %v3859_v34 = vadd.f32 1e-05, %v3857_v11 }
 0x8fd   : > { %v3737_v15 = vpop.xlane.xlu0 %3736 }
 0x8fe   : > { %v3741_v54 = vmul.f32 %v3737_v15, %v12745_v4 }
 0x900   : > { %v3743_v55 = vadd.f32 1e-05, %v3741_v54 }
 0x902   : > { %5328 = vrsqrt.f32 %v3743_v55  ;;  %vm3751_vm4 = vweird.f32 %v3743_v55 }
 0x903   : > { %5330 = vrsqrt.f32 %v3859_v34 }
 0x905   : > { %v3856_v56 = vpop.xlane.xlu0 %3855 }
 0x906   : > { %v3858_v11 = vmul.f32 %v3856_v56, %v12745_v4 }
 0x908   : > { %v5329_v16 = vpop.eup %5328 }
 0x909   : > { %v3746_v17 = vmul.f32 %v5329_v16, %v3743_v55  ;;  %vm3752_vm5 = vweird.f32 %v5329_v16  ;;  %v5331_v25 = vpop.eup %5330 }
 0x90a   : > { %vm3753_vm7 = vmor %vm3751_vm4, %vm3752_vm5  ;;  %v3862_v12 = vmul.f32 %v5331_v25, %v3859_v34  ;;  %vm3868_vm6 = vweird.f32 %v5331_v25  ;;  %vm3867_vm5 = vweird.f32 %v3859_v34 }
 0x90b   : > { %v3747_v42 = vmul.f32 %v5329_v16, %v3746_v17  ;;  %vm3869_vm4 = vmor %vm3867_vm5, %vm3868_vm6 }
 0x90c   : > { %v3863_v45 = vmul.f32 %v5331_v25, %v3862_v12 }
 0x90d   : > { %v3748_v5 = vmul.f32 0.5, %v3747_v42 }
 0x90e   : > { %v3864_v27 = vmul.f32 0.5, %v3863_v45 }
 0x90f   : > { %v3749_v58 = vsub.f32 1.5, %v3748_v5 }
 0x910   : > { %v3865_v36 = vsub.f32 1.5, %v3864_v27 }
 0x911   : > { %v3750_v19 = vmul.f32 %v5329_v16, %v3749_v58 }
 0x912   : > { %v3866_v61 = vmul.f32 %v5331_v25, %v3865_v36 }
 0x913   : > { %v3754_v0 = vsel %vm3753_vm7, %v5329_v16, %v3750_v19 }
 0x914   : > { %v3765_v30 = vmul.f32 %v3754_v0, %v3727_v47  ;;  %v3766_v41 = vmul.f32 %v3754_v0, %v3728_v48  ;;  %v3740_v47 = vpop.xlane.xlu2 %3739  ;;  %v3870_v20 = vsel %vm3869_vm4, %v5331_v25, %v3866_v61 }
 0x915   : > { %v3742_v48 = vmul.f32 %v3740_v47, %v12745_v4  ;;  %v3881_v9 = vmul.f32 %v3870_v20, %v10383_v60  ;;  %v3882_v44 = vmul.f32 %v3870_v20, %v10385_v39 }
 0x916   : > { %vm3769_vm15 = vcmp.ge.f32.partialorder %v3765_v30, 0.0  ;;  %vm3770_vm14 = vcmp.ge.f32.partialorder %v3766_v41, 0.0  ;;  %v3773_v57 = vmul.f32 0.2, %v3765_v30  ;;  %v3774_v3 = vmul.f32 0.2, %v3766_v41 }
 0x917   : > { %v3744_v40 = vadd.f32 1e-05, %v3742_v48  ;;  %v3889_v37 = vmul.f32 0.2, %v3881_v9  ;;  %vm3885_vm7 = vcmp.ge.f32.partialorder %v3881_v9, 0.0 }
 0x918   : > { %v10412_v59 = vsel %vm3769_vm15, %v3765_v30, %v3773_v57  ;;  %v10414_v51 = vsel %vm3770_vm14, %v3766_v41, %v3774_v3  ;;  %v3890_v60 = vmul.f32 0.2, %v3882_v44  ;;  %vm3886_vm15 = vcmp.ge.f32.partialorder %v3882_v44, 0.0 }
 0x919   : > { %12746 = vst [vmem:[#allocation6_spill] sm:$0xff] %v10412_v59  ;;  %4001 = vrot.lane.b32.xlu0 %v10414_v51, %s12151_s24  ;;  %3961 = vrot.lane.b32.xlu2 %v10412_v59, %s12159_s28  ;;  %5332 = vrsqrt.f32 %v3744_v40  ;;  %v10443_v38 = vsel %vm3885_vm7, %v3881_v9, %v3889_v37  ;;  %vm3761_vm6 = vweird.f32 %v3744_v40 }
 0x91a   : > { %12747 = vst [vmem:[#allocation128_spill] sm:$0xff] %v10414_v51  ;;  %3993 = vrot.lane.b32.xlu1 %v10412_v59, %s12151_s24  ;;  %v10451_v6 = vsel %vm3886_vm15, %v3882_v44, %v3890_v60 }
 0x91b   : > { %12748 = vst [vmem:[#allocation126_spill] sm:$0xff] %v10443_v38 }
 0x91c   : > { %12749 = vst [vmem:[#allocation34_spill] sm:$0xff] %v10451_v6 }
 0x91f   : > { %v5333_v53 = vpop.eup %5332 }
 0x920   : > { %v3756_v23 = vmul.f32 %v5333_v53, %v3744_v40  ;;  %vm3762_vm14 = vweird.f32 %v5333_v53 }
 0x921   : > { %4089 = vrot.lane.b32.xlu0 %v10412_v59, %s12209_s16  ;;  %4097 = vrot.lane.b32.xlu2 %v10414_v51, %s12209_s16  ;;  %vm3763_vm5 = vmor %vm3761_vm6, %vm3762_vm14 }
 0x922   : > { %3969 = vrot.lane.b32.xlu1 %v10414_v51, %s12159_s28  ;;  %v3757_v31 = vmul.f32 %v5333_v53, %v3756_v23 }
 0x924   : > { %v3758_v21 = vmul.f32 0.5, %v3757_v31 }
 0x926   : > { %v3759_v39 = vsub.f32 1.5, %v3758_v21 }
 0x928   : > { %v3760_v7 = vmul.f32 %v5333_v53, %v3759_v39 }
 0x929   : > { %3937 = vrot.lane.b32.xlu0 %v10414_v51, %s12174_s30  ;;  %4057 = vrot.lane.b32.xlu2 %v10412_v59, %s12217_s17 }
 0x92a   : > { %3929 = vrot.lane.b32.xlu1 %v10412_v59, %s12174_s30  ;;  %v3764_v15 = vsel %vm3763_vm5, %v5333_v53, %v3760_v7 }
 0x92b   : > { %v3768_v54 = vmul.f32 %v3764_v15, %v10396_v35  ;;  %v3860_v35 = vadd.f32 1e-05, %v3858_v11  ;;  %v3767_v17 = vmul.f32 %v3764_v15, %v10394_v18 }
 0x92d   : > { %v3776_v55 = vmul.f32 0.2, %v3768_v54  ;;  %vm3772_vm4 = vcmp.ge.f32.partialorder %v3768_v54, 0.0  ;;  %5334 = vrsqrt.f32 %v3860_v35  ;;  %v3775_v42 = vmul.f32 0.2, %v3767_v17 }
 0x92e   : > { %vm3771_vm7 = vcmp.ge.f32.partialorder %v3767_v17, 0.0  ;;  %vm3877_vm14 = vweird.f32 %v3860_v35 }
 0x92f   : > { %v10472_v16 = vsel %vm3772_vm4, %v3768_v54, %v3776_v55  ;;  %v10488_v5 = vsel %vm3771_vm7, %v3767_v17, %v3775_v42  ;;  %vm12753_vm7 = vcmp.lt.s32.totalorder %v5616_v8, 1 }
 0x930   : > { %12750 = vst [vmem:[#allocation8_spill] sm:$0xff] %v10472_v16 }
 0x931   : > { %4121 = vrot.lane.b32.xlu0 %v10412_v59, %s12275_s29  ;;  %4129 = vrot.lane.b32.xlu2 %v10414_v51, %s12275_s29  ;;  %12751 = vst [vmem:[#allocation89_spill] sm:$0xff] %v10488_v5 }
 0x932   : > { %4065 = vrot.lane.b32.xlu1 %v10414_v51, %s12217_s17 }
 0x933   : > { %v5335_v34 = vpop.eup %5334 }
 0x934   : > { %v3872_v58 = vmul.f32 %v5335_v34, %v3860_v35  ;;  %vm3878_vm15 = vweird.f32 %v5335_v34 }
 0x935   : > { %vm3879_vm6 = vmor %vm3877_vm14, %vm3878_vm15  ;;  %vm12756_vm14 = vcmp.lt.s32.totalorder %v5616_v8, 112 }
 0x936   : > { %v3873_v18 = vmul.f32 %v5335_v34, %v3872_v58  ;;  %vm12754_vm15 = vmmov %vm12753_vm7 }
 0x938   : > { %v3874_v19 = vmul.f32 0.5, %v3873_v18 }
 0x939   : > { %3997 = vrot.lane.b32.xlu0 %v10443_v38, %s12151_s24  ;;  %4093 = vrot.lane.b32.xlu2 %v10443_v38, %s12209_s16 }
 0x93a   : > { %3897 = vrot.lane.b32.xlu1 %v10412_v59, %s12213_s20  ;;  %v3875_v30 = vsub.f32 1.5, %v3874_v19 }
 0x93c   : > { %v3876_v41 = vmul.f32 %v5335_v34, %v3875_v30 }
 0x93e   : > { %v3880_v57 = vsel %vm3879_vm6, %v5335_v34, %v3876_v41  ;;  %vm12757_vm6 = vmmov %vm12756_vm14 }
 0x93f   : > { %v3884_v3 = vmul.f32 %v3880_v57, %v10400_v24  ;;  %v3883_v27 = vmul.f32 %v3880_v57, %v10398_v49 }
 0x941   : > { %3973 = vrot.lane.b32.xlu0 %v10451_v6, %s12159_s28  ;;  %4061 = vrot.lane.b32.xlu2 %v10443_v38, %s12217_s17  ;;  %v3892_v45 = vmul.f32 0.2, %v3884_v3  ;;  %vm3888_vm5 = vcmp.ge.f32.partialorder %v3884_v3, 0.0  ;;  %v3891_v48 = vmul.f32 0.2, %v3883_v27  ;;  %vm3887_vm4 = vcmp.ge.f32.partialorder %v3883_v27, 0.0 }
 0x942   : > { %4005 = vrot.lane.b32.xlu1 %v10451_v6, %s12151_s24 }
 0x943   : > { %v10516_v36 = vsel %vm3888_vm5, %v3884_v3, %v3892_v45  ;;  %v10532_v20 = vsel %vm3887_vm4, %v3883_v27, %v3891_v48  ;;  %vm12758_vm5 = vcmp.lt.s32.totalorder %v5616_v8, 15 }
 0x944   : > { %12752 = vst [vmem:[#allocation135_spill] sm:$0xff] %v10516_v36  ;;  %vm12759_vm4 = vmmov %vm12758_vm5 }
 0x945   : > { %12755 = vst [vmem:[#allocation35_spill] sm:$0xff] %v10532_v20 }
 0x949   : > { %3941 = vrot.lane.b32.xlu0 %v10451_v6, %s12174_s30  ;;  %4133 = vrot.lane.b32.xlu2 %v10451_v6, %s12275_s29 }
 0x94a   : > { %3965 = vrot.lane.b32.xlu1 %v10443_v38, %s12159_s28 }
 0x951   : > { %4125 = vrot.lane.b32.xlu0 %v10443_v38, %s12275_s29  ;;  %3909 = vrot.lane.b32.xlu2 %v10451_v6, %s12213_s20 }
 0x952   : > { %4101 = vrot.lane.b32.xlu1 %v10451_v6, %s12209_s16 }
 0x959   : > { %3901 = vrot.lane.b32.xlu0 %v10443_v38, %s12213_s20  ;;  %4003 = vrot.lane.b32.xlu2 %v10472_v16, %s12151_s24 }
 0x95a   : > { %3933 = vrot.lane.b32.xlu1 %v10443_v38, %s12174_s30 }
 0x961   : > { %4037 = vrot.lane.b32.xlu0 %v10451_v6, %s12242_s27  ;;  %3971 = vrot.lane.b32.xlu2 %v10472_v16, %s12159_s28 }
 0x962   : > { %4069 = vrot.lane.b32.xlu1 %v10451_v6, %s12217_s17 }
 0x969   : > { %3995 = vrot.lane.b32.xlu0 %v10488_v5, %s12151_s24  ;;  %4059 = vrot.lane.b32.xlu2 %v10488_v5, %s12217_s17 }
 0x96a   : > { %4029 = vrot.lane.b32.xlu1 %v10443_v38, %s12242_s27 }
 0x971   : > { %3963 = vrot.lane.b32.xlu0 %v10488_v5, %s12159_s28  ;;  %4131 = vrot.lane.b32.xlu2 %v10472_v16, %s12275_s29 }
 0x972   : > { %4091 = vrot.lane.b32.xlu1 %v10488_v5, %s12209_s16 }
 0x973   : > { %v3962_v0 = vpop.permute.xlu2 %3961 }
 0x979   : > { %4099 = vrot.lane.b32.xlu0 %v10472_v16, %s12209_s16  ;;  %3899 = vrot.lane.b32.xlu2 %v10488_v5, %s12213_s20 }
 0x97a   : > { %3931 = vrot.lane.b32.xlu1 %v10488_v5, %s12174_s30 }
 0x97b   : > { %v4098_v25 = vpop.permute.xlu2 %4097 }
 0x981   : > { %3939 = vrot.lane.b32.xlu0 %v10472_v16, %s12174_s30  ;;  %4035 = vrot.lane.b32.xlu2 %v10472_v16, %s12242_s27 }
 0x982   : > { %4067 = vrot.lane.b32.xlu1 %v10472_v16, %s12217_s17 }
 0x983   : > { %v4058_v12 = vpop.permute.xlu2 %4057 }
 0x989   : > { %4123 = vrot.lane.b32.xlu0 %v10488_v5, %s12275_s29  ;;  %4007 = vrot.lane.b32.xlu2 %v10516_v36, %s12151_s24 }
 0x98a   : > { %3907 = vrot.lane.b32.xlu1 %v10472_v16, %s12213_s20 }
 0x98b   : > { %v4130_v24 = vpop.permute.xlu2 %4129  ;;  %v4002_v47 = vpop.permute.xlu0 %4001 }
 0x98c   : > { %v3994_v61 = vpop.permute.xlu1 %3993 }
 0x98d   : > { %v10526_v40 = vsel %vm12753_vm7, %v3994_v61, %v4002_v47  ;;  %v10530_v49 = vsel %vm12754_vm15, %v4002_v47, %v3994_v61  ;;  %vm12760_vm7 = vcmp.lt.s32.totalorder %v5616_v8, 16 }
 0x98e   : > { %vm12761_vm15 = vmmov %vm12760_vm7 }
 0x991   : > { %4027 = vrot.lane.b32.xlu0 %v10488_v5, %s12242_s27  ;;  %3967 = vrot.lane.b32.xlu2 %v10532_v20, %s12159_s28 }
 0x992   : > { %3999 = vrot.lane.b32.xlu1 %v10532_v20, %s12151_s24 }
 0x993   : > { %v4094_v9 = vpop.permute.xlu2 %4093  ;;  %v4090_v37 = vpop.permute.xlu0 %4089 }
 0x994   : > { %v3970_v53 = vpop.permute.xlu1 %3969  ;;  %v10542_v44 = vsel %vm12756_vm14, %v4090_v37, %v4098_v25  ;;  %v10546_v23 = vsel %vm12757_vm6, %v4098_v25, %v4090_v37  ;;  %vm12762_vm14 = vcmp.lt.s32.totalorder %v5616_v8, 111 }
 0x995   : > { %v10550_v60 = vsel %vm12758_vm5, %v3962_v0, %v3970_v53  ;;  %v10554_v31 = vsel %vm12759_vm4, %v3970_v53, %v3962_v0  ;;  %vm12763_vm6 = vmmov %vm12762_vm14  ;;  %vm12765_vm5 = vcmp.lt.s32.totalorder %v5616_v8, 113 }
 0x996   : > { %vm12766_vm4 = vmmov %vm12765_vm5 }
 0x999   : > { %4095 = vrot.lane.b32.xlu0 %v10532_v20, %s12209_s16  ;;  %4103 = vrot.lane.b32.xlu2 %v10516_v36, %s12209_s16 }
 0x99a   : > { %3975 = vrot.lane.b32.xlu1 %v10516_v36, %s12159_s28 }
 0x99b   : > { %v4062_v21 = vpop.permute.xlu2 %4061  ;;  %v3938_v39 = vpop.permute.xlu0 %3937 }
 0x99c   : > { %v3930_v7 = vpop.permute.xlu1 %3929 }
 0x99d   : > { %v10564_v15 = vsel %vm12760_vm7, %v3930_v7, %v3938_v39  ;;  %v10568_v54 = vsel %vm12761_vm15, %v3938_v39, %v3930_v7  ;;  %vm12768_vm7 = vcmp.lt.s32.totalorder %v5616_v8, 1 }
 0x99e   : > { %vm12769_vm15 = vmmov %vm12768_vm7 }
 0x9a1   : > { %3943 = vrot.lane.b32.xlu0 %v10516_v36, %s12174_s30  ;;  %4063 = vrot.lane.b32.xlu2 %v10532_v20, %s12217_s17 }
 0x9a2   : > { %3935 = vrot.lane.b32.xlu1 %v10532_v20, %s12174_s30  ;;  %s12857_s30 = sshll.u32 %s12859_s19, 5 }
 0x9a3   : > { %v4134_v55 = vpop.permute.xlu2 %4133  ;;  %v4122_v56 = vpop.permute.xlu0 %4121 }
 0x9a4   : > { %v4066_v11 = vpop.permute.xlu1 %4065  ;;  %v10578_v35 = vsel %vm12762_vm14, %v4122_v56, %v4130_v24  ;;  %v10582_v17 = vsel %vm12763_vm6, %v4130_v24, %v4122_v56  ;;  %vm12770_vm14 = vcmp.lt.s32.totalorder %v5616_v8, 15 }
 0x9a5   : > { %12764 = vst [vmem:[#allocation7_spill] sm:$0xff] %v10582_v17  ;;  %v10586_v42 = vsel %vm12765_vm5, %v4058_v12, %v4066_v11  ;;  %v10590_v34 = vsel %vm12766_vm4, %v4066_v11, %v4058_v12  ;;  %vm12771_vm6 = vmmov %vm12770_vm14  ;;  %vm12772_vm5 = vcmp.lt.s32.totalorder %v5616_v8, 111 }
 0x9a6   : > { %12767 = vst [vmem:[#allocation59_spill] sm:$0xff] %v10590_v34  ;;  %vm12773_vm4 = vmmov %vm12772_vm5 }
 0x9a9   : > { %4127 = vrot.lane.b32.xlu0 %v10532_v20, %s12275_s29  ;;  %4135 = vrot.lane.b32.xlu2 %v10516_v36, %s12275_s29 }
 0x9aa   : > { %4071 = vrot.lane.b32.xlu1 %v10516_v36, %s12217_s17  ;;  %s494_s17 = scalar_lea.vmem %s11072_s15, %s12857_s30 }
 0x9ab   : > { %v3998_v58 = vpop.permute.xlu0 %3997  ;;  %v3910_v19 = vpop.permute.xlu2 %3909 }
 0x9ac   : > { %v10598_v18 = vpop.permute.xlu1 %3897 }
 0x9b1   : > { %3911 = vrot.lane.b32.xlu0 %v10516_v36, %s12213_s20  ;;  %4031 = vrot.lane.b32.xlu2 %v10532_v20, %s12242_s27 }
 0x9b2   : > { %3903 = vrot.lane.b32.xlu1 %v10532_v20, %s12213_s20 }
 0x9b3   : > { %v3974_v0 = vpop.permute.xlu0 %3973  ;;  %v4004_v57 = vpop.permute.xlu2 %4003 }
 0x9b4   : > { %v4006_v30 = vpop.permute.xlu1 %4005 }
 0x9b5   : > { %v4011_v41 = vsel %vm12768_vm7, %v3998_v58, %v4006_v30  ;;  %v4015_v25 = vsel %vm12769_vm15, %v4006_v30, %v3998_v58  ;;  %vm12775_vm7 = vcmp.lt.s32.totalorder %v5616_v8, 112 }
 0x9b6   : > { %vm12776_vm15 = vmmov %vm12775_vm7 }
 0x9b9   : > { %3905 = vrot.lane.b32.xlu0 %v10414_v51, %s12213_s20  ;;  %4025 = vrot.lane.b32.xlu2 %v10412_v59, %s12242_s27 }
 0x9ba   : > { %4039 = vrot.lane.b32.xlu1 %v10516_v36, %s12242_s27 }
 0x9bb   : > { %v3942_v3 = vpop.permute.xlu0 %3941  ;;  %v10624_v24 = vpop.permute.xlu2 %3971 }
 0x9bc   : > { %v3966_v12 = vpop.permute.xlu1 %3965 }
 0x9bd   : > { %v10618_v45 = vsel %vm12770_vm14, %v3966_v12, %v3974_v0  ;;  %v10622_v27 = vsel %vm12771_vm6, %v3974_v0, %v3966_v12  ;;  %vm12777_vm14 = vcmp.lt.s32.totalorder %v5616_v8, 17 }
 0x9be   : > { %vm12778_vm6 = vmmov %vm12777_vm14 }
 0x9c2   : > { %4033 = vrot.lane.b32.xlu1 %v10414_v51, %s12242_s27 }
 0x9c3   : > { %v4126_v47 = vpop.permute.xlu0 %4125  ;;  %v10642_v7 = vpop.permute.xlu2 %4059 }
 0x9c4   : > { %v4102_v48 = vpop.permute.xlu1 %4101  ;;  %v10630_v61 = vsel %vm12772_vm5, %v4126_v47, %v4134_v55  ;;  %v10634_v37 = vsel %vm12773_vm4, %v4134_v55, %v4126_v47  ;;  %vm12779_vm5 = vcmp.lt.s32.totalorder %v5616_v8, 16 }
 0x9c5   : > { %12774 = vst [vmem:[#allocation94_spill] sm:$0xff] %v10634_v37  ;;  %v4107_v53 = vsel %vm12775_vm7, %v4094_v9, %v4102_v48  ;;  %v10640_v39 = vsel %vm12776_vm15, %v4102_v48, %v4094_v9  ;;  %vm12780_vm4 = vmmov %vm12779_vm5  ;;  %vm12781_vm7 = vcmp.lt.s32.totalorder %v5616_v8, 113 }
 0x9c6   : > { %vm12782_vm15 = vmmov %vm12781_vm7 }
 0x9cb   : > { %v3902_v56 = vpop.permute.xlu0 %3901  ;;  %v10660_v47 = vpop.permute.xlu2 %4131 }
 0x9cc   : > { %v3934_v11 = vpop.permute.xlu1 %3933  ;;  %v10646_v58 = vsel %vm12777_vm14, %v3902_v56, %v3910_v19  ;;  %v10650_v0 = vsel %vm12778_vm6, %v3910_v19, %v3902_v56  ;;  %vm12783_vm14 = vcmp.lt.s32.totalorder %v5616_v8, 127 }
 0x9cd   : > { %v10654_v55 = vsel %vm12779_vm5, %v3934_v11, %v3942_v3  ;;  %v10658_v9 = vsel %vm12780_vm4, %v3942_v3, %v3934_v11  ;;  %vm12784_vm6 = vmmov %vm12783_vm14  ;;  %vm12786_vm5 = vcmp.lt.s32.totalorder %v5616_v8, 1 }
 0x9ce   : > { %vm12787_vm4 = vmmov %vm12786_vm5 }
 0x9d3   : > { %v4038_v30 = vpop.permute.xlu0 %4037  ;;  %v10678_v11 = vpop.permute.xlu2 %3899 }
 0x9d4   : > { %v4070_v12 = vpop.permute.xlu1 %4069 }
 0x9d5   : > { %v10664_v48 = vsel %vm12781_vm7, %v4062_v21, %v4070_v12  ;;  %v10668_v19 = vsel %vm12782_vm15, %v4070_v12, %v4062_v21  ;;  %vm12790_vm7 = vmmov %vm12787_vm4 }
 0x9d6   : > { %vm12791_vm15 = vmmov %vm12787_vm4 }
 0x9db   : > { %v3996_v56 = vpop.permute.xlu0 %3995  ;;  %v10682_v4 = vpop.permute.xlu2 %4035 }
 0x9dc   : > { %v4030_v28 = vpop.permute.xlu1 %4029  ;;  %v4010_v34 = vsel %vm12790_vm7, %v3996_v56, %v4004_v57  ;;  %v4014_v37 = vsel %vm12791_vm15, %v4004_v57, %v3996_v56  ;;  %v12833_v56 = vld [vmem:[#allocation7_spill] sm:$0xff] }
 0x9dd   : > { %v10672_v63 = vsel %vm12783_vm14, %v4030_v28, %v4038_v30  ;;  %v10676_v3 = vsel %vm12784_vm6, %v4038_v30, %v4030_v28  ;;  %vm12792_vm14 = vcmp.lt.s32.totalorder %v5616_v8, 112  ;;  %vm12793_vm6 = vcmp.lt.s32.totalorder %v5616_v8, 15 }
 0x9de   : > { %12785 = vst [vmem:[#allocation37_spill] sm:$0xff] %v10676_v3 }
 0x9e3   : > { %v3964_v14 = vpop.permute.xlu0 %3963  ;;  %v4008_v12 = vpop.permute.xlu2 %4007 }
 0x9e4   : > { %v10680_v10 = vpop.permute.xlu1 %4091 }
 0x9e5   : > { %v12834_v3 = vld [vmem:[#allocation37_spill] sm:$0xff] }
 0x9eb   : > { %v10684_v51 = vpop.permute.xlu0 %4099  ;;  %v3968_v28 = vpop.permute.xlu2 %3967 }
 0x9ec   : > { %v3932_v21 = vpop.permute.xlu1 %3931 }
 0x9f3   : > { %v3940_v16 = vpop.permute.xlu0 %3939  ;;  %v4104_v50 = vpop.permute.xlu2 %4103 }
 0x9f4   : > { %v10686_v6 = vpop.permute.xlu1 %4067 }
 0x9fb   : > { %v10688_v59 = vpop.permute.xlu0 %4123  ;;  %v4064_v57 = vpop.permute.xlu2 %4063 }
 0x9fc   : > { %v10690_v36 = vpop.permute.xlu1 %3907 }
 0xa03   : > { %v10692_v30 = vpop.permute.xlu0 %4027 }
 0xa04   : > { %v4000_v5 = vpop.permute.xlu1 %3999 }
 0xa05   : > { %v4012_v38 = vsel %vm12786_vm5, %v4000_v5, %v4008_v12  ;;  %v4016_v20 = vsel %vm12787_vm4, %v4008_v12, %v4000_v5  ;;  %vm12794_vm5 = vmmov %vm12793_vm6  ;;  %v12839_v12 = vld [vmem:[#allocation89_spill] sm:$0xff] }
 0xa06   : > { %5158 = vmatpush.msk.msrb.mxu0 %vm12673_vm1, %v4016_v20  ;;  %5192 = vmatpush.msk.msrb.mxu2 %vm12563_vm12, %v4012_v38  ;;  %vm12799_vm7 = vmmov %vm12794_vm5 }
 0xa07   : > { %vm12800_vm15 = vmmov %vm12794_vm5 }
 0xa08   : > { %5159 = vmatpush.msk.msrb.mxu0 %vm12673_vm1, %v4015_v25  ;;  %5193 = vmatpush.msk.msrb.mxu2 %vm12563_vm12, %v4011_v41  ;;  %v3982_v17 = vsel %vm12800_vm15, %v10624_v24, %v3964_v14  ;;  %vm12809_vm15 = vnez %v12568_v29 }
 0xa0a   : > { %5160 = vmatpush.msk.msrb.mxu0 %vm12673_vm1, %v4014_v37  ;;  %5194 = vmatpush.msk.msrb.mxu2 %vm12563_vm12, %v4010_v34  ;;  %v12795_v34 = vld [vmem:[#allocation4_spill] sm:$0xff] }
 0xa0b   : > { %v4096_v38 = vpop.permute.xlu0 %4095  ;;  %vm12796_vm4 = vnez %v12795_v34 }
 0xa0c   : > { %v3976_v5 = vpop.permute.xlu1 %3975  ;;  %5161 = vmatpush.msk.msrb.mxu0 %vm12673_vm1, %v10530_v49  ;;  %5195 = vmatpush.msk.msrb.mxu2 %vm12563_vm12, %v10526_v40  ;;  %v4108_v20 = vsel %vm12792_vm14, %v4096_v38, %v4104_v50  ;;  %vm12797_vm1 = vnez %v12571_v13  ;;  %vm12798_vm12 = vmmov %vm12792_vm14  ;;  %v3978_v49 = vsel %vm12799_vm7, %v3964_v14, %v10624_v24  ;;  %vm12801_vm14 = vcmp.lt.s32.totalorder %v5616_v8, 16 }
 0xa0d   : > { %v3980_v41 = vsel %vm12793_vm6, %v3968_v28, %v3976_v5  ;;  %v3984_v25 = vsel %vm12794_vm5, %v3976_v5, %v3968_v28  ;;  %5174 = vmatpush.msk.msrb.mxu1 %vm12796_vm4, %v4108_v20  ;;  %v4106_v40 = vsel %vm12798_vm12, %v10680_v10, %v10684_v51  ;;  %vm12802_vm6 = vmmov %vm12801_vm14  ;;  %vm12803_vm5 = vnez %v12694_v43  ;;  %v12840_v28 = vld [vmem:[#allocation135_spill] sm:$0xff]  ;;  %v12845_v5 = vld [vmem:[#allocation128_spill] sm:$0xff] }
 0xa0e   : > { %5162 = vmatpush.msk.msrb.mxu0 %vm12229_vm11, %v3984_v25  ;;  %5196 = vmatpush.msk.msrb.mxu2 %vm12797_vm1, %v3980_v41  ;;  %vm12807_vm12 = vcmp.lt.s32.totalorder %v5616_v8, 111  ;;  %vm12808_vm7 = vcmp.lt.s32.totalorder %v5616_v8, 113  ;;  %v4157_v20 = vld [vmem:[%s11066_s9 + $0x20] sm:$0xff] }
 0xa0f   : > { %5175 = vmatpush.msk.msrb.mxu1 %vm12796_vm4, %v4107_v53 }
 0xa10   : > { %5163 = vmatpush.msk.msrb.mxu0 %vm12229_vm11, %v10622_v27  ;;  %5197 = vmatpush.msk.msrb.mxu2 %vm12797_vm1, %v10618_v45 }
 0xa11   : > { %5176 = vmatpush.msk.msrb.mxu1 %vm12796_vm4, %v4106_v40 }
 0xa12   : > { %5164 = vmatpush.msk.msrb.mxu0 %vm12229_vm11, %v3982_v17  ;;  %5198 = vmatpush.msk.msrb.mxu2 %vm12797_vm1, %v3978_v49 }
 0xa13   : > { %5177 = vmatpush.msk.msrb.mxu1 %vm12796_vm4, %v10542_v44  ;;  %v3944_v45 = vpop.permute.xlu0 %3943  ;;  %vm12804_vm4 = vnez %v12258_v52  ;;  %v4136_v44 = vpop.permute.xlu2 %4135 }
 0xa14   : > { %v3936_v27 = vpop.permute.xlu1 %3935  ;;  %5165 = vmatpush.msk.msrb.mxu0 %vm12229_vm11, %v10554_v31  ;;  %5199 = vmatpush.msk.msrb.mxu2 %vm12797_vm1, %v10550_v60  ;;  %vm12805_vm11 = vmmov %vm12802_vm6 }
 0xa15   : > { %v3948_v14 = vsel %vm12801_vm14, %v3936_v27, %v3944_v45  ;;  %v3952_v24 = vsel %vm12802_vm6, %v3944_v45, %v3936_v27  ;;  %v3946_v13 = vsel %vm12805_vm11, %v3932_v21, %v3940_v16  ;;  %vm12806_vm1 = vmmov %vm12802_vm6 }
 0xa16   : > { %5166 = vmatpush.msk.msrb.mxu0 %vm12803_vm5, %v3952_v24  ;;  %5200 = vmatpush.msk.msrb.mxu2 %vm12804_vm4, %v3948_v14  ;;  %v3950_v46 = vsel %vm12806_vm1, %v3940_v16, %v3932_v21  ;;  %vm12810_vm14 = vmmov %vm12807_vm12  ;;  %vm12815_vm1 = vcmask 261120   ;;  %v12836_v21 = vld [vmem:[#allocation35_spill] sm:$0xff] }
 0xa17   : > { %v4138_v52 = vsel %vm12810_vm14, %v10688_v59, %v10660_v47  ;;  %vm12811_vm6 = vmmov %vm12808_vm7 }
 0xa18   : > { %5167 = vmatpush.msk.msrb.mxu0 %vm12803_vm5, %v10658_v9  ;;  %5201 = vmatpush.msk.msrb.mxu2 %vm12804_vm4, %v10654_v55  ;;  %v4074_v43 = vsel %vm12811_vm6, %v10642_v7, %v10686_v6 }
 0xa1a   : > { %5168 = vmatpush.msk.msrb.mxu0 %vm12803_vm5, %v3950_v46  ;;  %5202 = vmatpush.msk.msrb.mxu2 %vm12804_vm4, %v3946_v13 }
 0xa1b   : > { %v4128_v60 = vpop.permute.xlu0 %4127 }
 0xa1c   : > { %v4072_v31 = vpop.permute.xlu1 %4071  ;;  %5169 = vmatpush.msk.msrb.mxu0 %vm12803_vm5, %v10568_v54  ;;  %5203 = vmatpush.msk.msrb.mxu2 %vm12804_vm4, %v10564_v15  ;;  %v4140_v16 = vsel %vm12807_vm12, %v4128_v60, %v4136_v44  ;;  %v10822_v15 = vld [vmem:[%s11066_s9 + $0x10] sm:$0xff]  ;;  %vm12812_vm5 = vcmp.lt.s32.totalorder %v5616_v8, 112  ;;  %vm12813_vm4 = vcmp.lt.s32.totalorder %v5616_v8, 17 }
 0xa1d   : > { %v4076_v37 = vsel %vm12808_vm7, %v4064_v57, %v4072_v31  ;;  %5186 = vmatpush.msk.msra.mxu3 %vm12582_vm10, %v4140_v16  ;;  %v4112_v54 = vsel %vm12812_vm5, %v4104_v50, %v4096_v38  ;;  %vm12814_vm11 = vmmov %vm12813_vm4  ;;  %v12842_v38 = vld [vmem:[#allocation34_spill] sm:$0xff] }
 0xa1e   : > { %5178 = vmatpush.msk.msrb.mxu1 %vm12809_vm15, %v4076_v37  ;;  %vm12817_vm12 = vmmov %vm12813_vm4 }
 0xa1f   : > { %5187 = vmatpush.msk.msra.mxu3 %vm12582_vm10, %v10630_v61  ;;  %v3914_v62 = vsel %vm12817_vm12, %v10678_v11, %v10690_v36  ;;  %vm12818_vm7 = vmmov %vm12813_vm4 }
 0xa20   : > { %5179 = vmatpush.msk.msrb.mxu1 %vm12809_vm15, %v10664_v48  ;;  %v3918_v50 = vsel %vm12818_vm7, %v10690_v36, %v10678_v11  ;;  %vm12820_vm14 = vmmov %vm12813_vm4 }
 0xa21   : > { %5188 = vmatpush.msk.msra.mxu3 %vm12582_vm10, %v4138_v52  ;;  %vm12843_vm7 = vmmov %vm12815_vm1 }
 0xa22   : > { %5180 = vmatpush.msk.msrb.mxu1 %vm12809_vm15, %v4074_v43 }
 0xa23   : > { %5189 = vmatpush.msk.msra.mxu3 %vm12582_vm10, %v10578_v35  ;;  %v3912_v61 = vpop.permute.xlu0 %3911  ;;  %vm12816_vm10 = vmmov %vm12812_vm5  ;;  %vm12822_vm5 = vcmp.lt.s32.totalorder %v5616_v8, 127 }
 0xa24   : > { %v3904_v53 = vpop.permute.xlu1 %3903  ;;  %5181 = vmatpush.msk.msrb.mxu1 %vm12809_vm15, %v10586_v42  ;;  %5190 = vmatmul.msk.f32.vlgmr.msra.gmra.mxu3 %vm12815_vm1, %v10822_v15  ;;  %v4110_v29 = vsel %vm12816_vm10, %v10684_v51, %v10680_v10  ;;  %v4032_v10 = vpop.permute.xlu2 %4031  ;;  %vm12819_vm15 = vmmov %vm12811_vm6 }
 0xa25   : > { %5208 = vmatpush.msk.msrb.mxu3 %vm12306_vm3, %v4112_v54  ;;  %v3916_v55 = vsel %vm12813_vm4, %v3904_v53, %v3912_v61  ;;  %v3920_v9 = vsel %vm12814_vm11, %v3912_v61, %v3904_v53  ;;  %v4080_v35 = vsel %vm12819_vm15, %v4072_v31, %v4064_v57  ;;  %vm12821_vm6 = vmmov %vm12813_vm4  ;;  %vm12824_vm4 = vnez %v12584_v33  ;;  %v12838_v33 = vld [vmem:[#allocation126_spill] sm:$0xff]  ;;  %v10978_v61 = vld [vmem:[%s5518_s23 + $0x10] sm:$0xff] }
 0xa26   : > { %5170 = vmatpush.msk.msrb.mxu0 %vm12705_vm0, %v3920_v9  ;;  %5204 = vmatpush.msk.msrb.mxu2 %vm12707_vm13, %v3916_v55  ;;  %vm12830_vm10 = vmmov %vm12822_vm5  ;;  %v10981_v53 = vld [vmem:[%s5518_s23 + $0x18] sm:$0xff]  ;;  %v10986_v9 = vld [vmem:[%s5518_s23] sm:$0xff] }
 0xa27   : > { %5209 = vmatpush.msk.msrb.mxu3 %vm12306_vm3, %v10640_v39  ;;  %vm12831_vm12 = vmmov %vm12822_vm5  ;;  %v4485_v55 = vadd.f32 %v10981_v53, %v10978_v61 }
 0xa28   : > { %5171 = vmatpush.msk.msrb.mxu0 %vm12705_vm0, %v10650_v0  ;;  %5205 = vmatpush.msk.msrb.mxu2 %vm12707_vm13, %v10646_v58  ;;  %v12827_v0 = vld [vmem:[#allocation94_spill] sm:$0xff] }
 0xa29   : > { %5210 = vmatpush.msk.msrb.mxu3 %vm12306_vm3, %v4110_v29  ;;  %4486 = vadd.xlane.f32.xlu1 %v4485_v55  ;;  %v10989_v29 = vld [vmem:[%s5518_s23 + $0x8] sm:$0xff]  ;;  %v12851_v55 = vld [vmem:[#allocation93_spill] sm:$0xff] }
 0xa2a   : > { %5172 = vmatpush.msk.msrb.mxu0 %vm12705_vm0, %v3918_v50  ;;  %5206 = vmatpush.msk.msrb.mxu2 %vm12707_vm13, %v3914_v62  ;;  %v4482_v62 = vadd.f32 %v10989_v29, %v10986_v9 }
 0xa2b   : > { %5211 = vmatpush.msk.msrb.mxu3 %vm12306_vm3, %v10546_v23  ;;  %v3906_v51 = vpop.permute.xlu0 %3905  ;;  %vm12823_vm3 = vcmp.lt.s32.totalorder %v5616_v8, 111  ;;  %v12844_v8 = vld [vmem:[#allocation8_spill] sm:$0xff] }
 0xa2c   : > { %v4040_v42 = vpop.permute.xlu1 %4039  ;;  %v3913_v36 = vsel %vm12820_vm14, %v10598_v18, %v3906_v51  ;;  %v3917_v39 = vsel %vm12821_vm6, %v3906_v51, %v10598_v18  ;;  %v4144_v23 = vsel %vm12823_vm3, %v4136_v44, %v4128_v60  ;;  %vm12828_vm11 = vmmov %vm12823_vm3  ;;  %5191 = vmatmul.msk.f32.gmra.mxu3 %vm12815_vm1, %v4158_v22 }
 0xa2d   : > { %v4044_v58 = vsel %vm12822_vm5, %v4032_v10, %v4040_v42  ;;  %5212 = vmatpush.msk.msrb.mxu3 %vm12620_vm9, %v4080_v35  ;;  %5173 = vmatpush.msk.msrb.mxu0 %vm12705_vm0, %v3917_v39  ;;  %vm12825_vm0 = vmmov %vm12819_vm15  ;;  %v4048_v48 = vsel %vm12830_vm10, %v4040_v42, %v4032_v10  ;;  %v12847_v10 = vld [vmem:[#allocation27_spill] sm:$0xff]  ;;  %vm12848_vm15 = vcmask 130048  }
 0xa2e   : > { %5182 = vmatpush.msk.msrb.mxu1 %vm12824_vm4, %v4044_v58  ;;  %5207 = vmatpush.msk.msrb.mxu2 %vm12707_vm13, %v3913_v36  ;;  %v4078_v18 = vsel %vm12825_vm0, %v10686_v6, %v10642_v7  ;;  %vm12826_vm13 = vmmov %vm12822_vm5  ;;  %v4142_v6 = vsel %vm12828_vm11, %v10660_v47, %v10688_v59  ;;  %v4026_v7 = vpop.permute.xlu2 %4025 }
 0xa2f   : > { %5213 = vmatpush.msk.msrb.mxu3 %vm12620_vm9, %v10668_v19  ;;  %5220 = vmatpush.msk.msra.mxu0 %vm12461_vm2, %v4144_v23  ;;  %v4042_v2 = vsel %vm12826_vm13, %v10692_v30, %v10682_v4 }
 0xa30   : > { %5183 = vmatpush.msk.msrb.mxu1 %vm12824_vm4, %v10672_v63  ;;  %4181 = vmatmul.f32.vlgmr.msrb.gmra.mxu0 %v4153_v26  ;;  %v12829_v63 = vld [vmem:[#allocation59_spill] sm:$0xff] }
 0xa31   : > { %5214 = vmatpush.msk.msrb.mxu3 %vm12620_vm9, %v4078_v18  ;;  %5221 = vmatpush.msk.msra.mxu0 %vm12461_vm2, %v12827_v0 }
 0xa32   : > { %5184 = vmatpush.msk.msrb.mxu1 %vm12824_vm4, %v4042_v2  ;;  %4250 = vmatmul.f32.vlgmr.msrb.gmra.mxu2 %v4153_v26 }
 0xa33   : > { %5215 = vmatpush.msk.msrb.mxu3 %vm12620_vm9, %v12829_v63  ;;  %5222 = vmatpush.msk.msra.mxu0 %vm12461_vm2, %v4142_v6  ;;  %vm12835_vm9 = vmmov %vm12822_vm5 }
 0xa34   : > { %v4034_v19 = vpop.permute.xlu1 %4033  ;;  %v4046_v11 = vsel %vm12835_vm9, %v10682_v4, %v10692_v30  ;;  %v4154_v4 = vld [vmem:[%s11066_s9 + $0x8] sm:$0xff]  ;;  %v12841_v30 = vld [vmem:[#allocation6_spill] sm:$0xff]  ;;  %vm4527_vm9 = vcmask 1043456  }
 0xa35   : > { %v4041_v59 = vsel %vm12831_vm12, %v4026_v7, %v4034_v19  ;;  %5216 = vmatpush.msk.msrb.mxu3 %vm12627_vm8, %v4048_v48  ;;  %5223 = vmatpush.msk.msra.mxu0 %vm12461_vm2, %v12833_v56  ;;  %vm12837_vm2 = vmmov %vm12822_vm5  ;;  %vm4367_vm12 = vcmask 523264  }
 0xa36   : > { %5185 = vmatpush.msk.msrb.mxu1 %vm12824_vm4, %v4041_v59  ;;  %v4045_v1 = vsel %vm12837_vm2, %v4034_v19, %v4026_v7  ;;  %vm4520_vm2 = vcmask 31744  }
 0xa37   : > { %5217 = vmatpush.msk.msrb.mxu3 %vm12627_vm8, %v12834_v3 }
 0xa38   : > { %4200 = vmatpush.msrb.mxu1 %v12836_v21  ;;  %4184 = vmatmul.f32.gmra.mxu0 %v4156_v32 }
 0xa39   : > { %5218 = vmatpush.msk.msrb.mxu3 %vm12627_vm8, %v4046_v11 }
 0xa3a   : > { %4201 = vmatpush.msrb.mxu1 %v12838_v33  ;;  %4253 = vmatmul.f32.gmra.mxu2 %v4156_v32  ;;  %v4490_v32 = vld [vmem:[%s11068_s11] sm:$0xf] }
 0xa3b   : > { %5219 = vmatpush.msk.msrb.mxu3 %vm12627_vm8, %v4045_v1  ;;  %vm12846_vm8 = vmmov %vm12815_vm1 }
 0xa3c   : > { %4202 = vmatpush.msrb.mxu1 %v12839_v12 }
 0xa3d   : > { %4269 = vmatpush.msrb.mxu3 %v12840_v28 }
 0xa3e   : > { %4203 = vmatpush.msrb.mxu1 %v12841_v30 }
 0xa3f   : > { %4204 = vmatmul.f32.vlgmr.msrb.gmra.mxu1 %v4154_v4  ;;  %4270 = vmatpush.msrb.mxu3 %v12842_v38 }
 0xa40   : > { %5224 = vmatmul.msk.f32.vlgmr.msra.gmra.mxu0 %vm12843_vm7, %v10822_v15 }
 0xa41   : > { %4271 = vmatpush.msrb.mxu3 %v12844_v8 }
 0xa43   : > { %4272 = vmatpush.msrb.mxu3 %v12845_v5 }
 0xa44   : > { %4273 = vmatmul.f32.vlgmr.msrb.gmra.mxu3 %v4154_v4 }
 0xa47   : > { %4207 = vmatmul.f32.gmra.mxu1 %v4157_v20 }
 0xa48   : > { %5225 = vmatmul.msk.f32.gmra.mxu0 %vm12846_vm8, %v4158_v22 }
 0xa4c   : > { %4276 = vmatmul.f32.gmra.mxu3 %v4157_v20 }
 0xa9c   : > { %v4487_v63 = vpop.xlane.xlu1 %4486 }
 0xa9d   : > { %v4489_v7 = vmul.f32 %v4487_v63, %v12847_v10  ;;  %v4518_v63 = vld [vmem:[%s11071_s14] sm:$0xff] }
 0xa9f   : > { %4509 = vmatpush.msrb.mxu0 %v4489_v7 }
 0xaa7   : > { %v4228_v25 = vpop.f32.mrf.mxu3 }
 0xaad   : > { %v4182_v41 = vpop.f32.mrf.mxu0 }
 0xaaf   : > { %v4231_v40 = vpop.f32.mrf.mxu3 }
 0xab5   : > { %v4185_v34 = vpop.f32.mrf.mxu0  ;;  %v4251_v17 = vpop.f32.mrf.mxu2 }
 0xabc   : > { %v4205_v49 = vpop.f32.mrf.mxu1 }
 0xabd   : > { %v4297_v57 = vpop.f32.mrf.mxu0  ;;  %v4206_v45 = vadd.f32 %v4205_v49, %v4182_v41  ;;  %v4254_v60 = vpop.f32.mrf.mxu2 }
 0xabf   : > { %v4229_v24 = vadd.f32 %v4228_v25, %v4206_v45 }
 0xac4   : > { %v4208_v46 = vpop.f32.mrf.mxu1 }
 0xac5   : > { %v4209_v31 = vadd.f32 %v4208_v46, %v4185_v34  ;;  %v4300_v37 = vpop.f32.mrf.mxu0 }
 0xac7   : > { %v4274_v27 = vpop.f32.mrf.mxu3  ;;  %v4232_v43 = vadd.f32 %v4231_v40, %v4209_v31 }
 0xac8   : > { %v4275_v14 = vadd.f32 %v4274_v27, %v4251_v17 }
 0xaca   : > { %v4298_v13 = vadd.f32 %v4297_v57, %v4275_v14 }
 0xacc   : > { %v4303_v44 = vadd.f32 %v4298_v13, %v4229_v24 }
 0xace   : > { %4304 = vadd.xlane.f32.xlu2 %v4303_v44 }
 0xacf   : > { %v4277_v16 = vpop.f32.mrf.mxu3 }
 0xad0   : > { %v4278_v52 = vadd.f32 %v4277_v16, %v4254_v60 }
 0xad2   : > { %v4301_v15 = vadd.f32 %v4300_v37, %v4278_v52 }
 0xad4   : > { %v4306_v54 = vadd.f32 %v4301_v15, %v4232_v43 }
 0xad6   : > { %4307 = vadd.xlane.f32.xlu0 %v4306_v54  ;;  %4483 = vadd.xlane.f32.xlu2 %v4482_v62  ;;  %v12850_v54 = vld [vmem:[#allocation29_spill] sm:$0xff]  ;;  %v12852_v62 = vld [vmem:[#allocation76_spill] sm:$0xff] }
 0xb41   : > { %v4305_v50 = vpop.xlane.xlu2 %4304 }
 0xb42   : > { %v4309_v51 = vmul.f32 %v4305_v50, %v12847_v10  ;;  %v12853_v50 = vld [vmem:[#allocation172_spill] sm:$0xff] }
 0xb44   : > { %v4311_v35 = vsub.f32 %v4229_v24, %v4309_v51  ;;  %v4312_v42 = vsub.f32 %v4298_v13, %v4309_v51  ;;  %v12854_v51 = vld [vmem:[#allocation165_spill] sm:$0xff] }
 0xb46   : > { %v4315_v36 = vmul.f32 %v4311_v35, %v4311_v35  ;;  %v4316_v39 = vmul.f32 %v4312_v42, %v4312_v42 }
 0xb48   : > { %v4319_v58 = vadd.f32 %v4316_v39, %v4315_v36 }
 0xb49   : > { %v4308_v26 = vpop.xlane.xlu0 %4307  ;;  %v4484_v48 = vpop.xlane.xlu2 %4483 }
 0xb4a   : > { %v4310_v23 = vmul.f32 %v4308_v26, %v12847_v10  ;;  %4320 = vadd.xlane.f32.xlu1 %v4319_v58  ;;  %v4488_v19 = vmul.f32 %v4484_v48, %v12847_v10  ;;  %v4516_v58 = vld [vmem:[%s11070_s13] sm:$0xff]  ;;  %v4517_v26 = vld [vmem:[%s11070_s13 + $0x8] sm:$0xff] }
 0xb4c   : > { %v4313_v22 = vsub.f32 %v4232_v43, %v4310_v23  ;;  %v4314_v18 = vsub.f32 %v4301_v15, %v4310_v23  ;;  %4510 = vmatpush.msrb.mxu0 %v4488_v19  ;;  %v12849_v15 = vld [vmem:[#allocation72_spill] sm:$0xff] }
 0xb4d   : > { %5230 = vmatmul.msk.f32.vlgmr.msrb.gmra.mxu0 %vm12848_vm15, %v4490_v32  ;;  %v4519_v32 = vld [vmem:[%s11071_s14 + $0x8] sm:$0xff] }
 0xb4e   : > { %v4317_v2 = vmul.f32 %v4313_v22, %v4313_v22  ;;  %v4318_v0 = vmul.f32 %v4314_v18, %v4314_v18 }
 0xb50   : > { %v4322_v6 = vadd.f32 %v4318_v0, %v4317_v2 }
 0xb52   : > { %4323 = vadd.xlane.f32.xlu0 %v4322_v6 }
 0xbbd   : > { %v4321_v59 = vpop.xlane.xlu1 %4320 }
 0xbbe   : > { %v4325_v47 = vmul.f32 %v4321_v59, %v12847_v10 }
 0xbc0   : > { %v4327_v56 = vadd.f32 1e-05, %v4325_v47 }
 0xbc2   : > { %5336 = vrsqrt.f32 %v4327_v56  ;;  %vm4335_vm6 = vweird.f32 %v4327_v56 }
 0xbc5   : > { %v4324_v3 = vpop.xlane.xlu0 %4323 }
 0xbc6   : > { %v4326_v11 = vmul.f32 %v4324_v3, %v12847_v10 }
 0xbc8   : > { %v5337_v21 = vpop.eup %5336  ;;  %v4328_v1 = vadd.f32 1e-05, %v4326_v11 }
 0xbc9   : > { %v4330_v33 = vmul.f32 %v5337_v21, %v4327_v56  ;;  %vm4336_vm14 = vweird.f32 %v5337_v21 }
 0xbca   : > { %5338 = vrsqrt.f32 %v4328_v1  ;;  %vm4337_vm5 = vmor %vm4335_vm6, %vm4336_vm14  ;;  %vm4345_vm4 = vweird.f32 %v4328_v1 }
 0xbcb   : > { %v4331_v4 = vmul.f32 %v5337_v21, %v4330_v33 }
 0xbcd   : > { %v4332_v28 = vmul.f32 0.5, %v4331_v4 }
 0xbcf   : > { %v4333_v38 = vsub.f32 1.5, %v4332_v28 }
 0xbd0   : > { %v5339_v20 = vpop.eup %5338 }
 0xbd1   : > { %v4340_v41 = vmul.f32 %v5339_v20, %v4328_v1  ;;  %v4334_v25 = vmul.f32 %v5337_v21, %v4333_v38  ;;  %vm4346_vm3 = vweird.f32 %v5339_v20  ;;  %v5421_v1 = vmov 0  }
 0xbd2   : > { %vm4347_vm0 = vmor %vm4345_vm4, %vm4346_vm3  ;;  %5300 = vset.pattern.permute.xlu0 %v5421_v1  ;;  %5301 = vset.pattern.permute.xlu1 %v5421_v1 }
 0xbd3   : > { %v4341_v34 = vmul.f32 %v5339_v20, %v4340_v41  ;;  %v4338_v49 = vsel %vm4337_vm5, %v5337_v21, %v4334_v25 }
 0xbd4   : > { %v4349_v45 = vmul.f32 %v4338_v49, %v4311_v35  ;;  %v4350_v27 = vmul.f32 %v4338_v49, %v4312_v42  ;;  %v4491_v35 = vld [vmem:[%s11069_s12] sm:$0xf]  ;;  %v4512_v42 = vpop.f32.mrf.mxu0 }
 0xbd5   : > { %v4342_v40 = vmul.f32 0.5, %v4341_v34  ;;  %v4513_v36 = vadd.f32 %v4512_v42, %v4491_v35 }
 0xbd6   : > { %v4357_v46 = vmul.f32 0.2, %v4349_v45  ;;  %v4358_v44 = vmul.f32 0.2, %v4350_v27  ;;  %vm4353_vm1 = vcmp.ge.f32.partialorder %v4349_v45, 0.0  ;;  %vm4354_vm10 = vcmp.ge.f32.partialorder %v4350_v27, 0.0 }
 0xbd7   : > { %v4343_v17 = vsub.f32 1.5, %v4342_v40  ;;  %v4515_v39 = vmax.f32 %v4513_v36, 0.0 }
 0xbd8   : > { %v4361_v52 = vsel %vm4353_vm1, %v4349_v45, %v4357_v46  ;;  %v4362_v43 = vsel %vm4354_vm10, %v4350_v27, %v4358_v44 }
 0xbd9   : > { %v4344_v57 = vmul.f32 %v5339_v20, %v4343_v17 }
 0xbdb   : > { %v4348_v14 = vsel %vm4347_vm0, %v5339_v20, %v4344_v57 }
 0xbdc   : > { %v4351_v24 = vmul.f32 %v4348_v14, %v4313_v22  ;;  %v4352_v13 = vmul.f32 %v4348_v14, %v4314_v18 }
 0xbde   : > { %vm4355_vm13 = vcmp.ge.f32.partialorder %v4351_v24, 0.0  ;;  %v4359_v60 = vmul.f32 0.2, %v4351_v24  ;;  %vm4356_vm11 = vcmp.ge.f32.partialorder %v4352_v13, 0.0  ;;  %v4360_v31 = vmul.f32 0.2, %v4352_v13 }
 0xbe0   : > { %v4363_v16 = vsel %vm4355_vm13, %v4351_v24, %v4359_v60  ;;  %v4364_v37 = vsel %vm4356_vm11, %v4352_v13, %v4360_v31 }
 0xbe1   : > { %4382 = vmatpush.msra.mxu1 %v4363_v16  ;;  %4405 = vmatpush.msra.mxu2 %v4364_v37 }
 0xbe3   : > { %4383 = vmatpush.msra.mxu1 %v4361_v52  ;;  %4406 = vmatpush.msra.mxu2 %v4362_v43 }
 0xbe5   : > { %4384 = vmatpush.msra.mxu1 %v12839_v12  ;;  %4407 = vmatpush.msra.mxu2 %v12844_v8  ;;  %v4365_v12 = vld [vmem:[%s11067_s10] sm:$0xff]  ;;  %v12856_v8 = vld [vmem:[#allocation176_spill] sm:$0xff] }
 0xbe7   : > { %4385 = vmatpush.msra.mxu1 %v12841_v30  ;;  %4408 = vmatpush.msra.mxu2 %v12845_v5  ;;  %v12855_v30 = vld [vmem:[#allocation175_spill] sm:$0xff] }
 0xbe8   : > { %v4366_v5 = vld [vmem:[%s11067_s10 + $0x8] sm:$0xff] }
 0xbe9   : > { %4386 = vmatpush.msra.mxu1 %v12849_v15  ;;  %4409 = vmatpush.msra.mxu2 %v12850_v54 }
 0xbeb   : > { %4387 = vmatpush.msra.mxu1 %v12851_v55  ;;  %4410 = vmatpush.msra.mxu2 %v12852_v62 }
 0xbed   : > { %4388 = vmatpush.msra.mxu1 %v12853_v50  ;;  %4411 = vmatpush.msra.mxu2 %v12854_v51 }
 0xbef   : > { %4389 = vmatpush.msra.mxu1 %v12855_v30  ;;  %4412 = vmatpush.msra.mxu2 %v12856_v8 }
 0xbf0   : > { %5228 = vmatmul.msk.f32.vlgmr.msra.gmra.mxu2 %vm4367_vm12, %v4365_v12  ;;  %5226 = vmatmul.msk.f32.vlgmr.msra.gmra.mxu1 %vm4367_vm12, %v4365_v12 }
 0xbf1   : > { %5231 = vmatpush.msk.msrb.mxu1 %vm4527_vm9, %v4515_v39 }
 0xbf8   : > { %5229 = vmatmul.msk.f32.gmra.mxu2 %vm4367_vm12, %v4366_v5  ;;  %5227 = vmatmul.msk.f32.gmra.mxu1 %vm4367_vm12, %v4366_v5 }
 0xc00   : > { %5232 = vmatmul.msk.f32.vlgmr.msrb.gmra.mxu1 %vm4520_vm2, %v4516_v58 }
 0xc08   : > { %5233 = vmatmul.msk.f32.gmra.mxu1 %vm4520_vm2, %v4517_v26 }
 0xc6d   : > { %v4391_v23 = vpop.f32.mrf.mxu1 }
 0xc73   : > { %v4414_v22 = vpop.f32.mrf.mxu2 }
 0xc74   : > { %v4420_v18 = vadd.f32 %v4414_v22, %v4391_v23 }
 0xc75   : > { %v4394_v2 = vpop.f32.mrf.mxu1 }
 0xc76   : > { %4421 = vadd.xlane.f32.xlu2 %v4420_v18 }
 0xc7b   : > { %v4417_v0 = vpop.f32.mrf.mxu2 }
 0xc7c   : > { %v4423_v6 = vadd.f32 %v4417_v0, %v4394_v2 }
 0xc7d   : > { %v4548_v7 = vpop.f32.mrf.mxu1 }
 0xc7e   : > { %4424 = vadd.xlane.f32.xlu0 %v4423_v6  ;;  %v4549_v48 = vadd.f32 %v4548_v7, %v4518_v63 }
 0xc80   : > { %v5234_v19 = vmul.f32 -1.442695, %v4549_v48 }
 0xc82   : > { %5340 = vpow2.f32 %v5234_v19 }
 0xc85   : > { %v4551_v3 = vpop.f32.mrf.mxu1 }
 0xc86   : > { %v4552_v11 = vadd.f32 %v4551_v3, %v4519_v32 }
 0xc88   : > { %v5341_v59 = vpop.eup %5340  ;;  %v5235_v38 = vmul.f32 -1.442695, %v4552_v11 }
 0xc89   : > { %v4560_v47 = vadd.f32 1.0, %v5341_v59 }
 0xc8b   : > { %5342 = vrcp.f32 %v4560_v47  ;;  %vm4567_vm7 = vweird.f32 %v4560_v47  ;;  %v4571_v4 = vand.u32 2147483647, %v4560_v47  ;;  %v4573_v28 = vand.u32 2147483648, %v4560_v47 }
 0xc8c   : > { %5344 = vpow2.f32 %v5235_v38 }
 0xc8d   : > { %v4574_v41 = vor.u32 1.1754944e-38, %v4573_v28  ;;  %vm4572_vm14 = vcmp.eq.f32.partialorder %v4571_v4, 8.507059e+37 }
 0xc91   : > { %v5343_v56 = vpop.eup %5342 }
 0xc92   : > { %v4563_v21 = vmul.f32 %v5343_v56, %v4560_v47  ;;  %vm4568_vm8 = vweird.f32 %v5343_v56  ;;  %v5345_v49 = vpop.eup %5344 }
 0xc93   : > { %vm4569_vm15 = vmor %vm4567_vm7, %vm4568_vm8  ;;  %v4561_v45 = vadd.f32 1.0, %v5345_v49 }
 0xc94   : > { %v4564_v33 = vsub.f32 1.0, %v4563_v21 }
 0xc95   : > { %5346 = vrcp.f32 %v4561_v45  ;;  %vm4582_vm6 = vweird.f32 %v4561_v45  ;;  %v4588_v50 = vand.u32 2147483648, %v4561_v45  ;;  %v4586_v12 = vand.u32 2147483647, %v4561_v45 }
 0xc96   : > { %v4565_v20 = vmul.f32 %v5343_v56, %v4564_v33 }
 0xc97   : > { %v4589_v30 = vor.u32 1.1754944e-38, %v4588_v50  ;;  %vm4587_vm4 = vcmp.eq.f32.partialorder %v4586_v12, 8.507059e+37 }
 0xc98   : > { %v4566_v25 = vadd.f32 %v5343_v56, %v4565_v20 }
 0xc9a   : > { %v4570_v34 = vsel %vm4569_vm15, %v5343_v56, %v4566_v25 }
 0xc9b   : > { %v4575_v40 = vsel %vm4572_vm14, %v4574_v41, %v4570_v34  ;;  %v5347_v31 = vpop.eup %5346 }
 0xc9c   : > { %4594 = vperm.xlu0 %5300, %v4575_v40   ;;  %v4578_v15 = vmul.f32 %v5347_v31, %v4561_v45  ;;  %vm4583_vm5 = vweird.f32 %v5347_v31 }
 0xc9d   : > { %vm4584_vm3 = vmor %vm4582_vm6, %vm4583_vm5 }
 0xc9e   : > { %v4579_v55 = vsub.f32 1.0, %v4578_v15 }
 0xca0   : > { %v4580_v62 = vmul.f32 %v5347_v31, %v4579_v55 }
 0xca2   : > { %v4581_v51 = vadd.f32 %v5347_v31, %v4580_v62 }
 0xca4   : > { %v4585_v8 = vsel %vm4584_vm3, %v5347_v31, %v4581_v51 }
 0xca5   : > { %v4590_v5 = vsel %vm4587_vm4, %v4589_v30, %v4585_v8 }
 0xce9   : > { %v4422_v17 = vpop.xlane.xlu2 %4421 }
 0xcea   : > { %v4426_v57 = vmul.f32 %v4422_v17, %v12847_v10 }
 0xcec   : > { %v4428_v27 = vsub.f32 %v4391_v23, %v4426_v57  ;;  %v4429_v14 = vsub.f32 %v4414_v22, %v4426_v57 }
 0xcee   : > { %v4432_v24 = vmul.f32 %v4428_v27, %v4428_v27  ;;  %v4433_v13 = vmul.f32 %v4429_v14, %v4429_v14 }
 0xcf0   : > { %v4436_v46 = vadd.f32 %v4433_v13, %v4432_v24 }
 0xcf1   : > { %v4425_v44 = vpop.xlane.xlu0 %4424 }
 0xcf2   : > { %v4427_v60 = vmul.f32 %v4425_v44, %v12847_v10  ;;  %4437 = vadd.xlane.f32.xlu1 %v4436_v46 }
 0xcf4   : > { %v11038_v16 = vsub.f32 %v4394_v2, %v4427_v60  ;;  %v4431_v37 = vsub.f32 %v4417_v0, %v4427_v60 }
 0xcf6   : > { %v4434_v52 = vmul.f32 %v11038_v16, %v11038_v16  ;;  %v4435_v43 = vmul.f32 %v4431_v37, %v4431_v37 }
 0xcf8   : > { %v4439_v54 = vadd.f32 %v4435_v43, %v4434_v52 }
 0xcfa   : > { %4440 = vadd.xlane.f32.xlu2 %v4439_v54 }
 0xd0b   : > { %4599 = vperm.xlu1 %5301, %v4590_v5  }
 0xd0e   : > { %v4595_v1 = vpop.permute.xlu0 %4594 }
 0xd65   : > { %v4438_v35 = vpop.xlane.xlu1 %4437 }
 0xd66   : > { %v4442_v42 = vmul.f32 %v4438_v35, %v12847_v10 }
 0xd68   : > { %v4444_v36 = vadd.f32 1e-05, %v4442_v42 }
 0xd6a   : > { %5348 = vrsqrt.f32 %v4444_v36  ;;  %vm4452_vm13 = vweird.f32 %v4444_v36 }
 0xd6d   : > { %v4441_v39 = vpop.xlane.xlu2 %4440 }
 0xd6e   : > { %v4443_v58 = vmul.f32 %v4441_v39, %v12847_v10 }
 0xd70   : > { %v5349_v26 = vpop.eup %5348  ;;  %v4445_v23 = vadd.f32 1e-05, %v4443_v58 }
 0xd71   : > { %v4447_v22 = vmul.f32 %v5349_v26, %v4444_v36  ;;  %vm4453_vm0 = vweird.f32 %v5349_v26 }
 0xd72   : > { %5350 = vrsqrt.f32 %v4445_v23  ;;  %vm4454_vm11 = vmor %vm4452_vm13, %vm4453_vm0  ;;  %vm4462_vm9 = vweird.f32 %v4445_v23 }
 0xd73   : > { %v4448_v18 = vmul.f32 %v5349_v26, %v4447_v22 }
 0xd75   : > { %v4449_v2 = vmul.f32 0.5, %v4448_v18 }
 0xd77   : > { %v4450_v0 = vsub.f32 1.5, %v4449_v2 }
 0xd78   : > { %v5351_v6 = vpop.eup %5350 }
 0xd79   : > { %v4451_v63 = vmul.f32 %v5349_v26, %v4450_v0  ;;  %v4457_v7 = vmul.f32 %v5351_v6, %v4445_v23  ;;  %vm4463_vm12 = vweird.f32 %v5351_v6 }
 0xd7a   : > { %vm4464_vm2 = vmor %vm4462_vm9, %vm4463_vm12 }
 0xd7b   : > { %v4458_v48 = vmul.f32 %v5351_v6, %v4457_v7  ;;  %v4455_v19 = vsel %vm4454_vm11, %v5349_v26, %v4451_v63 }
 0xd7c   : > { %v4466_v59 = vmul.f32 %v4455_v19, %v4428_v27  ;;  %v4467_v47 = vmul.f32 %v4455_v19, %v4429_v14 }
 0xd7d   : > { %v4459_v56 = vmul.f32 0.5, %v4458_v48  ;;  %v4600_v17 = vpop.permute.xlu1 %4599 }
 0xd7e   : > { %vm4470_vm1 = vcmp.ge.f32.partialorder %v4466_v59, 0.0  ;;  %vm4471_vm10 = vcmp.ge.f32.partialorder %v4467_v47, 0.0  ;;  %v4474_v10 = vmul.f32 0.2, %v4466_v59  ;;  %v4475_v32 = vmul.f32 0.2, %v4467_v47 }
 0xd7f   : > { %v4460_v3 = vsub.f32 1.5, %v4459_v56 }
 0xd80   : > { %v4478_v11 = vsel %vm4470_vm1, %v4466_v59, %v4474_v10  ;;  %v4479_v21 = vsel %vm4471_vm10, %v4467_v47, %v4475_v32 }
 0xd81   : > { %v4461_v33 = vmul.f32 %v5351_v6, %v4460_v3  ;;  %v4602_v4 = vmul.f32 %v4595_v1, %v4478_v11  ;;  %v4603_v28 = vmul.f32 %v4595_v1, %v4479_v21 }
 0xd83   : > { %v4606_v38 = vadd.f32 %v10986_v9, %v4602_v4  ;;  %v4607_v20 = vadd.f32 %v10989_v29, %v4603_v28  ;;  %v4465_v41 = vsel %vm4464_vm2, %v5351_v6, %v4461_v33 }
 0xd84   : > { %v4468_v25 = vmul.f32 %v4465_v41, %v11038_v16  ;;  %v4469_v34 = vmul.f32 %v4465_v41, %v4431_v37 }
 0xd85   : > { %4610 = vst [vmem:[%s494_s17] sm:$0xff] %v4606_v38 }
 0xd86   : > { %4611 = vst [vmem:[%s494_s17 + $0x8] sm:$0xff] %v4607_v20  ;;  %vm4472_vm7 = vcmp.ge.f32.partialorder %v4468_v25, 0.0  ;;  %vm4473_vm8 = vcmp.ge.f32.partialorder %v4469_v34, 0.0  ;;  %v4476_v40 = vmul.f32 0.2, %v4468_v25 }
 0xd87   : > { %v4477_v49 = vmul.f32 0.2, %v4469_v34 }
 0xd88   : > { %v4480_v57 = vsel %vm4472_vm7, %v4468_v25, %v4476_v40 }
 0xd89   : > { %v4481_v45 = vsel %vm4473_vm8, %v4469_v34, %v4477_v49  ;;  %v4604_v27 = vmul.f32 %v4600_v17, %v4480_v57 }
 0xd8a   : > { %v4605_v14 = vmul.f32 %v4600_v17, %v4481_v45 }
 0xd8b   : > { %v4608_v24 = vadd.f32 %v10978_v61, %v4604_v27 }
 0xd8c   : > { %v4609_v9 = vadd.f32 %v10981_v53, %v4605_v14 }
 0xd8d   : > { %4612 = vst [vmem:[%s494_s17 + $0x10] sm:$0xff] %v4608_v24 }
 0xd8e   : > { %4613 = vst [vmem:[%s494_s17 + $0x18] sm:$0xff] %v4609_v9 }
 0xd8f PF: > { %s25_s18 = sadd.s32 1, %s5370_s18  }
 0xd90   : > { %p22_p4 = scmp.ge.s32.totalorder %s25_s18, 4  }
 0xd92   :  { %24 = sbr.rel (!%p22_p4) target bundleno = 1 (0x1), region = 110 }

</bundles_post_ra>
